<compile_context>
chip_gen: v7x
topology: tpu7x:2x2x1
jax: 0.10.0
libtpu: 0.0.40
codegen_flags: <defaults>
</compile_context>

<pallas_src>
import functools

import jax
import jax.numpy as jnp
from jax import lax
from jax.experimental import pallas as pl
from jax.experimental.pallas import tpu as pltpu


def _sigmoid(x):
  return 1.0 / (1.0 + jnp.exp(-x))


def _bottleneck_cbam_kernel(
    x_ref, w1_ref, bn1b_ref, w2_ref, bn2b_ref, w3_ref, bn3b_ref,
    wfc1t_ref, wfc2t_ref, wsa_ref,
    out_ref,
    y1pad_ref, y3_ref, sapad_ref, sa_ref,
    *, rows_per_chunk):
  H, W, C4 = y3_ref.shape
  P = y1pad_ref.shape[-1]
  HW = H * W
  R = rows_per_chunk
  n_chunks = H // R
  Cin = x_ref.shape[-1]

  # ---- zero only the pad halos (every step: scratch is per-core, so a
  #      program_id(0)==0 guard would be unsafe with a "parallel" batch axis) ----
  y1pad_ref[0] = jnp.zeros((W + 2, P), jnp.float32)
  y1pad_ref[H + 1] = jnp.zeros((W + 2, P), jnp.float32)
  y1pad_ref[1:H + 1, 0:1, :] = jnp.zeros((H, 1, P), jnp.float32)
  y1pad_ref[1:H + 1, W + 1:W + 2, :] = jnp.zeros((H, 1, P), jnp.float32)
  sapad_ref[:, 0:3, :] = jnp.zeros((2, 3, W + 6), jnp.float32)
  sapad_ref[:, H + 3:H + 6, :] = jnp.zeros((2, 3, W + 6), jnp.float32)
  sapad_ref[:, 3:H + 3, 0:3] = jnp.zeros((2, H, 3), jnp.float32)
  sapad_ref[:, 3:H + 3, W + 3:W + 6] = jnp.zeros((2, H, 3), jnp.float32)

  # ---- conv1 (1x1, bn1 scale folded into w1) + bias + relu: one whole-image matmul ----
  x2d = x_ref[0].reshape(HW, Cin)                                  # (HW, Cin)
  y1 = jnp.dot(x2d, w1_ref[...], preferred_element_type=jnp.float32) + bn1b_ref[...]
  y1 = jnp.maximum(y1, 0.0)                                        # (HW, P)
  y1pad_ref[1:H + 1, 1:W + 1, :] = y1.reshape(H, W, P)

  # ---- conv2 (3x3, pad 1) as 9 per-tap whole-image matmuls + bn2 bias + relu ----
  acc = jnp.zeros((HW, P), jnp.float32)
  for dy in range(3):
    for dx in range(3):
      tap = y1pad_ref[dy:dy + H, dx:dx + W, :].reshape(HW, P)
      acc = acc + jnp.dot(tap, w2_ref[dy, dx],
                          preferred_element_type=jnp.float32)
  y2 = jnp.maximum(acc + bn2b_ref[...], 0.0)                       # (HW, P)

  # ---- conv3 (1x1, bn3 scale folded) + bias: one whole-image matmul ----
  y3f = (jnp.dot(y2, w3_ref[...], preferred_element_type=jnp.float32)
         + bn3b_ref[...])                                          # (HW, C4)

  # ---- channel attention: avg/max pool -> shared MLP as two small MXU matmuls ----
  pooled = jnp.concatenate(
      [jnp.mean(y3f, axis=0, keepdims=True),
       jnp.max(y3f, axis=0, keepdims=True)], axis=0)               # (2, C4)
  hidden = jnp.maximum(
      jnp.dot(pooled, wfc1t_ref[...], preferred_element_type=jnp.float32), 0.0)
  ca2 = jnp.dot(hidden, wfc2t_ref[...], preferred_element_type=jnp.float32)  # (2, C4)
  ca = _sigmoid(ca2[0:1, :] + ca2[1:2, :])                         # (1, C4)

  y3_ref[...] = y3f.reshape(H, W, C4)

  # ---- spatial attention input maps (channel mean/max of ca*y3), streamed ----
  def sa_maps_chunk(r, carry):
    h0 = r * R
    y3c = y3_ref[pl.ds(h0, R)] * ca                                # (R, W, C4)
    sapad_ref[0, pl.ds(h0 + 3, R), 3:W + 3] = jnp.mean(y3c, axis=-1)
    sapad_ref[1, pl.ds(h0 + 3, R), 3:W + 3] = jnp.max(y3c, axis=-1)
    return carry
  lax.fori_loop(0, n_chunks, sa_maps_chunk, 0, unroll=True)

  # ---- 7x7 spatial-attention conv (scalar weights from SMEM), lane-dense (H, W) ----
  sa_acc = jnp.zeros((H, W), jnp.float32)
  for c in range(2):
    for ky in range(7):
      for kx in range(7):
        wscal = wsa_ref[c * 49 + ky * 7 + kx]
        sa_acc = sa_acc + wscal * sapad_ref[c, ky:ky + H, kx:kx + W]
  sa_ref[...] = _sigmoid(sa_acc)                                   # (H, W)

  # ---- CA/SA scaling + residual add + relu, streamed in row chunks into out_ref ----
  def out_chunk(r, carry):
    h0 = r * R
    y3c = y3_ref[pl.ds(h0, R)] * ca                                # (R, W, C4)
    sa_c = sa_ref[pl.ds(h0, R)]                                    # (R, W)
    res = x_ref[0, pl.ds(h0, R)]                                   # (R, W, C4)
    out = jnp.maximum(y3c * sa_c[:, :, None] + res, 0.0)
    out_ref[0, pl.ds(h0, R)] = out.astype(out_ref.dtype)
    return carry
  lax.fori_loop(0, n_chunks, out_chunk, 0, unroll=True)


def bottleneck_cbam_pallas(x_nchw, params):
  N, Cin, H, W = x_nchw.shape
  P = params["w1"].shape[1]
  C4 = params["w3"].shape[1]
  assert Cin == C4, "downsample=None requires inplanes == planes*4"
  # TODO(synk): keep NHWC end-to-end in the surrounding model to drop these transposes.
  x = jnp.transpose(x_nchw, (0, 2, 3, 1)).astype(jnp.float32)      # NHWC

  rows = next(r for r in (8, 4, 2, 1) if H % r == 0)

  def img_map(n):
    return (n, 0, 0, 0)

  def full_map(ndim):
    return lambda n: (0,) * ndim

  weight_names = ["w1", "bn1b", "w2", "bn2b", "w3", "bn3b", "wfc1t", "wfc2t"]
  weight_args, weight_specs = [], []
  for name in weight_names:
    a = params[name]
    weight_args.append(a)
    weight_specs.append(pl.BlockSpec(a.shape, full_map(a.ndim)))
  wsa = params["wsa"]
  weight_args.append(wsa)
  weight_specs.append(pl.BlockSpec(wsa.shape, full_map(wsa.ndim),
                                   memory_space=pltpu.MemorySpace.SMEM))

  grid_spec = pltpu.PrefetchScalarGridSpec(
      num_scalar_prefetch=0,
      grid=(N,),
      in_specs=[pl.BlockSpec((1, H, W, Cin), img_map)] + weight_specs,
      out_specs=pl.BlockSpec((1, H, W, C4), img_map),
      scratch_shapes=[
          pltpu.VMEM((H + 2, W + 2, P), jnp.float32),   # padded conv1 output
          pltpu.VMEM((H, W, C4), jnp.float32),          # conv3 (+bn3 bias) output
          pltpu.VMEM((2, H + 6, W + 6), jnp.float32),   # padded SA mean/max maps
          pltpu.VMEM((H, W), jnp.float32),              # spatial attention mask
      ])

  kernel = functools.partial(_bottleneck_cbam_kernel, rows_per_chunk=rows)
  out_nhwc = pl.pallas_call(
      kernel,
      out_shape=jax.ShapeDtypeStruct((N, H, W, C4), jnp.float32),
      grid_spec=grid_spec,
      compiler_params=pltpu.CompilerParams(
          dimension_semantics=("parallel",)),           # batch elems independent
  )(x, *weight_args)
  return jnp.transpose(out_nhwc, (0, 3, 1, 2))          # back to NCHW


def init_params(key, inplanes, planes):
  C4 = planes * 4
  assert C4 >= 16, "ChannelAttention fc uses in_planes // 16"
  Cred = C4 // 16
  ks = jax.random.split(key, 20)
  kit = iter(ks)

  def conv_w(o, i, kh, kw):
    fan_in = i * kh * kw
    return (jax.random.normal(next(kit), (o, i, kh, kw), jnp.float32)
            / jnp.sqrt(float(fan_in)))

  def bn_fold(c):
    gamma = 1.0 + 0.1 * jax.random.normal(next(kit), (c,), jnp.float32)
    beta = 0.1 * jax.random.normal(next(kit), (c,), jnp.float32)
    mean = 0.1 * jax.random.normal(next(kit), (c,), jnp.float32)
    var = 1.0 + 0.1 * jax.random.uniform(next(kit), (c,), jnp.float32)
    scale = gamma / jnp.sqrt(var + 1e-5)
    bias = beta - mean * scale
    return scale, bias

  w1 = conv_w(planes, inplanes, 1, 1)
  w2 = conv_w(planes, planes, 3, 3)
  w3 = conv_w(C4, planes, 1, 1)
  wfc1 = conv_w(Cred, C4, 1, 1)
  wfc2 = conv_w(C4, Cred, 1, 1)
  wsa = conv_w(1, 2, 7, 7)
  bn1_s, bn1_b = bn_fold(planes)
  bn2_s, bn2_b = bn_fold(planes)
  bn3_s, bn3_b = bn_fold(C4)

  return {
      # kernel-layout weights (BN scales folded into conv output channels)
      "w1": (w1[:, :, 0, 0] * bn1_s[:, None]).T,                           # (Cin, P)
      "w2": jnp.transpose(w2 * bn2_s[:, None, None, None], (2, 3, 1, 0)),  # (3,3,P,P)
      "w3": (w3[:, :, 0, 0] * bn3_s[:, None]).T,                           # (P, C4)
      "wfc1t": wfc1[:, :, 0, 0].T,                                         # (C4, Cred)
      "wfc2t": wfc2[:, :, 0, 0].T,                                         # (Cred, C4)
      "wsa": wsa[0].reshape(-1),                                           # (98,) [c,ky,kx]
      "bn1b": bn1_b[None, :], "bn2b": bn2_b[None, :], "bn3b": bn3_b[None, :],
      # OIHW / vector copies for the pure-JAX reference
      "w1_oihw": w1, "w2_oihw": w2, "w3_oihw": w3,
      "wfc1_oihw": wfc1, "wfc2_oihw": wfc2, "wsa_oihw": wsa,
      "bn1_scale": bn1_s, "bn1_bias": bn1_b,
      "bn2_scale": bn2_s, "bn2_bias": bn2_b,
      "bn3_scale": bn3_s, "bn3_bias": bn3_b,
  }


def reference_forward(x, p):
  def conv(v, w, pad):
    return jax.lax.conv_general_dilated(
        v, w, (1, 1), [(pad, pad), (pad, pad)],
        dimension_numbers=("NCHW", "OIHW", "NCHW"))

  def bn(v, s, b):
    return v * s[None, :, None, None] + b[None, :, None, None]

  relu = lambda v: jnp.maximum(v, 0.0)
  out = relu(bn(conv(x, p["w1_oihw"], 0), p["bn1_scale"], p["bn1_bias"]))
  out = relu(bn(conv(out, p["w2_oihw"], 1), p["bn2_scale"], p["bn2_bias"]))
  out = bn(conv(out, p["w3_oihw"], 0), p["bn3_scale"], p["bn3_bias"])
  avg = jnp.mean(out, axis=(2, 3), keepdims=True)
  mx = jnp.max(out, axis=(2, 3), keepdims=True)
  fc = lambda v: conv(relu(conv(v, p["wfc1_oihw"], 0)), p["wfc2_oihw"], 0)
  out = jax.nn.sigmoid(fc(avg) + fc(mx)) * out
  avg_c = jnp.mean(out, axis=1, keepdims=True)
  max_c = jnp.max(out, axis=1, keepdims=True)
  sa = jax.nn.sigmoid(conv(jnp.concatenate([avg_c, max_c], axis=1),
                           p["wsa_oihw"], 3))
  out = sa * out
  return relu(out + x)


if __name__ == "__main__":
  key = jax.random.PRNGKey(0)
  kx, kp = jax.random.split(key)
  planes = 4
  inplanes = planes * 4        # downsample=None => residual requires this
  N, H, W = 2, 16, 16
  x = jax.random.normal(kx, (N, inplanes, H, W), jnp.float32)
  params = init_params(kp, inplanes, planes)

  out = bottleneck_cbam_pallas(x, params)
  out = jax.block_until_ready(out)
  assert out.shape == (N, planes * 4, H, W)

  ref = reference_forward(x, params)
  err = float(jnp.max(jnp.abs(out - ref)))
  assert err < 1e-2, f"max abs error vs reference: {err}"
  print("KERNEL_OK")
</pallas_src>

<mosaic_0001>
module attributes {stable_mosaic.version = 11 : i64} {
  func.func @_bottleneck_cbam_kernel(%arg0: i32, %arg1: memref<1x16x16x16xf32, #tpu.memory_space<vmem>>, %arg2: memref<16x4xf32, #tpu.memory_space<vmem>>, %arg3: memref<1x4xf32, #tpu.memory_space<vmem>>, %arg4: memref<3x3x4x4xf32, #tpu.memory_space<vmem>>, %arg5: memref<1x4xf32, #tpu.memory_space<vmem>>, %arg6: memref<4x16xf32, #tpu.memory_space<vmem>>, %arg7: memref<1x16xf32, #tpu.memory_space<vmem>>, %arg8: memref<16x1xf32, #tpu.memory_space<vmem>>, %arg9: memref<1x16xf32, #tpu.memory_space<vmem>>, %arg10: memref<98xf32, #tpu.memory_space<smem>>, %arg11: memref<1x16x16x16xf32, #tpu.memory_space<vmem>>, %arg12: memref<18x18x4xf32, #tpu.memory_space<vmem>>, %arg13: memref<16x16x16xf32, #tpu.memory_space<vmem>>, %arg14: memref<2x22x22xf32, #tpu.memory_space<vmem>>, %arg15: memref<16x16xf32, #tpu.memory_space<vmem>>) attributes {dimension_semantics = [#tpu.dimension_semantics<parallel>], iteration_bounds = array<i64: 2>, scalar_prefetch = 0 : i64, scratch_operands = 4 : i64, tpu.core_type = #tpu.core_type<tc>, window_params = [{transform_indices = @transform_0, window_bounds = array<i64: 1, 16, 16, 16>}, {pipeline_mode = #tpu.pipeline_mode<synchronous>, transform_indices = @transform_1, window_bounds = array<i64: 16, 4>}, {pipeline_mode = #tpu.pipeline_mode<synchronous>, transform_indices = @transform_2, window_bounds = array<i64: 1, 4>}, {pipeline_mode = #tpu.pipeline_mode<synchronous>, transform_indices = @transform_3, window_bounds = array<i64: 3, 3, 4, 4>}, {pipeline_mode = #tpu.pipeline_mode<synchronous>, transform_indices = @transform_4, window_bounds = array<i64: 1, 4>}, {pipeline_mode = #tpu.pipeline_mode<synchronous>, transform_indices = @transform_5, window_bounds = array<i64: 4, 16>}, {pipeline_mode = #tpu.pipeline_mode<synchronous>, transform_indices = @transform_6, window_bounds = array<i64: 1, 16>}, {pipeline_mode = #tpu.pipeline_mode<synchronous>, transform_indices = @transform_7, window_bounds = array<i64: 16, 1>}, {pipeline_mode = #tpu.pipeline_mode<synchronous>, transform_indices = @transform_8, window_bounds = array<i64: 1, 16>}, {transform_indices = @transform_9, window_bounds = array<i64: 98>}, {transform_indices = @transform_10, window_bounds = array<i64: 1, 16, 16, 16>}]} {
    %cst = arith.constant 0.000000e+00 : f32
    %0 = vector.broadcast %cst : f32 to vector<18x4xf32>
    %c0 = arith.constant 0 : index
    %c0_0 = arith.constant 0 : index
    %c0_1 = arith.constant 0 : index
    %1 = vector.load %arg12[%c0, %c0_0, %c0_1] : memref<18x18x4xf32, #tpu.memory_space<vmem>>, vector<1x18x4xf32>
    %2 = vector.shape_cast %1 : vector<1x18x4xf32> to vector<18x4xf32>
    %3 = vector.shape_cast %0 : vector<18x4xf32> to vector<1x18x4xf32>
    tpu.vector_store %arg12[%c0, %c0_0, %c0_1], %3 {strides = array<i32>} : memref<18x18x4xf32, #tpu.memory_space<vmem>>, vector<1x18x4xf32>,
    %cst_2 = arith.constant 0.000000e+00 : f32
    %4 = vector.broadcast %cst_2 : f32 to vector<18x4xf32>
    %c17 = arith.constant 17 : index
    %c0_3 = arith.constant 0 : index
    %c0_4 = arith.constant 0 : index
    %5 = vector.load %arg12[%c17, %c0_3, %c0_4] : memref<18x18x4xf32, #tpu.memory_space<vmem>>, vector<1x18x4xf32>
    %6 = vector.shape_cast %5 : vector<1x18x4xf32> to vector<18x4xf32>
    %7 = vector.shape_cast %4 : vector<18x4xf32> to vector<1x18x4xf32>
    tpu.vector_store %arg12[%c17, %c0_3, %c0_4], %7 {strides = array<i32>} : memref<18x18x4xf32, #tpu.memory_space<vmem>>, vector<1x18x4xf32>,
    %cst_5 = arith.constant 0.000000e+00 : f32
    %8 = vector.broadcast %cst_5 : f32 to vector<16x1x4xf32>
    %c1 = arith.constant 1 : index
    %c0_6 = arith.constant 0 : index
    %c0_7 = arith.constant 0 : index
    %9 = vector.load %arg12[%c1, %c0_6, %c0_7] : memref<18x18x4xf32, #tpu.memory_space<vmem>>, vector<16x1x4xf32>
    tpu.vector_store %arg12[%c1, %c0_6, %c0_7], %8 {strides = array<i32>} : memref<18x18x4xf32, #tpu.memory_space<vmem>>, vector<16x1x4xf32>,
    %cst_8 = arith.constant 0.000000e+00 : f32
    %10 = vector.broadcast %cst_8 : f32 to vector<16x1x4xf32>
    %c1_9 = arith.constant 1 : index
    %c17_10 = arith.constant 17 : index
    %c0_11 = arith.constant 0 : index
    %11 = vector.load %arg12[%c1_9, %c17_10, %c0_11] : memref<18x18x4xf32, #tpu.memory_space<vmem>>, vector<16x1x4xf32>
    tpu.vector_store %arg12[%c1_9, %c17_10, %c0_11], %10 {strides = array<i32>} : memref<18x18x4xf32, #tpu.memory_space<vmem>>, vector<16x1x4xf32>,
    %cst_12 = arith.constant 0.000000e+00 : f32
    %12 = vector.broadcast %cst_12 : f32 to vector<2x3x22xf32>
    %c0_13 = arith.constant 0 : index
    %c0_14 = arith.constant 0 : index
    %c0_15 = arith.constant 0 : index
    %13 = vector.load %arg14[%c0_13, %c0_14, %c0_15] : memref<2x22x22xf32, #tpu.memory_space<vmem>>, vector<2x3x22xf32>
    tpu.vector_store %arg14[%c0_13, %c0_14, %c0_15], %12 {strides = array<i32>} : memref<2x22x22xf32, #tpu.memory_space<vmem>>, vector<2x3x22xf32>,
    %cst_16 = arith.constant 0.000000e+00 : f32
    %14 = vector.broadcast %cst_16 : f32 to vector<2x3x22xf32>
    %c0_17 = arith.constant 0 : index
    %c19 = arith.constant 19 : index
    %c0_18 = arith.constant 0 : index
    %15 = vector.load %arg14[%c0_17, %c19, %c0_18] : memref<2x22x22xf32, #tpu.memory_space<vmem>>, vector<2x3x22xf32>
    tpu.vector_store %arg14[%c0_17, %c19, %c0_18], %14 {strides = array<i32>} : memref<2x22x22xf32, #tpu.memory_space<vmem>>, vector<2x3x22xf32>,
    %cst_19 = arith.constant 0.000000e+00 : f32
    %16 = vector.broadcast %cst_19 : f32 to vector<2x16x3xf32>
    %c0_20 = arith.constant 0 : index
    %c3 = arith.constant 3 : index
    %c0_21 = arith.constant 0 : index
    %17 = vector.load %arg14[%c0_20, %c3, %c0_21] : memref<2x22x22xf32, #tpu.memory_space<vmem>>, vector<2x16x3xf32>
    tpu.vector_store %arg14[%c0_20, %c3, %c0_21], %16 {strides = array<i32>} : memref<2x22x22xf32, #tpu.memory_space<vmem>>, vector<2x16x3xf32>,
    %cst_22 = arith.constant 0.000000e+00 : f32
    %18 = vector.broadcast %cst_22 : f32 to vector<2x16x3xf32>
    %c0_23 = arith.constant 0 : index
    %c3_24 = arith.constant 3 : index
    %c19_25 = arith.constant 19 : index
    %19 = vector.load %arg14[%c0_23, %c3_24, %c19_25] : memref<2x22x22xf32, #tpu.memory_space<vmem>>, vector<2x16x3xf32>
    tpu.vector_store %arg14[%c0_23, %c3_24, %c19_25], %18 {strides = array<i32>} : memref<2x22x22xf32, #tpu.memory_space<vmem>>, vector<2x16x3xf32>,
    %c0_26 = arith.constant 0 : index
    %c0_27 = arith.constant 0 : index
    %c0_28 = arith.constant 0 : index
    %c0_29 = arith.constant 0 : index
    %20 = vector.load %arg1[%c0_26, %c0_27, %c0_28, %c0_29] : memref<1x16x16x16xf32, #tpu.memory_space<vmem>>, vector<1x16x16x16xf32>
    %21 = vector.shape_cast %20 : vector<1x16x16x16xf32> to vector<16x16x16xf32>
    %22 = vector.shape_cast %21 : vector<16x16x16xf32> to vector<256x16xf32>
    %c0_30 = arith.constant 0 : index
    %c0_31 = arith.constant 0 : index
    %23 = vector.load %arg2[%c0_30, %c0_31] : memref<16x4xf32, #tpu.memory_space<vmem>>, vector<16x4xf32>
    %cst_32 = arith.constant dense<0.000000e+00> : vector<256x4xf32>
    %24 = tpu.matmul %22, %23, %cst_32 {dimension_numbers = #tpu.dot_dimension_numbers<[1], [0], [0], [1], [0, 0, 1, 1], [], []>} : vector<256x16xf32>, vector<16x4xf32>, vector<256x4xf32> -> vector<256x4xf32>
    %c0_33 = arith.constant 0 : index
    %c0_34 = arith.constant 0 : index
    %25 = vector.load %arg3[%c0_33, %c0_34] : memref<1x4xf32, #tpu.memory_space<vmem>>, vector<1x4xf32>
    %26 = vector.broadcast %25 : vector<1x4xf32> to vector<256x4xf32>
    %27 = arith.addf %24, %26 : vector<256x4xf32>
    %cst_35 = arith.constant 0.000000e+00 : f32
    %28 = vector.broadcast %cst_35 : f32 to vector<256x4xf32>
    %29 = arith.maximumf %27, %28 : vector<256x4xf32>
    %30 = vector.shape_cast %29 : vector<256x4xf32> to vector<16x16x4xf32>
    %c1_36 = arith.constant 1 : index
    %c1_37 = arith.constant 1 : index
    %c0_38 = arith.constant 0 : index
    %31 = vector.load %arg12[%c1_36, %c1_37, %c0_38] : memref<18x18x4xf32, #tpu.memory_space<vmem>>, vector<16x16x4xf32>
    tpu.vector_store %arg12[%c1_36, %c1_37, %c0_38], %30 {strides = array<i32>} : memref<18x18x4xf32, #tpu.memory_space<vmem>>, vector<16x16x4xf32>,
    %cst_39 = arith.constant 0.000000e+00 : f32
    %32 = vector.broadcast %cst_39 : f32 to vector<256x4xf32>
    %c0_40 = arith.constant 0 : index
    %c0_41 = arith.constant 0 : index
    %c0_42 = arith.constant 0 : index
    %33 = vector.load %arg12[%c0_40, %c0_41, %c0_42] : memref<18x18x4xf32, #tpu.memory_space<vmem>>, vector<16x16x4xf32>
    %34 = vector.shape_cast %33 : vector<16x16x4xf32> to vector<256x4xf32>
    %c0_43 = arith.constant 0 : index
    %c0_44 = arith.constant 0 : index
    %c0_45 = arith.constant 0 : index
    %c0_46 = arith.constant 0 : index
    %35 = vector.load %arg4[%c0_43, %c0_44, %c0_45, %c0_46] : memref<3x3x4x4xf32, #tpu.memory_space<vmem>>, vector<1x1x4x4xf32>
    %36 = vector.shape_cast %35 : vector<1x1x4x4xf32> to vector<4x4xf32>
    %cst_47 = arith.constant dense<0.000000e+00> : vector<256x4xf32>
    %37 = tpu.matmul %34, %36, %cst_47 {dimension_numbers = #tpu.dot_dimension_numbers<[1], [0], [0], [1], [0, 0, 1, 1], [], []>} : vector<256x4xf32>, vector<4x4xf32>, vector<256x4xf32> -> vector<256x4xf32>
    %38 = arith.addf %32, %37 : vector<256x4xf32>
    %c0_48 = arith.constant 0 : index
    %c1_49 = arith.constant 1 : index
    %c0_50 = arith.constant 0 : index
    %39 = vector.load %arg12[%c0_48, %c1_49, %c0_50] : memref<18x18x4xf32, #tpu.memory_space<vmem>>, vector<16x16x4xf32>
    %40 = vector.shape_cast %39 : vector<16x16x4xf32> to vector<256x4xf32>
    %c0_51 = arith.constant 0 : index
    %c1_52 = arith.constant 1 : index
    %c0_53 = arith.constant 0 : index
    %c0_54 = arith.constant 0 : index
    %41 = vector.load %arg4[%c0_51, %c1_52, %c0_53, %c0_54] : memref<3x3x4x4xf32, #tpu.memory_space<vmem>>, vector<1x1x4x4xf32>
    %42 = vector.shape_cast %41 : vector<1x1x4x4xf32> to vector<4x4xf32>
    %cst_55 = arith.constant dense<0.000000e+00> : vector<256x4xf32>
    %43 = tpu.matmul %40, %42, %cst_55 {dimension_numbers = #tpu.dot_dimension_numbers<[1], [0], [0], [1], [0, 0, 1, 1], [], []>} : vector<256x4xf32>, vector<4x4xf32>, vector<256x4xf32> -> vector<256x4xf32>
    %44 = arith.addf %38, %43 : vector<256x4xf32>
    %c0_56 = arith.constant 0 : index
    %c2 = arith.constant 2 : index
    %c0_57 = arith.constant 0 : index
    %45 = vector.load %arg12[%c0_56, %c2, %c0_57] : memref<18x18x4xf32, #tpu.memory_space<vmem>>, vector<16x16x4xf32>
    %46 = vector.shape_cast %45 : vector<16x16x4xf32> to vector<256x4xf32>
    %c0_58 = arith.constant 0 : index
    %c2_59 = arith.constant 2 : index
    %c0_60 = arith.constant 0 : index
    %c0_61 = arith.constant 0 : index
    %47 = vector.load %arg4[%c0_58, %c2_59, %c0_60, %c0_61] : memref<3x3x4x4xf32, #tpu.memory_space<vmem>>, vector<1x1x4x4xf32>
    %48 = vector.shape_cast %47 : vector<1x1x4x4xf32> to vector<4x4xf32>
    %cst_62 = arith.constant dense<0.000000e+00> : vector<256x4xf32>
    %49 = tpu.matmul %46, %48, %cst_62 {dimension_numbers = #tpu.dot_dimension_numbers<[1], [0], [0], [1], [0, 0, 1, 1], [], []>} : vector<256x4xf32>, vector<4x4xf32>, vector<256x4xf32> -> vector<256x4xf32>
    %50 = arith.addf %44, %49 : vector<256x4xf32>
    %c1_63 = arith.constant 1 : index
    %c0_64 = arith.constant 0 : index
    %c0_65 = arith.constant 0 : index
    %51 = vector.load %arg12[%c1_63, %c0_64, %c0_65] : memref<18x18x4xf32, #tpu.memory_space<vmem>>, vector<16x16x4xf32>
    %52 = vector.shape_cast %51 : vector<16x16x4xf32> to vector<256x4xf32>
    %c1_66 = arith.constant 1 : index
    %c0_67 = arith.constant 0 : index
    %c0_68 = arith.constant 0 : index
    %c0_69 = arith.constant 0 : index
    %53 = vector.load %arg4[%c1_66, %c0_67, %c0_68, %c0_69] : memref<3x3x4x4xf32, #tpu.memory_space<vmem>>, vector<1x1x4x4xf32>
    %54 = vector.shape_cast %53 : vector<1x1x4x4xf32> to vector<4x4xf32>
    %cst_70 = arith.constant dense<0.000000e+00> : vector<256x4xf32>
    %55 = tpu.matmul %52, %54, %cst_70 {dimension_numbers = #tpu.dot_dimension_numbers<[1], [0], [0], [1], [0, 0, 1, 1], [], []>} : vector<256x4xf32>, vector<4x4xf32>, vector<256x4xf32> -> vector<256x4xf32>
    %56 = arith.addf %50, %55 : vector<256x4xf32>
    %c1_71 = arith.constant 1 : index
    %c1_72 = arith.constant 1 : index
    %c0_73 = arith.constant 0 : index
    %57 = vector.load %arg12[%c1_71, %c1_72, %c0_73] : memref<18x18x4xf32, #tpu.memory_space<vmem>>, vector<16x16x4xf32>
    %58 = vector.shape_cast %57 : vector<16x16x4xf32> to vector<256x4xf32>
    %c1_74 = arith.constant 1 : index
    %c1_75 = arith.constant 1 : index
    %c0_76 = arith.constant 0 : index
    %c0_77 = arith.constant 0 : index
    %59 = vector.load %arg4[%c1_74, %c1_75, %c0_76, %c0_77] : memref<3x3x4x4xf32, #tpu.memory_space<vmem>>, vector<1x1x4x4xf32>
    %60 = vector.shape_cast %59 : vector<1x1x4x4xf32> to vector<4x4xf32>
    %cst_78 = arith.constant dense<0.000000e+00> : vector<256x4xf32>
    %61 = tpu.matmul %58, %60, %cst_78 {dimension_numbers = #tpu.dot_dimension_numbers<[1], [0], [0], [1], [0, 0, 1, 1], [], []>} : vector<256x4xf32>, vector<4x4xf32>, vector<256x4xf32> -> vector<256x4xf32>
    %62 = arith.addf %56, %61 : vector<256x4xf32>
    %c1_79 = arith.constant 1 : index
    %c2_80 = arith.constant 2 : index
    %c0_81 = arith.constant 0 : index
    %63 = vector.load %arg12[%c1_79, %c2_80, %c0_81] : memref<18x18x4xf32, #tpu.memory_space<vmem>>, vector<16x16x4xf32>
    %64 = vector.shape_cast %63 : vector<16x16x4xf32> to vector<256x4xf32>
    %c1_82 = arith.constant 1 : index
    %c2_83 = arith.constant 2 : index
    %c0_84 = arith.constant 0 : index
    %c0_85 = arith.constant 0 : index
    %65 = vector.load %arg4[%c1_82, %c2_83, %c0_84, %c0_85] : memref<3x3x4x4xf32, #tpu.memory_space<vmem>>, vector<1x1x4x4xf32>
    %66 = vector.shape_cast %65 : vector<1x1x4x4xf32> to vector<4x4xf32>
    %cst_86 = arith.constant dense<0.000000e+00> : vector<256x4xf32>
    %67 = tpu.matmul %64, %66, %cst_86 {dimension_numbers = #tpu.dot_dimension_numbers<[1], [0], [0], [1], [0, 0, 1, 1], [], []>} : vector<256x4xf32>, vector<4x4xf32>, vector<256x4xf32> -> vector<256x4xf32>
    %68 = arith.addf %62, %67 : vector<256x4xf32>
    %c2_87 = arith.constant 2 : index
    %c0_88 = arith.constant 0 : index
    %c0_89 = arith.constant 0 : index
    %69 = vector.load %arg12[%c2_87, %c0_88, %c0_89] : memref<18x18x4xf32, #tpu.memory_space<vmem>>, vector<16x16x4xf32>
    %70 = vector.shape_cast %69 : vector<16x16x4xf32> to vector<256x4xf32>
    %c2_90 = arith.constant 2 : index
    %c0_91 = arith.constant 0 : index
    %c0_92 = arith.constant 0 : index
    %c0_93 = arith.constant 0 : index
    %71 = vector.load %arg4[%c2_90, %c0_91, %c0_92, %c0_93] : memref<3x3x4x4xf32, #tpu.memory_space<vmem>>, vector<1x1x4x4xf32>
    %72 = vector.shape_cast %71 : vector<1x1x4x4xf32> to vector<4x4xf32>
    %cst_94 = arith.constant dense<0.000000e+00> : vector<256x4xf32>
    %73 = tpu.matmul %70, %72, %cst_94 {dimension_numbers = #tpu.dot_dimension_numbers<[1], [0], [0], [1], [0, 0, 1, 1], [], []>} : vector<256x4xf32>, vector<4x4xf32>, vector<256x4xf32> -> vector<256x4xf32>
    %74 = arith.addf %68, %73 : vector<256x4xf32>
    %c2_95 = arith.constant 2 : index
    %c1_96 = arith.constant 1 : index
    %c0_97 = arith.constant 0 : index
    %75 = vector.load %arg12[%c2_95, %c1_96, %c0_97] : memref<18x18x4xf32, #tpu.memory_space<vmem>>, vector<16x16x4xf32>
    %76 = vector.shape_cast %75 : vector<16x16x4xf32> to vector<256x4xf32>
    %c2_98 = arith.constant 2 : index
    %c1_99 = arith.constant 1 : index
    %c0_100 = arith.constant 0 : index
    %c0_101 = arith.constant 0 : index
    %77 = vector.load %arg4[%c2_98, %c1_99, %c0_100, %c0_101] : memref<3x3x4x4xf32, #tpu.memory_space<vmem>>, vector<1x1x4x4xf32>
    %78 = vector.shape_cast %77 : vector<1x1x4x4xf32> to vector<4x4xf32>
    %cst_102 = arith.constant dense<0.000000e+00> : vector<256x4xf32>
    %79 = tpu.matmul %76, %78, %cst_102 {dimension_numbers = #tpu.dot_dimension_numbers<[1], [0], [0], [1], [0, 0, 1, 1], [], []>} : vector<256x4xf32>, vector<4x4xf32>, vector<256x4xf32> -> vector<256x4xf32>
    %80 = arith.addf %74, %79 : vector<256x4xf32>
    %c2_103 = arith.constant 2 : index
    %c2_104 = arith.constant 2 : index
    %c0_105 = arith.constant 0 : index
    %81 = vector.load %arg12[%c2_103, %c2_104, %c0_105] : memref<18x18x4xf32, #tpu.memory_space<vmem>>, vector<16x16x4xf32>
    %82 = vector.shape_cast %81 : vector<16x16x4xf32> to vector<256x4xf32>
    %c2_106 = arith.constant 2 : index
    %c2_107 = arith.constant 2 : index
    %c0_108 = arith.constant 0 : index
    %c0_109 = arith.constant 0 : index
    %83 = vector.load %arg4[%c2_106, %c2_107, %c0_108, %c0_109] : memref<3x3x4x4xf32, #tpu.memory_space<vmem>>, vector<1x1x4x4xf32>
    %84 = vector.shape_cast %83 : vector<1x1x4x4xf32> to vector<4x4xf32>
    %cst_110 = arith.constant dense<0.000000e+00> : vector<256x4xf32>
    %85 = tpu.matmul %82, %84, %cst_110 {dimension_numbers = #tpu.dot_dimension_numbers<[1], [0], [0], [1], [0, 0, 1, 1], [], []>} : vector<256x4xf32>, vector<4x4xf32>, vector<256x4xf32> -> vector<256x4xf32>
    %86 = arith.addf %80, %85 : vector<256x4xf32>
    %c0_111 = arith.constant 0 : index
    %c0_112 = arith.constant 0 : index
    %87 = vector.load %arg5[%c0_111, %c0_112] : memref<1x4xf32, #tpu.memory_space<vmem>>, vector<1x4xf32>
    %88 = vector.broadcast %87 : vector<1x4xf32> to vector<256x4xf32>
    %89 = arith.addf %86, %88 : vector<256x4xf32>
    %cst_113 = arith.constant 0.000000e+00 : f32
    %90 = vector.broadcast %cst_113 : f32 to vector<256x4xf32>
    %91 = arith.maximumf %89, %90 : vector<256x4xf32>
    %c0_114 = arith.constant 0 : index
    %c0_115 = arith.constant 0 : index
    %92 = vector.load %arg6[%c0_114, %c0_115] : memref<4x16xf32, #tpu.memory_space<vmem>>, vector<4x16xf32>
    %cst_116 = arith.constant dense<0.000000e+00> : vector<256x16xf32>
    %93 = tpu.matmul %91, %92, %cst_116 {dimension_numbers = #tpu.dot_dimension_numbers<[1], [0], [0], [1], [0, 0, 1, 1], [], []>} : vector<256x4xf32>, vector<4x16xf32>, vector<256x16xf32> -> vector<256x16xf32>
    %c0_117 = arith.constant 0 : index
    %c0_118 = arith.constant 0 : index
    %94 = vector.load %arg7[%c0_117, %c0_118] : memref<1x16xf32, #tpu.memory_space<vmem>>, vector<1x16xf32>
    %95 = vector.broadcast %94 : vector<1x16xf32> to vector<256x16xf32>
    %96 = arith.addf %93, %95 : vector<256x16xf32>
    %cst_119 = arith.constant dense<0.000000e+00> : vector<16xf32>
    %97 = vector.multi_reduction <add>, %96, %cst_119 [0] : vector<256x16xf32> to vector<16xf32>
    %98 = vector.shape_cast %97 : vector<16xf32> to vector<1x16xf32>
    %cst_120 = arith.constant 2.560000e+02 : f32
    %99 = vector.broadcast %cst_120 : f32 to vector<1x16xf32>
    %100 = arith.divf %98, %99 : vector<1x16xf32>
    %cst_121 = arith.constant dense<0xFF800000> : vector<16xf32>
    %101 = vector.multi_reduction <maximumf>, %96, %cst_121 [0] : vector<256x16xf32> to vector<16xf32>
    %102 = vector.shape_cast %101 : vector<16xf32> to vector<1x16xf32>
    %103 = tpu.concatenate %100, %102 in 0 : vector<1x16xf32>, vector<1x16xf32> -> vector<2x16xf32>
    %c0_122 = arith.constant 0 : index
    %c0_123 = arith.constant 0 : index
    %104 = vector.load %arg8[%c0_122, %c0_123] : memref<16x1xf32, #tpu.memory_space<vmem>>, vector<16x1xf32>
    %cst_124 = arith.constant dense<0.000000e+00> : vector<2x1xf32>
    %105 = tpu.matmul %103, %104, %cst_124 {dimension_numbers = #tpu.dot_dimension_numbers<[1], [0], [0], [1], [0, 0, 1, 1], [], []>} : vector<2x16xf32>, vector<16x1xf32>, vector<2x1xf32> -> vector<2x1xf32>
    %cst_125 = arith.constant 0.000000e+00 : f32
    %106 = vector.broadcast %cst_125 : f32 to vector<2x1xf32>
    %107 = arith.maximumf %105, %106 : vector<2x1xf32>
    %c0_126 = arith.constant 0 : index
    %c0_127 = arith.constant 0 : index
    %108 = vector.load %arg9[%c0_126, %c0_127] : memref<1x16xf32, #tpu.memory_space<vmem>>, vector<1x16xf32>
    %cst_128 = arith.constant dense<0.000000e+00> : vector<2x16xf32>
    %109 = tpu.matmul %107, %108, %cst_128 {dimension_numbers = #tpu.dot_dimension_numbers<[1], [0], [0], [1], [0, 0, 1, 1], [], []>} : vector<2x1xf32>, vector<1x16xf32>, vector<2x16xf32> -> vector<2x16xf32>
    %110 = vector.extract_strided_slice %109 {offsets = [0, 0], sizes = [1, 16], strides = [1, 1]} : vector<2x16xf32> to vector<1x16xf32>
    %111 = vector.extract_strided_slice %109 {offsets = [1, 0], sizes = [1, 16], strides = [1, 1]} : vector<2x16xf32> to vector<1x16xf32>
    %112 = arith.addf %110, %111 : vector<1x16xf32>
    %cst_129 = arith.constant 0.000000e+00 : f32
    %113 = vector.broadcast %cst_129 : f32 to vector<1x16xf32>
    %114 = arith.subf %113, %112 : vector<1x16xf32>
    %115 = math.exp %114 : vector<1x16xf32>
    %cst_130 = arith.constant 1.000000e+00 : f32
    %116 = vector.broadcast %cst_130 : f32 to vector<1x16xf32>
    %117 = arith.addf %116, %115 : vector<1x16xf32>
    %cst_131 = arith.constant 1.000000e+00 : f32
    %118 = vector.broadcast %cst_131 : f32 to vector<1x16xf32>
    %119 = arith.divf %118, %117 : vector<1x16xf32>
    %120 = vector.shape_cast %96 : vector<256x16xf32> to vector<16x16x16xf32>
    %c0_132 = arith.constant 0 : index
    %c0_133 = arith.constant 0 : index
    %c0_134 = arith.constant 0 : index
    %121 = vector.load %arg13[%c0_132, %c0_133, %c0_134] : memref<16x16x16xf32, #tpu.memory_space<vmem>>, vector<16x16x16xf32>
    tpu.vector_store %arg13[%c0_132, %c0_133, %c0_134], %120 {strides = array<i32>} : memref<16x16x16xf32, #tpu.memory_space<vmem>>, vector<16x16x16xf32>,
    %c0_i32 = arith.constant 0 : i32
    %c8_i32 = arith.constant 8 : i32
    %122 = arith.muli %c0_i32, %c8_i32 : i32
    %123 = arith.index_cast %122 : i32 to index
    %c0_135 = arith.constant 0 : index
    %c0_136 = arith.constant 0 : index
    %124 = vector.load %arg13[%123, %c0_135, %c0_136] : memref<16x16x16xf32, #tpu.memory_space<vmem>>, vector<8x16x16xf32>
    %125 = vector.shape_cast %119 : vector<1x16xf32> to vector<1x1x16xf32>
    %126 = vector.broadcast %125 : vector<1x1x16xf32> to vector<8x16x16xf32>
    %127 = arith.mulf %124, %126 : vector<8x16x16xf32>
    %cst_137 = arith.constant dense<0.000000e+00> : vector<8x16xf32>
    %128 = vector.multi_reduction <add>, %127, %cst_137 [2] : vector<8x16x16xf32> to vector<8x16xf32>
    %cst_138 = arith.constant 1.600000e+01 : f32
    %129 = vector.broadcast %cst_138 : f32 to vector<8x16xf32>
    %130 = arith.divf %128, %129 : vector<8x16xf32>
    %c3_i32 = arith.constant 3 : i32
    %131 = arith.addi %122, %c3_i32 : i32
    %c0_139 = arith.constant 0 : index
    %132 = arith.index_cast %131 : i32 to index
    %c3_140 = arith.constant 3 : index
    %133 = vector.load %arg14[%c0_139, %132, %c3_140] : memref<2x22x22xf32, #tpu.memory_space<vmem>>, vector<1x8x16xf32>
    %134 = vector.shape_cast %133 : vector<1x8x16xf32> to vector<8x16xf32>
    %135 = vector.shape_cast %130 : vector<8x16xf32> to vector<1x8x16xf32>
    tpu.vector_store %arg14[%c0_139, %132, %c3_140], %135 {strides = array<i32>} : memref<2x22x22xf32, #tpu.memory_space<vmem>>, vector<1x8x16xf32>,
    %cst_141 = arith.constant dense<0xFF800000> : vector<8x16xf32>
    %136 = vector.multi_reduction <maximumf>, %127, %cst_141 [2] : vector<8x16x16xf32> to vector<8x16xf32>
    %c3_i32_142 = arith.constant 3 : i32
    %137 = arith.addi %122, %c3_i32_142 : i32
    %c1_143 = arith.constant 1 : index
    %138 = arith.index_cast %137 : i32 to index
    %c3_144 = arith.constant 3 : index
    %139 = vector.load %arg14[%c1_143, %138, %c3_144] : memref<2x22x22xf32, #tpu.memory_space<vmem>>, vector<1x8x16xf32>
    %140 = vector.shape_cast %139 : vector<1x8x16xf32> to vector<8x16xf32>
    %141 = vector.shape_cast %136 : vector<8x16xf32> to vector<1x8x16xf32>
    tpu.vector_store %arg14[%c1_143, %138, %c3_144], %141 {strides = array<i32>} : memref<2x22x22xf32, #tpu.memory_space<vmem>>, vector<1x8x16xf32>,
    %c1_i32 = arith.constant 1 : i32
    %c8_i32_145 = arith.constant 8 : i32
    %142 = arith.muli %c1_i32, %c8_i32_145 : i32
    %143 = arith.index_cast %142 : i32 to index
    %c0_146 = arith.constant 0 : index
    %c0_147 = arith.constant 0 : index
    %144 = vector.load %arg13[%143, %c0_146, %c0_147] : memref<16x16x16xf32, #tpu.memory_space<vmem>>, vector<8x16x16xf32>
    %145 = vector.shape_cast %119 : vector<1x16xf32> to vector<1x1x16xf32>
    %146 = vector.broadcast %145 : vector<1x1x16xf32> to vector<8x16x16xf32>
    %147 = arith.mulf %144, %146 : vector<8x16x16xf32>
    %cst_148 = arith.constant dense<0.000000e+00> : vector<8x16xf32>
    %148 = vector.multi_reduction <add>, %147, %cst_148 [2] : vector<8x16x16xf32> to vector<8x16xf32>
    %cst_149 = arith.constant 1.600000e+01 : f32
    %149 = vector.broadcast %cst_149 : f32 to vector<8x16xf32>
    %150 = arith.divf %148, %149 : vector<8x16xf32>
    %c3_i32_150 = arith.constant 3 : i32
    %151 = arith.addi %142, %c3_i32_150 : i32
    %c0_151 = arith.constant 0 : index
    %152 = arith.index_cast %151 : i32 to index
    %c3_152 = arith.constant 3 : index
    %153 = vector.load %arg14[%c0_151, %152, %c3_152] : memref<2x22x22xf32, #tpu.memory_space<vmem>>, vector<1x8x16xf32>
    %154 = vector.shape_cast %153 : vector<1x8x16xf32> to vector<8x16xf32>
    %155 = vector.shape_cast %150 : vector<8x16xf32> to vector<1x8x16xf32>
    tpu.vector_store %arg14[%c0_151, %152, %c3_152], %155 {strides = array<i32>} : memref<2x22x22xf32, #tpu.memory_space<vmem>>, vector<1x8x16xf32>,
    %cst_153 = arith.constant dense<0xFF800000> : vector<8x16xf32>
    %156 = vector.multi_reduction <maximumf>, %147, %cst_153 [2] : vector<8x16x16xf32> to vector<8x16xf32>
    %c3_i32_154 = arith.constant 3 : i32
    %157 = arith.addi %142, %c3_i32_154 : i32
    %c1_155 = arith.constant 1 : index
    %158 = arith.index_cast %157 : i32 to index
    %c3_156 = arith.constant 3 : index
    %159 = vector.load %arg14[%c1_155, %158, %c3_156] : memref<2x22x22xf32, #tpu.memory_space<vmem>>, vector<1x8x16xf32>
    %160 = vector.shape_cast %159 : vector<1x8x16xf32> to vector<8x16xf32>
    %161 = vector.shape_cast %156 : vector<8x16xf32> to vector<1x8x16xf32>
    tpu.vector_store %arg14[%c1_155, %158, %c3_156], %161 {strides = array<i32>} : memref<2x22x22xf32, #tpu.memory_space<vmem>>, vector<1x8x16xf32>,
    %c2_i32 = arith.constant 2 : i32
    %cst_157 = arith.constant 0.000000e+00 : f32
    %162 = vector.broadcast %cst_157 : f32 to vector<16x16xf32>
    %c0_158 = arith.constant 0 : index
    %163 = memref.load %arg10[%c0_158] : memref<98xf32, #tpu.memory_space<smem>>
    %c0_159 = arith.constant 0 : index
    %c0_160 = arith.constant 0 : index
    %c0_161 = arith.constant 0 : index
    %164 = vector.load %arg14[%c0_159, %c0_160, %c0_161] : memref<2x22x22xf32, #tpu.memory_space<vmem>>, vector<1x16x16xf32>
    %165 = vector.shape_cast %164 : vector<1x16x16xf32> to vector<16x16xf32>
    %166 = vector.broadcast %163 : f32 to vector<16x16xf32>
    %167 = arith.mulf %166, %165 : vector<16x16xf32>
    %168 = arith.addf %162, %167 : vector<16x16xf32>
    %c1_162 = arith.constant 1 : index
    %169 = memref.load %arg10[%c1_162] : memref<98xf32, #tpu.memory_space<smem>>
    %c0_163 = arith.constant 0 : index
    %c0_164 = arith.constant 0 : index
    %c1_165 = arith.constant 1 : index
    %170 = vector.load %arg14[%c0_163, %c0_164, %c1_165] : memref<2x22x22xf32, #tpu.memory_space<vmem>>, vector<1x16x16xf32>
    %171 = vector.shape_cast %170 : vector<1x16x16xf32> to vector<16x16xf32>
    %172 = vector.broadcast %169 : f32 to vector<16x16xf32>
    %173 = arith.mulf %172, %171 : vector<16x16xf32>
    %174 = arith.addf %168, %173 : vector<16x16xf32>
    %c2_166 = arith.constant 2 : index
    %175 = memref.load %arg10[%c2_166] : memref<98xf32, #tpu.memory_space<smem>>
    %c0_167 = arith.constant 0 : index
    %c0_168 = arith.constant 0 : index
    %c2_169 = arith.constant 2 : index
    %176 = vector.load %arg14[%c0_167, %c0_168, %c2_169] : memref<2x22x22xf32, #tpu.memory_space<vmem>>, vector<1x16x16xf32>
    %177 = vector.shape_cast %176 : vector<1x16x16xf32> to vector<16x16xf32>
    %178 = vector.broadcast %175 : f32 to vector<16x16xf32>
    %179 = arith.mulf %178, %177 : vector<16x16xf32>
    %180 = arith.addf %174, %179 : vector<16x16xf32>
    %c3_170 = arith.constant 3 : index
    %181 = memref.load %arg10[%c3_170] : memref<98xf32, #tpu.memory_space<smem>>
    %c0_171 = arith.constant 0 : index
    %c0_172 = arith.constant 0 : index
    %c3_173 = arith.constant 3 : index
    %182 = vector.load %arg14[%c0_171, %c0_172, %c3_173] : memref<2x22x22xf32, #tpu.memory_space<vmem>>, vector<1x16x16xf32>
    %183 = vector.shape_cast %182 : vector<1x16x16xf32> to vector<16x16xf32>
    %184 = vector.broadcast %181 : f32 to vector<16x16xf32>
    %185 = arith.mulf %184, %183 : vector<16x16xf32>
    %186 = arith.addf %180, %185 : vector<16x16xf32>
    %c4 = arith.constant 4 : index
    %187 = memref.load %arg10[%c4] : memref<98xf32, #tpu.memory_space<smem>>
    %c0_174 = arith.constant 0 : index
    %c0_175 = arith.constant 0 : index
    %c4_176 = arith.constant 4 : index
    %188 = vector.load %arg14[%c0_174, %c0_175, %c4_176] : memref<2x22x22xf32, #tpu.memory_space<vmem>>, vector<1x16x16xf32>
    %189 = vector.shape_cast %188 : vector<1x16x16xf32> to vector<16x16xf32>
    %190 = vector.broadcast %187 : f32 to vector<16x16xf32>
    %191 = arith.mulf %190, %189 : vector<16x16xf32>
    %192 = arith.addf %186, %191 : vector<16x16xf32>
    %c5 = arith.constant 5 : index
    %193 = memref.load %arg10[%c5] : memref<98xf32, #tpu.memory_space<smem>>
    %c0_177 = arith.constant 0 : index
    %c0_178 = arith.constant 0 : index
    %c5_179 = arith.constant 5 : index
    %194 = vector.load %arg14[%c0_177, %c0_178, %c5_179] : memref<2x22x22xf32, #tpu.memory_space<vmem>>, vector<1x16x16xf32>
    %195 = vector.shape_cast %194 : vector<1x16x16xf32> to vector<16x16xf32>
    %196 = vector.broadcast %193 : f32 to vector<16x16xf32>
    %197 = arith.mulf %196, %195 : vector<16x16xf32>
    %198 = arith.addf %192, %197 : vector<16x16xf32>
    %c6 = arith.constant 6 : index
    %199 = memref.load %arg10[%c6] : memref<98xf32, #tpu.memory_space<smem>>
    %c0_180 = arith.constant 0 : index
    %c0_181 = arith.constant 0 : index
    %c6_182 = arith.constant 6 : index
    %200 = vector.load %arg14[%c0_180, %c0_181, %c6_182] : memref<2x22x22xf32, #tpu.memory_space<vmem>>, vector<1x16x16xf32>
    %201 = vector.shape_cast %200 : vector<1x16x16xf32> to vector<16x16xf32>
    %202 = vector.broadcast %199 : f32 to vector<16x16xf32>
    %203 = arith.mulf %202, %201 : vector<16x16xf32>
    %204 = arith.addf %198, %203 : vector<16x16xf32>
    %c7 = arith.constant 7 : index
    %205 = memref.load %arg10[%c7] : memref<98xf32, #tpu.memory_space<smem>>
    %c0_183 = arith.constant 0 : index
    %c1_184 = arith.constant 1 : index
    %c0_185 = arith.constant 0 : index
    %206 = vector.load %arg14[%c0_183, %c1_184, %c0_185] : memref<2x22x22xf32, #tpu.memory_space<vmem>>, vector<1x16x16xf32>
    %207 = vector.shape_cast %206 : vector<1x16x16xf32> to vector<16x16xf32>
    %208 = vector.broadcast %205 : f32 to vector<16x16xf32>
    %209 = arith.mulf %208, %207 : vector<16x16xf32>
    %210 = arith.addf %204, %209 : vector<16x16xf32>
    %c8 = arith.constant 8 : index
    %211 = memref.load %arg10[%c8] : memref<98xf32, #tpu.memory_space<smem>>
    %c0_186 = arith.constant 0 : index
    %c1_187 = arith.constant 1 : index
    %c1_188 = arith.constant 1 : index
    %212 = vector.load %arg14[%c0_186, %c1_187, %c1_188] : memref<2x22x22xf32, #tpu.memory_space<vmem>>, vector<1x16x16xf32>
    %213 = vector.shape_cast %212 : vector<1x16x16xf32> to vector<16x16xf32>
    %214 = vector.broadcast %211 : f32 to vector<16x16xf32>
    %215 = arith.mulf %214, %213 : vector<16x16xf32>
    %216 = arith.addf %210, %215 : vector<16x16xf32>
    %c9 = arith.constant 9 : index
    %217 = memref.load %arg10[%c9] : memref<98xf32, #tpu.memory_space<smem>>
    %c0_189 = arith.constant 0 : index
    %c1_190 = arith.constant 1 : index
    %c2_191 = arith.constant 2 : index
    %218 = vector.load %arg14[%c0_189, %c1_190, %c2_191] : memref<2x22x22xf32, #tpu.memory_space<vmem>>, vector<1x16x16xf32>
    %219 = vector.shape_cast %218 : vector<1x16x16xf32> to vector<16x16xf32>
    %220 = vector.broadcast %217 : f32 to vector<16x16xf32>
    %221 = arith.mulf %220, %219 : vector<16x16xf32>
    %222 = arith.addf %216, %221 : vector<16x16xf32>
    %c10 = arith.constant 10 : index
    %223 = memref.load %arg10[%c10] : memref<98xf32, #tpu.memory_space<smem>>
    %c0_192 = arith.constant 0 : index
    %c1_193 = arith.constant 1 : index
    %c3_194 = arith.constant 3 : index
    %224 = vector.load %arg14[%c0_192, %c1_193, %c3_194] : memref<2x22x22xf32, #tpu.memory_space<vmem>>, vector<1x16x16xf32>
    %225 = vector.shape_cast %224 : vector<1x16x16xf32> to vector<16x16xf32>
    %226 = vector.broadcast %223 : f32 to vector<16x16xf32>
    %227 = arith.mulf %226, %225 : vector<16x16xf32>
    %228 = arith.addf %222, %227 : vector<16x16xf32>
    %c11 = arith.constant 11 : index
    %229 = memref.load %arg10[%c11] : memref<98xf32, #tpu.memory_space<smem>>
    %c0_195 = arith.constant 0 : index
    %c1_196 = arith.constant 1 : index
    %c4_197 = arith.constant 4 : index
    %230 = vector.load %arg14[%c0_195, %c1_196, %c4_197] : memref<2x22x22xf32, #tpu.memory_space<vmem>>, vector<1x16x16xf32>
    %231 = vector.shape_cast %230 : vector<1x16x16xf32> to vector<16x16xf32>
    %232 = vector.broadcast %229 : f32 to vector<16x16xf32>
    %233 = arith.mulf %232, %231 : vector<16x16xf32>
    %234 = arith.addf %228, %233 : vector<16x16xf32>
    %c12 = arith.constant 12 : index
    %235 = memref.load %arg10[%c12] : memref<98xf32, #tpu.memory_space<smem>>
    %c0_198 = arith.constant 0 : index
    %c1_199 = arith.constant 1 : index
    %c5_200 = arith.constant 5 : index
    %236 = vector.load %arg14[%c0_198, %c1_199, %c5_200] : memref<2x22x22xf32, #tpu.memory_space<vmem>>, vector<1x16x16xf32>
    %237 = vector.shape_cast %236 : vector<1x16x16xf32> to vector<16x16xf32>
    %238 = vector.broadcast %235 : f32 to vector<16x16xf32>
    %239 = arith.mulf %238, %237 : vector<16x16xf32>
    %240 = arith.addf %234, %239 : vector<16x16xf32>
    %c13 = arith.constant 13 : index
    %241 = memref.load %arg10[%c13] : memref<98xf32, #tpu.memory_space<smem>>
    %c0_201 = arith.constant 0 : index
    %c1_202 = arith.constant 1 : index
    %c6_203 = arith.constant 6 : index
    %242 = vector.load %arg14[%c0_201, %c1_202, %c6_203] : memref<2x22x22xf32, #tpu.memory_space<vmem>>, vector<1x16x16xf32>
    %243 = vector.shape_cast %242 : vector<1x16x16xf32> to vector<16x16xf32>
    %244 = vector.broadcast %241 : f32 to vector<16x16xf32>
    %245 = arith.mulf %244, %243 : vector<16x16xf32>
    %246 = arith.addf %240, %245 : vector<16x16xf32>
    %c14 = arith.constant 14 : index
    %247 = memref.load %arg10[%c14] : memref<98xf32, #tpu.memory_space<smem>>
    %c0_204 = arith.constant 0 : index
    %c2_205 = arith.constant 2 : index
    %c0_206 = arith.constant 0 : index
    %248 = vector.load %arg14[%c0_204, %c2_205, %c0_206] : memref<2x22x22xf32, #tpu.memory_space<vmem>>, vector<1x16x16xf32>
    %249 = vector.shape_cast %248 : vector<1x16x16xf32> to vector<16x16xf32>
    %250 = vector.broadcast %247 : f32 to vector<16x16xf32>
    %251 = arith.mulf %250, %249 : vector<16x16xf32>
    %252 = arith.addf %246, %251 : vector<16x16xf32>
    %c15 = arith.constant 15 : index
    %253 = memref.load %arg10[%c15] : memref<98xf32, #tpu.memory_space<smem>>
    %c0_207 = arith.constant 0 : index
    %c2_208 = arith.constant 2 : index
    %c1_209 = arith.constant 1 : index
    %254 = vector.load %arg14[%c0_207, %c2_208, %c1_209] : memref<2x22x22xf32, #tpu.memory_space<vmem>>, vector<1x16x16xf32>
    %255 = vector.shape_cast %254 : vector<1x16x16xf32> to vector<16x16xf32>
    %256 = vector.broadcast %253 : f32 to vector<16x16xf32>
    %257 = arith.mulf %256, %255 : vector<16x16xf32>
    %258 = arith.addf %252, %257 : vector<16x16xf32>
    %c16 = arith.constant 16 : index
    %259 = memref.load %arg10[%c16] : memref<98xf32, #tpu.memory_space<smem>>
    %c0_210 = arith.constant 0 : index
    %c2_211 = arith.constant 2 : index
    %c2_212 = arith.constant 2 : index
    %260 = vector.load %arg14[%c0_210, %c2_211, %c2_212] : memref<2x22x22xf32, #tpu.memory_space<vmem>>, vector<1x16x16xf32>
    %261 = vector.shape_cast %260 : vector<1x16x16xf32> to vector<16x16xf32>
    %262 = vector.broadcast %259 : f32 to vector<16x16xf32>
    %263 = arith.mulf %262, %261 : vector<16x16xf32>
    %264 = arith.addf %258, %263 : vector<16x16xf32>
    %c17_213 = arith.constant 17 : index
    %265 = memref.load %arg10[%c17_213] : memref<98xf32, #tpu.memory_space<smem>>
    %c0_214 = arith.constant 0 : index
    %c2_215 = arith.constant 2 : index
    %c3_216 = arith.constant 3 : index
    %266 = vector.load %arg14[%c0_214, %c2_215, %c3_216] : memref<2x22x22xf32, #tpu.memory_space<vmem>>, vector<1x16x16xf32>
    %267 = vector.shape_cast %266 : vector<1x16x16xf32> to vector<16x16xf32>
    %268 = vector.broadcast %265 : f32 to vector<16x16xf32>
    %269 = arith.mulf %268, %267 : vector<16x16xf32>
    %270 = arith.addf %264, %269 : vector<16x16xf32>
    %c18 = arith.constant 18 : index
    %271 = memref.load %arg10[%c18] : memref<98xf32, #tpu.memory_space<smem>>
    %c0_217 = arith.constant 0 : index
    %c2_218 = arith.constant 2 : index
    %c4_219 = arith.constant 4 : index
    %272 = vector.load %arg14[%c0_217, %c2_218, %c4_219] : memref<2x22x22xf32, #tpu.memory_space<vmem>>, vector<1x16x16xf32>
    %273 = vector.shape_cast %272 : vector<1x16x16xf32> to vector<16x16xf32>
    %274 = vector.broadcast %271 : f32 to vector<16x16xf32>
    %275 = arith.mulf %274, %273 : vector<16x16xf32>
    %276 = arith.addf %270, %275 : vector<16x16xf32>
    %c19_220 = arith.constant 19 : index
    %277 = memref.load %arg10[%c19_220] : memref<98xf32, #tpu.memory_space<smem>>
    %c0_221 = arith.constant 0 : index
    %c2_222 = arith.constant 2 : index
    %c5_223 = arith.constant 5 : index
    %278 = vector.load %arg14[%c0_221, %c2_222, %c5_223] : memref<2x22x22xf32, #tpu.memory_space<vmem>>, vector<1x16x16xf32>
    %279 = vector.shape_cast %278 : vector<1x16x16xf32> to vector<16x16xf32>
    %280 = vector.broadcast %277 : f32 to vector<16x16xf32>
    %281 = arith.mulf %280, %279 : vector<16x16xf32>
    %282 = arith.addf %276, %281 : vector<16x16xf32>
    %c20 = arith.constant 20 : index
    %283 = memref.load %arg10[%c20] : memref<98xf32, #tpu.memory_space<smem>>
    %c0_224 = arith.constant 0 : index
    %c2_225 = arith.constant 2 : index
    %c6_226 = arith.constant 6 : index
    %284 = vector.load %arg14[%c0_224, %c2_225, %c6_226] : memref<2x22x22xf32, #tpu.memory_space<vmem>>, vector<1x16x16xf32>
    %285 = vector.shape_cast %284 : vector<1x16x16xf32> to vector<16x16xf32>
    %286 = vector.broadcast %283 : f32 to vector<16x16xf32>
    %287 = arith.mulf %286, %285 : vector<16x16xf32>
    %288 = arith.addf %282, %287 : vector<16x16xf32>
    %c21 = arith.constant 21 : index
    %289 = memref.load %arg10[%c21] : memref<98xf32, #tpu.memory_space<smem>>
    %c0_227 = arith.constant 0 : index
    %c3_228 = arith.constant 3 : index
    %c0_229 = arith.constant 0 : index
    %290 = vector.load %arg14[%c0_227, %c3_228, %c0_229] : memref<2x22x22xf32, #tpu.memory_space<vmem>>, vector<1x16x16xf32>
    %291 = vector.shape_cast %290 : vector<1x16x16xf32> to vector<16x16xf32>
    %292 = vector.broadcast %289 : f32 to vector<16x16xf32>
    %293 = arith.mulf %292, %291 : vector<16x16xf32>
    %294 = arith.addf %288, %293 : vector<16x16xf32>
    %c22 = arith.constant 22 : index
    %295 = memref.load %arg10[%c22] : memref<98xf32, #tpu.memory_space<smem>>
    %c0_230 = arith.constant 0 : index
    %c3_231 = arith.constant 3 : index
    %c1_232 = arith.constant 1 : index
    %296 = vector.load %arg14[%c0_230, %c3_231, %c1_232] : memref<2x22x22xf32, #tpu.memory_space<vmem>>, vector<1x16x16xf32>
    %297 = vector.shape_cast %296 : vector<1x16x16xf32> to vector<16x16xf32>
    %298 = vector.broadcast %295 : f32 to vector<16x16xf32>
    %299 = arith.mulf %298, %297 : vector<16x16xf32>
    %300 = arith.addf %294, %299 : vector<16x16xf32>
    %c23 = arith.constant 23 : index
    %301 = memref.load %arg10[%c23] : memref<98xf32, #tpu.memory_space<smem>>
    %c0_233 = arith.constant 0 : index
    %c3_234 = arith.constant 3 : index
    %c2_235 = arith.constant 2 : index
    %302 = vector.load %arg14[%c0_233, %c3_234, %c2_235] : memref<2x22x22xf32, #tpu.memory_space<vmem>>, vector<1x16x16xf32>
    %303 = vector.shape_cast %302 : vector<1x16x16xf32> to vector<16x16xf32>
    %304 = vector.broadcast %301 : f32 to vector<16x16xf32>
    %305 = arith.mulf %304, %303 : vector<16x16xf32>
    %306 = arith.addf %300, %305 : vector<16x16xf32>
    %c24 = arith.constant 24 : index
    %307 = memref.load %arg10[%c24] : memref<98xf32, #tpu.memory_space<smem>>
    %c0_236 = arith.constant 0 : index
    %c3_237 = arith.constant 3 : index
    %c3_238 = arith.constant 3 : index
    %308 = vector.load %arg14[%c0_236, %c3_237, %c3_238] : memref<2x22x22xf32, #tpu.memory_space<vmem>>, vector<1x16x16xf32>
    %309 = vector.shape_cast %308 : vector<1x16x16xf32> to vector<16x16xf32>
    %310 = vector.broadcast %307 : f32 to vector<16x16xf32>
    %311 = arith.mulf %310, %309 : vector<16x16xf32>
    %312 = arith.addf %306, %311 : vector<16x16xf32>
    %c25 = arith.constant 25 : index
    %313 = memref.load %arg10[%c25] : memref<98xf32, #tpu.memory_space<smem>>
    %c0_239 = arith.constant 0 : index
    %c3_240 = arith.constant 3 : index
    %c4_241 = arith.constant 4 : index
    %314 = vector.load %arg14[%c0_239, %c3_240, %c4_241] : memref<2x22x22xf32, #tpu.memory_space<vmem>>, vector<1x16x16xf32>
    %315 = vector.shape_cast %314 : vector<1x16x16xf32> to vector<16x16xf32>
    %316 = vector.broadcast %313 : f32 to vector<16x16xf32>
    %317 = arith.mulf %316, %315 : vector<16x16xf32>
    %318 = arith.addf %312, %317 : vector<16x16xf32>
    %c26 = arith.constant 26 : index
    %319 = memref.load %arg10[%c26] : memref<98xf32, #tpu.memory_space<smem>>
    %c0_242 = arith.constant 0 : index
    %c3_243 = arith.constant 3 : index
    %c5_244 = arith.constant 5 : index
    %320 = vector.load %arg14[%c0_242, %c3_243, %c5_244] : memref<2x22x22xf32, #tpu.memory_space<vmem>>, vector<1x16x16xf32>
    %321 = vector.shape_cast %320 : vector<1x16x16xf32> to vector<16x16xf32>
    %322 = vector.broadcast %319 : f32 to vector<16x16xf32>
    %323 = arith.mulf %322, %321 : vector<16x16xf32>
    %324 = arith.addf %318, %323 : vector<16x16xf32>
    %c27 = arith.constant 27 : index
    %325 = memref.load %arg10[%c27] : memref<98xf32, #tpu.memory_space<smem>>
    %c0_245 = arith.constant 0 : index
    %c3_246 = arith.constant 3 : index
    %c6_247 = arith.constant 6 : index
    %326 = vector.load %arg14[%c0_245, %c3_246, %c6_247] : memref<2x22x22xf32, #tpu.memory_space<vmem>>, vector<1x16x16xf32>
    %327 = vector.shape_cast %326 : vector<1x16x16xf32> to vector<16x16xf32>
    %328 = vector.broadcast %325 : f32 to vector<16x16xf32>
    %329 = arith.mulf %328, %327 : vector<16x16xf32>
    %330 = arith.addf %324, %329 : vector<16x16xf32>
    %c28 = arith.constant 28 : index
    %331 = memref.load %arg10[%c28] : memref<98xf32, #tpu.memory_space<smem>>
    %c0_248 = arith.constant 0 : index
    %c4_249 = arith.constant 4 : index
    %c0_250 = arith.constant 0 : index
    %332 = vector.load %arg14[%c0_248, %c4_249, %c0_250] : memref<2x22x22xf32, #tpu.memory_space<vmem>>, vector<1x16x16xf32>
    %333 = vector.shape_cast %332 : vector<1x16x16xf32> to vector<16x16xf32>
    %334 = vector.broadcast %331 : f32 to vector<16x16xf32>
    %335 = arith.mulf %334, %333 : vector<16x16xf32>
    %336 = arith.addf %330, %335 : vector<16x16xf32>
    %c29 = arith.constant 29 : index
    %337 = memref.load %arg10[%c29] : memref<98xf32, #tpu.memory_space<smem>>
    %c0_251 = arith.constant 0 : index
    %c4_252 = arith.constant 4 : index
    %c1_253 = arith.constant 1 : index
    %338 = vector.load %arg14[%c0_251, %c4_252, %c1_253] : memref<2x22x22xf32, #tpu.memory_space<vmem>>, vector<1x16x16xf32>
    %339 = vector.shape_cast %338 : vector<1x16x16xf32> to vector<16x16xf32>
    %340 = vector.broadcast %337 : f32 to vector<16x16xf32>
    %341 = arith.mulf %340, %339 : vector<16x16xf32>
    %342 = arith.addf %336, %341 : vector<16x16xf32>
    %c30 = arith.constant 30 : index
    %343 = memref.load %arg10[%c30] : memref<98xf32, #tpu.memory_space<smem>>
    %c0_254 = arith.constant 0 : index
    %c4_255 = arith.constant 4 : index
    %c2_256 = arith.constant 2 : index
    %344 = vector.load %arg14[%c0_254, %c4_255, %c2_256] : memref<2x22x22xf32, #tpu.memory_space<vmem>>, vector<1x16x16xf32>
    %345 = vector.shape_cast %344 : vector<1x16x16xf32> to vector<16x16xf32>
    %346 = vector.broadcast %343 : f32 to vector<16x16xf32>
    %347 = arith.mulf %346, %345 : vector<16x16xf32>
    %348 = arith.addf %342, %347 : vector<16x16xf32>
    %c31 = arith.constant 31 : index
    %349 = memref.load %arg10[%c31] : memref<98xf32, #tpu.memory_space<smem>>
    %c0_257 = arith.constant 0 : index
    %c4_258 = arith.constant 4 : index
    %c3_259 = arith.constant 3 : index
    %350 = vector.load %arg14[%c0_257, %c4_258, %c3_259] : memref<2x22x22xf32, #tpu.memory_space<vmem>>, vector<1x16x16xf32>
    %351 = vector.shape_cast %350 : vector<1x16x16xf32> to vector<16x16xf32>
    %352 = vector.broadcast %349 : f32 to vector<16x16xf32>
    %353 = arith.mulf %352, %351 : vector<16x16xf32>
    %354 = arith.addf %348, %353 : vector<16x16xf32>
    %c32 = arith.constant 32 : index
    %355 = memref.load %arg10[%c32] : memref<98xf32, #tpu.memory_space<smem>>
    %c0_260 = arith.constant 0 : index
    %c4_261 = arith.constant 4 : index
    %c4_262 = arith.constant 4 : index
    %356 = vector.load %arg14[%c0_260, %c4_261, %c4_262] : memref<2x22x22xf32, #tpu.memory_space<vmem>>, vector<1x16x16xf32>
    %357 = vector.shape_cast %356 : vector<1x16x16xf32> to vector<16x16xf32>
    %358 = vector.broadcast %355 : f32 to vector<16x16xf32>
    %359 = arith.mulf %358, %357 : vector<16x16xf32>
    %360 = arith.addf %354, %359 : vector<16x16xf32>
    %c33 = arith.constant 33 : index
    %361 = memref.load %arg10[%c33] : memref<98xf32, #tpu.memory_space<smem>>
    %c0_263 = arith.constant 0 : index
    %c4_264 = arith.constant 4 : index
    %c5_265 = arith.constant 5 : index
    %362 = vector.load %arg14[%c0_263, %c4_264, %c5_265] : memref<2x22x22xf32, #tpu.memory_space<vmem>>, vector<1x16x16xf32>
    %363 = vector.shape_cast %362 : vector<1x16x16xf32> to vector<16x16xf32>
    %364 = vector.broadcast %361 : f32 to vector<16x16xf32>
    %365 = arith.mulf %364, %363 : vector<16x16xf32>
    %366 = arith.addf %360, %365 : vector<16x16xf32>
    %c34 = arith.constant 34 : index
    %367 = memref.load %arg10[%c34] : memref<98xf32, #tpu.memory_space<smem>>
    %c0_266 = arith.constant 0 : index
    %c4_267 = arith.constant 4 : index
    %c6_268 = arith.constant 6 : index
    %368 = vector.load %arg14[%c0_266, %c4_267, %c6_268] : memref<2x22x22xf32, #tpu.memory_space<vmem>>, vector<1x16x16xf32>
    %369 = vector.shape_cast %368 : vector<1x16x16xf32> to vector<16x16xf32>
    %370 = vector.broadcast %367 : f32 to vector<16x16xf32>
    %371 = arith.mulf %370, %369 : vector<16x16xf32>
    %372 = arith.addf %366, %371 : vector<16x16xf32>
    %c35 = arith.constant 35 : index
    %373 = memref.load %arg10[%c35] : memref<98xf32, #tpu.memory_space<smem>>
    %c0_269 = arith.constant 0 : index
    %c5_270 = arith.constant 5 : index
    %c0_271 = arith.constant 0 : index
    %374 = vector.load %arg14[%c0_269, %c5_270, %c0_271] : memref<2x22x22xf32, #tpu.memory_space<vmem>>, vector<1x16x16xf32>
    %375 = vector.shape_cast %374 : vector<1x16x16xf32> to vector<16x16xf32>
    %376 = vector.broadcast %373 : f32 to vector<16x16xf32>
    %377 = arith.mulf %376, %375 : vector<16x16xf32>
    %378 = arith.addf %372, %377 : vector<16x16xf32>
    %c36 = arith.constant 36 : index
    %379 = memref.load %arg10[%c36] : memref<98xf32, #tpu.memory_space<smem>>
    %c0_272 = arith.constant 0 : index
    %c5_273 = arith.constant 5 : index
    %c1_274 = arith.constant 1 : index
    %380 = vector.load %arg14[%c0_272, %c5_273, %c1_274] : memref<2x22x22xf32, #tpu.memory_space<vmem>>, vector<1x16x16xf32>
    %381 = vector.shape_cast %380 : vector<1x16x16xf32> to vector<16x16xf32>
    %382 = vector.broadcast %379 : f32 to vector<16x16xf32>
    %383 = arith.mulf %382, %381 : vector<16x16xf32>
    %384 = arith.addf %378, %383 : vector<16x16xf32>
    %c37 = arith.constant 37 : index
    %385 = memref.load %arg10[%c37] : memref<98xf32, #tpu.memory_space<smem>>
    %c0_275 = arith.constant 0 : index
    %c5_276 = arith.constant 5 : index
    %c2_277 = arith.constant 2 : index
    %386 = vector.load %arg14[%c0_275, %c5_276, %c2_277] : memref<2x22x22xf32, #tpu.memory_space<vmem>>, vector<1x16x16xf32>
    %387 = vector.shape_cast %386 : vector<1x16x16xf32> to vector<16x16xf32>
    %388 = vector.broadcast %385 : f32 to vector<16x16xf32>
    %389 = arith.mulf %388, %387 : vector<16x16xf32>
    %390 = arith.addf %384, %389 : vector<16x16xf32>
    %c38 = arith.constant 38 : index
    %391 = memref.load %arg10[%c38] : memref<98xf32, #tpu.memory_space<smem>>
    %c0_278 = arith.constant 0 : index
    %c5_279 = arith.constant 5 : index
    %c3_280 = arith.constant 3 : index
    %392 = vector.load %arg14[%c0_278, %c5_279, %c3_280] : memref<2x22x22xf32, #tpu.memory_space<vmem>>, vector<1x16x16xf32>
    %393 = vector.shape_cast %392 : vector<1x16x16xf32> to vector<16x16xf32>
    %394 = vector.broadcast %391 : f32 to vector<16x16xf32>
    %395 = arith.mulf %394, %393 : vector<16x16xf32>
    %396 = arith.addf %390, %395 : vector<16x16xf32>
    %c39 = arith.constant 39 : index
    %397 = memref.load %arg10[%c39] : memref<98xf32, #tpu.memory_space<smem>>
    %c0_281 = arith.constant 0 : index
    %c5_282 = arith.constant 5 : index
    %c4_283 = arith.constant 4 : index
    %398 = vector.load %arg14[%c0_281, %c5_282, %c4_283] : memref<2x22x22xf32, #tpu.memory_space<vmem>>, vector<1x16x16xf32>
    %399 = vector.shape_cast %398 : vector<1x16x16xf32> to vector<16x16xf32>
    %400 = vector.broadcast %397 : f32 to vector<16x16xf32>
    %401 = arith.mulf %400, %399 : vector<16x16xf32>
    %402 = arith.addf %396, %401 : vector<16x16xf32>
    %c40 = arith.constant 40 : index
    %403 = memref.load %arg10[%c40] : memref<98xf32, #tpu.memory_space<smem>>
    %c0_284 = arith.constant 0 : index
    %c5_285 = arith.constant 5 : index
    %c5_286 = arith.constant 5 : index
    %404 = vector.load %arg14[%c0_284, %c5_285, %c5_286] : memref<2x22x22xf32, #tpu.memory_space<vmem>>, vector<1x16x16xf32>
    %405 = vector.shape_cast %404 : vector<1x16x16xf32> to vector<16x16xf32>
    %406 = vector.broadcast %403 : f32 to vector<16x16xf32>
    %407 = arith.mulf %406, %405 : vector<16x16xf32>
    %408 = arith.addf %402, %407 : vector<16x16xf32>
    %c41 = arith.constant 41 : index
    %409 = memref.load %arg10[%c41] : memref<98xf32, #tpu.memory_space<smem>>
    %c0_287 = arith.constant 0 : index
    %c5_288 = arith.constant 5 : index
    %c6_289 = arith.constant 6 : index
    %410 = vector.load %arg14[%c0_287, %c5_288, %c6_289] : memref<2x22x22xf32, #tpu.memory_space<vmem>>, vector<1x16x16xf32>
    %411 = vector.shape_cast %410 : vector<1x16x16xf32> to vector<16x16xf32>
    %412 = vector.broadcast %409 : f32 to vector<16x16xf32>
    %413 = arith.mulf %412, %411 : vector<16x16xf32>
    %414 = arith.addf %408, %413 : vector<16x16xf32>
    %c42 = arith.constant 42 : index
    %415 = memref.load %arg10[%c42] : memref<98xf32, #tpu.memory_space<smem>>
    %c0_290 = arith.constant 0 : index
    %c6_291 = arith.constant 6 : index
    %c0_292 = arith.constant 0 : index
    %416 = vector.load %arg14[%c0_290, %c6_291, %c0_292] : memref<2x22x22xf32, #tpu.memory_space<vmem>>, vector<1x16x16xf32>
    %417 = vector.shape_cast %416 : vector<1x16x16xf32> to vector<16x16xf32>
    %418 = vector.broadcast %415 : f32 to vector<16x16xf32>
    %419 = arith.mulf %418, %417 : vector<16x16xf32>
    %420 = arith.addf %414, %419 : vector<16x16xf32>
    %c43 = arith.constant 43 : index
    %421 = memref.load %arg10[%c43] : memref<98xf32, #tpu.memory_space<smem>>
    %c0_293 = arith.constant 0 : index
    %c6_294 = arith.constant 6 : index
    %c1_295 = arith.constant 1 : index
    %422 = vector.load %arg14[%c0_293, %c6_294, %c1_295] : memref<2x22x22xf32, #tpu.memory_space<vmem>>, vector<1x16x16xf32>
    %423 = vector.shape_cast %422 : vector<1x16x16xf32> to vector<16x16xf32>
    %424 = vector.broadcast %421 : f32 to vector<16x16xf32>
    %425 = arith.mulf %424, %423 : vector<16x16xf32>
    %426 = arith.addf %420, %425 : vector<16x16xf32>
    %c44 = arith.constant 44 : index
    %427 = memref.load %arg10[%c44] : memref<98xf32, #tpu.memory_space<smem>>
    %c0_296 = arith.constant 0 : index
    %c6_297 = arith.constant 6 : index
    %c2_298 = arith.constant 2 : index
    %428 = vector.load %arg14[%c0_296, %c6_297, %c2_298] : memref<2x22x22xf32, #tpu.memory_space<vmem>>, vector<1x16x16xf32>
    %429 = vector.shape_cast %428 : vector<1x16x16xf32> to vector<16x16xf32>
    %430 = vector.broadcast %427 : f32 to vector<16x16xf32>
    %431 = arith.mulf %430, %429 : vector<16x16xf32>
    %432 = arith.addf %426, %431 : vector<16x16xf32>
    %c45 = arith.constant 45 : index
    %433 = memref.load %arg10[%c45] : memref<98xf32, #tpu.memory_space<smem>>
    %c0_299 = arith.constant 0 : index
    %c6_300 = arith.constant 6 : index
    %c3_301 = arith.constant 3 : index
    %434 = vector.load %arg14[%c0_299, %c6_300, %c3_301] : memref<2x22x22xf32, #tpu.memory_space<vmem>>, vector<1x16x16xf32>
    %435 = vector.shape_cast %434 : vector<1x16x16xf32> to vector<16x16xf32>
    %436 = vector.broadcast %433 : f32 to vector<16x16xf32>
    %437 = arith.mulf %436, %435 : vector<16x16xf32>
    %438 = arith.addf %432, %437 : vector<16x16xf32>
    %c46 = arith.constant 46 : index
    %439 = memref.load %arg10[%c46] : memref<98xf32, #tpu.memory_space<smem>>
    %c0_302 = arith.constant 0 : index
    %c6_303 = arith.constant 6 : index
    %c4_304 = arith.constant 4 : index
    %440 = vector.load %arg14[%c0_302, %c6_303, %c4_304] : memref<2x22x22xf32, #tpu.memory_space<vmem>>, vector<1x16x16xf32>
    %441 = vector.shape_cast %440 : vector<1x16x16xf32> to vector<16x16xf32>
    %442 = vector.broadcast %439 : f32 to vector<16x16xf32>
    %443 = arith.mulf %442, %441 : vector<16x16xf32>
    %444 = arith.addf %438, %443 : vector<16x16xf32>
    %c47 = arith.constant 47 : index
    %445 = memref.load %arg10[%c47] : memref<98xf32, #tpu.memory_space<smem>>
    %c0_305 = arith.constant 0 : index
    %c6_306 = arith.constant 6 : index
    %c5_307 = arith.constant 5 : index
    %446 = vector.load %arg14[%c0_305, %c6_306, %c5_307] : memref<2x22x22xf32, #tpu.memory_space<vmem>>, vector<1x16x16xf32>
    %447 = vector.shape_cast %446 : vector<1x16x16xf32> to vector<16x16xf32>
    %448 = vector.broadcast %445 : f32 to vector<16x16xf32>
    %449 = arith.mulf %448, %447 : vector<16x16xf32>
    %450 = arith.addf %444, %449 : vector<16x16xf32>
    %c48 = arith.constant 48 : index
    %451 = memref.load %arg10[%c48] : memref<98xf32, #tpu.memory_space<smem>>
    %c0_308 = arith.constant 0 : index
    %c6_309 = arith.constant 6 : index
    %c6_310 = arith.constant 6 : index
    %452 = vector.load %arg14[%c0_308, %c6_309, %c6_310] : memref<2x22x22xf32, #tpu.memory_space<vmem>>, vector<1x16x16xf32>
    %453 = vector.shape_cast %452 : vector<1x16x16xf32> to vector<16x16xf32>
    %454 = vector.broadcast %451 : f32 to vector<16x16xf32>
    %455 = arith.mulf %454, %453 : vector<16x16xf32>
    %456 = arith.addf %450, %455 : vector<16x16xf32>
    %c49 = arith.constant 49 : index
    %457 = memref.load %arg10[%c49] : memref<98xf32, #tpu.memory_space<smem>>
    %c1_311 = arith.constant 1 : index
    %c0_312 = arith.constant 0 : index
    %c0_313 = arith.constant 0 : index
    %458 = vector.load %arg14[%c1_311, %c0_312, %c0_313] : memref<2x22x22xf32, #tpu.memory_space<vmem>>, vector<1x16x16xf32>
    %459 = vector.shape_cast %458 : vector<1x16x16xf32> to vector<16x16xf32>
    %460 = vector.broadcast %457 : f32 to vector<16x16xf32>
    %461 = arith.mulf %460, %459 : vector<16x16xf32>
    %462 = arith.addf %456, %461 : vector<16x16xf32>
    %c50 = arith.constant 50 : index
    %463 = memref.load %arg10[%c50] : memref<98xf32, #tpu.memory_space<smem>>
    %c1_314 = arith.constant 1 : index
    %c0_315 = arith.constant 0 : index
    %c1_316 = arith.constant 1 : index
    %464 = vector.load %arg14[%c1_314, %c0_315, %c1_316] : memref<2x22x22xf32, #tpu.memory_space<vmem>>, vector<1x16x16xf32>
    %465 = vector.shape_cast %464 : vector<1x16x16xf32> to vector<16x16xf32>
    %466 = vector.broadcast %463 : f32 to vector<16x16xf32>
    %467 = arith.mulf %466, %465 : vector<16x16xf32>
    %468 = arith.addf %462, %467 : vector<16x16xf32>
    %c51 = arith.constant 51 : index
    %469 = memref.load %arg10[%c51] : memref<98xf32, #tpu.memory_space<smem>>
    %c1_317 = arith.constant 1 : index
    %c0_318 = arith.constant 0 : index
    %c2_319 = arith.constant 2 : index
    %470 = vector.load %arg14[%c1_317, %c0_318, %c2_319] : memref<2x22x22xf32, #tpu.memory_space<vmem>>, vector<1x16x16xf32>
    %471 = vector.shape_cast %470 : vector<1x16x16xf32> to vector<16x16xf32>
    %472 = vector.broadcast %469 : f32 to vector<16x16xf32>
    %473 = arith.mulf %472, %471 : vector<16x16xf32>
    %474 = arith.addf %468, %473 : vector<16x16xf32>
    %c52 = arith.constant 52 : index
    %475 = memref.load %arg10[%c52] : memref<98xf32, #tpu.memory_space<smem>>
    %c1_320 = arith.constant 1 : index
    %c0_321 = arith.constant 0 : index
    %c3_322 = arith.constant 3 : index
    %476 = vector.load %arg14[%c1_320, %c0_321, %c3_322] : memref<2x22x22xf32, #tpu.memory_space<vmem>>, vector<1x16x16xf32>
    %477 = vector.shape_cast %476 : vector<1x16x16xf32> to vector<16x16xf32>
    %478 = vector.broadcast %475 : f32 to vector<16x16xf32>
    %479 = arith.mulf %478, %477 : vector<16x16xf32>
    %480 = arith.addf %474, %479 : vector<16x16xf32>
    %c53 = arith.constant 53 : index
    %481 = memref.load %arg10[%c53] : memref<98xf32, #tpu.memory_space<smem>>
    %c1_323 = arith.constant 1 : index
    %c0_324 = arith.constant 0 : index
    %c4_325 = arith.constant 4 : index
    %482 = vector.load %arg14[%c1_323, %c0_324, %c4_325] : memref<2x22x22xf32, #tpu.memory_space<vmem>>, vector<1x16x16xf32>
    %483 = vector.shape_cast %482 : vector<1x16x16xf32> to vector<16x16xf32>
    %484 = vector.broadcast %481 : f32 to vector<16x16xf32>
    %485 = arith.mulf %484, %483 : vector<16x16xf32>
    %486 = arith.addf %480, %485 : vector<16x16xf32>
    %c54 = arith.constant 54 : index
    %487 = memref.load %arg10[%c54] : memref<98xf32, #tpu.memory_space<smem>>
    %c1_326 = arith.constant 1 : index
    %c0_327 = arith.constant 0 : index
    %c5_328 = arith.constant 5 : index
    %488 = vector.load %arg14[%c1_326, %c0_327, %c5_328] : memref<2x22x22xf32, #tpu.memory_space<vmem>>, vector<1x16x16xf32>
    %489 = vector.shape_cast %488 : vector<1x16x16xf32> to vector<16x16xf32>
    %490 = vector.broadcast %487 : f32 to vector<16x16xf32>
    %491 = arith.mulf %490, %489 : vector<16x16xf32>
    %492 = arith.addf %486, %491 : vector<16x16xf32>
    %c55 = arith.constant 55 : index
    %493 = memref.load %arg10[%c55] : memref<98xf32, #tpu.memory_space<smem>>
    %c1_329 = arith.constant 1 : index
    %c0_330 = arith.constant 0 : index
    %c6_331 = arith.constant 6 : index
    %494 = vector.load %arg14[%c1_329, %c0_330, %c6_331] : memref<2x22x22xf32, #tpu.memory_space<vmem>>, vector<1x16x16xf32>
    %495 = vector.shape_cast %494 : vector<1x16x16xf32> to vector<16x16xf32>
    %496 = vector.broadcast %493 : f32 to vector<16x16xf32>
    %497 = arith.mulf %496, %495 : vector<16x16xf32>
    %498 = arith.addf %492, %497 : vector<16x16xf32>
    %c56 = arith.constant 56 : index
    %499 = memref.load %arg10[%c56] : memref<98xf32, #tpu.memory_space<smem>>
    %c1_332 = arith.constant 1 : index
    %c1_333 = arith.constant 1 : index
    %c0_334 = arith.constant 0 : index
    %500 = vector.load %arg14[%c1_332, %c1_333, %c0_334] : memref<2x22x22xf32, #tpu.memory_space<vmem>>, vector<1x16x16xf32>
    %501 = vector.shape_cast %500 : vector<1x16x16xf32> to vector<16x16xf32>
    %502 = vector.broadcast %499 : f32 to vector<16x16xf32>
    %503 = arith.mulf %502, %501 : vector<16x16xf32>
    %504 = arith.addf %498, %503 : vector<16x16xf32>
    %c57 = arith.constant 57 : index
    %505 = memref.load %arg10[%c57] : memref<98xf32, #tpu.memory_space<smem>>
    %c1_335 = arith.constant 1 : index
    %c1_336 = arith.constant 1 : index
    %c1_337 = arith.constant 1 : index
    %506 = vector.load %arg14[%c1_335, %c1_336, %c1_337] : memref<2x22x22xf32, #tpu.memory_space<vmem>>, vector<1x16x16xf32>
    %507 = vector.shape_cast %506 : vector<1x16x16xf32> to vector<16x16xf32>
    %508 = vector.broadcast %505 : f32 to vector<16x16xf32>
    %509 = arith.mulf %508, %507 : vector<16x16xf32>
    %510 = arith.addf %504, %509 : vector<16x16xf32>
    %c58 = arith.constant 58 : index
    %511 = memref.load %arg10[%c58] : memref<98xf32, #tpu.memory_space<smem>>
    %c1_338 = arith.constant 1 : index
    %c1_339 = arith.constant 1 : index
    %c2_340 = arith.constant 2 : index
    %512 = vector.load %arg14[%c1_338, %c1_339, %c2_340] : memref<2x22x22xf32, #tpu.memory_space<vmem>>, vector<1x16x16xf32>
    %513 = vector.shape_cast %512 : vector<1x16x16xf32> to vector<16x16xf32>
    %514 = vector.broadcast %511 : f32 to vector<16x16xf32>
    %515 = arith.mulf %514, %513 : vector<16x16xf32>
    %516 = arith.addf %510, %515 : vector<16x16xf32>
    %c59 = arith.constant 59 : index
    %517 = memref.load %arg10[%c59] : memref<98xf32, #tpu.memory_space<smem>>
    %c1_341 = arith.constant 1 : index
    %c1_342 = arith.constant 1 : index
    %c3_343 = arith.constant 3 : index
    %518 = vector.load %arg14[%c1_341, %c1_342, %c3_343] : memref<2x22x22xf32, #tpu.memory_space<vmem>>, vector<1x16x16xf32>
    %519 = vector.shape_cast %518 : vector<1x16x16xf32> to vector<16x16xf32>
    %520 = vector.broadcast %517 : f32 to vector<16x16xf32>
    %521 = arith.mulf %520, %519 : vector<16x16xf32>
    %522 = arith.addf %516, %521 : vector<16x16xf32>
    %c60 = arith.constant 60 : index
    %523 = memref.load %arg10[%c60] : memref<98xf32, #tpu.memory_space<smem>>
    %c1_344 = arith.constant 1 : index
    %c1_345 = arith.constant 1 : index
    %c4_346 = arith.constant 4 : index
    %524 = vector.load %arg14[%c1_344, %c1_345, %c4_346] : memref<2x22x22xf32, #tpu.memory_space<vmem>>, vector<1x16x16xf32>
    %525 = vector.shape_cast %524 : vector<1x16x16xf32> to vector<16x16xf32>
    %526 = vector.broadcast %523 : f32 to vector<16x16xf32>
    %527 = arith.mulf %526, %525 : vector<16x16xf32>
    %528 = arith.addf %522, %527 : vector<16x16xf32>
    %c61 = arith.constant 61 : index
    %529 = memref.load %arg10[%c61] : memref<98xf32, #tpu.memory_space<smem>>
    %c1_347 = arith.constant 1 : index
    %c1_348 = arith.constant 1 : index
    %c5_349 = arith.constant 5 : index
    %530 = vector.load %arg14[%c1_347, %c1_348, %c5_349] : memref<2x22x22xf32, #tpu.memory_space<vmem>>, vector<1x16x16xf32>
    %531 = vector.shape_cast %530 : vector<1x16x16xf32> to vector<16x16xf32>
    %532 = vector.broadcast %529 : f32 to vector<16x16xf32>
    %533 = arith.mulf %532, %531 : vector<16x16xf32>
    %534 = arith.addf %528, %533 : vector<16x16xf32>
    %c62 = arith.constant 62 : index
    %535 = memref.load %arg10[%c62] : memref<98xf32, #tpu.memory_space<smem>>
    %c1_350 = arith.constant 1 : index
    %c1_351 = arith.constant 1 : index
    %c6_352 = arith.constant 6 : index
    %536 = vector.load %arg14[%c1_350, %c1_351, %c6_352] : memref<2x22x22xf32, #tpu.memory_space<vmem>>, vector<1x16x16xf32>
    %537 = vector.shape_cast %536 : vector<1x16x16xf32> to vector<16x16xf32>
    %538 = vector.broadcast %535 : f32 to vector<16x16xf32>
    %539 = arith.mulf %538, %537 : vector<16x16xf32>
    %540 = arith.addf %534, %539 : vector<16x16xf32>
    %c63 = arith.constant 63 : index
    %541 = memref.load %arg10[%c63] : memref<98xf32, #tpu.memory_space<smem>>
    %c1_353 = arith.constant 1 : index
    %c2_354 = arith.constant 2 : index
    %c0_355 = arith.constant 0 : index
    %542 = vector.load %arg14[%c1_353, %c2_354, %c0_355] : memref<2x22x22xf32, #tpu.memory_space<vmem>>, vector<1x16x16xf32>
    %543 = vector.shape_cast %542 : vector<1x16x16xf32> to vector<16x16xf32>
    %544 = vector.broadcast %541 : f32 to vector<16x16xf32>
    %545 = arith.mulf %544, %543 : vector<16x16xf32>
    %546 = arith.addf %540, %545 : vector<16x16xf32>
    %c64 = arith.constant 64 : index
    %547 = memref.load %arg10[%c64] : memref<98xf32, #tpu.memory_space<smem>>
    %c1_356 = arith.constant 1 : index
    %c2_357 = arith.constant 2 : index
    %c1_358 = arith.constant 1 : index
    %548 = vector.load %arg14[%c1_356, %c2_357, %c1_358] : memref<2x22x22xf32, #tpu.memory_space<vmem>>, vector<1x16x16xf32>
    %549 = vector.shape_cast %548 : vector<1x16x16xf32> to vector<16x16xf32>
    %550 = vector.broadcast %547 : f32 to vector<16x16xf32>
    %551 = arith.mulf %550, %549 : vector<16x16xf32>
    %552 = arith.addf %546, %551 : vector<16x16xf32>
    %c65 = arith.constant 65 : index
    %553 = memref.load %arg10[%c65] : memref<98xf32, #tpu.memory_space<smem>>
    %c1_359 = arith.constant 1 : index
    %c2_360 = arith.constant 2 : index
    %c2_361 = arith.constant 2 : index
    %554 = vector.load %arg14[%c1_359, %c2_360, %c2_361] : memref<2x22x22xf32, #tpu.memory_space<vmem>>, vector<1x16x16xf32>
    %555 = vector.shape_cast %554 : vector<1x16x16xf32> to vector<16x16xf32>
    %556 = vector.broadcast %553 : f32 to vector<16x16xf32>
    %557 = arith.mulf %556, %555 : vector<16x16xf32>
    %558 = arith.addf %552, %557 : vector<16x16xf32>
    %c66 = arith.constant 66 : index
    %559 = memref.load %arg10[%c66] : memref<98xf32, #tpu.memory_space<smem>>
    %c1_362 = arith.constant 1 : index
    %c2_363 = arith.constant 2 : index
    %c3_364 = arith.constant 3 : index
    %560 = vector.load %arg14[%c1_362, %c2_363, %c3_364] : memref<2x22x22xf32, #tpu.memory_space<vmem>>, vector<1x16x16xf32>
    %561 = vector.shape_cast %560 : vector<1x16x16xf32> to vector<16x16xf32>
    %562 = vector.broadcast %559 : f32 to vector<16x16xf32>
    %563 = arith.mulf %562, %561 : vector<16x16xf32>
    %564 = arith.addf %558, %563 : vector<16x16xf32>
    %c67 = arith.constant 67 : index
    %565 = memref.load %arg10[%c67] : memref<98xf32, #tpu.memory_space<smem>>
    %c1_365 = arith.constant 1 : index
    %c2_366 = arith.constant 2 : index
    %c4_367 = arith.constant 4 : index
    %566 = vector.load %arg14[%c1_365, %c2_366, %c4_367] : memref<2x22x22xf32, #tpu.memory_space<vmem>>, vector<1x16x16xf32>
    %567 = vector.shape_cast %566 : vector<1x16x16xf32> to vector<16x16xf32>
    %568 = vector.broadcast %565 : f32 to vector<16x16xf32>
    %569 = arith.mulf %568, %567 : vector<16x16xf32>
    %570 = arith.addf %564, %569 : vector<16x16xf32>
    %c68 = arith.constant 68 : index
    %571 = memref.load %arg10[%c68] : memref<98xf32, #tpu.memory_space<smem>>
    %c1_368 = arith.constant 1 : index
    %c2_369 = arith.constant 2 : index
    %c5_370 = arith.constant 5 : index
    %572 = vector.load %arg14[%c1_368, %c2_369, %c5_370] : memref<2x22x22xf32, #tpu.memory_space<vmem>>, vector<1x16x16xf32>
    %573 = vector.shape_cast %572 : vector<1x16x16xf32> to vector<16x16xf32>
    %574 = vector.broadcast %571 : f32 to vector<16x16xf32>
    %575 = arith.mulf %574, %573 : vector<16x16xf32>
    %576 = arith.addf %570, %575 : vector<16x16xf32>
    %c69 = arith.constant 69 : index
    %577 = memref.load %arg10[%c69] : memref<98xf32, #tpu.memory_space<smem>>
    %c1_371 = arith.constant 1 : index
    %c2_372 = arith.constant 2 : index
    %c6_373 = arith.constant 6 : index
    %578 = vector.load %arg14[%c1_371, %c2_372, %c6_373] : memref<2x22x22xf32, #tpu.memory_space<vmem>>, vector<1x16x16xf32>
    %579 = vector.shape_cast %578 : vector<1x16x16xf32> to vector<16x16xf32>
    %580 = vector.broadcast %577 : f32 to vector<16x16xf32>
    %581 = arith.mulf %580, %579 : vector<16x16xf32>
    %582 = arith.addf %576, %581 : vector<16x16xf32>
    %c70 = arith.constant 70 : index
    %583 = memref.load %arg10[%c70] : memref<98xf32, #tpu.memory_space<smem>>
    %c1_374 = arith.constant 1 : index
    %c3_375 = arith.constant 3 : index
    %c0_376 = arith.constant 0 : index
    %584 = vector.load %arg14[%c1_374, %c3_375, %c0_376] : memref<2x22x22xf32, #tpu.memory_space<vmem>>, vector<1x16x16xf32>
    %585 = vector.shape_cast %584 : vector<1x16x16xf32> to vector<16x16xf32>
    %586 = vector.broadcast %583 : f32 to vector<16x16xf32>
    %587 = arith.mulf %586, %585 : vector<16x16xf32>
    %588 = arith.addf %582, %587 : vector<16x16xf32>
    %c71 = arith.constant 71 : index
    %589 = memref.load %arg10[%c71] : memref<98xf32, #tpu.memory_space<smem>>
    %c1_377 = arith.constant 1 : index
    %c3_378 = arith.constant 3 : index
    %c1_379 = arith.constant 1 : index
    %590 = vector.load %arg14[%c1_377, %c3_378, %c1_379] : memref<2x22x22xf32, #tpu.memory_space<vmem>>, vector<1x16x16xf32>
    %591 = vector.shape_cast %590 : vector<1x16x16xf32> to vector<16x16xf32>
    %592 = vector.broadcast %589 : f32 to vector<16x16xf32>
    %593 = arith.mulf %592, %591 : vector<16x16xf32>
    %594 = arith.addf %588, %593 : vector<16x16xf32>
    %c72 = arith.constant 72 : index
    %595 = memref.load %arg10[%c72] : memref<98xf32, #tpu.memory_space<smem>>
    %c1_380 = arith.constant 1 : index
    %c3_381 = arith.constant 3 : index
    %c2_382 = arith.constant 2 : index
    %596 = vector.load %arg14[%c1_380, %c3_381, %c2_382] : memref<2x22x22xf32, #tpu.memory_space<vmem>>, vector<1x16x16xf32>
    %597 = vector.shape_cast %596 : vector<1x16x16xf32> to vector<16x16xf32>
    %598 = vector.broadcast %595 : f32 to vector<16x16xf32>
    %599 = arith.mulf %598, %597 : vector<16x16xf32>
    %600 = arith.addf %594, %599 : vector<16x16xf32>
    %c73 = arith.constant 73 : index
    %601 = memref.load %arg10[%c73] : memref<98xf32, #tpu.memory_space<smem>>
    %c1_383 = arith.constant 1 : index
    %c3_384 = arith.constant 3 : index
    %c3_385 = arith.constant 3 : index
    %602 = vector.load %arg14[%c1_383, %c3_384, %c3_385] : memref<2x22x22xf32, #tpu.memory_space<vmem>>, vector<1x16x16xf32>
    %603 = vector.shape_cast %602 : vector<1x16x16xf32> to vector<16x16xf32>
    %604 = vector.broadcast %601 : f32 to vector<16x16xf32>
    %605 = arith.mulf %604, %603 : vector<16x16xf32>
    %606 = arith.addf %600, %605 : vector<16x16xf32>
    %c74 = arith.constant 74 : index
    %607 = memref.load %arg10[%c74] : memref<98xf32, #tpu.memory_space<smem>>
    %c1_386 = arith.constant 1 : index
    %c3_387 = arith.constant 3 : index
    %c4_388 = arith.constant 4 : index
    %608 = vector.load %arg14[%c1_386, %c3_387, %c4_388] : memref<2x22x22xf32, #tpu.memory_space<vmem>>, vector<1x16x16xf32>
    %609 = vector.shape_cast %608 : vector<1x16x16xf32> to vector<16x16xf32>
    %610 = vector.broadcast %607 : f32 to vector<16x16xf32>
    %611 = arith.mulf %610, %609 : vector<16x16xf32>
    %612 = arith.addf %606, %611 : vector<16x16xf32>
    %c75 = arith.constant 75 : index
    %613 = memref.load %arg10[%c75] : memref<98xf32, #tpu.memory_space<smem>>
    %c1_389 = arith.constant 1 : index
    %c3_390 = arith.constant 3 : index
    %c5_391 = arith.constant 5 : index
    %614 = vector.load %arg14[%c1_389, %c3_390, %c5_391] : memref<2x22x22xf32, #tpu.memory_space<vmem>>, vector<1x16x16xf32>
    %615 = vector.shape_cast %614 : vector<1x16x16xf32> to vector<16x16xf32>
    %616 = vector.broadcast %613 : f32 to vector<16x16xf32>
    %617 = arith.mulf %616, %615 : vector<16x16xf32>
    %618 = arith.addf %612, %617 : vector<16x16xf32>
    %c76 = arith.constant 76 : index
    %619 = memref.load %arg10[%c76] : memref<98xf32, #tpu.memory_space<smem>>
    %c1_392 = arith.constant 1 : index
    %c3_393 = arith.constant 3 : index
    %c6_394 = arith.constant 6 : index
    %620 = vector.load %arg14[%c1_392, %c3_393, %c6_394] : memref<2x22x22xf32, #tpu.memory_space<vmem>>, vector<1x16x16xf32>
    %621 = vector.shape_cast %620 : vector<1x16x16xf32> to vector<16x16xf32>
    %622 = vector.broadcast %619 : f32 to vector<16x16xf32>
    %623 = arith.mulf %622, %621 : vector<16x16xf32>
    %624 = arith.addf %618, %623 : vector<16x16xf32>
    %c77 = arith.constant 77 : index
    %625 = memref.load %arg10[%c77] : memref<98xf32, #tpu.memory_space<smem>>
    %c1_395 = arith.constant 1 : index
    %c4_396 = arith.constant 4 : index
    %c0_397 = arith.constant 0 : index
    %626 = vector.load %arg14[%c1_395, %c4_396, %c0_397] : memref<2x22x22xf32, #tpu.memory_space<vmem>>, vector<1x16x16xf32>
    %627 = vector.shape_cast %626 : vector<1x16x16xf32> to vector<16x16xf32>
    %628 = vector.broadcast %625 : f32 to vector<16x16xf32>
    %629 = arith.mulf %628, %627 : vector<16x16xf32>
    %630 = arith.addf %624, %629 : vector<16x16xf32>
    %c78 = arith.constant 78 : index
    %631 = memref.load %arg10[%c78] : memref<98xf32, #tpu.memory_space<smem>>
    %c1_398 = arith.constant 1 : index
    %c4_399 = arith.constant 4 : index
    %c1_400 = arith.constant 1 : index
    %632 = vector.load %arg14[%c1_398, %c4_399, %c1_400] : memref<2x22x22xf32, #tpu.memory_space<vmem>>, vector<1x16x16xf32>
    %633 = vector.shape_cast %632 : vector<1x16x16xf32> to vector<16x16xf32>
    %634 = vector.broadcast %631 : f32 to vector<16x16xf32>
    %635 = arith.mulf %634, %633 : vector<16x16xf32>
    %636 = arith.addf %630, %635 : vector<16x16xf32>
    %c79 = arith.constant 79 : index
    %637 = memref.load %arg10[%c79] : memref<98xf32, #tpu.memory_space<smem>>
    %c1_401 = arith.constant 1 : index
    %c4_402 = arith.constant 4 : index
    %c2_403 = arith.constant 2 : index
    %638 = vector.load %arg14[%c1_401, %c4_402, %c2_403] : memref<2x22x22xf32, #tpu.memory_space<vmem>>, vector<1x16x16xf32>
    %639 = vector.shape_cast %638 : vector<1x16x16xf32> to vector<16x16xf32>
    %640 = vector.broadcast %637 : f32 to vector<16x16xf32>
    %641 = arith.mulf %640, %639 : vector<16x16xf32>
    %642 = arith.addf %636, %641 : vector<16x16xf32>
    %c80 = arith.constant 80 : index
    %643 = memref.load %arg10[%c80] : memref<98xf32, #tpu.memory_space<smem>>
    %c1_404 = arith.constant 1 : index
    %c4_405 = arith.constant 4 : index
    %c3_406 = arith.constant 3 : index
    %644 = vector.load %arg14[%c1_404, %c4_405, %c3_406] : memref<2x22x22xf32, #tpu.memory_space<vmem>>, vector<1x16x16xf32>
    %645 = vector.shape_cast %644 : vector<1x16x16xf32> to vector<16x16xf32>
    %646 = vector.broadcast %643 : f32 to vector<16x16xf32>
    %647 = arith.mulf %646, %645 : vector<16x16xf32>
    %648 = arith.addf %642, %647 : vector<16x16xf32>
    %c81 = arith.constant 81 : index
    %649 = memref.load %arg10[%c81] : memref<98xf32, #tpu.memory_space<smem>>
    %c1_407 = arith.constant 1 : index
    %c4_408 = arith.constant 4 : index
    %c4_409 = arith.constant 4 : index
    %650 = vector.load %arg14[%c1_407, %c4_408, %c4_409] : memref<2x22x22xf32, #tpu.memory_space<vmem>>, vector<1x16x16xf32>
    %651 = vector.shape_cast %650 : vector<1x16x16xf32> to vector<16x16xf32>
    %652 = vector.broadcast %649 : f32 to vector<16x16xf32>
    %653 = arith.mulf %652, %651 : vector<16x16xf32>
    %654 = arith.addf %648, %653 : vector<16x16xf32>
    %c82 = arith.constant 82 : index
    %655 = memref.load %arg10[%c82] : memref<98xf32, #tpu.memory_space<smem>>
    %c1_410 = arith.constant 1 : index
    %c4_411 = arith.constant 4 : index
    %c5_412 = arith.constant 5 : index
    %656 = vector.load %arg14[%c1_410, %c4_411, %c5_412] : memref<2x22x22xf32, #tpu.memory_space<vmem>>, vector<1x16x16xf32>
    %657 = vector.shape_cast %656 : vector<1x16x16xf32> to vector<16x16xf32>
    %658 = vector.broadcast %655 : f32 to vector<16x16xf32>
    %659 = arith.mulf %658, %657 : vector<16x16xf32>
    %660 = arith.addf %654, %659 : vector<16x16xf32>
    %c83 = arith.constant 83 : index
    %661 = memref.load %arg10[%c83] : memref<98xf32, #tpu.memory_space<smem>>
    %c1_413 = arith.constant 1 : index
    %c4_414 = arith.constant 4 : index
    %c6_415 = arith.constant 6 : index
    %662 = vector.load %arg14[%c1_413, %c4_414, %c6_415] : memref<2x22x22xf32, #tpu.memory_space<vmem>>, vector<1x16x16xf32>
    %663 = vector.shape_cast %662 : vector<1x16x16xf32> to vector<16x16xf32>
    %664 = vector.broadcast %661 : f32 to vector<16x16xf32>
    %665 = arith.mulf %664, %663 : vector<16x16xf32>
    %666 = arith.addf %660, %665 : vector<16x16xf32>
    %c84 = arith.constant 84 : index
    %667 = memref.load %arg10[%c84] : memref<98xf32, #tpu.memory_space<smem>>
    %c1_416 = arith.constant 1 : index
    %c5_417 = arith.constant 5 : index
    %c0_418 = arith.constant 0 : index
    %668 = vector.load %arg14[%c1_416, %c5_417, %c0_418] : memref<2x22x22xf32, #tpu.memory_space<vmem>>, vector<1x16x16xf32>
    %669 = vector.shape_cast %668 : vector<1x16x16xf32> to vector<16x16xf32>
    %670 = vector.broadcast %667 : f32 to vector<16x16xf32>
    %671 = arith.mulf %670, %669 : vector<16x16xf32>
    %672 = arith.addf %666, %671 : vector<16x16xf32>
    %c85 = arith.constant 85 : index
    %673 = memref.load %arg10[%c85] : memref<98xf32, #tpu.memory_space<smem>>
    %c1_419 = arith.constant 1 : index
    %c5_420 = arith.constant 5 : index
    %c1_421 = arith.constant 1 : index
    %674 = vector.load %arg14[%c1_419, %c5_420, %c1_421] : memref<2x22x22xf32, #tpu.memory_space<vmem>>, vector<1x16x16xf32>
    %675 = vector.shape_cast %674 : vector<1x16x16xf32> to vector<16x16xf32>
    %676 = vector.broadcast %673 : f32 to vector<16x16xf32>
    %677 = arith.mulf %676, %675 : vector<16x16xf32>
    %678 = arith.addf %672, %677 : vector<16x16xf32>
    %c86 = arith.constant 86 : index
    %679 = memref.load %arg10[%c86] : memref<98xf32, #tpu.memory_space<smem>>
    %c1_422 = arith.constant 1 : index
    %c5_423 = arith.constant 5 : index
    %c2_424 = arith.constant 2 : index
    %680 = vector.load %arg14[%c1_422, %c5_423, %c2_424] : memref<2x22x22xf32, #tpu.memory_space<vmem>>, vector<1x16x16xf32>
    %681 = vector.shape_cast %680 : vector<1x16x16xf32> to vector<16x16xf32>
    %682 = vector.broadcast %679 : f32 to vector<16x16xf32>
    %683 = arith.mulf %682, %681 : vector<16x16xf32>
    %684 = arith.addf %678, %683 : vector<16x16xf32>
    %c87 = arith.constant 87 : index
    %685 = memref.load %arg10[%c87] : memref<98xf32, #tpu.memory_space<smem>>
    %c1_425 = arith.constant 1 : index
    %c5_426 = arith.constant 5 : index
    %c3_427 = arith.constant 3 : index
    %686 = vector.load %arg14[%c1_425, %c5_426, %c3_427] : memref<2x22x22xf32, #tpu.memory_space<vmem>>, vector<1x16x16xf32>
    %687 = vector.shape_cast %686 : vector<1x16x16xf32> to vector<16x16xf32>
    %688 = vector.broadcast %685 : f32 to vector<16x16xf32>
    %689 = arith.mulf %688, %687 : vector<16x16xf32>
    %690 = arith.addf %684, %689 : vector<16x16xf32>
    %c88 = arith.constant 88 : index
    %691 = memref.load %arg10[%c88] : memref<98xf32, #tpu.memory_space<smem>>
    %c1_428 = arith.constant 1 : index
    %c5_429 = arith.constant 5 : index
    %c4_430 = arith.constant 4 : index
    %692 = vector.load %arg14[%c1_428, %c5_429, %c4_430] : memref<2x22x22xf32, #tpu.memory_space<vmem>>, vector<1x16x16xf32>
    %693 = vector.shape_cast %692 : vector<1x16x16xf32> to vector<16x16xf32>
    %694 = vector.broadcast %691 : f32 to vector<16x16xf32>
    %695 = arith.mulf %694, %693 : vector<16x16xf32>
    %696 = arith.addf %690, %695 : vector<16x16xf32>
    %c89 = arith.constant 89 : index
    %697 = memref.load %arg10[%c89] : memref<98xf32, #tpu.memory_space<smem>>
    %c1_431 = arith.constant 1 : index
    %c5_432 = arith.constant 5 : index
    %c5_433 = arith.constant 5 : index
    %698 = vector.load %arg14[%c1_431, %c5_432, %c5_433] : memref<2x22x22xf32, #tpu.memory_space<vmem>>, vector<1x16x16xf32>
    %699 = vector.shape_cast %698 : vector<1x16x16xf32> to vector<16x16xf32>
    %700 = vector.broadcast %697 : f32 to vector<16x16xf32>
    %701 = arith.mulf %700, %699 : vector<16x16xf32>
    %702 = arith.addf %696, %701 : vector<16x16xf32>
    %c90 = arith.constant 90 : index
    %703 = memref.load %arg10[%c90] : memref<98xf32, #tpu.memory_space<smem>>
    %c1_434 = arith.constant 1 : index
    %c5_435 = arith.constant 5 : index
    %c6_436 = arith.constant 6 : index
    %704 = vector.load %arg14[%c1_434, %c5_435, %c6_436] : memref<2x22x22xf32, #tpu.memory_space<vmem>>, vector<1x16x16xf32>
    %705 = vector.shape_cast %704 : vector<1x16x16xf32> to vector<16x16xf32>
    %706 = vector.broadcast %703 : f32 to vector<16x16xf32>
    %707 = arith.mulf %706, %705 : vector<16x16xf32>
    %708 = arith.addf %702, %707 : vector<16x16xf32>
    %c91 = arith.constant 91 : index
    %709 = memref.load %arg10[%c91] : memref<98xf32, #tpu.memory_space<smem>>
    %c1_437 = arith.constant 1 : index
    %c6_438 = arith.constant 6 : index
    %c0_439 = arith.constant 0 : index
    %710 = vector.load %arg14[%c1_437, %c6_438, %c0_439] : memref<2x22x22xf32, #tpu.memory_space<vmem>>, vector<1x16x16xf32>
    %711 = vector.shape_cast %710 : vector<1x16x16xf32> to vector<16x16xf32>
    %712 = vector.broadcast %709 : f32 to vector<16x16xf32>
    %713 = arith.mulf %712, %711 : vector<16x16xf32>
    %714 = arith.addf %708, %713 : vector<16x16xf32>
    %c92 = arith.constant 92 : index
    %715 = memref.load %arg10[%c92] : memref<98xf32, #tpu.memory_space<smem>>
    %c1_440 = arith.constant 1 : index
    %c6_441 = arith.constant 6 : index
    %c1_442 = arith.constant 1 : index
    %716 = vector.load %arg14[%c1_440, %c6_441, %c1_442] : memref<2x22x22xf32, #tpu.memory_space<vmem>>, vector<1x16x16xf32>
    %717 = vector.shape_cast %716 : vector<1x16x16xf32> to vector<16x16xf32>
    %718 = vector.broadcast %715 : f32 to vector<16x16xf32>
    %719 = arith.mulf %718, %717 : vector<16x16xf32>
    %720 = arith.addf %714, %719 : vector<16x16xf32>
    %c93 = arith.constant 93 : index
    %721 = memref.load %arg10[%c93] : memref<98xf32, #tpu.memory_space<smem>>
    %c1_443 = arith.constant 1 : index
    %c6_444 = arith.constant 6 : index
    %c2_445 = arith.constant 2 : index
    %722 = vector.load %arg14[%c1_443, %c6_444, %c2_445] : memref<2x22x22xf32, #tpu.memory_space<vmem>>, vector<1x16x16xf32>
    %723 = vector.shape_cast %722 : vector<1x16x16xf32> to vector<16x16xf32>
    %724 = vector.broadcast %721 : f32 to vector<16x16xf32>
    %725 = arith.mulf %724, %723 : vector<16x16xf32>
    %726 = arith.addf %720, %725 : vector<16x16xf32>
    %c94 = arith.constant 94 : index
    %727 = memref.load %arg10[%c94] : memref<98xf32, #tpu.memory_space<smem>>
    %c1_446 = arith.constant 1 : index
    %c6_447 = arith.constant 6 : index
    %c3_448 = arith.constant 3 : index
    %728 = vector.load %arg14[%c1_446, %c6_447, %c3_448] : memref<2x22x22xf32, #tpu.memory_space<vmem>>, vector<1x16x16xf32>
    %729 = vector.shape_cast %728 : vector<1x16x16xf32> to vector<16x16xf32>
    %730 = vector.broadcast %727 : f32 to vector<16x16xf32>
    %731 = arith.mulf %730, %729 : vector<16x16xf32>
    %732 = arith.addf %726, %731 : vector<16x16xf32>
    %c95 = arith.constant 95 : index
    %733 = memref.load %arg10[%c95] : memref<98xf32, #tpu.memory_space<smem>>
    %c1_449 = arith.constant 1 : index
    %c6_450 = arith.constant 6 : index
    %c4_451 = arith.constant 4 : index
    %734 = vector.load %arg14[%c1_449, %c6_450, %c4_451] : memref<2x22x22xf32, #tpu.memory_space<vmem>>, vector<1x16x16xf32>
    %735 = vector.shape_cast %734 : vector<1x16x16xf32> to vector<16x16xf32>
    %736 = vector.broadcast %733 : f32 to vector<16x16xf32>
    %737 = arith.mulf %736, %735 : vector<16x16xf32>
    %738 = arith.addf %732, %737 : vector<16x16xf32>
    %c96 = arith.constant 96 : index
    %739 = memref.load %arg10[%c96] : memref<98xf32, #tpu.memory_space<smem>>
    %c1_452 = arith.constant 1 : index
    %c6_453 = arith.constant 6 : index
    %c5_454 = arith.constant 5 : index
    %740 = vector.load %arg14[%c1_452, %c6_453, %c5_454] : memref<2x22x22xf32, #tpu.memory_space<vmem>>, vector<1x16x16xf32>
    %741 = vector.shape_cast %740 : vector<1x16x16xf32> to vector<16x16xf32>
    %742 = vector.broadcast %739 : f32 to vector<16x16xf32>
    %743 = arith.mulf %742, %741 : vector<16x16xf32>
    %744 = arith.addf %738, %743 : vector<16x16xf32>
    %c97 = arith.constant 97 : index
    %745 = memref.load %arg10[%c97] : memref<98xf32, #tpu.memory_space<smem>>
    %c1_455 = arith.constant 1 : index
    %c6_456 = arith.constant 6 : index
    %c6_457 = arith.constant 6 : index
    %746 = vector.load %arg14[%c1_455, %c6_456, %c6_457] : memref<2x22x22xf32, #tpu.memory_space<vmem>>, vector<1x16x16xf32>
    %747 = vector.shape_cast %746 : vector<1x16x16xf32> to vector<16x16xf32>
    %748 = vector.broadcast %745 : f32 to vector<16x16xf32>
    %749 = arith.mulf %748, %747 : vector<16x16xf32>
    %750 = arith.addf %744, %749 : vector<16x16xf32>
    %cst_458 = arith.constant 0.000000e+00 : f32
    %751 = vector.broadcast %cst_458 : f32 to vector<16x16xf32>
    %752 = arith.subf %751, %750 : vector<16x16xf32>
    %753 = math.exp %752 : vector<16x16xf32>
    %cst_459 = arith.constant 1.000000e+00 : f32
    %754 = vector.broadcast %cst_459 : f32 to vector<16x16xf32>
    %755 = arith.addf %754, %753 : vector<16x16xf32>
    %cst_460 = arith.constant 1.000000e+00 : f32
    %756 = vector.broadcast %cst_460 : f32 to vector<16x16xf32>
    %757 = arith.divf %756, %755 : vector<16x16xf32>
    %c0_461 = arith.constant 0 : index
    %c0_462 = arith.constant 0 : index
    %758 = vector.load %arg15[%c0_461, %c0_462] : memref<16x16xf32, #tpu.memory_space<vmem>>, vector<16x16xf32>
    tpu.vector_store %arg15[%c0_461, %c0_462], %757 {strides = array<i32>} : memref<16x16xf32, #tpu.memory_space<vmem>>, vector<16x16xf32>,
    %c0_i32_463 = arith.constant 0 : i32
    %c8_i32_464 = arith.constant 8 : i32
    %759 = arith.muli %c0_i32_463, %c8_i32_464 : i32
    %760 = arith.index_cast %759 : i32 to index
    %c0_465 = arith.constant 0 : index
    %c0_466 = arith.constant 0 : index
    %761 = vector.load %arg13[%760, %c0_465, %c0_466] : memref<16x16x16xf32, #tpu.memory_space<vmem>>, vector<8x16x16xf32>
    %762 = vector.shape_cast %119 : vector<1x16xf32> to vector<1x1x16xf32>
    %763 = vector.broadcast %762 : vector<1x1x16xf32> to vector<8x16x16xf32>
    %764 = arith.mulf %761, %763 : vector<8x16x16xf32>
    %765 = arith.index_cast %759 : i32 to index
    %c0_467 = arith.constant 0 : index
    %766 = vector.load %arg15[%765, %c0_467] : memref<16x16xf32, #tpu.memory_space<vmem>>, vector<8x16xf32>
    %c0_468 = arith.constant 0 : index
    %767 = arith.index_cast %759 : i32 to index
    %c0_469 = arith.constant 0 : index
    %c0_470 = arith.constant 0 : index
    %768 = vector.load %arg1[%c0_468, %767, %c0_469, %c0_470] : memref<1x16x16x16xf32, #tpu.memory_space<vmem>>, vector<1x8x16x16xf32>
    %769 = vector.shape_cast %768 : vector<1x8x16x16xf32> to vector<8x16x16xf32>
    %770 = vector.shape_cast %766 : vector<8x16xf32> to vector<8x16x1xf32>
    %771 = vector.broadcast %770 : vector<8x16x1xf32> to vector<8x16x16xf32>
    %772 = arith.mulf %764, %771 : vector<8x16x16xf32>
    %773 = arith.addf %772, %769 : vector<8x16x16xf32>
    %cst_471 = arith.constant 0.000000e+00 : f32
    %774 = vector.broadcast %cst_471 : f32 to vector<8x16x16xf32>
    %775 = arith.maximumf %773, %774 : vector<8x16x16xf32>
    %c0_472 = arith.constant 0 : index
    %776 = arith.index_cast %759 : i32 to index
    %c0_473 = arith.constant 0 : index
    %c0_474 = arith.constant 0 : index
    %777 = vector.load %arg11[%c0_472, %776, %c0_473, %c0_474] : memref<1x16x16x16xf32, #tpu.memory_space<vmem>>, vector<1x8x16x16xf32>
    %778 = vector.shape_cast %777 : vector<1x8x16x16xf32> to vector<8x16x16xf32>
    %779 = vector.shape_cast %775 : vector<8x16x16xf32> to vector<1x8x16x16xf32>
    tpu.vector_store %arg11[%c0_472, %776, %c0_473, %c0_474], %779 {strides = array<i32>} : memref<1x16x16x16xf32, #tpu.memory_space<vmem>>, vector<1x8x16x16xf32>,
    %c1_i32_475 = arith.constant 1 : i32
    %c8_i32_476 = arith.constant 8 : i32
    %780 = arith.muli %c1_i32_475, %c8_i32_476 : i32
    %781 = arith.index_cast %780 : i32 to index
    %c0_477 = arith.constant 0 : index
    %c0_478 = arith.constant 0 : index
    %782 = vector.load %arg13[%781, %c0_477, %c0_478] : memref<16x16x16xf32, #tpu.memory_space<vmem>>, vector<8x16x16xf32>
    %783 = vector.shape_cast %119 : vector<1x16xf32> to vector<1x1x16xf32>
    %784 = vector.broadcast %783 : vector<1x1x16xf32> to vector<8x16x16xf32>
    %785 = arith.mulf %782, %784 : vector<8x16x16xf32>
    %786 = arith.index_cast %780 : i32 to index
    %c0_479 = arith.constant 0 : index
    %787 = vector.load %arg15[%786, %c0_479] : memref<16x16xf32, #tpu.memory_space<vmem>>, vector<8x16xf32>
    %c0_480 = arith.constant 0 : index
    %788 = arith.index_cast %780 : i32 to index
    %c0_481 = arith.constant 0 : index
    %c0_482 = arith.constant 0 : index
    %789 = vector.load %arg1[%c0_480, %788, %c0_481, %c0_482] : memref<1x16x16x16xf32, #tpu.memory_space<vmem>>, vector<1x8x16x16xf32>
    %790 = vector.shape_cast %789 : vector<1x8x16x16xf32> to vector<8x16x16xf32>
    %791 = vector.shape_cast %787 : vector<8x16xf32> to vector<8x16x1xf32>
    %792 = vector.broadcast %791 : vector<8x16x1xf32> to vector<8x16x16xf32>
    %793 = arith.mulf %785, %792 : vector<8x16x16xf32>
    %794 = arith.addf %793, %790 : vector<8x16x16xf32>
    %cst_483 = arith.constant 0.000000e+00 : f32
    %795 = vector.broadcast %cst_483 : f32 to vector<8x16x16xf32>
    %796 = arith.maximumf %794, %795 : vector<8x16x16xf32>
    %c0_484 = arith.constant 0 : index
    %797 = arith.index_cast %780 : i32 to index
    %c0_485 = arith.constant 0 : index
    %c0_486 = arith.constant 0 : index
    %798 = vector.load %arg11[%c0_484, %797, %c0_485, %c0_486] : memref<1x16x16x16xf32, #tpu.memory_space<vmem>>, vector<1x8x16x16xf32>
    %799 = vector.shape_cast %798 : vector<1x8x16x16xf32> to vector<8x16x16xf32>
    %800 = vector.shape_cast %796 : vector<8x16x16xf32> to vector<1x8x16x16xf32>
    tpu.vector_store %arg11[%c0_484, %797, %c0_485, %c0_486], %800 {strides = array<i32>} : memref<1x16x16x16xf32, #tpu.memory_space<vmem>>, vector<1x8x16x16xf32>,
    %c2_i32_487 = arith.constant 2 : i32
    return
  }
  func.func @transform_0(%arg0: i32) -> (i32, i32, i32, i32) {
    %c0_i32 = arith.constant 0 : i32
    %c0_i32_0 = arith.constant 0 : i32
    %c0_i32_1 = arith.constant 0 : i32
    %c0_i32_2 = arith.constant 0 : i32
    return %arg0, %c0_i32, %c0_i32_0, %c0_i32_1 : i32, i32, i32, i32
  }
  func.func @transform_1(%arg0: i32) -> (i32, i32) {
    %c0_i32 = arith.constant 0 : i32
    %c0_i32_0 = arith.constant 0 : i32
    %c0_i32_1 = arith.constant 0 : i32
    return %c0_i32, %c0_i32_0 : i32, i32
  }
  func.func @transform_2(%arg0: i32) -> (i32, i32) {
    %c0_i32 = arith.constant 0 : i32
    %c0_i32_0 = arith.constant 0 : i32
    %c0_i32_1 = arith.constant 0 : i32
    return %c0_i32, %c0_i32_0 : i32, i32
  }
  func.func @transform_3(%arg0: i32) -> (i32, i32, i32, i32) {
    %c0_i32 = arith.constant 0 : i32
    %c0_i32_0 = arith.constant 0 : i32
    %c0_i32_1 = arith.constant 0 : i32
    %c0_i32_2 = arith.constant 0 : i32
    %c0_i32_3 = arith.constant 0 : i32
    return %c0_i32, %c0_i32_0, %c0_i32_1, %c0_i32_2 : i32, i32, i32, i32
  }
  func.func @transform_4(%arg0: i32) -> (i32, i32) {
    %c0_i32 = arith.constant 0 : i32
    %c0_i32_0 = arith.constant 0 : i32
    %c0_i32_1 = arith.constant 0 : i32
    return %c0_i32, %c0_i32_0 : i32, i32
  }
  func.func @transform_5(%arg0: i32) -> (i32, i32) {
    %c0_i32 = arith.constant 0 : i32
    %c0_i32_0 = arith.constant 0 : i32
    %c0_i32_1 = arith.constant 0 : i32
    return %c0_i32, %c0_i32_0 : i32, i32
  }
  func.func @transform_6(%arg0: i32) -> (i32, i32) {
    %c0_i32 = arith.constant 0 : i32
    %c0_i32_0 = arith.constant 0 : i32
    %c0_i32_1 = arith.constant 0 : i32
    return %c0_i32, %c0_i32_0 : i32, i32
  }
  func.func @transform_7(%arg0: i32) -> (i32, i32) {
    %c0_i32 = arith.constant 0 : i32
    %c0_i32_0 = arith.constant 0 : i32
    %c0_i32_1 = arith.constant 0 : i32
    return %c0_i32, %c0_i32_0 : i32, i32
  }
  func.func @transform_8(%arg0: i32) -> (i32, i32) {
    %c0_i32 = arith.constant 0 : i32
    %c0_i32_0 = arith.constant 0 : i32
    %c0_i32_1 = arith.constant 0 : i32
    return %c0_i32, %c0_i32_0 : i32, i32
  }
  func.func @transform_9(%arg0: i32) -> i32 {
    %c0_i32 = arith.constant 0 : i32
    %c0_i32_0 = arith.constant 0 : i32
    return %c0_i32 : i32
  }
  func.func @transform_10(%arg0: i32) -> (i32, i32, i32, i32) {
    %c0_i32 = arith.constant 0 : i32
    %c0_i32_0 = arith.constant 0 : i32
    %c0_i32_1 = arith.constant 0 : i32
    %c0_i32_2 = arith.constant 0 : i32
    return %arg0, %c0_i32, %c0_i32_0, %c0_i32_1 : i32, i32, i32, i32
  }
}

</mosaic_0001>

<bundles_post_ra>
// kernel: tpu_custom_call.1
= control target key start
LH: loop header
LB: loop body
LE: loop exit
PB: predicated region body
PF: predicated region fallthrough
CT: control target
= control target key end

     0   :  { %s12766_s0 = inlined_call_operand.hbm [shape: f32[2,16,16,16], index: 0, kind: input, shape index: {}]   ;;  %s12767_s1 = inlined_call_operand.vmem [shape: f32[16,4], index: 1, kind: input, shape index: {}]   ;;  %s12768_s2 = inlined_call_operand.vmem [shape: f32[1,4], index: 2, kind: input, shape index: {}]   ;;  %s12769_s3 = inlined_call_operand.vmem [shape: f32[3,3,4,4], index: 3, kind: input, shape index: {}]   ;;  %s12770_s4 = inlined_call_operand.vmem [shape: f32[1,4], index: 4, kind: input, shape index: {}]   ;;  %s12771_s5 = inlined_call_operand.vmem [shape: f32[4,16], index: 5, kind: input, shape index: {}]   ;;  %s12772_s6 = inlined_call_operand.vmem [shape: f32[1,16], index: 6, kind: input, shape index: {}]   ;;  %s12773_s7 = inlined_call_operand.vmem [shape: f32[16,1], index: 7, kind: input, shape index: {}]   ;;  %s12774_s8 = inlined_call_operand.vmem [shape: f32[1,16], index: 8, kind: input, shape index: {}]   ;;  %s12775_s9 = inlined_call_operand.vmem [shape: f32[98], index: 9, kind: input, shape index: {}]   ;;  %s12776_s10 = inlined_call_operand.hbm [shape: f32[2,16,16,16], index: 10, kind: output, shape index: {}]  }
   0x1   :  { %12882 = sst [smem:[#allocation58_spill]] %s12766_s0 }
   0x2   :  { %12883 = sst [smem:[#allocation59_spill]] %s12767_s1 }
   0x3   :  { %12884 = sst [smem:[#allocation60_spill]] %s12768_s2 }
   0x4   :  { %12885 = sst [smem:[#allocation61_spill]] %s12769_s3 }
   0x5   :  { %12886 = sst [smem:[#allocation62_spill]] %s12770_s4 }
   0x6   :  { %12887 = sst [smem:[#allocation63_spill]] %s12771_s5 }
   0x7   :  { %12888 = sst [smem:[#allocation64_spill]] %s12772_s6 }
   0x8   :  { %12889 = sst [smem:[#allocation65_spill]] %s12773_s7 }
   0x9   :  { %12890 = sst [smem:[#allocation66_spill]] %s12774_s8 }
   0xa   :  { %12891 = sst [smem:[#allocation67_spill]] %s12775_s9 }
   0xb   :  { %12892 = sst [smem:[#allocation68_spill]] %s12776_s10 }
   0xc   :  { %15 = vsyncpa [#allocation7], 0 }
   0xd   :  { %17 = vsyncpa [#allocation7 + $0x1], 0 }
   0xe   :  { %18 = vsyncpa [#allocation9], 0 }
   0xf   :  { %19 = vsyncpa [#allocation8], 0 }
  0x10   :  { %21 = vsyncpa [#allocation8 + $0x1], 0  ;;  %s9567_s13 = smov 0   ;;  %s9569_s14 = smov 0  }
  0x11   :  { %s9571_s15 = smov 0   ;;  %s9573_s16 = smov 0  }
  0x12 LB: > { %12893 = sst [smem:[#allocation15_spill]] %s9482_s13  ;;  %s9588_s17 = sadd.s32 4294967295, %s9494_s16   ;;  %s9494_s16 = sphi %s9573_s16, %s13084_s16   ;;  %s9490_s15 = sphi %s9571_s15, %s13087_s15   ;;  %s9486_s14 = sphi %s9569_s14, %s13086_s14   ;;  %s9482_s13 = sphi %s9567_s13, %s13085_s13  }
  0x13   : > { %12894 = sst [smem:[#allocation16_spill]] %s9486_s14  ;;  %s7566_s18 = sadd.s32 4294967294, %s9494_s16  }
  0x14   : > { %12895 = sst [smem:[#allocation17_spill]] %s9490_s15  ;;  %s9592_s19 = sadd.s32 1, %s9494_s16  }
  0x15   : > { %12896 = sst [smem:[#allocation18_spill]] %s9494_s16  ;;  %s34_s20 = sadd.s32 1, %s9490_s15 }
  0x16   : > { %12897 = sst [smem:[#allocation19_spill]] %s9588_s17  ;;  %s31_s21 = ssub.s32 %s9494_s16, %s9592_s19 }
  0x17   : > { %12898 = sst [smem:[#allocation20_spill]] %s9592_s19  ;;  %p41_p0 = scmp.ne.s32.totalorder %s9490_s15, %s9486_s14 }
  0x18   : > { %p32_p1 = scmp.eq.s32.totalorder %s31_s21, 0  ;;  %p42_p2 = scmp.eq.s32.totalorder %s9494_s16, 0 }
  0x19   : > { %p47_p3 = scmp.ne.s32.totalorder %s9486_s14, %s9482_s13  ;;  %p12778_p4 = scmp.eq.s32.totalorder %s9588_s17, 0 }
  0x1a   : > { %s9604_s22 = scalar_select %p32_p1, %s9490_s15, %s34_s20  }
  0x1b   : > { %p9606_p5 = por %p42_p2, %p41_p0  ;;  %p9612_p6 = por %p12778_p4, %p47_p3 }
  0x1c   : > { %12899 = sst [smem:[#allocation21_spill]] %s9604_s22  ;;  %p260_p7 = scmp.eq.s32.totalorder %s9588_s17, 1 }
  0x1d   : > { %s12901_s24 = scalar_select %p9612_p6, 1, 0 }
  0x1e   : > { %p266_p8 = scmp.eq.s32.totalorder %s7566_s18, 1  ;;  %p7567_p9 = scmp.ge.s32.totalorder %s9494_s16, 1 }
  0x1f   : > { %p273_p10 = scmp.lt.s32.totalorder %s9494_s16, 3  ;;  %p9619_p11 = por %p260_p7, %p41_p0 }
  0x20   : > { %p9623_p12 = por %p266_p8, %p47_p3  ;;  %s12907_s9 = sld [smem:[#allocation67_spill]] }
  0x21   : > { %s12902_s25 = scalar_select %p9619_p11, 1, 0 }
  0x22   : > { %s12904_s26 = scalar_select %p9623_p12, 1, 0 }
  0x23   : > { %12903 = sst [smem:[#allocation22_spill]] %s12902_s25  ;;  %p9627_p13 = pnand %p7567_p9, %p273_p10 }
  0x24   : > { %12905 = sst [smem:[#allocation23_spill]] %s12904_s26  ;;  %p9308_p2 = scmp.lt.s32.totalorder %s9494_s16, 2 }
  0x25   : > { %p9295_p1 = pneg %p9627_p13  ;;  %s321_s12 = sand.u32 1, %s9490_s15  }
  0x26   : > { %s310_s30 = sshll.u32 %s12907_s9, 4  ;;  %p9647_p3 = pnand %p9308_p2, %p9606_p5  ;;  %s311_s30 = int_to_ptr.vmem [resolvable:$true] %s310_s30 }
  0x27   : > { %p9640_p7 = pnand %p9295_p1, %p12778_p4  ;;  %s7570_s20 = sshll.u32 %s321_s12, 8 }
  0x28   : > { %s9379_s21 = scalar_lea.vmem %s311_s30, 16  ;;  %p9387_p12 = scmp.lt.s32.totalorder %s311_s30, %s311_s30 }
  0x29   : > { %p9380_p8 = scmp.ne.s32.totalorder %s311_s30, %s9379_s21  ;;  %p9381_p9 = pneg %p9640_p7 }
  0x2a   : > { %p9388_p11 = scmp.lt.s32.totalorder %s9379_s21, %s9379_s21 }
  0x2b   : > { %p9382_p10 = pnand %p9381_p9, %p9380_p8 }
  0x2c   : > { %p9389_p1 = por %p9388_p11, %p9387_p12 }
  0x2d   : > { %p9383_p0 = pneg %p9382_p10 }
  0x2f   : > { %p9390_p4 = pnand %p9389_p1, %p9383_p0 }
  0x31   : > { %9393 = shalt.err (!%p9390_p4)
}
  0x32   : > { %s9496_s28 = smov [#allocation10]   ;;  %s8087_s23 = sshll.u32 %s9494_s16, 12 }
  0x33   : > { %9298 = dma.vmem_to_smem (!%p9640_p7), %s311_s30, 16, %s9496_s28, [#allocation9]  }
  0x34   : > { %s325_s29 = scalar_lea.vmem [#allocation6], %s7570_s20  ;;  %s12910_s0 = sld [smem:[#allocation58_spill]] }
  0x35   : > { %s332_s9 = sshll.u32 %s325_s29, 4  ;;  %s9663_s21 = scalar_lea.sflag [#allocation7], %s321_s12  ;;  %s9661_s9 = int_to_ptr.vmem [resolvable:$true] %s332_s9 }
  0x36   : > { %p9396_p5 = pneg %p9647_p3 }
  0x3a   : > { %s9659_s19 = scalar_lea.hbm %s12910_s0, %s8087_s23  ;;  %s9399_s22 = scalar_lea.hbm %s12910_s0, 8192 }
  0x3b   : > { %s9394_s11 = scalar_lea.hbm %s9659_s19, 4096  ;;  %p9400_p0 = scmp.lt.u32.totalorder %s9659_s19, %s12910_s0 }
  0x3c   : > { %p9395_p4 = scmp.ne.s32.totalorder %s9659_s19, %s9394_s11  ;;  %p9401_p2 = scmp.lt.u32.totalorder %s9399_s22, %s9394_s11 }
  0x3d   : > { %p9403_p8 = scmp.lt.u32.totalorder %s9394_s11, %s9659_s19 }
  0x3e   : > { %p9397_p11 = pnand %p9396_p5, %p9395_p4  ;;  %p9402_p7 = por %p9401_p2, %p9400_p0 }
  0x40   : > { %p9398_p12 = pneg %p9397_p11  ;;  %p9404_p9 = por %p9403_p8, %p9402_p7 }
  0x42   : > { %p9405_p10 = pnand %p9404_p9, %p9398_p12 }
  0x44   : > { %9408 = shalt.err (!%p9405_p10)
}
  0x45   : > { %s9409_s12 = scalar_lea.vmem %s9661_s9, 4096  ;;  %s9497_s23 = smov [#allocation6]  }
  0x46   : > { %p9410_p1 = scmp.ne.s32.totalorder %s9661_s9, %s9409_s12  ;;  %s9414_s29 = sshll.u32 %s9497_s23, 4  ;;  %s9415_s29 = int_to_ptr.vmem [resolvable:$false] %s9414_s29 }
  0x47   : > { %s9416_s30 = scalar_lea.vmem %s9415_s29, 8192  ;;  %p9417_p6 = scmp.lt.s32.totalorder %s9661_s9, %s9415_s29 }
  0x48   : > { %p9412_p4 = pnand %p9410_p1, %p9396_p5  ;;  %p9418_p0 = scmp.lt.s32.totalorder %s9416_s30, %s9409_s12 }
  0x4a   : > { %p9413_p11 = pneg %p9412_p4  ;;  %p9419_p2 = por %p9418_p0, %p9417_p6 }
  0x4c   : > { %p9420_p7 = pnand %p9419_p2, %p9413_p11 }
  0x4e   : > { %9423 = shalt.err (!%p9420_p7)
}
  0x4f   : > { %s9498_s11 = smov 128   ;;  %s9499_s15 = smov 8  }
  0x50   : > { %9302 = dma.hbm_to_vmem [thread:$0]  (!%p9647_p3), %s9659_s19, 4096, %s9661_s9, %s9663_s21, %s9498_s11, %s9498_s11, %s9499_s15  }
  0x51   : > { %344 = sbr.rel (%p9627_p13) target bundleno = 2572 (0xa0c), region = 60 }
  0x58   : > { %s9694_s22 = sand.u32 1, %s9486_s14   ;;  %p12913_p6 = scmp.ne.s32.totalorder %s12901_s24, 0 }
  0x59   : > { %12911 = sst [smem:[#allocation24_spill]] %s9694_s22  ;;  %s12803_s20 = sshll.u32 %s9694_s22, 8 }
  0x5a   : > { %s347_s28 = scalar_lea.sflag [#allocation7], %s9694_s22  ;;  %s9700_s12 = scalar_lea.vmem [#allocation6], %s12803_s20 }
  0x5b   : > { %12912 = sst [smem:[#allocation25_spill]] %s9700_s12 }
  0x5c   : > { %9469 = dma.done.wait (%p12913_p6), %s347_s28, 4096  }
  0x5d   : > { %9471 = vsyncadd (%p12913_p6), %s347_s28, 4294963200  ;;  %p12914_p3 = scmp.eq.s32.totalorder %s9588_s17, 0 }
  0x5f   : > { %9473 = dma.done.wait (%p12914_p3), [#allocation9], 16   ;;  %p12915_p13 = pmov %p12914_p3 }
  0x61   : > { %9475 = vsyncadd (%p12915_p13), [#allocation9], 4294967280 }
  0x62   : > { %359 = sfence }
  0x63   : > { %s12916_s1 = sld [smem:[#allocation59_spill]]  ;;  %v450_v2 = vld [vmem:[%s9700_s12] sm:$0xff]  ;;  %vm491_vm0 = vcmask 130048   ;;  %v451_v4 = vld [vmem:[%s9700_s12 + $0x8] sm:$0xff]  ;;  %v452_v5 = vld [vmem:[%s9700_s12 + $0x10] sm:$0xff]  ;;  %vm392_vm1 = vcmask 31744  }
  0x64   : > { %8462 = vmatprep.mubr.msk.f32.mxu0 %vm491_vm0, %v450_v2  ;;  %v453_v6 = vld [vmem:[%s9700_s12 + $0x18] sm:$0xff]  ;;  %v454_v7 = vld [vmem:[%s9700_s12 + $0x20] sm:$0xff]  ;;  %v455_v8 = vld [vmem:[%s9700_s12 + $0x28] sm:$0xff]  ;;  %v12783_v35 = vmov 0.0   ;;  %vm395_vm2 = vcmask 25600   ;;  %vm402_vm3 = vcmask 24576  }
  0x65   : > { %v456_v9 = vld [vmem:[%s9700_s12 + $0x30] sm:$0xff]  ;;  %v457_v10 = vld [vmem:[%s9700_s12 + $0x38] sm:$0xff]  ;;  %v458_v11 = vld [vmem:[%s9700_s12 + $0x40] sm:$0xff]  ;;  %393 = vst.msk [vmem:[#allocation2] sm:$0xff] %vm392_vm1, %v12783_v35  ;;  %s12917_s3 = sld [smem:[#allocation61_spill]]  ;;  %vm1040_vm4 = vcmask 1043456  }
  0x66   : > { %v459_v12 = vld [vmem:[%s9700_s12 + $0x48] sm:$0xff]  ;;  %v460_v13 = vld [vmem:[%s9700_s12 + $0x50] sm:$0xff]  ;;  %v461_v14 = vld [vmem:[%s9700_s12 + $0x58] sm:$0xff]  ;;  %394 = vst.msk [vmem:[#allocation2 + $0x8] sm:$0xff] %vm392_vm1, %v12783_v35  ;;  %s12918_s2 = sld [smem:[#allocation60_spill]]  ;;  %s12937_s5 = sld [smem:[#allocation63_spill]] }
  0x67   : > { %v462_v15 = vld [vmem:[%s9700_s12 + $0x60] sm:$0xff]  ;;  %v463_v16 = vld [vmem:[%s9700_s12 + $0x68] sm:$0xff]  ;;  %v464_v17 = vld [vmem:[%s9700_s12 + $0x70] sm:$0xff]  ;;  %398 = vst.msk [vmem:[#allocation2 + $0x198] sm:$0xff] %vm392_vm1, %v12783_v35  ;;  %s12956_s4 = sld [smem:[#allocation62_spill]]  ;;  %s12957_s7 = sld [smem:[#allocation65_spill]] }
  0x68   : > { %v465_v18 = vld [vmem:[%s9700_s12 + $0x78] sm:$0xff]  ;;  %v466_v19 = vld [vmem:[%s9700_s12 + $0x80] sm:$0xff]  ;;  %v467_v20 = vld [vmem:[%s9700_s12 + $0x88] sm:$0xff]  ;;  %399 = vst.msk [vmem:[#allocation2 + $0x1a0] sm:$0xff] %vm392_vm1, %v12783_v35  ;;  %vm9502_vm5 = vmmov 0   ;;  %s12959_s6 = sld [smem:[#allocation64_spill]] }
  0x69   : > { %v482_v0 = vld [vmem:[%s12916_s1] sm:$0xff]  ;;  %v483_v1 = vld [vmem:[%s12916_s1 + $0x8] sm:$0xff]  ;;  %v470_v23 = vld [vmem:[%s9700_s12 + $0xa0] sm:$0xff]  ;;  %396 = vst.msk [vmem:[#allocation2 + $0x10] sm:$0x3] %vm395_vm2, %v12783_v35  ;;  %vm4867_vm6 = vcmask 1040384  }
  0x6a   : > { %v9022_v3 = vpack.c.bf16 %v483_v1, %v482_v0  ;;  %v468_v21 = vld [vmem:[%s9700_s12 + $0x90] sm:$0xff]  ;;  %v469_v22 = vld [vmem:[%s9700_s12 + $0x98] sm:$0xff]  ;;  %v471_v24 = vld [vmem:[%s9700_s12 + $0xa8] sm:$0xff]  ;;  %400 = vst.msk [vmem:[#allocation2 + $0x1a8] sm:$0x3] %vm395_vm2, %v12783_v35  ;;  %s12960_s8 = sld [smem:[#allocation66_spill]] }
  0x6b   : > { %v472_v25 = vld [vmem:[%s9700_s12 + $0xb0] sm:$0xff]  ;;  %v473_v26 = vld [vmem:[%s9700_s12 + $0xb8] sm:$0xff]  ;;  %v474_v27 = vld [vmem:[%s9700_s12 + $0xc0] sm:$0xff]  ;;  %409 = vst.msk [vmem:[#allocation2 + $0xa8] sm:$0x1] %vm402_vm3, %v12783_v35  ;;  %vm4946_vm7 = vcmask 7168  }
  0x6c   : > { %9023 = vmatprep.subr.bf16.mxu0 %v9022_v3  ;;  %v475_v28 = vld [vmem:[%s9700_s12 + $0xc8] sm:$0xff]  ;;  %v476_v29 = vld [vmem:[%s9700_s12 + $0xd0] sm:$0xff]  ;;  %v477_v30 = vld [vmem:[%s9700_s12 + $0xd8] sm:$0xff]  ;;  %403 = vst.msk [vmem:[#allocation2 + $0x18] sm:$0x1] %vm402_vm3, %v12783_v35  ;;  %vm435_vm8 = vcmask 174080  }
  0x6d   : > { %9025 = vmatpush3.bf16.msra.mxu0 %v9022_v3  ;;  %v478_v31 = vld [vmem:[%s9700_s12 + $0xe0] sm:$0xff]  ;;  %v479_v32 = vld [vmem:[%s9700_s12 + $0xe8] sm:$0xff]  ;;  %v480_v33 = vld [vmem:[%s9700_s12 + $0xf0] sm:$0xff]  ;;  %404 = vst.msk [vmem:[#allocation2 + $0x30] sm:$0x1] %vm402_vm3, %v12783_v35  ;;  %vm440_vm9 = vcmask 23552  }
  0x6e   : > { %v481_v34 = vld [vmem:[%s9700_s12 + $0xf8] sm:$0xff]  ;;  %405 = vst.msk [vmem:[#allocation2 + $0x48] sm:$0x1] %vm402_vm3, %v12783_v35  ;;  %406 = vst.msk [vmem:[#allocation2 + $0x60] sm:$0x1] %vm402_vm3, %v12783_v35  ;;  %vm445_vm10 = vcmask 179352  }
  0x6f   : > { %407 = vst.msk [vmem:[#allocation2 + $0x78] sm:$0x1] %vm402_vm3, %v12783_v35  ;;  %408 = vst.msk [vmem:[#allocation2 + $0x90] sm:$0x1] %vm402_vm3, %v12783_v35  ;;  %v7610_v36 = vld [vmem:[%s12917_s3 + $0x4] sm:$0xf] }
  0x70   : > { %8463 = vmatmul.mubr.msk.f32.vlgmr.msra.gmra.mrb[0].mxu0 %vm491_vm0, %v451_v4  ;;  %410 = vst.msk [vmem:[#allocation2 + $0xc0] sm:$0x1] %vm402_vm3, %v12783_v35  ;;  %411 = vst.msk [vmem:[#allocation2 + $0xd8] sm:$0x1] %vm402_vm3, %v12783_v35  ;;  %8510 = vmatprep.subr.msk.mxu0 %vm1040_vm4, %v7610_v36  ;;  %v910_v37 = vld [vmem:[#allocation2 + $0x1] sm:$0xff]  ;;  %v911_v38 = vld [vmem:[#allocation2 + $0x9] sm:$0xff] }
  0x71   : > { %8465 = vmatprep.mubr.msk.f32.mxu0 %vm491_vm0, %v452_v5  ;;  %412 = vst.msk [vmem:[#allocation2 + $0xf0] sm:$0x1] %vm402_vm3, %v12783_v35  ;;  %413 = vst.msk [vmem:[#allocation2 + $0x108] sm:$0x1] %vm402_vm3, %v12783_v35  ;;  %8511 = vmatpush3.msk.msra.mxu0 %vm1040_vm4, %v7610_v36  ;;  %v9864_v39 = vld [vmem:[%s12917_s3 + $0xc] sm:$0xf] }
  0x72   : > { %414 = vst.msk [vmem:[#allocation2 + $0x120] sm:$0x1] %vm402_vm3, %v12783_v35  ;;  %415 = vst.msk [vmem:[#allocation2 + $0x138] sm:$0x1] %vm402_vm3, %v12783_v35  ;;  %9029 = vmatprep.subr.msk.mxu1 %vm1040_vm4, %v9864_v39  ;;  %v9873_v40 = vld [vmem:[%s12917_s3 + $0x10] sm:$0xf] }
  0x73   : > { %416 = vst.msk [vmem:[#allocation2 + $0x150] sm:$0x1] %vm402_vm3, %v12783_v35  ;;  %417 = vst.msk [vmem:[#allocation2 + $0x168] sm:$0x1] %vm402_vm3, %v12783_v35  ;;  %9030 = vmatpush3.msk.msra.mxu1 %vm1040_vm4, %v9864_v39  ;;  %v909_v41 = vld [vmem:[%s12917_s3] sm:$0xf] }
  0x74   : > { %8466 = vmatmul.mubr.msk.f32.gmra.mrb[2].mxu0 %vm491_vm0, %v453_v6  ;;  %418 = vst.msk [vmem:[#allocation2 + $0x180] sm:$0x1] %vm402_vm3, %v12783_v35  ;;  %419 = vst.msk [vmem:[#allocation2 + $0x29] sm:$0x1] %vm402_vm3, %v12783_v35  ;;  %8710 = vmatprep.subr.msk.mxu1 %vm1040_vm4, %v9873_v40  ;;  %v9885_v42 = vld [vmem:[%s12918_s2] ss:$0 sm:$0xff] }
  0x75   : > { %8468 = vmatprep.mubr.msk.f32.mxu0 %vm491_vm0, %v454_v7  ;;  %420 = vst.msk [vmem:[#allocation2 + $0x41] sm:$0x1] %vm402_vm3, %v12783_v35  ;;  %421 = vst.msk [vmem:[#allocation2 + $0x59] sm:$0x1] %vm402_vm3, %v12783_v35  ;;  %8560 = vmatprep.subr.msk.mxu0 %vm1040_vm4, %v909_v41  ;;  %v9896_v56 = vld [vmem:[%s12917_s3 + $0x8] sm:$0xf] }
  0x76   : > { %422 = vst.msk [vmem:[#allocation2 + $0x71] sm:$0x1] %vm402_vm3, %v12783_v35  ;;  %423 = vst.msk [vmem:[#allocation2 + $0x89] sm:$0x1] %vm402_vm3, %v12783_v35  ;;  %vm5194_vm11 = vcmask 154712   ;;  %vm5259_vm12 = vcmask 1041409  }
  0x77   : > { %424 = vst.msk [vmem:[#allocation2 + $0xa1] sm:$0x1] %vm402_vm3, %v12783_v35  ;;  %425 = vst.msk [vmem:[#allocation2 + $0xb9] sm:$0x1] %vm402_vm3, %v12783_v35  ;;  %vm5261_vm13 = vcmask 1042434   ;;  %vm5263_vm14 = vcmask 1043459  }
  0x78   : > { %8469 = vmatmul.mubr.msk.f32.gmra.mrb[4].mxu0 %vm491_vm0, %v455_v8  ;;  %426 = vst.msk [vmem:[#allocation2 + $0xd1] sm:$0x1] %vm402_vm3, %v12783_v35  ;;  %427 = vst.msk [vmem:[#allocation2 + $0xe9] sm:$0x1] %vm402_vm3, %v12783_v35  ;;  %vm5265_vm15 = vcmask 1044484   ;;  %vm5269_vm2 = vcmask 1046534  }
  0x79   : > { %8471 = vmatprep.mubr.msk.f32.mxu0 %vm491_vm0, %v456_v9  ;;  %428 = vst.msk [vmem:[#allocation2 + $0x101] sm:$0x1] %vm402_vm3, %v12783_v35  ;;  %429 = vst.msk [vmem:[#allocation2 + $0x119] sm:$0x1] %vm402_vm3, %v12783_v35  ;;  %s11219_s9 = sld [smem:[#allocation10 + $0x32]]  ;;  %s11225_s19 = sld [smem:[#allocation10 + $0x33]] }
  0x7a   : > { %430 = vst.msk [vmem:[#allocation2 + $0x131] sm:$0x1] %vm402_vm3, %v12783_v35  ;;  %431 = vst.msk [vmem:[#allocation2 + $0x149] sm:$0x1] %vm402_vm3, %v12783_v35  ;;  %s11228_s27 = sld [smem:[#allocation10 + $0x34]]  ;;  %s11236_s18 = sld [smem:[#allocation10 + $0x35]] }
  0x7b   : > { %432 = vst.msk [vmem:[#allocation2 + $0x161] sm:$0x1] %vm402_vm3, %v12783_v35  ;;  %433 = vst.msk [vmem:[#allocation2 + $0x179] sm:$0x1] %vm402_vm3, %v12783_v35  ;;  %s12814_s24 = smov 127   ;;  %s11242_s21 = sld [smem:[#allocation10 + $0x36]] }
  0x7c   : > { %8472 = vmatmul.mubr.msk.f32.gmra.mrb[6].mxu0 %vm491_vm0, %v457_v10  ;;  %434 = vst.msk [vmem:[#allocation2 + $0x191] sm:$0x1] %vm402_vm3, %v12783_v35  ;;  %vm5271_vm3 = vcmask 1047559   ;;  %s11245_s23 = sld [smem:[#allocation10 + $0x37]]  ;;  %s12810_s29 = smov 126  }
  0x7d   : > { %8474 = vmatprep.mubr.msk.f32.mxu0 %vm491_vm0, %v458_v11  ;;  %s12808_s30 = smov 125   ;;  %s11262_s11 = sld [smem:[#allocation10 + $0x39]] }
  0x7e   : > { %s12806_s15 = smov 124   ;;  %s11278_s28 = sld [smem:[#allocation10 + $0x3a]] }
  0x7f   : > { %s12804_s20 = smov 123   ;;  %s12966_s0 = smov 127  }
  0x80   : > { %8475 = vmatmul.mubr.msk.f32.gmra.mrb[8].mxu0 %vm491_vm0, %v459_v12  ;;  %s11325_s1 = sld [smem:[#allocation10 + $0x3d]]  ;;  %s12967_s2 = smov 126  }
  0x81   : > { %8477 = vmatprep.mubr.msk.f32.mxu0 %vm491_vm0, %v460_v13  ;;  %s11377_s14 = sld [smem:[#allocation10 + $0x42]]  ;;  %s11387_s16 = sld [smem:[#allocation10 + $0x1c]] }
  0x82   : > { %s11391_s26 = sld [smem:[#allocation10 + $0x23]]  ;;  %s11393_s13 = sld [smem:[#allocation10 + $0x2a]] }
  0x83   : > { %s12974_s10 = smov 122   ;;  %s11410_s25 = sld [smem:[#allocation10 + $0x43]] }
  0x84   : > { %8478 = vmatmul.mubr.msk.f32.gmra.mrb[10].mxu0 %vm491_vm0, %v461_v14  ;;  %s11425_s17 = sld [smem:[#allocation10 + $0x44]]  ;;  %s11460_s22 = sld [smem:[#allocation10 + $0x1]] }
  0x85   : > { %8480 = vmatprep.mubr.msk.f32.mxu0 %vm491_vm0, %v462_v15  ;;  %s11467_s12 = sld [smem:[#allocation10 + $0x3]] }
  0x87   : > { %12971 = sst [smem:[#allocation46_spill]] %s11387_s16 }
  0x88   : > { %8481 = vmatmul.mubr.msk.f32.gmra.mrb[12].mxu0 %vm491_vm0, %v463_v16  ;;  %12972 = sst [smem:[#allocation47_spill]] %s11391_s26 }
  0x89   : > { %8483 = vmatprep.mubr.msk.f32.mxu0 %vm491_vm0, %v464_v17  ;;  %12973 = sst [smem:[#allocation48_spill]] %s11393_s13 }
  0x8c   : > { %8484 = vmatmul.mubr.msk.f32.gmra.mrb[14].mxu0 %vm491_vm0, %v465_v18 }
  0x8d   : > { %8486 = vmatprep.mubr.msk.f32.mxu0 %vm491_vm0, %v466_v19 }
  0x90   : > { %8487 = vmatmul.mubr.msk.f32.gmra.mrb[16].mxu0 %vm491_vm0, %v467_v20 }
  0x91   : > { %8489 = vmatprep.mubr.msk.f32.mxu0 %vm491_vm0, %v468_v21 }
  0x94   : > { %8490 = vmatmul.mubr.msk.f32.gmra.mrb[18].mxu0 %vm491_vm0, %v469_v22 }
  0x95   : > { %8492 = vmatprep.mubr.msk.f32.mxu0 %vm491_vm0, %v470_v23 }
  0x98   : > { %8493 = vmatmul.mubr.msk.f32.gmra.mrb[20].mxu0 %vm491_vm0, %v471_v24 }
  0x99   : > { %8495 = vmatprep.mubr.msk.f32.mxu0 %vm491_vm0, %v472_v25 }
  0x9c   : > { %8496 = vmatmul.mubr.msk.f32.gmra.mrb[22].mxu0 %vm491_vm0, %v473_v26 }
  0x9d   : > { %8498 = vmatprep.mubr.msk.f32.mxu0 %vm491_vm0, %v474_v27 }
  0xa0   : > { %8499 = vmatmul.mubr.msk.f32.gmra.mrb[24].mxu0 %vm491_vm0, %v475_v28 }
  0xa1   : > { %8501 = vmatprep.mubr.msk.f32.mxu0 %vm491_vm0, %v476_v29 }
  0xa4   : > { %8502 = vmatmul.mubr.msk.f32.gmra.mrb[26].mxu0 %vm491_vm0, %v477_v30 }
  0xa5   : > { %8504 = vmatprep.mubr.msk.f32.mxu0 %vm491_vm0, %v478_v31 }
  0xa8   : > { %8505 = vmatmul.mubr.msk.f32.gmra.mrb[28].mxu0 %vm491_vm0, %v479_v32 }
  0xa9   : > { %8507 = vmatprep.mubr.msk.f32.mxu0 %vm491_vm0, %v480_v33 }
  0xac   : > { %8508 = vmatmul.mubr.msk.f32.gmra.mrb[30].mxu0 %vm491_vm0, %v481_v34 }
  0xad   : > { %8512 = vmatprep.mubr.msk.f32.mxu0 %vm392_vm1, %v910_v37 }
  0xb0   : > { %8513 = vmatmul.mubr.msk.f32.vlgmr.msra.gmra.mrb[32].mxu0 %vm392_vm1, %v911_v38 }
  0xb1   : > { %8561 = vmatpush3.msk.msra.mxu0 %vm1040_vm4, %v909_v41 }
  0xb2   : > { %8610 = vmatprep.subr.msk.mxu0 %vm1040_vm4, %v9896_v56 }
 0x143   : > { %v8464_v43 = vpop.f32.mrb[0].mxu0 }
 0x144   : > { %v660_v44 = vadd.f32 %v8464_v43, %v9885_v42  ;;  %v654_v45 = vpop.f32.mrb[1].mxu0 }
 0x145   : > { %v655_v46 = vadd.f32 %v9885_v42, %v654_v45 }
 0x146   : > { %v814_v47 = vmax.f32 %v660_v44, 0.0 }
 0x147   : > { %v813_v48 = vmax.f32 %v655_v46, 0.0  ;;  %v8467_v49 = vpop.f32.mrb[2].mxu0 }
 0x148   : > { %846 = vst.msk [vmem:[#allocation2 + $0x21] sm:$0xff] %vm392_vm1, %v814_v47  ;;  %v670_v50 = vadd.f32 %v8467_v49, %v9885_v42  ;;  %v664_v51 = vpop.f32.mrb[3].mxu0 }
 0x149   : > { %845 = vst.msk [vmem:[#allocation2 + $0x19] sm:$0xff] %vm392_vm1, %v813_v48  ;;  %v665_v52 = vadd.f32 %v9885_v42, %v664_v51 }
 0x14a   : > { %v816_v53 = vmax.f32 %v670_v50, 0.0 }
 0x14b   : > { %v815_v54 = vmax.f32 %v665_v52, 0.0  ;;  %v8470_v55 = vpop.f32.mrb[4].mxu0 }
 0x14c   : > { %848 = vst.msk [vmem:[#allocation2 + $0x39] sm:$0xff] %vm392_vm1, %v816_v53  ;;  %v680_v57 = vadd.f32 %v8470_v55, %v9885_v42  ;;  %v674_v58 = vpop.f32.mrb[5].mxu0 }
 0x14d   : > { %847 = vst.msk [vmem:[#allocation2 + $0x31] sm:$0xff] %vm392_vm1, %v815_v54  ;;  %v675_v59 = vadd.f32 %v9885_v42, %v674_v58 }
 0x14e   : > { %v818_v60 = vmax.f32 %v680_v57, 0.0 }
 0x14f   : > { %v817_v61 = vmax.f32 %v675_v59, 0.0  ;;  %v8473_v62 = vpop.f32.mrb[6].mxu0  ;;  %v9912_v3 = vld [vmem:[#allocation2 + $0x21] sm:$0xff]  ;;  %v9995_v59 = vld [vmem:[%s12917_s3 + $0x14] sm:$0xf] }
 0x150   : > { %850 = vst.msk [vmem:[#allocation2 + $0x51] sm:$0xff] %vm392_vm1, %v818_v60  ;;  %v690_v63 = vadd.f32 %v8473_v62, %v9885_v42  ;;  %v684_v0 = vpop.f32.mrb[7].mxu0  ;;  %v9906_v1 = vld [vmem:[#allocation2 + $0x19] sm:$0xff] }
 0x151   : > { %849 = vst.msk [vmem:[#allocation2 + $0x49] sm:$0xff] %vm392_vm1, %v817_v61  ;;  %v685_v2 = vadd.f32 %v9885_v42, %v684_v0  ;;  %8515 = vmatprep.mubr.msk.f32.mxu0 %vm392_vm1, %v9906_v1 }
 0x152   : > { %v820_v4 = vmax.f32 %v690_v63, 0.0  ;;  %8516 = vmatmul.mubr.msk.f32.gmra.mrb[34].mxu0 %vm392_vm1, %v9912_v3 }
 0x153   : > { %v819_v5 = vmax.f32 %v685_v2, 0.0  ;;  %v8476_v6 = vpop.f32.mrb[8].mxu0  ;;  %v9924_v11 = vld [vmem:[#allocation2 + $0x39] sm:$0xff] }
 0x154   : > { %852 = vst.msk [vmem:[#allocation2 + $0x69] sm:$0xff] %vm392_vm1, %v820_v4  ;;  %v700_v7 = vadd.f32 %v8476_v6, %v9885_v42  ;;  %v694_v8 = vpop.f32.mrb[9].mxu0  ;;  %v9918_v9 = vld [vmem:[#allocation2 + $0x31] sm:$0xff] }
 0x155   : > { %851 = vst.msk [vmem:[#allocation2 + $0x61] sm:$0xff] %vm392_vm1, %v819_v5  ;;  %v695_v10 = vadd.f32 %v9885_v42, %v694_v8  ;;  %8518 = vmatprep.mubr.msk.f32.mxu0 %vm392_vm1, %v9918_v9 }
 0x156   : > { %v822_v12 = vmax.f32 %v700_v7, 0.0  ;;  %8519 = vmatmul.mubr.msk.f32.gmra.mrb[36].mxu0 %vm392_vm1, %v9924_v11 }
 0x157   : > { %v821_v13 = vmax.f32 %v695_v10, 0.0  ;;  %v8479_v14 = vpop.f32.mrb[10].mxu0  ;;  %v9936_v19 = vld [vmem:[#allocation2 + $0x51] sm:$0xff] }
 0x158   : > { %854 = vst.msk [vmem:[#allocation2 + $0x81] sm:$0xff] %vm392_vm1, %v822_v12  ;;  %v710_v15 = vadd.f32 %v8479_v14, %v9885_v42  ;;  %v704_v16 = vpop.f32.mrb[11].mxu0  ;;  %v9930_v17 = vld [vmem:[#allocation2 + $0x49] sm:$0xff] }
 0x159   : > { %853 = vst.msk [vmem:[#allocation2 + $0x79] sm:$0xff] %vm392_vm1, %v821_v13  ;;  %v705_v18 = vadd.f32 %v9885_v42, %v704_v16  ;;  %8521 = vmatprep.mubr.msk.f32.mxu0 %vm392_vm1, %v9930_v17 }
 0x15a   : > { %v824_v20 = vmax.f32 %v710_v15, 0.0  ;;  %8522 = vmatmul.mubr.msk.f32.gmra.mrb[38].mxu0 %vm392_vm1, %v9936_v19 }
 0x15b   : > { %v823_v21 = vmax.f32 %v705_v18, 0.0  ;;  %v8482_v22 = vpop.f32.mrb[12].mxu0  ;;  %v9948_v27 = vld [vmem:[#allocation2 + $0x69] sm:$0xff] }
 0x15c   : > { %856 = vst.msk [vmem:[#allocation2 + $0x99] sm:$0xff] %vm392_vm1, %v824_v20  ;;  %v720_v23 = vadd.f32 %v8482_v22, %v9885_v42  ;;  %v714_v24 = vpop.f32.mrb[13].mxu0  ;;  %v9942_v25 = vld [vmem:[#allocation2 + $0x61] sm:$0xff] }
 0x15d   : > { %855 = vst.msk [vmem:[#allocation2 + $0x91] sm:$0xff] %vm392_vm1, %v823_v21  ;;  %v715_v26 = vadd.f32 %v9885_v42, %v714_v24  ;;  %8524 = vmatprep.mubr.msk.f32.mxu0 %vm392_vm1, %v9942_v25 }
 0x15e   : > { %v826_v28 = vmax.f32 %v720_v23, 0.0  ;;  %8525 = vmatmul.mubr.msk.f32.gmra.mrb[40].mxu0 %vm392_vm1, %v9948_v27 }
 0x15f   : > { %v825_v29 = vmax.f32 %v715_v26, 0.0  ;;  %v8485_v30 = vpop.f32.mrb[14].mxu0  ;;  %v9960_v36 = vld [vmem:[#allocation2 + $0x81] sm:$0xff] }
 0x160   : > { %858 = vst.msk [vmem:[#allocation2 + $0xb1] sm:$0xff] %vm392_vm1, %v826_v28  ;;  %v730_v31 = vadd.f32 %v8485_v30, %v9885_v42  ;;  %v724_v32 = vpop.f32.mrb[15].mxu0  ;;  %v9954_v33 = vld [vmem:[#allocation2 + $0x79] sm:$0xff] }
 0x161   : > { %857 = vst.msk [vmem:[#allocation2 + $0xa9] sm:$0xff] %vm392_vm1, %v825_v29  ;;  %v725_v34 = vadd.f32 %v9885_v42, %v724_v32  ;;  %8527 = vmatprep.mubr.msk.f32.mxu0 %vm392_vm1, %v9954_v33 }
 0x162   : > { %v828_v37 = vmax.f32 %v730_v31, 0.0  ;;  %8528 = vmatmul.mubr.msk.f32.gmra.mrb[42].mxu0 %vm392_vm1, %v9960_v36 }
 0x163   : > { %v827_v38 = vmax.f32 %v725_v34, 0.0  ;;  %v8488_v41 = vpop.f32.mrb[16].mxu0  ;;  %v9972_v47 = vld [vmem:[#allocation2 + $0x99] sm:$0xff] }
 0x164   : > { %860 = vst.msk [vmem:[#allocation2 + $0xc9] sm:$0xff] %vm392_vm1, %v828_v37  ;;  %v740_v43 = vadd.f32 %v8488_v41, %v9885_v42  ;;  %v734_v44 = vpop.f32.mrb[17].mxu0  ;;  %v9966_v45 = vld [vmem:[#allocation2 + $0x91] sm:$0xff] }
 0x165   : > { %859 = vst.msk [vmem:[#allocation2 + $0xc1] sm:$0xff] %vm392_vm1, %v827_v38  ;;  %v735_v46 = vadd.f32 %v9885_v42, %v734_v44  ;;  %8530 = vmatprep.mubr.msk.f32.mxu0 %vm392_vm1, %v9966_v45 }
 0x166   : > { %v830_v48 = vmax.f32 %v740_v43, 0.0  ;;  %8531 = vmatmul.mubr.msk.f32.gmra.mrb[44].mxu0 %vm392_vm1, %v9972_v47 }
 0x167   : > { %v829_v49 = vmax.f32 %v735_v46, 0.0  ;;  %v8491_v50 = vpop.f32.mrb[18].mxu0  ;;  %v9990_v58 = vld [vmem:[#allocation2 + $0xb1] sm:$0xff] }
 0x168   : > { %862 = vst.msk [vmem:[#allocation2 + $0xe1] sm:$0xff] %vm392_vm1, %v830_v48  ;;  %v750_v51 = vadd.f32 %v8491_v50, %v9885_v42  ;;  %v744_v52 = vpop.f32.mrb[19].mxu0  ;;  %v9978_v53 = vld [vmem:[#allocation2 + $0xa9] sm:$0xff]  ;;  %v10417_v35 = vld [vmem:[#allocation2 + $0xb2] sm:$0xff] }
 0x169   : > { %v9980_v54 = vld [vmem:[#allocation2 + $0xa8] sm:$0xff]  ;;  %v9982_v55 = vld [vmem:[#allocation2 + $0xb0] sm:$0xff]  ;;  %861 = vst.msk [vmem:[#allocation2 + $0xd9] sm:$0xff] %vm392_vm1, %v829_v49  ;;  %v745_v57 = vadd.f32 %v9885_v42, %v744_v52  ;;  %8533 = vmatprep.mubr.msk.f32.mxu0 %vm392_vm1, %v9978_v53  ;;  %12922 = vst [vmem:[#allocation29_spill] sm:$0xff] %v10417_v35 }
 0x16a   : > { %8680 = vmatprep.mubr.msk.f32.mxu1 %vm392_vm1, %v9980_v54  ;;  %v832_v60 = vmax.f32 %v750_v51, 0.0  ;;  %8534 = vmatmul.mubr.msk.f32.gmra.mrb[46].mxu0 %vm392_vm1, %v9990_v58 }
 0x16b   : > { %8681 = vmatmul.mubr.msk.f32.vlgmr.msra.gmra.mrb[0].mxu1 %vm392_vm1, %v9982_v55  ;;  %v831_v61 = vmax.f32 %v745_v57, 0.0  ;;  %v8494_v62 = vpop.f32.mrb[20].mxu0 }
 0x16c   : > { %8711 = vmatpush3.msk.msra.mxu1 %vm1040_vm4, %v9873_v40  ;;  %864 = vst.msk [vmem:[#allocation2 + $0xf9] sm:$0xff] %vm392_vm1, %v832_v60  ;;  %v760_v63 = vadd.f32 %v8494_v62, %v9885_v42  ;;  %v754_v0 = vpop.f32.mrb[21].mxu0  ;;  %v10005_v2 = vld [vmem:[#allocation2 + $0xc1] sm:$0xff]  ;;  %v10019_v40 = vld [vmem:[#allocation2 + $0xc9] sm:$0xff] }
 0x16d   : > { %v10007_v4 = vld [vmem:[#allocation2 + $0xc0] sm:$0xff]  ;;  %v10009_v5 = vld [vmem:[#allocation2 + $0xc8] sm:$0xff]  ;;  %8760 = vmatprep.subr.msk.mxu1 %vm1040_vm4, %v9995_v59  ;;  %863 = vst.msk [vmem:[#allocation2 + $0xf1] sm:$0xff] %vm392_vm1, %v831_v61  ;;  %v755_v6 = vadd.f32 %v9885_v42, %v754_v0  ;;  %8536 = vmatprep.mubr.msk.f32.mxu0 %vm392_vm1, %v10005_v2 }
 0x16e   : > { %8683 = vmatprep.mubr.msk.f32.mxu1 %vm392_vm1, %v10007_v4  ;;  %v834_v7 = vmax.f32 %v760_v63, 0.0  ;;  %8537 = vmatmul.mubr.msk.f32.gmra.mrb[48].mxu0 %vm392_vm1, %v10019_v40 }
 0x16f   : > { %8684 = vmatmul.mubr.msk.f32.gmra.mrb[2].mxu1 %vm392_vm1, %v10009_v5  ;;  %v833_v8 = vmax.f32 %v755_v6, 0.0  ;;  %v8497_v10 = vpop.f32.mrb[22].mxu0  ;;  %v10039_v20 = vld [vmem:[#allocation2 + $0xe1] sm:$0xff] }
 0x170   : > { %866 = vst.msk [vmem:[#allocation2 + $0x111] sm:$0xff] %vm392_vm1, %v834_v7  ;;  %v770_v12 = vadd.f32 %v8497_v10, %v9885_v42  ;;  %v764_v13 = vpop.f32.mrb[23].mxu0  ;;  %v10027_v14 = vld [vmem:[#allocation2 + $0xd9] sm:$0xff] }
 0x171   : > { %v10029_v15 = vld [vmem:[#allocation2 + $0xd8] sm:$0xff]  ;;  %v10031_v16 = vld [vmem:[#allocation2 + $0xe0] sm:$0xff]  ;;  %865 = vst.msk [vmem:[#allocation2 + $0x109] sm:$0xff] %vm392_vm1, %v833_v8  ;;  %v765_v18 = vadd.f32 %v9885_v42, %v764_v13  ;;  %8539 = vmatprep.mubr.msk.f32.mxu0 %vm392_vm1, %v10027_v14 }
 0x172   : > { %8686 = vmatprep.mubr.msk.f32.mxu1 %vm392_vm1, %v10029_v15  ;;  %v836_v21 = vmax.f32 %v770_v12, 0.0  ;;  %8540 = vmatmul.mubr.msk.f32.gmra.mrb[50].mxu0 %vm392_vm1, %v10039_v20 }
 0x173   : > { %8687 = vmatmul.mubr.msk.f32.gmra.mrb[4].mxu1 %vm392_vm1, %v10031_v16  ;;  %v835_v22 = vmax.f32 %v765_v18, 0.0  ;;  %v8500_v23 = vpop.f32.mrb[24].mxu0  ;;  %v10059_v32 = vld [vmem:[#allocation2 + $0xf9] sm:$0xff] }
 0x174   : > { %868 = vst.msk [vmem:[#allocation2 + $0x129] sm:$0xff] %vm392_vm1, %v836_v21  ;;  %v780_v24 = vadd.f32 %v8500_v23, %v9885_v42  ;;  %v774_v26 = vpop.f32.mrb[25].mxu0  ;;  %v10047_v28 = vld [vmem:[#allocation2 + $0xf1] sm:$0xff] }
 0x175   : > { %v10049_v29 = vld [vmem:[#allocation2 + $0xf0] sm:$0xff]  ;;  %v10051_v30 = vld [vmem:[#allocation2 + $0xf8] sm:$0xff]  ;;  %867 = vst.msk [vmem:[#allocation2 + $0x121] sm:$0xff] %vm392_vm1, %v835_v22  ;;  %v775_v31 = vadd.f32 %v9885_v42, %v774_v26  ;;  %8542 = vmatprep.mubr.msk.f32.mxu0 %vm392_vm1, %v10047_v28 }
 0x176   : > { %8689 = vmatprep.mubr.msk.f32.mxu1 %vm392_vm1, %v10049_v29  ;;  %v838_v34 = vmax.f32 %v780_v24, 0.0  ;;  %8543 = vmatmul.mubr.msk.f32.gmra.mrb[52].mxu0 %vm392_vm1, %v10059_v32 }
 0x177   : > { %8690 = vmatmul.mubr.msk.f32.gmra.mrb[6].mxu1 %vm392_vm1, %v10051_v30  ;;  %v837_v37 = vmax.f32 %v775_v31, 0.0  ;;  %v8503_v38 = vpop.f32.mrb[26].mxu0  ;;  %v10079_v50 = vld [vmem:[#allocation2 + $0x111] sm:$0xff] }
 0x178   : > { %870 = vst.msk [vmem:[#allocation2 + $0x141] sm:$0xff] %vm392_vm1, %v838_v34  ;;  %v790_v41 = vadd.f32 %v8503_v38, %v9885_v42  ;;  %v784_v43 = vpop.f32.mrb[27].mxu0  ;;  %v10067_v44 = vld [vmem:[#allocation2 + $0x109] sm:$0xff] }
 0x179   : > { %v10069_v46 = vld [vmem:[#allocation2 + $0x108] sm:$0xff]  ;;  %v10071_v48 = vld [vmem:[#allocation2 + $0x110] sm:$0xff]  ;;  %869 = vst.msk [vmem:[#allocation2 + $0x139] sm:$0xff] %vm392_vm1, %v837_v37  ;;  %v785_v49 = vadd.f32 %v9885_v42, %v784_v43  ;;  %8545 = vmatprep.mubr.msk.f32.mxu0 %vm392_vm1, %v10067_v44  ;;  %v877_v43 = vld [vmem:[#allocation2] sm:$0xff] }
 0x17a   : > { %8692 = vmatprep.mubr.msk.f32.mxu1 %vm392_vm1, %v10069_v46  ;;  %v840_v51 = vmax.f32 %v790_v41, 0.0  ;;  %8546 = vmatmul.mubr.msk.f32.gmra.mrb[54].mxu0 %vm392_vm1, %v10079_v50 }
 0x17b   : > { %8693 = vmatmul.mubr.msk.f32.gmra.mrb[8].mxu1 %vm392_vm1, %v10071_v48  ;;  %v839_v52 = vmax.f32 %v785_v49, 0.0  ;;  %v8506_v57 = vpop.f32.mrb[28].mxu0  ;;  %v10099_v7 = vld [vmem:[#allocation2 + $0x129] sm:$0xff] }
 0x17c   : > { %872 = vst.msk [vmem:[#allocation2 + $0x159] sm:$0xff] %vm392_vm1, %v840_v51  ;;  %v800_v60 = vadd.f32 %v8506_v57, %v9885_v42  ;;  %v794_v61 = vpop.f32.mrb[29].mxu0  ;;  %v10087_v62 = vld [vmem:[#allocation2 + $0x121] sm:$0xff] }
 0x17d   : > { %v10089_v63 = vld [vmem:[#allocation2 + $0x120] sm:$0xff]  ;;  %v10091_v0 = vld [vmem:[#allocation2 + $0x128] sm:$0xff]  ;;  %871 = vst.msk [vmem:[#allocation2 + $0x151] sm:$0xff] %vm392_vm1, %v839_v52  ;;  %v795_v6 = vadd.f32 %v9885_v42, %v794_v61  ;;  %8548 = vmatprep.mubr.msk.f32.mxu0 %vm392_vm1, %v10087_v62 }
 0x17e   : > { %8695 = vmatprep.mubr.msk.f32.mxu1 %vm392_vm1, %v10089_v63  ;;  %v842_v8 = vmax.f32 %v800_v60, 0.0  ;;  %8549 = vmatmul.mubr.msk.f32.gmra.mrb[56].mxu0 %vm392_vm1, %v10099_v7  ;;  %v878_v60 = vld [vmem:[#allocation2 + $0x8] sm:$0xff] }
 0x17f   : > { %8696 = vmatmul.mubr.msk.f32.gmra.mrb[10].mxu1 %vm392_vm1, %v10091_v0  ;;  %v841_v10 = vmax.f32 %v795_v6, 0.0  ;;  %v8509_v12 = vpop.f32.mrb[30].mxu0  ;;  %v10119_v26 = vld [vmem:[#allocation2 + $0x141] sm:$0xff] }
 0x180   : > { %874 = vst.msk [vmem:[#allocation2 + $0x171] sm:$0xff] %vm392_vm1, %v842_v8  ;;  %v810_v13 = vadd.f32 %v8509_v12, %v9885_v42  ;;  %v804_v18 = vpop.f32.mrb[31].mxu0  ;;  %v10107_v21 = vld [vmem:[#allocation2 + $0x139] sm:$0xff] }
 0x181   : > { %v10109_v22 = vld [vmem:[#allocation2 + $0x138] sm:$0xff]  ;;  %v10111_v23 = vld [vmem:[#allocation2 + $0x140] sm:$0xff]  ;;  %873 = vst.msk [vmem:[#allocation2 + $0x169] sm:$0xff] %vm392_vm1, %v841_v10  ;;  %v805_v24 = vadd.f32 %v9885_v42, %v804_v18  ;;  %8551 = vmatprep.mubr.msk.f32.mxu0 %vm392_vm1, %v10107_v21 }
 0x182   : > { %8698 = vmatprep.mubr.msk.f32.mxu1 %vm392_vm1, %v10109_v22  ;;  %v844_v31 = vmax.f32 %v810_v13, 0.0  ;;  %8552 = vmatmul.mubr.msk.f32.gmra.mrb[58].mxu0 %vm392_vm1, %v10119_v26  ;;  %v10169_v8 = vld [vmem:[#allocation2 + $0x18] sm:$0xff]  ;;  %v10177_v10 = vld [vmem:[#allocation2 + $0x20] sm:$0xff] }
 0x183   : > { %8699 = vmatmul.mubr.msk.f32.gmra.mrb[12].mxu1 %vm392_vm1, %v10111_v23  ;;  %v843_v34 = vmax.f32 %v805_v24, 0.0  ;;  %v10137_v41 = vld [vmem:[#allocation2 + $0x159] sm:$0xff]  ;;  %v1596_v13 = vld [vmem:[#allocation2 + $0x22] sm:$0xff] }
 0x184   : > { %876 = vst.msk [vmem:[#allocation2 + $0x189] sm:$0xff] %vm392_vm1, %v844_v31  ;;  %v10126_v37 = vld [vmem:[#allocation2 + $0x151] sm:$0xff]  ;;  %v10343_v18 = vld [vmem:[%s12917_s3 + $0x1c] sm:$0xf] }
 0x185   : > { %v10128_v42 = vld [vmem:[#allocation2 + $0x150] sm:$0xff]  ;;  %v10130_v38 = vld [vmem:[#allocation2 + $0x158] sm:$0xff]  ;;  %875 = vst.msk [vmem:[#allocation2 + $0x181] sm:$0xff] %vm392_vm1, %v843_v34  ;;  %8554 = vmatprep.mubr.msk.f32.mxu0 %vm392_vm1, %v10126_v37 }
 0x186   : > { %8701 = vmatprep.mubr.msk.f32.mxu1 %vm392_vm1, %v10128_v42  ;;  %8555 = vmatmul.mubr.msk.f32.gmra.mrb[60].mxu0 %vm392_vm1, %v10137_v41  ;;  %v10182_v12 = vld [vmem:[%s12917_s3 + $0x18] sm:$0xf]  ;;  %v10363_v31 = vld [vmem:[#allocation2 + $0x4a] sm:$0xff] }
 0x187   : > { %8702 = vmatmul.mubr.msk.f32.gmra.mrb[14].mxu1 %vm392_vm1, %v10130_v38  ;;  %v10153_v57 = vld [vmem:[#allocation2 + $0x171] sm:$0xff] }
 0x188   : > { %v10143_v49 = vld [vmem:[#allocation2 + $0x169] sm:$0xff]  ;;  %v10347_v24 = vld [vmem:[#allocation2 + $0x32] sm:$0xff] }
 0x189   : > { %v10145_v51 = vld [vmem:[#allocation2 + $0x168] sm:$0xff]  ;;  %v10147_v52 = vld [vmem:[#allocation2 + $0x170] sm:$0xff]  ;;  %8557 = vmatprep.mubr.msk.f32.mxu0 %vm392_vm1, %v10143_v49 }
 0x18a   : > { %8704 = vmatprep.mubr.msk.f32.mxu1 %vm392_vm1, %v10145_v51  ;;  %8558 = vmatmul.mubr.msk.f32.gmra.mrb[62].mxu0 %vm392_vm1, %v10153_v57  ;;  %v10369_v34 = vld [vmem:[#allocation2 + $0x52] sm:$0xff] }
 0x18b   : > { %8705 = vmatmul.mubr.msk.f32.gmra.mrb[16].mxu1 %vm392_vm1, %v10147_v52  ;;  %8562 = vmatprep.mubr.msk.f32.mxu0 %vm392_vm1, %v877_v43  ;;  %v10375_v43 = vld [vmem:[#allocation2 + $0x62] sm:$0xff] }
 0x18c   : > { %v10160_v61 = vld [vmem:[#allocation2 + $0x180] sm:$0xff]  ;;  %v10162_v6 = vld [vmem:[#allocation2 + $0x188] sm:$0xff] }
 0x18d   : > { %8707 = vmatprep.mubr.msk.f32.mxu1 %vm392_vm1, %v10160_v61 }
 0x18e   : > { %8563 = vmatmul.mubr.msk.f32.vlgmr.msra.gmra.mrb[32].mxu0 %vm392_vm1, %v878_v60  ;;  %v10381_v60 = vld [vmem:[#allocation2 + $0x6a] sm:$0xff] }
 0x18f   : > { %8708 = vmatmul.mubr.msk.f32.gmra.mrb[18].mxu1 %vm392_vm1, %v10162_v6  ;;  %8565 = vmatprep.mubr.msk.f32.mxu0 %vm392_vm1, %v10169_v8 }
 0x190   : > { %8712 = vmatprep.mubr.msk.f32.mxu1 %vm392_vm1, %v9906_v1  ;;  %8611 = vmatpush3.msk.msra.mxu0 %vm1040_vm4, %v9896_v56  ;;  %v10190_v1 = vld [vmem:[#allocation2 + $0x30] sm:$0xff]  ;;  %v10200_v56 = vld [vmem:[#allocation2 + $0x38] sm:$0xff] }
 0x191   : > { %8660 = vmatprep.subr.msk.mxu0 %vm1040_vm4, %v9864_v39 }
 0x192   : > { %8566 = vmatmul.mubr.msk.f32.gmra.mrb[34].mxu0 %vm392_vm1, %v10177_v10 }
 0x193   : > { %8713 = vmatmul.mubr.msk.f32.vlgmr.msra.gmra.mrb[20].mxu1 %vm392_vm1, %v9912_v3  ;;  %8568 = vmatprep.mubr.msk.f32.mxu0 %vm392_vm1, %v10190_v1  ;;  %v10206_v3 = vld [vmem:[#allocation2 + $0x48] sm:$0xff] }
 0x194   : > { %8761 = vmatpush3.msk.msra.mxu1 %vm1040_vm4, %v9995_v59  ;;  %8715 = vmatprep.mubr.msk.f32.mxu1 %vm392_vm1, %v9918_v9  ;;  %v10212_v9 = vld [vmem:[#allocation2 + $0x50] sm:$0xff]  ;;  %v10218_v59 = vld [vmem:[#allocation2 + $0x60] sm:$0xff] }
 0x195   : > { %8810 = vmatprep.subr.msk.mxu1 %vm1040_vm4, %v10182_v12 }
 0x196   : > { %8569 = vmatmul.mubr.msk.f32.gmra.mrb[36].mxu0 %vm392_vm1, %v10200_v56 }
 0x197   : > { %8716 = vmatmul.mubr.msk.f32.gmra.mrb[22].mxu1 %vm392_vm1, %v9924_v11  ;;  %8571 = vmatprep.mubr.msk.f32.mxu0 %vm392_vm1, %v10206_v3  ;;  %v10224_v11 = vld [vmem:[#allocation2 + $0x68] sm:$0xff] }
 0x198   : > { %8718 = vmatprep.mubr.msk.f32.mxu1 %vm392_vm1, %v9930_v17  ;;  %v10230_v17 = vld [vmem:[#allocation2 + $0x78] sm:$0xff] }
 0x19a   : > { %8572 = vmatmul.mubr.msk.f32.gmra.mrb[38].mxu0 %vm392_vm1, %v10212_v9 }
 0x19b   : > { %8719 = vmatmul.mubr.msk.f32.gmra.mrb[24].mxu1 %vm392_vm1, %v9936_v19  ;;  %8574 = vmatprep.mubr.msk.f32.mxu0 %vm392_vm1, %v10218_v59  ;;  %v10236_v19 = vld [vmem:[#allocation2 + $0x80] sm:$0xff] }
 0x19c   : > { %8721 = vmatprep.mubr.msk.f32.mxu1 %vm392_vm1, %v9942_v25  ;;  %v10242_v25 = vld [vmem:[#allocation2 + $0x90] sm:$0xff] }
 0x19e   : > { %8575 = vmatmul.mubr.msk.f32.gmra.mrb[40].mxu0 %vm392_vm1, %v10224_v11 }
 0x19f   : > { %8722 = vmatmul.mubr.msk.f32.gmra.mrb[26].mxu1 %vm392_vm1, %v9948_v27  ;;  %8577 = vmatprep.mubr.msk.f32.mxu0 %vm392_vm1, %v10230_v17  ;;  %v10248_v27 = vld [vmem:[#allocation2 + $0x98] sm:$0xff] }
 0x1a0   : > { %8724 = vmatprep.mubr.msk.f32.mxu1 %vm392_vm1, %v9954_v33  ;;  %v1593_v33 = vld [vmem:[#allocation2 + $0x2] sm:$0xff] }
 0x1a2   : > { %8578 = vmatmul.mubr.msk.f32.gmra.mrb[42].mxu0 %vm392_vm1, %v10236_v19 }
 0x1a3   : > { %8725 = vmatmul.mubr.msk.f32.gmra.mrb[28].mxu1 %vm392_vm1, %v9960_v36  ;;  %8580 = vmatprep.mubr.msk.f32.mxu0 %vm392_vm1, %v10242_v25  ;;  %v10326_v36 = vld [vmem:[#allocation2 + $0x181] sm:$0xff] }
 0x1a4   : > { %8727 = vmatprep.mubr.msk.f32.mxu1 %vm392_vm1, %v9966_v45  ;;  %v1594_v45 = vld [vmem:[#allocation2 + $0xa] sm:$0xff] }
 0x1a6   : > { %8581 = vmatmul.mubr.msk.f32.gmra.mrb[44].mxu0 %vm392_vm1, %v10248_v27 }
 0x1a7   : > { %8728 = vmatmul.mubr.msk.f32.gmra.mrb[30].mxu1 %vm392_vm1, %v9972_v47  ;;  %8583 = vmatprep.mubr.msk.f32.mxu0 %vm392_vm1, %v9980_v54  ;;  %v10331_v47 = vld [vmem:[#allocation2 + $0x189] sm:$0xff] }
 0x1a8   : > { %8730 = vmatprep.mubr.msk.f32.mxu1 %vm392_vm1, %v9978_v53  ;;  %v1595_v53 = vld [vmem:[#allocation2 + $0x1a] sm:$0xff] }
 0x1aa   : > { %8584 = vmatmul.mubr.msk.f32.gmra.mrb[46].mxu0 %vm392_vm1, %v9982_v55 }
 0x1ab   : > { %8731 = vmatmul.mubr.msk.f32.gmra.mrb[0].mxu1 %vm392_vm1, %v9990_v58  ;;  %8586 = vmatprep.mubr.msk.f32.mxu0 %vm392_vm1, %v10007_v4 }
 0x1ac   : > { %8733 = vmatprep.mubr.msk.f32.mxu1 %vm392_vm1, %v10005_v2 }
 0x1ae   : > { %8587 = vmatmul.mubr.msk.f32.gmra.mrb[48].mxu0 %vm392_vm1, %v10009_v5 }
 0x1af   : > { %8734 = vmatmul.mubr.msk.f32.gmra.mrb[2].mxu1 %vm392_vm1, %v10019_v40  ;;  %8589 = vmatprep.mubr.msk.f32.mxu0 %vm392_vm1, %v10029_v15 }
 0x1b0   : > { %8736 = vmatprep.mubr.msk.f32.mxu1 %vm392_vm1, %v10027_v14 }
 0x1b2   : > { %8590 = vmatmul.mubr.msk.f32.gmra.mrb[50].mxu0 %vm392_vm1, %v10031_v16 }
 0x1b3   : > { %8737 = vmatmul.mubr.msk.f32.gmra.mrb[4].mxu1 %vm392_vm1, %v10039_v20  ;;  %8592 = vmatprep.mubr.msk.f32.mxu0 %vm392_vm1, %v10049_v29 }
 0x1b4   : > { %8739 = vmatprep.mubr.msk.f32.mxu1 %vm392_vm1, %v10047_v28 }
 0x1b6   : > { %8593 = vmatmul.mubr.msk.f32.gmra.mrb[52].mxu0 %vm392_vm1, %v10051_v30 }
 0x1b7   : > { %8740 = vmatmul.mubr.msk.f32.gmra.mrb[6].mxu1 %vm392_vm1, %v10059_v32  ;;  %8595 = vmatprep.mubr.msk.f32.mxu0 %vm392_vm1, %v10069_v46 }
 0x1b8   : > { %8742 = vmatprep.mubr.msk.f32.mxu1 %vm392_vm1, %v10067_v44 }
 0x1ba   : > { %8596 = vmatmul.mubr.msk.f32.gmra.mrb[54].mxu0 %vm392_vm1, %v10071_v48 }
 0x1bb   : > { %8743 = vmatmul.mubr.msk.f32.gmra.mrb[8].mxu1 %vm392_vm1, %v10079_v50  ;;  %8598 = vmatprep.mubr.msk.f32.mxu0 %vm392_vm1, %v10089_v63 }
 0x1bc   : > { %8745 = vmatprep.mubr.msk.f32.mxu1 %vm392_vm1, %v10087_v62 }
 0x1be   : > { %8599 = vmatmul.mubr.msk.f32.gmra.mrb[56].mxu0 %vm392_vm1, %v10091_v0 }
 0x1bf   : > { %8746 = vmatmul.mubr.msk.f32.gmra.mrb[10].mxu1 %vm392_vm1, %v10099_v7  ;;  %8601 = vmatprep.mubr.msk.f32.mxu0 %vm392_vm1, %v10109_v22 }
 0x1c0   : > { %8748 = vmatprep.mubr.msk.f32.mxu1 %vm392_vm1, %v10107_v21 }
 0x1c2   : > { %8602 = vmatmul.mubr.msk.f32.gmra.mrb[58].mxu0 %vm392_vm1, %v10111_v23 }
 0x1c3   : > { %8749 = vmatmul.mubr.msk.f32.gmra.mrb[12].mxu1 %vm392_vm1, %v10119_v26  ;;  %8604 = vmatprep.mubr.msk.f32.mxu0 %vm392_vm1, %v10128_v42 }
 0x1c4   : > { %8751 = vmatprep.mubr.msk.f32.mxu1 %vm392_vm1, %v10126_v37 }
 0x1c6   : > { %8605 = vmatmul.mubr.msk.f32.gmra.mrb[60].mxu0 %vm392_vm1, %v10130_v38 }
 0x1c7   : > { %8752 = vmatmul.mubr.msk.f32.gmra.mrb[14].mxu1 %vm392_vm1, %v10137_v41  ;;  %8607 = vmatprep.mubr.msk.f32.mxu0 %vm392_vm1, %v10145_v51 }
 0x1c8   : > { %8754 = vmatprep.mubr.msk.f32.mxu1 %vm392_vm1, %v10143_v49 }
 0x1ca   : > { %8608 = vmatmul.mubr.msk.f32.gmra.mrb[62].mxu0 %vm392_vm1, %v10147_v52 }
 0x1cb   : > { %8755 = vmatmul.mubr.msk.f32.gmra.mrb[16].mxu1 %vm392_vm1, %v10153_v57  ;;  %8612 = vmatprep.mubr.msk.f32.mxu0 %vm392_vm1, %v1593_v33  ;;  %v10393_v33 = vld [vmem:[#allocation2 + $0x82] sm:$0xff] }
 0x1cc   : > { %8757 = vmatprep.mubr.msk.f32.mxu1 %vm392_vm1, %v10326_v36 }
 0x1ce   : > { %8613 = vmatmul.mubr.msk.f32.vlgmr.msra.gmra.mrb[32].mxu0 %vm392_vm1, %v1594_v45  ;;  %v10399_v45 = vld [vmem:[#allocation2 + $0x92] sm:$0xff] }
 0x1cf   : > { %8758 = vmatmul.mubr.msk.f32.gmra.mrb[18].mxu1 %vm392_vm1, %v10331_v47  ;;  %8615 = vmatprep.mubr.msk.f32.mxu0 %vm392_vm1, %v1595_v53  ;;  %12919 = vst [vmem:[#allocation26_spill] sm:$0xff] %v10399_v45 }
 0x1d0   : > { %8762 = vmatprep.mubr.msk.f32.mxu1 %vm392_vm1, %v1595_v53  ;;  %8661 = vmatpush3.msk.msra.mxu0 %vm1040_vm4, %v9864_v39  ;;  %v10357_v39 = vld [vmem:[#allocation2 + $0x3a] sm:$0xff] }
 0x1d1   : > { %v10405_v53 = vld [vmem:[#allocation2 + $0x9a] sm:$0xff] }
 0x1d2   : > { %8616 = vmatmul.mubr.msk.f32.gmra.mrb[34].mxu0 %vm392_vm1, %v1596_v13  ;;  %12920 = vst [vmem:[#allocation27_spill] sm:$0xff] %v10405_v53 }
 0x1d3   : > { %8763 = vmatmul.mubr.msk.f32.vlgmr.msra.gmra.mrb[20].mxu1 %vm392_vm1, %v1596_v13  ;;  %8618 = vmatprep.mubr.msk.f32.mxu0 %vm392_vm1, %v10347_v24  ;;  %v10411_v13 = vld [vmem:[#allocation2 + $0xaa] sm:$0xff] }
 0x1d4   : > { %8811 = vmatpush3.msk.msra.mxu1 %vm1040_vm4, %v10182_v12  ;;  %8765 = vmatprep.mubr.msk.f32.mxu1 %vm392_vm1, %v10347_v24  ;;  %v10387_v12 = vld [vmem:[#allocation2 + $0x7a] sm:$0xff]  ;;  %12921 = vst [vmem:[#allocation28_spill] sm:$0xff] %v10411_v13 }
 0x1d5   : > { %8860 = vmatprep.subr.msk.mxu1 %vm1040_vm4, %v10343_v18 }
 0x1d6   : > { %8619 = vmatmul.mubr.msk.f32.gmra.mrb[36].mxu0 %vm392_vm1, %v10357_v39 }
 0x1d7   : > { %8766 = vmatmul.mubr.msk.f32.gmra.mrb[22].mxu1 %vm392_vm1, %v10357_v39  ;;  %8621 = vmatprep.mubr.msk.f32.mxu0 %vm392_vm1, %v10363_v31 }
 0x1d8   : > { %8768 = vmatprep.mubr.msk.f32.mxu1 %vm392_vm1, %v10363_v31 }
 0x1da   : > { %8622 = vmatmul.mubr.msk.f32.gmra.mrb[38].mxu0 %vm392_vm1, %v10369_v34 }
 0x1db   : > { %8769 = vmatmul.mubr.msk.f32.gmra.mrb[24].mxu1 %vm392_vm1, %v10369_v34  ;;  %8624 = vmatprep.mubr.msk.f32.mxu0 %vm392_vm1, %v10375_v43 }
 0x1dc   : > { %8771 = vmatprep.mubr.msk.f32.mxu1 %vm392_vm1, %v10375_v43 }
 0x1de   : > { %8625 = vmatmul.mubr.msk.f32.gmra.mrb[40].mxu0 %vm392_vm1, %v10381_v60 }
 0x1df   : > { %8772 = vmatmul.mubr.msk.f32.gmra.mrb[26].mxu1 %vm392_vm1, %v10381_v60  ;;  %8627 = vmatprep.mubr.msk.f32.mxu0 %vm392_vm1, %v10387_v12 }
 0x1e0   : > { %8774 = vmatprep.mubr.msk.f32.mxu1 %vm392_vm1, %v10387_v12 }
 0x1e2   : > { %8628 = vmatmul.mubr.msk.f32.gmra.mrb[42].mxu0 %vm392_vm1, %v10393_v33 }
 0x1e3   : > { %8775 = vmatmul.mubr.msk.f32.gmra.mrb[28].mxu1 %vm392_vm1, %v10393_v33  ;;  %8630 = vmatprep.mubr.msk.f32.mxu0 %vm392_vm1, %v10399_v45 }
 0x1e4   : > { %8777 = vmatprep.mubr.msk.f32.mxu1 %vm392_vm1, %v10399_v45  ;;  %v10423_v45 = vld [vmem:[#allocation2 + $0xc2] sm:$0xff] }
 0x1e5   : > { %12923 = vst [vmem:[#allocation30_spill] sm:$0xff] %v10423_v45 }
 0x1e6   : > { %8631 = vmatmul.mubr.msk.f32.gmra.mrb[44].mxu0 %vm392_vm1, %v10405_v53 }
 0x1e7   : > { %8778 = vmatmul.mubr.msk.f32.gmra.mrb[30].mxu1 %vm392_vm1, %v10405_v53  ;;  %8633 = vmatprep.mubr.msk.f32.mxu0 %vm392_vm1, %v10411_v13  ;;  %v10429_v53 = vld [vmem:[#allocation2 + $0xca] sm:$0xff] }
 0x1e8   : > { %8780 = vmatprep.mubr.msk.f32.mxu1 %vm392_vm1, %v10411_v13  ;;  %12924 = vst [vmem:[#allocation31_spill] sm:$0xff] %v10429_v53  ;;  %v10435_v13 = vld [vmem:[#allocation2 + $0xda] sm:$0xff] }
 0x1e9   : > { %12925 = vst [vmem:[#allocation32_spill] sm:$0xff] %v10435_v13 }
 0x1ea   : > { %8634 = vmatmul.mubr.msk.f32.gmra.mrb[46].mxu0 %vm392_vm1, %v10417_v35 }
 0x1eb   : > { %8781 = vmatmul.mubr.msk.f32.gmra.mrb[0].mxu1 %vm392_vm1, %v10417_v35  ;;  %8636 = vmatprep.mubr.msk.f32.mxu0 %vm392_vm1, %v10423_v45  ;;  %v10441_v35 = vld [vmem:[#allocation2 + $0xe2] sm:$0xff] }
 0x1ec   : > { %8783 = vmatprep.mubr.msk.f32.mxu1 %vm392_vm1, %v10423_v45  ;;  %12926 = vst [vmem:[#allocation33_spill] sm:$0xff] %v10441_v35  ;;  %v10447_v45 = vld [vmem:[#allocation2 + $0xf2] sm:$0xff] }
 0x1ed   : > { %12927 = vst [vmem:[#allocation34_spill] sm:$0xff] %v10447_v45 }
 0x1ee   : > { %8637 = vmatmul.mubr.msk.f32.gmra.mrb[48].mxu0 %vm392_vm1, %v10429_v53 }
 0x1ef   : > { %8784 = vmatmul.mubr.msk.f32.gmra.mrb[2].mxu1 %vm392_vm1, %v10429_v53  ;;  %8639 = vmatprep.mubr.msk.f32.mxu0 %vm392_vm1, %v10435_v13  ;;  %v10453_v53 = vld [vmem:[#allocation2 + $0xfa] sm:$0xff] }
 0x1f0   : > { %8786 = vmatprep.mubr.msk.f32.mxu1 %vm392_vm1, %v10435_v13  ;;  %12928 = vst [vmem:[#allocation35_spill] sm:$0xff] %v10453_v53  ;;  %v10459_v13 = vld [vmem:[#allocation2 + $0x10a] sm:$0xff] }
 0x1f1   : > { %12929 = vst [vmem:[#allocation36_spill] sm:$0xff] %v10459_v13 }
 0x1f2   : > { %8640 = vmatmul.mubr.msk.f32.gmra.mrb[50].mxu0 %vm392_vm1, %v10441_v35 }
 0x1f3   : > { %8787 = vmatmul.mubr.msk.f32.gmra.mrb[4].mxu1 %vm392_vm1, %v10441_v35  ;;  %8642 = vmatprep.mubr.msk.f32.mxu0 %vm392_vm1, %v10447_v45  ;;  %v10465_v35 = vld [vmem:[#allocation2 + $0x112] sm:$0xff] }
 0x1f4   : > { %8789 = vmatprep.mubr.msk.f32.mxu1 %vm392_vm1, %v10447_v45  ;;  %12930 = vst [vmem:[#allocation37_spill] sm:$0xff] %v10465_v35  ;;  %v10471_v45 = vld [vmem:[#allocation2 + $0x122] sm:$0xff] }
 0x1f5   : > { %12931 = vst [vmem:[#allocation38_spill] sm:$0xff] %v10471_v45 }
 0x1f6   : > { %8643 = vmatmul.mubr.msk.f32.gmra.mrb[52].mxu0 %vm392_vm1, %v10453_v53 }
 0x1f7   : > { %8790 = vmatmul.mubr.msk.f32.gmra.mrb[6].mxu1 %vm392_vm1, %v10453_v53  ;;  %8645 = vmatprep.mubr.msk.f32.mxu0 %vm392_vm1, %v10459_v13  ;;  %v10477_v53 = vld [vmem:[#allocation2 + $0x12a] sm:$0xff] }
 0x1f8   : > { %8792 = vmatprep.mubr.msk.f32.mxu1 %vm392_vm1, %v10459_v13  ;;  %12932 = vst [vmem:[#allocation39_spill] sm:$0xff] %v10477_v53  ;;  %v10483_v13 = vld [vmem:[#allocation2 + $0x13a] sm:$0xff] }
 0x1f9   : > { %12933 = vst [vmem:[#allocation40_spill] sm:$0xff] %v10483_v13 }
 0x1fa   : > { %8646 = vmatmul.mubr.msk.f32.gmra.mrb[54].mxu0 %vm392_vm1, %v10465_v35 }
 0x1fb   : > { %8793 = vmatmul.mubr.msk.f32.gmra.mrb[8].mxu1 %vm392_vm1, %v10465_v35  ;;  %8648 = vmatprep.mubr.msk.f32.mxu0 %vm392_vm1, %v10471_v45  ;;  %v10489_v35 = vld [vmem:[#allocation2 + $0x142] sm:$0xff] }
 0x1fc   : > { %8795 = vmatprep.mubr.msk.f32.mxu1 %vm392_vm1, %v10471_v45  ;;  %12934 = vst [vmem:[#allocation41_spill] sm:$0xff] %v10489_v35  ;;  %v10495_v45 = vld [vmem:[#allocation2 + $0x152] sm:$0xff] }
 0x1fd   : > { %12935 = vst [vmem:[#allocation42_spill] sm:$0xff] %v10495_v45 }
 0x1fe   : > { %8649 = vmatmul.mubr.msk.f32.gmra.mrb[56].mxu0 %vm392_vm1, %v10477_v53 }
 0x1ff   : > { %8796 = vmatmul.mubr.msk.f32.gmra.mrb[10].mxu1 %vm392_vm1, %v10477_v53  ;;  %8651 = vmatprep.mubr.msk.f32.mxu0 %vm392_vm1, %v10483_v13  ;;  %v10501_v53 = vld [vmem:[#allocation2 + $0x15a] sm:$0xff] }
 0x200   : > { %8798 = vmatprep.mubr.msk.f32.mxu1 %vm392_vm1, %v10483_v13  ;;  %12936 = vst [vmem:[#allocation43_spill] sm:$0xff] %v10501_v53  ;;  %v10507_v13 = vld [vmem:[#allocation2 + $0x16a] sm:$0xff] }
 0x202   : > { %8652 = vmatmul.mubr.msk.f32.gmra.mrb[58].mxu0 %vm392_vm1, %v10489_v35 }
 0x203   : > { %8799 = vmatmul.mubr.msk.f32.gmra.mrb[12].mxu1 %vm392_vm1, %v10489_v35  ;;  %8654 = vmatprep.mubr.msk.f32.mxu0 %vm392_vm1, %v10495_v45  ;;  %v10513_v35 = vld [vmem:[#allocation2 + $0x172] sm:$0xff] }
 0x204   : > { %8801 = vmatprep.mubr.msk.f32.mxu1 %vm392_vm1, %v10495_v45  ;;  %v10519_v45 = vld [vmem:[#allocation2 + $0x182] sm:$0xff] }
 0x206   : > { %8655 = vmatmul.mubr.msk.f32.gmra.mrb[60].mxu0 %vm392_vm1, %v10501_v53 }
 0x207   : > { %8802 = vmatmul.mubr.msk.f32.gmra.mrb[14].mxu1 %vm392_vm1, %v10501_v53  ;;  %8657 = vmatprep.mubr.msk.f32.mxu0 %vm392_vm1, %v10507_v13  ;;  %v10525_v53 = vld [vmem:[#allocation2 + $0x18a] sm:$0xff] }
 0x208   : > { %8804 = vmatprep.mubr.msk.f32.mxu1 %vm392_vm1, %v10507_v13 }
 0x20a   : > { %8658 = vmatmul.mubr.msk.f32.gmra.mrb[62].mxu0 %vm392_vm1, %v10513_v35 }
 0x20b   : > { %8805 = vmatmul.mubr.msk.f32.gmra.mrb[16].mxu1 %vm392_vm1, %v10513_v35  ;;  %8662 = vmatprep.mubr.msk.f32.mxu0 %vm392_vm1, %v10169_v8  ;;  %v7881_v8 = vld [vmem:[%s12917_s3 + $0x20] sm:$0xf]  ;;  %s11330_s3 = sld [smem:[#allocation10 + $0x3e]] }
 0x20c   : > { %8807 = vmatprep.mubr.msk.f32.mxu1 %vm392_vm1, %v10519_v45 }
 0x20e   : > { %8663 = vmatmul.mubr.msk.f32.vlgmr.msra.gmra.mrb[32].mxu0 %vm392_vm1, %v10177_v10 }
 0x20f   : > { %8808 = vmatmul.mubr.msk.f32.gmra.mrb[18].mxu1 %vm392_vm1, %v10525_v53  ;;  %8665 = vmatprep.mubr.msk.f32.mxu0 %vm392_vm1, %v10190_v1 }
 0x210   : > { %8812 = vmatprep.mubr.msk.f32.mxu1 %vm392_vm1, %v10190_v1 }
 0x212   : > { %8666 = vmatmul.mubr.msk.f32.gmra.mrb[34].mxu0 %vm392_vm1, %v10200_v56 }
 0x213   : > { %8813 = vmatmul.mubr.msk.f32.vlgmr.msra.gmra.mrb[20].mxu1 %vm392_vm1, %v10200_v56  ;;  %8668 = vmatprep.mubr.msk.f32.mxu0 %vm392_vm1, %v10206_v3  ;;  %v12955_v56 = vld [vmem:[#allocation43_spill] sm:$0xff] }
 0x214   : > { %8861 = vmatpush3.msk.msra.mxu1 %vm1040_vm4, %v10343_v18  ;;  %8815 = vmatprep.mubr.msk.f32.mxu1 %vm392_vm1, %v10206_v3 }
 0x215   : > { %8910 = vmatprep.subr.msk.mxu1 %vm1040_vm4, %v7881_v8 }
 0x216   : > { %8669 = vmatmul.mubr.msk.f32.gmra.mrb[36].mxu0 %vm392_vm1, %v10212_v9 }
 0x217   : > { %8816 = vmatmul.mubr.msk.f32.gmra.mrb[22].mxu1 %vm392_vm1, %v10212_v9  ;;  %8671 = vmatprep.mubr.msk.f32.mxu0 %vm392_vm1, %v10218_v59 }
 0x218   : > { %8818 = vmatprep.mubr.msk.f32.mxu1 %vm392_vm1, %v10218_v59  ;;  %v3964_v59 = vld [vmem:[#allocation2 + $0x19a] sm:$0xff] }
 0x21a   : > { %8672 = vmatmul.mubr.msk.f32.gmra.mrb[38].mxu0 %vm392_vm1, %v10224_v11 }
 0x21b   : > { %8819 = vmatmul.mubr.msk.f32.gmra.mrb[24].mxu1 %vm392_vm1, %v10224_v11  ;;  %8674 = vmatprep.mubr.msk.f32.mxu0 %vm392_vm1, %v10230_v17 }
 0x21c   : > { %8821 = vmatprep.mubr.msk.f32.mxu1 %vm392_vm1, %v10230_v17 }
 0x21e   : > { %8675 = vmatmul.mubr.msk.f32.gmra.mrb[40].mxu0 %vm392_vm1, %v10236_v19 }
 0x21f   : > { %8822 = vmatmul.mubr.msk.f32.gmra.mrb[26].mxu1 %vm392_vm1, %v10236_v19  ;;  %8677 = vmatprep.mubr.msk.f32.mxu0 %vm392_vm1, %v10242_v25  ;;  %v3965_v19 = vld [vmem:[#allocation2 + $0x1a2] sm:$0xff] }
 0x220   : > { %8824 = vmatprep.mubr.msk.f32.mxu1 %vm392_vm1, %v10242_v25 }
 0x222   : > { %8678 = vmatmul.mubr.msk.f32.gmra.mrb[42].mxu0 %vm392_vm1, %v10248_v27 }
 0x223   : > { %8825 = vmatmul.mubr.msk.f32.gmra.mrb[28].mxu1 %vm392_vm1, %v10248_v27 }
 0x224   : > { %8827 = vmatprep.mubr.msk.f32.mxu1 %vm392_vm1, %v9980_v54  ;;  %v3184_v54 = vld [vmem:[#allocation2 + $0x198] sm:$0xff] }
 0x227   : > { %8828 = vmatmul.mubr.msk.f32.gmra.mrb[30].mxu1 %vm392_vm1, %v9982_v55  ;;  %v3185_v55 = vld [vmem:[#allocation2 + $0x1a0] sm:$0xff] }
 0x228   : > { %8830 = vmatprep.mubr.msk.f32.mxu1 %vm392_vm1, %v10007_v4  ;;  %v3544_v4 = vld [vmem:[#allocation2 + $0x31] sm:$0xff] }
 0x22b   : > { %8831 = vmatmul.mubr.msk.f32.gmra.mrb[0].mxu1 %vm392_vm1, %v10009_v5  ;;  %v3545_v5 = vld [vmem:[#allocation2 + $0x39] sm:$0xff] }
 0x22c   : > { %8833 = vmatprep.mubr.msk.f32.mxu1 %vm392_vm1, %v10029_v15  ;;  %v3546_v15 = vld [vmem:[#allocation2 + $0x49] sm:$0xff] }
 0x22f   : > { %8834 = vmatmul.mubr.msk.f32.gmra.mrb[2].mxu1 %vm392_vm1, %v10031_v16  ;;  %v3547_v16 = vld [vmem:[#allocation2 + $0x51] sm:$0xff] }
 0x230   : > { %8836 = vmatprep.mubr.msk.f32.mxu1 %vm392_vm1, %v10049_v29  ;;  %v3548_v29 = vld [vmem:[#allocation2 + $0x61] sm:$0xff] }
 0x233   : > { %8837 = vmatmul.mubr.msk.f32.gmra.mrb[4].mxu1 %vm392_vm1, %v10051_v30  ;;  %v3549_v30 = vld [vmem:[#allocation2 + $0x69] sm:$0xff] }
 0x234   : > { %8839 = vmatprep.mubr.msk.f32.mxu1 %vm392_vm1, %v10069_v46  ;;  %v3550_v46 = vld [vmem:[#allocation2 + $0x79] sm:$0xff] }
 0x237   : > { %8840 = vmatmul.mubr.msk.f32.gmra.mrb[6].mxu1 %vm392_vm1, %v10071_v48  ;;  %v3551_v48 = vld [vmem:[#allocation2 + $0x81] sm:$0xff] }
 0x238   : > { %8842 = vmatprep.mubr.msk.f32.mxu1 %vm392_vm1, %v10089_v63  ;;  %v3552_v63 = vld [vmem:[#allocation2 + $0x91] sm:$0xff] }
 0x23b   : > { %8843 = vmatmul.mubr.msk.f32.gmra.mrb[8].mxu1 %vm392_vm1, %v10091_v0  ;;  %v3553_v0 = vld [vmem:[#allocation2 + $0x99] sm:$0xff] }
 0x23c   : > { %8845 = vmatprep.mubr.msk.f32.mxu1 %vm392_vm1, %v10109_v22  ;;  %v3554_v22 = vld [vmem:[#allocation2 + $0xa9] sm:$0xff] }
 0x23f   : > { %8846 = vmatmul.mubr.msk.f32.gmra.mrb[10].mxu1 %vm392_vm1, %v10111_v23  ;;  %v12947_v23 = vld [vmem:[#allocation35_spill] sm:$0xff] }
 0x240   : > { %8848 = vmatprep.mubr.msk.f32.mxu1 %vm392_vm1, %v10128_v42  ;;  %v12950_v42 = vld [vmem:[#allocation38_spill] sm:$0xff] }
 0x243   : > { %8849 = vmatmul.mubr.msk.f32.gmra.mrb[12].mxu1 %vm392_vm1, %v10130_v38 }
 0x244   : > { %8851 = vmatprep.mubr.msk.f32.mxu1 %vm392_vm1, %v10145_v51  ;;  %v12952_v51 = vld [vmem:[#allocation40_spill] sm:$0xff] }
 0x247   : > { %8852 = vmatmul.mubr.msk.f32.gmra.mrb[14].mxu1 %vm392_vm1, %v10147_v52 }
 0x248   : > { %8854 = vmatprep.mubr.msk.f32.mxu1 %vm392_vm1, %v10160_v61  ;;  %v12953_v61 = vld [vmem:[#allocation41_spill] sm:$0xff] }
 0x24b   : > { %8855 = vmatmul.mubr.msk.f32.gmra.mrb[16].mxu1 %vm392_vm1, %v10162_v6  ;;  %v12954_v6 = vld [vmem:[#allocation42_spill] sm:$0xff] }
 0x24c   : > { %8857 = vmatprep.mubr.msk.f32.mxu1 %vm392_vm1, %v3184_v54 }
 0x24f   : > { %8858 = vmatmul.mubr.msk.f32.gmra.mrb[18].mxu1 %vm392_vm1, %v3185_v55 }
 0x250   : > { %8862 = vmatprep.mubr.msk.f32.mxu1 %vm392_vm1, %v3544_v4 }
 0x253   : > { %8863 = vmatmul.mubr.msk.f32.vlgmr.msra.gmra.mrb[20].mxu1 %vm392_vm1, %v3545_v5 }
 0x254   : > { %8911 = vmatpush3.msk.msra.mxu1 %vm1040_vm4, %v7881_v8  ;;  %8865 = vmatprep.mubr.msk.f32.mxu1 %vm392_vm1, %v3546_v15 }
 0x257   : > { %8866 = vmatmul.mubr.msk.f32.gmra.mrb[22].mxu1 %vm392_vm1, %v3547_v16  ;;  %v10781_v16 = vld [vmem:[%s12956_s4] ss:$0 sm:$0xff]  ;;  %s12968_s4 = smov 125  }
 0x258   : > { %8868 = vmatprep.mubr.msk.f32.mxu1 %vm392_vm1, %v3548_v29 }
 0x25b   : > { %8869 = vmatmul.mubr.msk.f32.gmra.mrb[24].mxu1 %vm392_vm1, %v3549_v30 }
 0x25c   : > { %8871 = vmatprep.mubr.msk.f32.mxu1 %vm392_vm1, %v3550_v46 }
 0x25f   : > { %8872 = vmatmul.mubr.msk.f32.gmra.mrb[26].mxu1 %vm392_vm1, %v3551_v48 }
 0x260   : > { %8874 = vmatprep.mubr.msk.f32.mxu1 %vm392_vm1, %v3552_v63 }
 0x263   : > { %8875 = vmatmul.mubr.msk.f32.gmra.mrb[28].mxu1 %vm392_vm1, %v3553_v0 }
 0x264   : > { %8877 = vmatprep.mubr.msk.f32.mxu1 %vm392_vm1, %v3554_v22 }
 0x267   : > { %8878 = vmatmul.mubr.msk.f32.gmra.mrb[30].mxu1 %vm392_vm1, %v9990_v58  ;;  %v4395_v58 = vld [vmem:[%s12937_s5] sm:$0xf]  ;;  %s11358_s5 = sld [smem:[#allocation10 + $0x40]] }
 0x268   : > { %8880 = vmatprep.mubr.msk.f32.mxu1 %vm392_vm1, %v10005_v2  ;;  %8960 = vmatprep.subr.msk.mxu0 %vm1040_vm4, %v4395_v58  ;;  %v3574_v2 = vld [vmem:[#allocation2 + $0x199] sm:$0xff] }
 0x269   : > { %8961 = vmatpush3.msk.msra.mxu0 %vm1040_vm4, %v4395_v58  ;;  %vm5274_vm4 = vcmask 154648  }
 0x26b   : > { %8881 = vmatmul.mubr.msk.f32.gmra.mrb[0].mxu1 %vm392_vm1, %v10019_v40  ;;  %v3575_v40 = vld [vmem:[#allocation2 + $0x1a1] sm:$0xff] }
 0x26c   : > { %8883 = vmatprep.mubr.msk.f32.mxu1 %vm392_vm1, %v10027_v14  ;;  %v12938_v14 = vld [vmem:[#allocation26_spill] sm:$0xff] }
 0x26f   : > { %8884 = vmatmul.mubr.msk.f32.gmra.mrb[2].mxu1 %vm392_vm1, %v10039_v20  ;;  %v12939_v20 = vld [vmem:[#allocation27_spill] sm:$0xff] }
 0x270   : > { %8886 = vmatprep.mubr.msk.f32.mxu1 %vm392_vm1, %v10047_v28  ;;  %v12940_v28 = vld [vmem:[#allocation28_spill] sm:$0xff] }
 0x273   : > { %8887 = vmatmul.mubr.msk.f32.gmra.mrb[4].mxu1 %vm392_vm1, %v10059_v32  ;;  %v12941_v32 = vld [vmem:[#allocation29_spill] sm:$0xff] }
 0x274   : > { %8889 = vmatprep.mubr.msk.f32.mxu1 %vm392_vm1, %v10067_v44  ;;  %v12942_v44 = vld [vmem:[#allocation30_spill] sm:$0xff] }
 0x277   : > { %8890 = vmatmul.mubr.msk.f32.gmra.mrb[6].mxu1 %vm392_vm1, %v10079_v50  ;;  %v12943_v50 = vld [vmem:[#allocation31_spill] sm:$0xff] }
 0x278   : > { %8892 = vmatprep.mubr.msk.f32.mxu1 %vm392_vm1, %v10087_v62  ;;  %v12944_v62 = vld [vmem:[#allocation32_spill] sm:$0xff] }
 0x27b   : > { %8893 = vmatmul.mubr.msk.f32.gmra.mrb[8].mxu1 %vm392_vm1, %v10099_v7  ;;  %v12945_v7 = vld [vmem:[#allocation33_spill] sm:$0xff] }
 0x27c   : > { %8895 = vmatprep.mubr.msk.f32.mxu1 %vm392_vm1, %v10107_v21  ;;  %v12946_v21 = vld [vmem:[#allocation34_spill] sm:$0xff] }
 0x27f   : > { %8896 = vmatmul.mubr.msk.f32.gmra.mrb[10].mxu1 %vm392_vm1, %v10119_v26  ;;  %v12948_v26 = vld [vmem:[#allocation36_spill] sm:$0xff] }
 0x280   : > { %8898 = vmatprep.mubr.msk.f32.mxu1 %vm392_vm1, %v10126_v37  ;;  %v12949_v37 = vld [vmem:[#allocation37_spill] sm:$0xff] }
 0x283   : > { %8899 = vmatmul.mubr.msk.f32.gmra.mrb[12].mxu1 %vm392_vm1, %v10137_v41 }
 0x284   : > { %8901 = vmatprep.mubr.msk.f32.mxu1 %vm392_vm1, %v10143_v49  ;;  %v12951_v49 = vld [vmem:[#allocation39_spill] sm:$0xff] }
 0x287   : > { %8902 = vmatmul.mubr.msk.f32.gmra.mrb[14].mxu1 %vm392_vm1, %v10153_v57 }
 0x288   : > { %8904 = vmatprep.mubr.msk.f32.mxu1 %vm392_vm1, %v10326_v36 }
 0x28b   : > { %8905 = vmatmul.mubr.msk.f32.gmra.mrb[16].mxu1 %vm392_vm1, %v10331_v47 }
 0x28c   : > { %8907 = vmatprep.mubr.msk.f32.mxu1 %vm392_vm1, %v3574_v2 }
 0x28f   : > { %8908 = vmatmul.mubr.msk.f32.gmra.mrb[18].mxu1 %vm392_vm1, %v3575_v40 }
 0x290   : > { %8912 = vmatprep.mubr.msk.f32.mxu1 %vm392_vm1, %v10347_v24 }
 0x293   : > { %8913 = vmatmul.mubr.msk.f32.vlgmr.msra.gmra.mrb[20].mxu1 %vm392_vm1, %v10357_v39 }
 0x294   : > { %8915 = vmatprep.mubr.msk.f32.mxu1 %vm392_vm1, %v10363_v31 }
 0x297   : > { %8916 = vmatmul.mubr.msk.f32.gmra.mrb[22].mxu1 %vm392_vm1, %v10369_v34 }
 0x298   : > { %8918 = vmatprep.mubr.msk.f32.mxu1 %vm392_vm1, %v10375_v43 }
 0x29b   : > { %8919 = vmatmul.mubr.msk.f32.gmra.mrb[24].mxu1 %vm392_vm1, %v10381_v60 }
 0x29c   : > { %8921 = vmatprep.mubr.msk.f32.mxu1 %vm392_vm1, %v10387_v12 }
 0x29f   : > { %8922 = vmatmul.mubr.msk.f32.gmra.mrb[26].mxu1 %vm392_vm1, %v10393_v33 }
 0x2a0   : > { %8924 = vmatprep.mubr.msk.f32.mxu1 %vm392_vm1, %v12938_v14 }
 0x2a3   : > { %8925 = vmatmul.mubr.msk.f32.gmra.mrb[28].mxu1 %vm392_vm1, %v12939_v20 }
 0x2a4   : > { %8927 = vmatprep.mubr.msk.f32.mxu1 %vm392_vm1, %v12940_v28 }
 0x2a7   : > { %8928 = vmatmul.mubr.msk.f32.gmra.mrb[30].mxu1 %vm392_vm1, %v12941_v32 }
 0x2a8   : > { %8930 = vmatprep.mubr.msk.f32.mxu1 %vm392_vm1, %v12942_v44 }
 0x2ab   : > { %8931 = vmatmul.mubr.msk.f32.gmra.mrb[0].mxu1 %vm392_vm1, %v12943_v50 }
 0x2ac   : > { %8933 = vmatprep.mubr.msk.f32.mxu1 %vm392_vm1, %v12944_v62 }
 0x2af   : > { %8934 = vmatmul.mubr.msk.f32.gmra.mrb[2].mxu1 %vm392_vm1, %v12945_v7 }
 0x2b0   : > { %8936 = vmatprep.mubr.msk.f32.mxu1 %vm392_vm1, %v12946_v21 }
 0x2b3   : > { %8937 = vmatmul.mubr.msk.f32.gmra.mrb[4].mxu1 %vm392_vm1, %v12947_v23 }
 0x2b4   : > { %8939 = vmatprep.mubr.msk.f32.mxu1 %vm392_vm1, %v12948_v26 }
 0x2b7   : > { %8940 = vmatmul.mubr.msk.f32.gmra.mrb[6].mxu1 %vm392_vm1, %v12949_v37 }
 0x2b8   : > { %8942 = vmatprep.mubr.msk.f32.mxu1 %vm392_vm1, %v12950_v42 }
 0x2b9   : > { %v10718_v38 = vpop.f32.mrb[44].mxu0 }
 0x2ba   : > { %v10720_v41 = vpop.f32.mrb[45].mxu0 }
 0x2bb   : > { %8943 = vmatmul.mubr.msk.f32.gmra.mrb[8].mxu1 %vm392_vm1, %v12951_v49 }
 0x2bc   : > { %8945 = vmatprep.mubr.msk.f32.mxu1 %vm392_vm1, %v12952_v51 }
 0x2bd   : > { %v10726_v52 = vpop.f32.mrb[46].mxu0 }
 0x2be   : > { %v10728_v57 = vpop.f32.mrb[47].mxu0 }
 0x2bf   : > { %8946 = vmatmul.mubr.msk.f32.gmra.mrb[10].mxu1 %vm392_vm1, %v12953_v61 }
 0x2c0   : > { %8948 = vmatprep.mubr.msk.f32.mxu1 %vm392_vm1, %v12954_v6 }
 0x2c1   : > { %v10734_v10 = vpop.f32.mrb[48].mxu0 }
 0x2c2   : > { %v10736_v1 = vpop.f32.mrb[49].mxu0 }
 0x2c3   : > { %8949 = vmatmul.mubr.msk.f32.gmra.mrb[12].mxu1 %vm392_vm1, %v12955_v56 }
 0x2c4   : > { %8951 = vmatprep.mubr.msk.f32.mxu1 %vm392_vm1, %v10507_v13 }
 0x2c5   : > { %v10742_v3 = vpop.f32.mrb[50].mxu0 }
 0x2c6   : > { %v10744_v9 = vpop.f32.mrb[51].mxu0 }
 0x2c7   : > { %8952 = vmatmul.mubr.msk.f32.gmra.mrb[14].mxu1 %vm392_vm1, %v10513_v35 }
 0x2c8   : > { %8954 = vmatprep.mubr.msk.f32.mxu1 %vm392_vm1, %v10519_v45 }
 0x2c9   : > { %v10750_v11 = vpop.f32.mrb[52].mxu0 }
 0x2ca   : > { %v10752_v17 = vpop.f32.mrb[53].mxu0 }
 0x2cb   : > { %8955 = vmatmul.mubr.msk.f32.gmra.mrb[16].mxu1 %vm392_vm1, %v10525_v53 }
 0x2cc   : > { %8957 = vmatprep.mubr.msk.f32.mxu1 %vm392_vm1, %v3964_v59 }
 0x2cd   : > { %v10757_v25 = vpop.f32.mrb[54].mxu0 }
 0x2ce   : > { %v10759_v27 = vpop.f32.mrb[55].mxu0 }
 0x2cf   : > { %8958 = vmatmul.mubr.msk.f32.gmra.mrb[18].mxu1 %vm392_vm1, %v3965_v19 }
 0x2d1   : > { %v10762_v35 = vpop.f32.mrb[56].mxu0 }
 0x2d2   : > { %v10764_v36 = vpop.f32.mrb[57].mxu0 }
 0x2d5   : > { %v10766_v47 = vpop.f32.mrb[58].mxu0 }
 0x2d6   : > { %v10768_v18 = vpop.f32.mrb[59].mxu0 }
 0x2d9   : > { %v10770_v24 = vpop.f32.mrb[60].mxu0 }
 0x2da   : > { %v10772_v39 = vpop.f32.mrb[61].mxu0 }
 0x2dd   : > { %v10774_v31 = vpop.f32.mrb[62].mxu0 }
 0x2de   : > { %v10776_v34 = vpop.f32.mrb[63].mxu0 }
 0x2e1   : > { %v8664_v43 = vpop.f32.mrb[32].mxu0 }
 0x2e2   : > { %v2182_v60 = vpop.f32.mrb[33].mxu0 }
 0x2e5   : > { %v8667_v12 = vpop.f32.mrb[34].mxu0 }
 0x2e6   : > { %v2192_v33 = vpop.f32.mrb[35].mxu0 }
 0x2e9   : > { %v8670_v45 = vpop.f32.mrb[36].mxu0 }
 0x2ea   : > { %v2202_v53 = vpop.f32.mrb[37].mxu0 }
 0x2ed   : > { %v8673_v13 = vpop.f32.mrb[38].mxu0 }
 0x2ee   : > { %v2212_v8 = vpop.f32.mrb[39].mxu0 }
 0x2f1   : > { %v8676_v54 = vpop.f32.mrb[40].mxu0 }
 0x2f2   : > { %v2222_v55 = vpop.f32.mrb[41].mxu0 }
 0x2f5   : > { %v8679_v4 = vpop.f32.mrb[42].mxu0 }
 0x2f6   : > { %v2232_v5 = vpop.f32.mrb[43].mxu0 }
 0x366   : > { %v8914_v15 = vpop.f32.mrb[20].mxu1 }
 0x367   : > { %v9031_v29 = vadd.f32 %v8914_v15, %v8664_v43  ;;  %v4133_v30 = vpop.f32.mrb[21].mxu1 }
 0x368   : > { %v9032_v46 = vadd.f32 %v4133_v30, %v2182_v60 }
 0x369   : > { %v4332_v48 = vadd.f32 %v9031_v29, %v10781_v16 }
 0x36a   : > { %v4331_v63 = vadd.f32 %v9032_v46, %v10781_v16  ;;  %v8917_v0 = vpop.f32.mrb[22].mxu1 }
 0x36b   : > { %v9033_v22 = vadd.f32 %v8917_v0, %v8667_v12  ;;  %v4143_v58 = vpop.f32.mrb[23].mxu1  ;;  %v4364_v14 = vmax.f32 %v4332_v48, 0.0 }
 0x36c   : > { %v4363_v2 = vmax.f32 %v4331_v63, 0.0  ;;  %v9034_v40 = vadd.f32 %v4143_v58, %v2192_v33 }
 0x36d   : > { %v4334_v20 = vadd.f32 %v9033_v22, %v10781_v16 }
 0x36e   : > { %v4333_v28 = vadd.f32 %v9034_v40, %v10781_v16  ;;  %v8920_v32 = vpop.f32.mrb[24].mxu1  ;;  %8962 = vmatprep.mubr.msk.f32.mxu0 %vm392_vm1, %v4363_v2 }
 0x36f   : > { %v9035_v44 = vadd.f32 %v8920_v32, %v8670_v45  ;;  %v4153_v50 = vpop.f32.mrb[25].mxu1  ;;  %8963 = vmatmul.mubr.msk.f32.vlgmr.msra.gmra.mrb[64].mxu0 %vm392_vm1, %v4364_v14  ;;  %v4366_v21 = vmax.f32 %v4334_v20, 0.0 }
 0x370   : > { %v4365_v62 = vmax.f32 %v4333_v28, 0.0  ;;  %v9036_v7 = vadd.f32 %v4153_v50, %v2202_v53 }
 0x371   : > { %v4336_v23 = vadd.f32 %v9035_v44, %v10781_v16 }
 0x372   : > { %v4335_v26 = vadd.f32 %v9036_v7, %v10781_v16  ;;  %v8923_v37 = vpop.f32.mrb[26].mxu1  ;;  %8965 = vmatprep.mubr.msk.f32.mxu0 %vm392_vm1, %v4365_v62 }
 0x373   : > { %v9037_v42 = vadd.f32 %v8923_v37, %v8673_v13  ;;  %v4163_v49 = vpop.f32.mrb[27].mxu1  ;;  %8966 = vmatmul.mubr.msk.f32.gmra.mrb[66].mxu0 %vm392_vm1, %v4366_v21  ;;  %v4368_v6 = vmax.f32 %v4336_v23, 0.0 }
 0x374   : > { %v4367_v51 = vmax.f32 %v4335_v26, 0.0  ;;  %v9038_v61 = vadd.f32 %v4163_v49, %v2212_v8 }
 0x375   : > { %v4338_v56 = vadd.f32 %v9037_v42, %v10781_v16 }
 0x376   : > { %v4337_v59 = vadd.f32 %v9038_v61, %v10781_v16  ;;  %v8926_v19 = vpop.f32.mrb[28].mxu1  ;;  %8968 = vmatprep.mubr.msk.f32.mxu0 %vm392_vm1, %v4367_v51 }
 0x377   : > { %v9039_v43 = vadd.f32 %v8926_v19, %v8676_v54  ;;  %v4173_v60 = vpop.f32.mrb[29].mxu1  ;;  %8969 = vmatmul.mubr.msk.f32.gmra.mrb[68].mxu0 %vm392_vm1, %v4368_v6  ;;  %v4370_v45 = vmax.f32 %v4338_v56, 0.0 }
 0x378   : > { %v4369_v12 = vmax.f32 %v4337_v59, 0.0  ;;  %v9040_v33 = vadd.f32 %v4173_v60, %v2222_v55 }
 0x379   : > { %v4340_v53 = vadd.f32 %v9039_v43, %v10781_v16 }
 0x37a   : > { %v4339_v13 = vadd.f32 %v9040_v33, %v10781_v16  ;;  %v8929_v8 = vpop.f32.mrb[30].mxu1  ;;  %8971 = vmatprep.mubr.msk.f32.mxu0 %vm392_vm1, %v4369_v12 }
 0x37b   : > { %v9041_v15 = vadd.f32 %v8929_v8, %v8679_v4  ;;  %v4183_v29 = vpop.f32.mrb[31].mxu1  ;;  %8972 = vmatmul.mubr.msk.f32.gmra.mrb[70].mxu0 %vm392_vm1, %v4370_v45  ;;  %v4372_v54 = vmax.f32 %v4340_v53, 0.0 }
 0x37c   : > { %v4371_v30 = vmax.f32 %v4339_v13, 0.0  ;;  %v9042_v46 = vadd.f32 %v4183_v29, %v2232_v5 }
 0x37d   : > { %v4342_v48 = vadd.f32 %v9041_v15, %v10781_v16 }
 0x37e   : > { %v4341_v63 = vadd.f32 %v9042_v46, %v10781_v16  ;;  %v8932_v55 = vpop.f32.mrb[0].mxu1  ;;  %8974 = vmatprep.mubr.msk.f32.mxu0 %vm392_vm1, %v4371_v30 }
 0x37f   : > { %v9043_v0 = vadd.f32 %v8932_v55, %v10718_v38  ;;  %v4193_v22 = vpop.f32.mrb[1].mxu1  ;;  %8975 = vmatmul.mubr.msk.f32.gmra.mrb[72].mxu0 %vm392_vm1, %v4372_v54  ;;  %v4374_v2 = vmax.f32 %v4342_v48, 0.0 }
 0x380   : > { %v4373_v58 = vmax.f32 %v4341_v63, 0.0  ;;  %v9044_v4 = vadd.f32 %v4193_v22, %v10720_v41 }
 0x381   : > { %v4344_v40 = vadd.f32 %v9043_v0, %v10781_v16 }
 0x382   : > { %v4343_v5 = vadd.f32 %v9044_v4, %v10781_v16  ;;  %v8935_v14 = vpop.f32.mrb[2].mxu1  ;;  %8977 = vmatprep.mubr.msk.f32.mxu0 %vm392_vm1, %v4373_v58 }
 0x383   : > { %v9045_v20 = vadd.f32 %v8935_v14, %v10726_v52  ;;  %v4203_v28 = vpop.f32.mrb[3].mxu1  ;;  %8978 = vmatmul.mubr.msk.f32.gmra.mrb[74].mxu0 %vm392_vm1, %v4374_v2  ;;  %v4376_v44 = vmax.f32 %v4344_v40, 0.0 }
 0x384   : > { %v4375_v38 = vmax.f32 %v4343_v5, 0.0  ;;  %v9046_v32 = vadd.f32 %v4203_v28, %v10728_v57 }
 0x385   : > { %v4346_v50 = vadd.f32 %v9045_v20, %v10781_v16 }
 0x386   : > { %v4345_v41 = vadd.f32 %v9046_v32, %v10781_v16  ;;  %v8938_v62 = vpop.f32.mrb[4].mxu1  ;;  %8980 = vmatprep.mubr.msk.f32.mxu0 %vm392_vm1, %v4375_v38 }
 0x387   : > { %v9047_v7 = vadd.f32 %v8938_v62, %v10734_v10  ;;  %v4213_v21 = vpop.f32.mrb[5].mxu1  ;;  %8981 = vmatmul.mubr.msk.f32.gmra.mrb[76].mxu0 %vm392_vm1, %v4376_v44  ;;  %v4378_v26 = vmax.f32 %v4346_v50, 0.0 }
 0x388   : > { %v4377_v52 = vmax.f32 %v4345_v41, 0.0  ;;  %v9048_v23 = vadd.f32 %v4213_v21, %v10736_v1 }
 0x389   : > { %v4348_v37 = vadd.f32 %v9047_v7, %v10781_v16 }
 0x38a   : > { %v4347_v57 = vadd.f32 %v9048_v23, %v10781_v16  ;;  %v8941_v42 = vpop.f32.mrb[6].mxu1  ;;  %8983 = vmatprep.mubr.msk.f32.mxu0 %vm392_vm1, %v4377_v52 }
 0x38b   : > { %v9049_v49 = vadd.f32 %v8941_v42, %v10742_v3  ;;  %v4223_v51 = vpop.f32.mrb[7].mxu1  ;;  %8984 = vmatmul.mubr.msk.f32.gmra.mrb[78].mxu0 %vm392_vm1, %v4378_v26  ;;  %v4380_v6 = vmax.f32 %v4348_v37, 0.0  ;;  %v12958_v37 = vmov 0.0  }
 0x38c   : > { %v4379_v10 = vmax.f32 %v4347_v57, 0.0  ;;  %v9050_v61 = vadd.f32 %v4223_v51, %v10744_v9  ;;  %v10879_v57 = vld [vmem:[%s12959_s6] ss:$0 sm:$0xff]  ;;  %436 = vst.msk [vmem:[#allocation4] sm:$0x7] %vm435_vm8, %v12958_v37  ;;  %s12969_s6 = smov 124  }
 0x38d   : > { %v4350_v56 = vadd.f32 %v9049_v49, %v10781_v16  ;;  %441 = vst.msk [vmem:[#allocation4 + $0x3] sm:$0xff] %vm440_vm9, %v12958_v37  ;;  %442 = vst.msk [vmem:[#allocation4 + $0xb] sm:$0xff] %vm440_vm9, %v12958_v37 }
 0x38e   : > { %v4349_v1 = vadd.f32 %v9050_v61, %v10781_v16  ;;  %v8944_v59 = vpop.f32.mrb[8].mxu1  ;;  %8986 = vmatprep.mubr.msk.f32.mxu0 %vm392_vm1, %v4379_v10  ;;  %437 = vst.msk [vmem:[#allocation4 + $0x18] sm:$0x7] %vm435_vm8, %v12958_v37  ;;  %438 = vst.msk [vmem:[#allocation4 + $0x13] sm:$0x7] %vm435_vm8, %v12958_v37 }
 0x38f   : > { %v9051_v19 = vadd.f32 %v8944_v59, %v10750_v11  ;;  %v4233_v43 = vpop.f32.mrb[9].mxu1  ;;  %8987 = vmatmul.mubr.msk.f32.gmra.mrb[80].mxu0 %vm392_vm1, %v4380_v6  ;;  %v4382_v12 = vmax.f32 %v4350_v56, 0.0  ;;  %439 = vst.msk [vmem:[#allocation4 + $0x2b] sm:$0x7] %vm435_vm8, %v12958_v37 }
 0x390   : > { %v4381_v3 = vmax.f32 %v4349_v1, 0.0  ;;  %v9052_v60 = vadd.f32 %v4233_v43, %v10752_v17  ;;  %443 = vst.msk [vmem:[#allocation4 + $0x1b] sm:$0xff] %vm440_vm9, %v12958_v37  ;;  %444 = vst.msk [vmem:[#allocation4 + $0x23] sm:$0xff] %vm440_vm9, %v12958_v37 }
 0x391   : > { %v4352_v33 = vadd.f32 %v9051_v19, %v10781_v16  ;;  %446 = vst.msk [vmem:[#allocation4 + $0x3] sm:$0xff] %vm445_vm10, %v12958_v37  ;;  %447 = vst.msk [vmem:[#allocation4 + $0xb] sm:$0xff] %vm445_vm10, %v12958_v37 }
 0x392   : > { %v4351_v9 = vadd.f32 %v9052_v60, %v10781_v16  ;;  %v8947_v45 = vpop.f32.mrb[10].mxu1  ;;  %8989 = vmatprep.mubr.msk.f32.mxu0 %vm392_vm1, %v4381_v3  ;;  %448 = vst.msk [vmem:[#allocation4 + $0x1b] sm:$0xff] %vm445_vm10, %v12958_v37  ;;  %449 = vst.msk [vmem:[#allocation4 + $0x23] sm:$0xff] %vm445_vm10, %v12958_v37 }
 0x393   : > { %v9053_v53 = vadd.f32 %v8947_v45, %v10757_v25  ;;  %v4243_v13 = vpop.f32.mrb[11].mxu1  ;;  %8990 = vmatmul.mubr.msk.f32.gmra.mrb[82].mxu0 %vm392_vm1, %v4382_v12  ;;  %v4384_v15 = vmax.f32 %v4352_v33, 0.0 }
 0x394   : > { %v4383_v11 = vmax.f32 %v4351_v9, 0.0  ;;  %v9054_v8 = vadd.f32 %v4243_v13, %v10759_v27 }
 0x395   : > { %v4354_v29 = vadd.f32 %v9053_v53, %v10781_v16 }
 0x396   : > { %v4353_v17 = vadd.f32 %v9054_v8, %v10781_v16  ;;  %v8950_v30 = vpop.f32.mrb[12].mxu1  ;;  %8992 = vmatprep.mubr.msk.f32.mxu0 %vm392_vm1, %v4383_v11 }
 0x397   : > { %v9055_v46 = vadd.f32 %v8950_v30, %v10762_v35  ;;  %v4253_v54 = vpop.f32.mrb[13].mxu1  ;;  %8993 = vmatmul.mubr.msk.f32.gmra.mrb[84].mxu0 %vm392_vm1, %v4384_v15  ;;  %v4386_v63 = vmax.f32 %v4354_v29, 0.0 }
 0x398   : > { %v4385_v25 = vmax.f32 %v4353_v17, 0.0  ;;  %v9056_v48 = vadd.f32 %v4253_v54, %v10764_v36 }
 0x399   : > { %v4356_v55 = vadd.f32 %v9055_v46, %v10781_v16 }
 0x39a   : > { %v4355_v27 = vadd.f32 %v9056_v48, %v10781_v16  ;;  %v8953_v0 = vpop.f32.mrb[14].mxu1  ;;  %8995 = vmatprep.mubr.msk.f32.mxu0 %vm392_vm1, %v4385_v25 }
 0x39b   : > { %v9057_v22 = vadd.f32 %v8953_v0, %v10766_v47  ;;  %v4263_v58 = vpop.f32.mrb[15].mxu1  ;;  %8996 = vmatmul.mubr.msk.f32.gmra.mrb[86].mxu0 %vm392_vm1, %v4386_v63  ;;  %v4388_v2 = vmax.f32 %v4356_v55, 0.0 }
 0x39c   : > { %v4387_v35 = vmax.f32 %v4355_v27, 0.0  ;;  %v9058_v4 = vadd.f32 %v4263_v58, %v10768_v18 }
 0x39d   : > { %v4358_v40 = vadd.f32 %v9057_v22, %v10781_v16 }
 0x39e   : > { %v4357_v36 = vadd.f32 %v9058_v4, %v10781_v16  ;;  %v8956_v5 = vpop.f32.mrb[16].mxu1  ;;  %8998 = vmatprep.mubr.msk.f32.mxu0 %vm392_vm1, %v4387_v35 }
 0x39f   : > { %v9059_v14 = vadd.f32 %v8956_v5, %v10770_v24  ;;  %v4273_v20 = vpop.f32.mrb[17].mxu1  ;;  %8999 = vmatmul.mubr.msk.f32.gmra.mrb[88].mxu0 %vm392_vm1, %v4388_v2  ;;  %v4390_v38 = vmax.f32 %v4358_v40, 0.0 }
 0x3a0   : > { %v4389_v47 = vmax.f32 %v4357_v36, 0.0  ;;  %v9060_v28 = vadd.f32 %v4273_v20, %v10772_v39 }
 0x3a1   : > { %v4360_v32 = vadd.f32 %v9059_v14, %v10781_v16 }
 0x3a2   : > { %v4359_v18 = vadd.f32 %v9060_v28, %v10781_v16  ;;  %v8959_v44 = vpop.f32.mrb[18].mxu1  ;;  %9001 = vmatprep.mubr.msk.f32.mxu0 %vm392_vm1, %v4389_v47 }
 0x3a3   : > { %v9061_v50 = vadd.f32 %v8959_v44, %v10774_v31  ;;  %v4283_v41 = vpop.f32.mrb[19].mxu1  ;;  %9002 = vmatmul.mubr.msk.f32.gmra.mrb[90].mxu0 %vm392_vm1, %v4390_v38  ;;  %v4392_v7 = vmax.f32 %v4360_v32, 0.0  ;;  %v9501_v31 = vmov 0.0|0.0  }
 0x3a4   : > { %v4391_v24 = vmax.f32 %v4359_v18, 0.0  ;;  %v9062_v62 = vadd.f32 %v4283_v41, %v10776_v34  ;;  %9026 = vmatprep.subr.bf16.mxu0 %v9501_v31  ;;  %v4869_v34 = vld [vmem:[%s12957_s7] sm:$0xff] }
 0x3a5   : > { %v4362_v21 = vadd.f32 %v9061_v50, %v10781_v16 }
 0x3a6   : > { %v4361_v39 = vadd.f32 %v9062_v62, %v10781_v16  ;;  %9004 = vmatprep.mubr.msk.f32.mxu0 %vm392_vm1, %v4391_v24  ;;  %v4870_v16 = vld [vmem:[%s12957_s7 + $0x8] sm:$0xff]  ;;  %s11367_s7 = sld [smem:[#allocation10 + $0x41]] }
 0x3a7   : > { %9005 = vmatmul.mubr.msk.f32.gmra.mrb[92].mxu0 %vm392_vm1, %v4392_v7  ;;  %v4394_v23 = vmax.f32 %v4362_v21, 0.0  ;;  %v9027_v26 = vpack.c.bf16 %v4870_v16, %v4869_v34 }
 0x3a8   : > { %v4393_v52 = vmax.f32 %v4361_v39, 0.0 }
 0x3a9   : > { %9028 = vmatpush3.bf16.msra.mxu0 %v9027_v26 }
 0x3aa   : > { %9007 = vmatprep.mubr.msk.f32.mxu0 %vm392_vm1, %v4393_v52  ;;  %9017 = vmatprep.subr.mxu0 %v12958_v37 }
 0x3ab   : > { %9008 = vmatmul.mubr.msk.f32.gmra.mrb[94].mxu0 %vm392_vm1, %v4394_v23  ;;  %vm5267_vm1 = vcmask 1045509  }
 0x3ac   : > { %9014 = vmatprep.mubr.msk.f32.mxu0 %vm9502_vm5, %v12958_v37 }
 0x442   : > { %v8964_v42 = vpop.f32.mrb[64].mxu0 }
 0x443   : > { %v4574_v49 = vadd.f32 %v8964_v42, %v10879_v57  ;;  %v4568_v51 = vpop.f32.mrb[65].mxu0 }
 0x444   : > { %v4569_v10 = vadd.f32 %v10879_v57, %v4568_v51 }
 0x445   : > { %v4728_v61 = vsel %vm491_vm0, %v4574_v49, 0.0  ;;  %5034 = vst.msk [vmem:[#allocation3 + $0x8] sm:$0xff] %vm491_vm0, %v4574_v49  ;;  %v4799_v13 = vsel %vm491_vm0, %v4574_v49, -inf }
 0x446   : > { %v4727_v6 = vsel %vm491_vm0, %v4569_v10, 0.0  ;;  %5033 = vst.msk [vmem:[#allocation3] sm:$0xff] %vm491_vm0, %v4569_v10  ;;  %v8967_v56 = vpop.f32.mrb[66].mxu0  ;;  %v4798_v15 = vsel %vm491_vm0, %v4569_v10, -inf }
 0x447   : > { %v4729_v1 = vadd.f32 %v4728_v61, %v4727_v6  ;;  %v4584_v59 = vadd.f32 %v8967_v56, %v10879_v57  ;;  %v4578_v19 = vpop.f32.mrb[67].mxu0 }
 0x448   : > { %v4579_v43 = vadd.f32 %v10879_v57, %v4578_v19 }
 0x449   : > { %5036 = vst.msk [vmem:[#allocation3 + $0x18] sm:$0xff] %vm491_vm0, %v4584_v59  ;;  %v4732_v45 = vsel %vm491_vm0, %v4584_v59, 0.0  ;;  %v4801_v0 = vsel %vm491_vm0, %v4584_v59, -inf }
 0x44a   : > { %v4730_v3 = vsel %vm491_vm0, %v4579_v43, 0.0  ;;  %5035 = vst.msk [vmem:[#allocation3 + $0x10] sm:$0xff] %vm491_vm0, %v4579_v43  ;;  %v8970_v60 = vpop.f32.mrb[68].mxu0  ;;  %v4800_v35 = vsel %vm491_vm0, %v4579_v43, -inf }
 0x44b   : > { %v4731_v12 = vadd.f32 %v4730_v3, %v4729_v1  ;;  %v4594_v33 = vadd.f32 %v8970_v60, %v10879_v57  ;;  %v4588_v9 = vpop.f32.mrb[69].mxu0 }
 0x44c   : > { %v4589_v53 = vadd.f32 %v10879_v57, %v4588_v9 }
 0x44d   : > { %v4804_v11 = vsel %vm491_vm0, %v4594_v33, -inf  ;;  %5038 = vst.msk [vmem:[#allocation3 + $0x28] sm:$0xff] %vm491_vm0, %v4594_v33  ;;  %v4733_v8 = vadd.f32 %v4732_v45, %v4731_v12  ;;  %v4736_v55 = vsel %vm491_vm0, %v4594_v33, 0.0 }
 0x44e   : > { %v4805_v29 = vmax.f32 %v4799_v13, %v4804_v11  ;;  %v4734_v17 = vsel %vm491_vm0, %v4589_v53, 0.0  ;;  %v4802_v30 = vsel %vm491_vm0, %v4589_v53, -inf  ;;  %5037 = vst.msk [vmem:[#allocation3 + $0x20] sm:$0xff] %vm491_vm0, %v4589_v53  ;;  %v8973_v46 = vpop.f32.mrb[70].mxu0 }
 0x44f   : > { %v4735_v54 = vadd.f32 %v4734_v17, %v4733_v8  ;;  %v4803_v25 = vmax.f32 %v4798_v15, %v4802_v30  ;;  %v4604_v48 = vadd.f32 %v8973_v46, %v10879_v57  ;;  %v4598_v63 = vpop.f32.mrb[71].mxu0 }
 0x450   : > { %v4599_v27 = vadd.f32 %v10879_v57, %v4598_v63 }
 0x451   : > { %v4808_v22 = vsel %vm491_vm0, %v4604_v48, -inf  ;;  %5040 = vst.msk [vmem:[#allocation3 + $0x38] sm:$0xff] %vm491_vm0, %v4604_v48  ;;  %v4737_v58 = vadd.f32 %v4736_v55, %v4735_v54  ;;  %v4740_v28 = vsel %vm491_vm0, %v4604_v48, 0.0 }
 0x452   : > { %v4809_v4 = vmax.f32 %v4801_v0, %v4808_v22  ;;  %v4738_v2 = vsel %vm491_vm0, %v4599_v27, 0.0  ;;  %v4806_v40 = vsel %vm491_vm0, %v4599_v27, -inf  ;;  %5039 = vst.msk [vmem:[#allocation3 + $0x30] sm:$0xff] %vm491_vm0, %v4599_v27  ;;  %v8976_v36 = vpop.f32.mrb[72].mxu0 }
 0x453   : > { %v4739_v5 = vadd.f32 %v4738_v2, %v4737_v58  ;;  %v4807_v14 = vmax.f32 %v4800_v35, %v4806_v40  ;;  %v4614_v20 = vadd.f32 %v8976_v36, %v10879_v57  ;;  %v4608_v47 = vpop.f32.mrb[73].mxu0 }
 0x454   : > { %v4609_v38 = vadd.f32 %v10879_v57, %v4608_v47 }
 0x455   : > { %v4812_v32 = vsel %vm491_vm0, %v4614_v20, -inf  ;;  %5042 = vst.msk [vmem:[#allocation3 + $0x48] sm:$0xff] %vm491_vm0, %v4614_v20  ;;  %v4741_v18 = vadd.f32 %v4740_v28, %v4739_v5  ;;  %v4744_v52 = vsel %vm491_vm0, %v4614_v20, 0.0 }
 0x456   : > { %v4813_v44 = vmax.f32 %v4805_v29, %v4812_v32  ;;  %v4742_v50 = vsel %vm491_vm0, %v4609_v38, 0.0  ;;  %v4810_v41 = vsel %vm491_vm0, %v4609_v38, -inf  ;;  %5041 = vst.msk [vmem:[#allocation3 + $0x40] sm:$0xff] %vm491_vm0, %v4609_v38  ;;  %v8979_v24 = vpop.f32.mrb[74].mxu0 }
 0x457   : > { %v4743_v62 = vadd.f32 %v4742_v50, %v4741_v18  ;;  %v4811_v7 = vmax.f32 %v4803_v25, %v4810_v41  ;;  %v4624_v21 = vadd.f32 %v8979_v24, %v10879_v57  ;;  %v4618_v39 = vpop.f32.mrb[75].mxu0 }
 0x458   : > { %v4619_v23 = vadd.f32 %v10879_v57, %v4618_v39 }
 0x459   : > { %v4816_v31 = vsel %vm491_vm0, %v4624_v21, -inf  ;;  %5044 = vst.msk [vmem:[#allocation3 + $0x58] sm:$0xff] %vm491_vm0, %v4624_v21  ;;  %v4745_v34 = vadd.f32 %v4744_v52, %v4743_v62  ;;  %v4748_v56 = vsel %vm491_vm0, %v4624_v21, 0.0 }
 0x45a   : > { %v4817_v16 = vmax.f32 %v4809_v4, %v4816_v31  ;;  %v4746_v26 = vsel %vm491_vm0, %v4619_v23, 0.0  ;;  %v4814_v42 = vsel %vm491_vm0, %v4619_v23, -inf  ;;  %5043 = vst.msk [vmem:[#allocation3 + $0x50] sm:$0xff] %vm491_vm0, %v4619_v23  ;;  %v8982_v49 = vpop.f32.mrb[76].mxu0 }
 0x45b   : > { %v4747_v51 = vadd.f32 %v4746_v26, %v4745_v34  ;;  %v4815_v10 = vmax.f32 %v4807_v14, %v4814_v42  ;;  %v4634_v61 = vadd.f32 %v8982_v49, %v10879_v57  ;;  %v4628_v6 = vpop.f32.mrb[77].mxu0 }
 0x45c   : > { %v4629_v1 = vadd.f32 %v10879_v57, %v4628_v6 }
 0x45d   : > { %v4820_v59 = vsel %vm491_vm0, %v4634_v61, -inf  ;;  %5046 = vst.msk [vmem:[#allocation3 + $0x68] sm:$0xff] %vm491_vm0, %v4634_v61  ;;  %v4749_v19 = vadd.f32 %v4748_v56, %v4747_v51  ;;  %v4752_v13 = vsel %vm491_vm0, %v4634_v61, 0.0 }
 0x45e   : > { %v4821_v43 = vmax.f32 %v4813_v44, %v4820_v59  ;;  %v4750_v3 = vsel %vm491_vm0, %v4629_v1, 0.0  ;;  %v4818_v60 = vsel %vm491_vm0, %v4629_v1, -inf  ;;  %5045 = vst.msk [vmem:[#allocation3 + $0x60] sm:$0xff] %vm491_vm0, %v4629_v1  ;;  %v8985_v12 = vpop.f32.mrb[78].mxu0 }
 0x45f   : > { %v4751_v33 = vadd.f32 %v4750_v3, %v4749_v19  ;;  %v4819_v9 = vmax.f32 %v4811_v7, %v4818_v60  ;;  %v4644_v45 = vadd.f32 %v8985_v12, %v10879_v57  ;;  %v4638_v53 = vpop.f32.mrb[79].mxu0 }
 0x460   : > { %v4639_v11 = vadd.f32 %v10879_v57, %v4638_v53 }
 0x461   : > { %v4824_v8 = vsel %vm491_vm0, %v4644_v45, -inf  ;;  %5048 = vst.msk [vmem:[#allocation3 + $0x78] sm:$0xff] %vm491_vm0, %v4644_v45  ;;  %v4753_v15 = vadd.f32 %v4752_v13, %v4751_v33  ;;  %v4756_v55 = vsel %vm491_vm0, %v4644_v45, 0.0 }
 0x462   : > { %v4825_v29 = vmax.f32 %v4817_v16, %v4824_v8  ;;  %v4754_v17 = vsel %vm491_vm0, %v4639_v11, 0.0  ;;  %v4822_v30 = vsel %vm491_vm0, %v4639_v11, -inf  ;;  %5047 = vst.msk [vmem:[#allocation3 + $0x70] sm:$0xff] %vm491_vm0, %v4639_v11  ;;  %v8988_v46 = vpop.f32.mrb[80].mxu0 }
 0x463   : > { %v4755_v54 = vadd.f32 %v4754_v17, %v4753_v15  ;;  %v4823_v25 = vmax.f32 %v4815_v10, %v4822_v30  ;;  %v4654_v48 = vadd.f32 %v8988_v46, %v10879_v57  ;;  %v4648_v63 = vpop.f32.mrb[81].mxu0 }
 0x464   : > { %v4649_v27 = vadd.f32 %v10879_v57, %v4648_v63 }
 0x465   : > { %v4828_v0 = vsel %vm491_vm0, %v4654_v48, -inf  ;;  %5050 = vst.msk [vmem:[#allocation3 + $0x88] sm:$0xff] %vm491_vm0, %v4654_v48  ;;  %v4757_v22 = vadd.f32 %v4756_v55, %v4755_v54  ;;  %v4760_v20 = vsel %vm491_vm0, %v4654_v48, 0.0 }
 0x466   : > { %v4829_v58 = vmax.f32 %v4821_v43, %v4828_v0  ;;  %v4758_v35 = vsel %vm491_vm0, %v4649_v27, 0.0  ;;  %v4826_v4 = vsel %vm491_vm0, %v4649_v27, -inf  ;;  %5049 = vst.msk [vmem:[#allocation3 + $0x80] sm:$0xff] %vm491_vm0, %v4649_v27  ;;  %v8991_v2 = vpop.f32.mrb[82].mxu0 }
 0x467   : > { %v4759_v40 = vadd.f32 %v4758_v35, %v4757_v22  ;;  %v4827_v36 = vmax.f32 %v4819_v9, %v4826_v4  ;;  %v4664_v5 = vadd.f32 %v8991_v2, %v10879_v57  ;;  %v4658_v14 = vpop.f32.mrb[83].mxu0 }
 0x468   : > { %v4659_v47 = vadd.f32 %v10879_v57, %v4658_v14 }
 0x469   : > { %v4832_v28 = vsel %vm491_vm0, %v4664_v5, -inf  ;;  %5052 = vst.msk [vmem:[#allocation3 + $0x98] sm:$0xff] %vm491_vm0, %v4664_v5  ;;  %v4761_v38 = vadd.f32 %v4760_v20, %v4759_v40  ;;  %v4764_v21 = vsel %vm491_vm0, %v4664_v5, 0.0 }
 0x46a   : > { %v4833_v32 = vmax.f32 %v4825_v29, %v4832_v28  ;;  %v4762_v18 = vsel %vm491_vm0, %v4659_v47, 0.0  ;;  %v4830_v44 = vsel %vm491_vm0, %v4659_v47, -inf  ;;  %5051 = vst.msk [vmem:[#allocation3 + $0x90] sm:$0xff] %vm491_vm0, %v4659_v47  ;;  %v8994_v50 = vpop.f32.mrb[84].mxu0 }
 0x46b   : > { %v4763_v41 = vadd.f32 %v4762_v18, %v4761_v38  ;;  %v4831_v24 = vmax.f32 %v4823_v25, %v4830_v44  ;;  %v4674_v62 = vadd.f32 %v8994_v50, %v10879_v57  ;;  %v4668_v7 = vpop.f32.mrb[85].mxu0 }
 0x46c   : > { %v4669_v39 = vadd.f32 %v10879_v57, %v4668_v7 }
 0x46d   : > { %v4836_v52 = vsel %vm491_vm0, %v4674_v62, -inf  ;;  %5054 = vst.msk [vmem:[#allocation3 + $0xa8] sm:$0xff] %vm491_vm0, %v4674_v62  ;;  %v4765_v23 = vadd.f32 %v4764_v21, %v4763_v41  ;;  %v4768_v61 = vsel %vm491_vm0, %v4674_v62, 0.0 }
 0x46e   : > { %v4837_v31 = vmax.f32 %v4829_v58, %v4836_v52  ;;  %v4766_v34 = vsel %vm491_vm0, %v4669_v39, 0.0  ;;  %v4834_v16 = vsel %vm491_vm0, %v4669_v39, -inf  ;;  %5053 = vst.msk [vmem:[#allocation3 + $0xa0] sm:$0xff] %vm491_vm0, %v4669_v39  ;;  %v8997_v26 = vpop.f32.mrb[86].mxu0 }
 0x46f   : > { %v4767_v42 = vadd.f32 %v4766_v34, %v4765_v23  ;;  %v4835_v49 = vmax.f32 %v4827_v36, %v4834_v16  ;;  %v4684_v51 = vadd.f32 %v8997_v26, %v10879_v57  ;;  %v4678_v10 = vpop.f32.mrb[87].mxu0 }
 0x470   : > { %v4679_v6 = vadd.f32 %v10879_v57, %v4678_v10 }
 0x471   : > { %v4840_v56 = vsel %vm491_vm0, %v4684_v51, -inf  ;;  %5056 = vst.msk [vmem:[#allocation3 + $0xb8] sm:$0xff] %vm491_vm0, %v4684_v51  ;;  %v4769_v1 = vadd.f32 %v4768_v61, %v4767_v42  ;;  %v4772_v45 = vsel %vm491_vm0, %v4684_v51, 0.0 }
 0x472   : > { %v4841_v59 = vmax.f32 %v4833_v32, %v4840_v56  ;;  %v4770_v19 = vsel %vm491_vm0, %v4679_v6, 0.0  ;;  %v4838_v43 = vsel %vm491_vm0, %v4679_v6, -inf  ;;  %5055 = vst.msk [vmem:[#allocation3 + $0xb0] sm:$0xff] %vm491_vm0, %v4679_v6  ;;  %v9000_v3 = vpop.f32.mrb[88].mxu0 }
 0x473   : > { %v4771_v60 = vadd.f32 %v4770_v19, %v4769_v1  ;;  %v4839_v12 = vmax.f32 %v4831_v24, %v4838_v43  ;;  %v4694_v33 = vadd.f32 %v9000_v3, %v10879_v57  ;;  %v4688_v9 = vpop.f32.mrb[89].mxu0 }
 0x474   : > { %v4689_v53 = vadd.f32 %v10879_v57, %v4688_v9 }
 0x475   : > { %v4844_v13 = vsel %vm491_vm0, %v4694_v33, -inf  ;;  %5058 = vst.msk [vmem:[#allocation3 + $0xc8] sm:$0xff] %vm491_vm0, %v4694_v33  ;;  %v4773_v11 = vadd.f32 %v4772_v45, %v4771_v60  ;;  %v4776_v48 = vsel %vm491_vm0, %v4694_v33, 0.0  ;;  %v4945_v45 = vld [vmem:[%s12960_s8] sm:$0x1]  ;;  %s12970_s8 = smov 123  }
 0x476   : > { %v4845_v8 = vmax.f32 %v4837_v31, %v4844_v13  ;;  %v4774_v15 = vsel %vm491_vm0, %v4689_v53, 0.0  ;;  %v4842_v29 = vsel %vm491_vm0, %v4689_v53, -inf  ;;  %5057 = vst.msk [vmem:[#allocation3 + $0xc0] sm:$0xff] %vm491_vm0, %v4689_v53  ;;  %v9003_v17 = vpop.f32.mrb[90].mxu0 }
 0x477   : > { %v4775_v30 = vadd.f32 %v4774_v15, %v4773_v11  ;;  %v4843_v46 = vmax.f32 %v4835_v49, %v4842_v29  ;;  %v4704_v54 = vadd.f32 %v9003_v17, %v10879_v57  ;;  %v4698_v25 = vpop.f32.mrb[91].mxu0 }
 0x478   : > { %v4699_v63 = vadd.f32 %v10879_v57, %v4698_v25 }
 0x479   : > { %v4848_v55 = vsel %vm491_vm0, %v4704_v54, -inf  ;;  %5060 = vst.msk [vmem:[#allocation3 + $0xd8] sm:$0xff] %vm491_vm0, %v4704_v54  ;;  %v4777_v27 = vadd.f32 %v4776_v48, %v4775_v30  ;;  %v4780_v5 = vsel %vm491_vm0, %v4704_v54, 0.0 }
 0x47a   : > { %v4849_v0 = vmax.f32 %v4841_v59, %v4848_v55  ;;  %v4778_v22 = vsel %vm491_vm0, %v4699_v63, 0.0  ;;  %v4846_v58 = vsel %vm491_vm0, %v4699_v63, -inf  ;;  %5059 = vst.msk [vmem:[#allocation3 + $0xd0] sm:$0xff] %vm491_vm0, %v4699_v63  ;;  %v9006_v35 = vpop.f32.mrb[92].mxu0  ;;  %v5081_v63 = vlaneseq }
 0x47b   : > { %v4779_v4 = vadd.f32 %v4778_v22, %v4777_v27  ;;  %v4847_v2 = vmax.f32 %v4839_v12, %v4846_v58  ;;  %v4714_v40 = vadd.f32 %v9006_v35, %v10879_v57  ;;  %v4708_v36 = vpop.f32.mrb[93].mxu0  ;;  %v5067_v58 = vld [vmem:[#allocation3 + $0x10] sm:$0xff]  ;;  %v5065_v35 = vld [vmem:[#allocation3] sm:$0xff] }
 0x47c   : > { %v4709_v14 = vadd.f32 %v10879_v57, %v4708_v36  ;;  %v11016_v55 = vshrl.u32 %v5081_v63, 7  ;;  %v5066_v36 = vld [vmem:[#allocation3 + $0x8] sm:$0xff] }
 0x47d   : > { %v4852_v20 = vsel %vm491_vm0, %v4714_v40, -inf  ;;  %5062 = vst.msk [vmem:[#allocation3 + $0xe8] sm:$0xff] %vm491_vm0, %v4714_v40  ;;  %v4781_v47 = vadd.f32 %v4780_v5, %v4779_v4  ;;  %v4784_v62 = vsel %vm491_vm0, %v4714_v40, 0.0  ;;  %v5068_v40 = vld [vmem:[#allocation3 + $0x18] sm:$0xff] }
 0x47e   : > { %v4853_v28 = vmax.f32 %v4845_v8, %v4852_v20  ;;  %v4782_v38 = vsel %vm491_vm0, %v4709_v14, 0.0  ;;  %v4850_v32 = vsel %vm491_vm0, %v4709_v14, -inf  ;;  %5061 = vst.msk [vmem:[#allocation3 + $0xe0] sm:$0xff] %vm491_vm0, %v4709_v14  ;;  %v9009_v18 = vpop.f32.mrb[94].mxu0  ;;  %12961 = vst [vmem:[#allocation26_spill] sm:$0xff] %v11016_v55  ;;  %v11019_v27 = vsub.s32 0, %v11016_v55 }
 0x47f   : > { %v4783_v44 = vadd.f32 %v4782_v38, %v4781_v47  ;;  %v4851_v50 = vmax.f32 %v4843_v46, %v4850_v32  ;;  %v4724_v41 = vadd.f32 %v9009_v18, %v10879_v57  ;;  %v4718_v24 = vpop.f32.mrb[95].mxu0  ;;  %v5069_v38 = vld [vmem:[#allocation3 + $0x20] sm:$0xff] }
 0x480   : > { %v4719_v7 = vadd.f32 %v10879_v57, %v4718_v24  ;;  %12962 = vst [vmem:[#allocation27_spill] sm:$0xff] %v11019_v27  ;;  %v5071_v24 = vld [vmem:[#allocation3 + $0x30] sm:$0xff] }
 0x481   : > { %v4858_v21 = vmax.f32 %v4851_v50, %v4853_v28  ;;  %v4856_v39 = vsel %vm491_vm0, %v4724_v41, -inf  ;;  %5064 = vst.msk [vmem:[#allocation3 + $0xf8] sm:$0xff] %vm491_vm0, %v4724_v41  ;;  %v4785_v52 = vadd.f32 %v4784_v62, %v4783_v44  ;;  %v4788_v42 = vsel %vm491_vm0, %v4724_v41, 0.0  ;;  %v5070_v28 = vld [vmem:[#allocation3 + $0x28] sm:$0xff]  ;;  %v5072_v41 = vld [vmem:[#allocation3 + $0x38] sm:$0xff] }
 0x482   : > { %v4857_v23 = vmax.f32 %v4849_v0, %v4856_v39  ;;  %v4786_v31 = vsel %vm491_vm0, %v4719_v7, 0.0  ;;  %v4854_v34 = vsel %vm491_vm0, %v4719_v7, -inf  ;;  %5063 = vst.msk [vmem:[#allocation3 + $0xf0] sm:$0xff] %vm491_vm0, %v4719_v7 }
 0x483   : > { %v4787_v16 = vadd.f32 %v4786_v31, %v4785_v52  ;;  %v4855_v26 = vmax.f32 %v4847_v2, %v4854_v34  ;;  %v5074_v52 = vld [vmem:[#allocation3 + $0x48] sm:$0xff] }
 0x485   : > { %v4789_v49 = vadd.f32 %v4788_v42, %v4787_v16  ;;  %v4859_v51 = vmax.f32 %v4855_v26, %v4857_v23  ;;  %v5073_v23 = vld [vmem:[#allocation3 + $0x40] sm:$0xff]  ;;  %v5076_v42 = vld [vmem:[#allocation3 + $0x58] sm:$0xff] }
 0x487   : > { %v4790_v57 = vrot.slane %v4789_v49, 4  ;;  %v4860_v10 = vmax.f32 %v4858_v21, %v4859_v51 }
 0x489   : > { %v4791_v61 = vadd.f32 %v4790_v57, %v4789_v49  ;;  %v4861_v6 = vrot.slane %v4860_v10, 4  ;;  %v5075_v49 = vld [vmem:[#allocation3 + $0x50] sm:$0xff] }
 0x48b   : > { %v4792_v56 = vrot.slane %v4791_v61, 2  ;;  %v4862_v1 = vmax.f32 %v4860_v10, %v4861_v6  ;;  %v5078_v6 = vld [vmem:[#allocation3 + $0x68] sm:$0xff] }
 0x48d   : > { %v4793_v59 = vadd.f32 %v4792_v56, %v4791_v61  ;;  %v4863_v19 = vrot.slane %v4862_v1, 2  ;;  %v5077_v56 = vld [vmem:[#allocation3 + $0x60] sm:$0xff] }
 0x48f   : > { %v4794_v43 = vrot.slane %v4793_v59, 1  ;;  %v4864_v3 = vmax.f32 %v4862_v1, %v4863_v19 }
 0x491   : > { %v4795_v60 = vadd.f32 %v4794_v43, %v4793_v59  ;;  %v4865_v12 = vrot.slane %v4864_v3, 1 }
 0x493   : > { %v4797_v33 = vmul.f32 0.00390625, %v4795_v60  ;;  %v4866_v9 = vmax.f32 %v4864_v3, %v4865_v12  ;;  %v5080_v3 = vld [vmem:[#allocation3 + $0x78] sm:$0xff]  ;;  %v5079_v60 = vld [vmem:[#allocation3 + $0x70] sm:$0xff] }
 0x495   : > { %v4868_v53 = vsel %vm4867_vm6, %v4797_v33, %v4866_v9 }
 0x496   : > { %9015 = vmatmul.mubr.msk.f32.vlgmr.msra.gmra.mrb[96].mxu0 %vm491_vm0, %v4868_v53 }
 0x497   : > { %9018 = vmatpush3.msk.msra.mxu0 %vm4867_vm6, %v4945_v45  ;;  %9019 = vmatprep.mubr.msk.f32.mxu0 %vm9502_vm5, %v12958_v37  ;;  %v5424_v37 = vld [vmem:[#allocation3 + $0x88] sm:$0xff] }
 0x569   : > { %v4940_v13 = vpop.f32.mrb[96].mxu0 }
 0x56a   : > { %v4944_v11 = vmax.f32 %v4940_v13, 0.0  ;;  %v9016_v8 = vpop.f32.mrb[97].mxu0 }
 0x56c   : > { %9020 = vmatmul.mubr.msk.f32.vlgmr.msra.gmra.mrb[98].mxu0 %vm4946_vm7, %v4944_v11 }
 0x63f   : > { %v5019_v15 = vpop.f32.mrb[98].mxu0 }
 0x640   : > { %v5024_v29 = vrot.slane %v5019_v15, 1  ;;  %v9021_v17 = vpop.f32.mrb[99].mxu0 }
 0x642   : > { %v5026_v30 = vadd.f32 %v5024_v29, %v5019_v15 }
 0x644   : > { %v5027_v46 = vsub.f32 0.0, %v5026_v30 }
 0x646   : > { %v5028_v54 = vmul.f32 1.442695, %v5027_v46 }
 0x648   : > { %9357 = vpow2.f32 %v5028_v54 }
 0x652   : > { %v9358_v25 = vpop.eup %9357 }
 0x653   : > { %v5030_v48 = vadd.f32 1.0, %v9358_v25 }
 0x655   : > { %9359 = vrcp.f32 %v5030_v48 }
 0x65f   : > { %v9360_v0 = vpop.eup %9359 }
 0x660   : > { %v11022_v22 = vrot.slane %v9360_v0, %v11019_v27 }
 0x662   : > { %12963 = vst [vmem:[#allocation28_spill] sm:$0xff] %v11022_v22  ;;  %v11025_v4 = vmul.f32 %v11022_v22, %v5067_v58  ;;  %v5085_v2 = vmul.f32 %v11022_v22, %v5065_v35  ;;  %v5088_v20 = vmul.f32 %v11022_v22, %v5068_v40  ;;  %v5086_v47 = vmul.f32 %v11022_v22, %v5066_v36 }
 0x663   : > { %v5090_v44 = vmul.f32 %v11022_v22, %v5070_v28  ;;  %v5089_v50 = vmul.f32 %v11022_v22, %v5069_v38  ;;  %v5092_v21 = vmul.f32 %v11022_v22, %v5072_v41  ;;  %v5091_v39 = vmul.f32 %v11022_v22, %v5071_v24 }
 0x664   : > { %v5107_v5 = vsel %vm491_vm0, %v11025_v4, 0.0  ;;  %v5101_v14 = vsel %vm491_vm0, %v5085_v2, 0.0  ;;  %v5110_v32 = vsel %vm491_vm0, %v5088_v20, 0.0  ;;  %v5104_v18 = vsel %vm491_vm0, %v5086_v47, 0.0 }
 0x665   : > { %5108 = vadd.xlane.f32.xlu1 %v5107_v5  ;;  %5102 = vadd.xlane.f32.xlu0 %v5101_v14  ;;  %v5116_v62 = vsel %vm491_vm0, %v5090_v44, 0.0  ;;  %v5113_v7 = vsel %vm491_vm0, %v5089_v50, 0.0  ;;  %v5122_v31 = vsel %vm491_vm0, %v5092_v21, 0.0  ;;  %v5119_v34 = vsel %vm491_vm0, %v5091_v39, 0.0 }
 0x666   : > { %v11044_v16 = vmul.f32 %v11022_v22, %v5074_v52  ;;  %v11047_v26 = vmul.f32 %v11022_v22, %v5073_v23  ;;  %v5096_v10 = vmul.f32 %v11022_v22, %v5076_v42  ;;  %v5095_v61 = vmul.f32 %v11022_v22, %v5075_v49 }
 0x667   : > { %v5098_v19 = vmul.f32 %v11022_v22, %v5078_v6  ;;  %v5097_v43 = vmul.f32 %v11022_v22, %v5077_v56  ;;  %v5100_v9 = vmul.f32 %v11022_v22, %v5080_v3  ;;  %v5099_v45 = vmul.f32 %v11022_v22, %v5079_v60 }
 0x668   : > { %v5128_v51 = vsel %vm491_vm0, %v11044_v16, 0.0  ;;  %v5125_v57 = vsel %vm491_vm0, %v11047_v26, 0.0  ;;  %v5134_v1 = vsel %vm491_vm0, %v5096_v10, 0.0  ;;  %v5131_v59 = vsel %vm491_vm0, %v5095_v61, 0.0 }
 0x669   : > { %5111 = vadd.xlane.f32.xlu1 %v5110_v32  ;;  %5105 = vadd.xlane.f32.xlu0 %v5104_v18  ;;  %v5140_v12 = vsel %vm491_vm0, %v5098_v19, 0.0  ;;  %v5137_v33 = vsel %vm491_vm0, %v5097_v43, 0.0  ;;  %v5146_v53 = vsel %vm491_vm0, %v5100_v9, 0.0  ;;  %v5143_v13 = vsel %vm491_vm0, %v5099_v45, 0.0 }
 0x66a   : > { %v5279_v11 = vsel %vm491_vm0, %v5086_v47, -inf  ;;  %v5276_v8 = vsel %vm491_vm0, %v5085_v2, -inf  ;;  %v5285_v15 = vsel %vm491_vm0, %v5088_v20, -inf  ;;  %v5282_v29 = vsel %vm491_vm0, %v11025_v4, -inf  ;;  %v5423_v2 = vld [vmem:[#allocation3 + $0x80] sm:$0xff]  ;;  %v5426_v20 = vld [vmem:[#allocation3 + $0x98] sm:$0xff] }
 0x66b   : > { %v5291_v17 = vsel %vm491_vm0, %v5090_v44, -inf  ;;  %v5288_v30 = vsel %vm491_vm0, %v5089_v50, -inf  ;;  %v5297_v46 = vsel %vm491_vm0, %v5092_v21, -inf  ;;  %v5294_v54 = vsel %vm491_vm0, %v5091_v39, -inf  ;;  %v5425_v47 = vld [vmem:[#allocation3 + $0x90] sm:$0xff]  ;;  %v5428_v44 = vld [vmem:[#allocation3 + $0xa8] sm:$0xff] }
 0x66c   : > { %v5303_v25 = vsel %vm491_vm0, %v11044_v16, -inf  ;;  %v5300_v48 = vsel %vm491_vm0, %v11047_v26, -inf  ;;  %v5309_v0 = vsel %vm491_vm0, %v5096_v10, -inf  ;;  %v5306_v58 = vsel %vm491_vm0, %v5095_v61, -inf  ;;  %v5427_v50 = vld [vmem:[#allocation3 + $0xa0] sm:$0xff]  ;;  %v5430_v21 = vld [vmem:[#allocation3 + $0xb8] sm:$0xff] }
 0x66d   : > { %5117 = vadd.xlane.f32.xlu1 %v5116_v62  ;;  %5114 = vadd.xlane.f32.xlu0 %v5113_v7  ;;  %v5315_v35 = vsel %vm491_vm0, %v5098_v19, -inf  ;;  %v5312_v4 = vsel %vm491_vm0, %v5097_v43, -inf  ;;  %v5321_v40 = vsel %vm491_vm0, %v5100_v9, -inf  ;;  %v5318_v36 = vsel %vm491_vm0, %v5099_v45, -inf  ;;  %v5429_v39 = vld [vmem:[#allocation3 + $0xb0] sm:$0xff]  ;;  %v5432_v16 = vld [vmem:[#allocation3 + $0xc8] sm:$0xff] }
 0x66e   : > { %v11097_v5 = vmul.f32 %v5424_v37, %v11022_v22  ;;  %v11100_v14 = vmul.f32 %v5423_v2, %v11022_v22  ;;  %v5442_v32 = vmul.f32 %v5426_v20, %v11022_v22  ;;  %v5441_v18 = vmul.f32 %v5425_v47, %v11022_v22  ;;  %v5431_v26 = vld [vmem:[#allocation3 + $0xc0] sm:$0xff]  ;;  %v5434_v10 = vld [vmem:[#allocation3 + $0xd8] sm:$0xff]  ;;  %v5433_v61 = vld [vmem:[#allocation3 + $0xd0] sm:$0xff] }
 0x66f   : > { %v5444_v62 = vmul.f32 %v5428_v44, %v11022_v22  ;;  %v5443_v7 = vmul.f32 %v5427_v50, %v11022_v22  ;;  %v5436_v19 = vld [vmem:[#allocation3 + $0xe8] sm:$0xff]  ;;  %v5435_v43 = vld [vmem:[#allocation3 + $0xe0] sm:$0xff]  ;;  %v5438_v9 = vld [vmem:[#allocation3 + $0xf8] sm:$0xff]  ;;  %v5183_v44 = vand.u32 127, %v5081_v63 }
 0x670   : > { %v5458_v28 = vsel %vm491_vm0, %v11097_v5, 0.0  ;;  %v5455_v38 = vsel %vm491_vm0, %v11100_v14, 0.0  ;;  %v5464_v41 = vsel %vm491_vm0, %v5442_v32, 0.0  ;;  %v5461_v24 = vsel %vm491_vm0, %v5441_v18, 0.0  ;;  %v5437_v45 = vld [vmem:[#allocation3 + $0xf0] sm:$0xff] }
 0x671   : > { %5123 = vadd.xlane.f32.xlu1 %v5122_v31  ;;  %5120 = vadd.xlane.f32.xlu0 %v5119_v34  ;;  %v5470_v52 = vsel %vm491_vm0, %v5444_v62, 0.0  ;;  %v5467_v23 = vsel %vm491_vm0, %v5443_v7, 0.0  ;;  %v5446_v31 = vmul.f32 %v5430_v21, %v11022_v22  ;;  %v5445_v34 = vmul.f32 %v5429_v39, %v11022_v22 }
 0x672   : > { %v5189_v50 = vadd.s32 4294967285, %v5183_v44 }
 0x673   : > { %v5476_v42 = vsel %vm491_vm0, %v5446_v31, 0.0  ;;  %v5473_v49 = vsel %vm491_vm0, %v5445_v34, 0.0 }
 0x675   : > { %5129 = vadd.xlane.f32.xlu1 %v5128_v51  ;;  %5126 = vadd.xlane.f32.xlu0 %v5125_v57  ;;  %v5448_v51 = vmul.f32 %v5432_v16, %v11022_v22  ;;  %v5447_v57 = vmul.f32 %v5431_v26, %v11022_v22 }
 0x677   : > { %v5482_v6 = vsel %vm491_vm0, %v5448_v51, 0.0  ;;  %v5479_v56 = vsel %vm491_vm0, %v5447_v57, 0.0 }
 0x679   : > { %5135 = vadd.xlane.f32.xlu1 %v5134_v1  ;;  %5132 = vadd.xlane.f32.xlu0 %v5131_v59  ;;  %v5450_v1 = vmul.f32 %v5434_v10, %v11022_v22  ;;  %v5449_v59 = vmul.f32 %v5433_v61, %v11022_v22 }
 0x67b   : > { %v5488_v3 = vsel %vm491_vm0, %v5450_v1, 0.0  ;;  %v5485_v60 = vsel %vm491_vm0, %v5449_v59, 0.0  ;;  %v5649_v37 = vsel %vm491_vm0, %v5450_v1, -inf  ;;  %v5646_v2 = vsel %vm491_vm0, %v5449_v59, -inf }
 0x67d   : > { %5141 = vadd.xlane.f32.xlu1 %v5140_v12  ;;  %5138 = vadd.xlane.f32.xlu0 %v5137_v33  ;;  %v5452_v12 = vmul.f32 %v5436_v19, %v11022_v22  ;;  %v5451_v33 = vmul.f32 %v5435_v43, %v11022_v22 }
 0x681   : > { %5147 = vadd.xlane.f32.xlu1 %v5146_v53  ;;  %5144 = vadd.xlane.f32.xlu0 %v5143_v13  ;;  %v5494_v53 = vsel %vm491_vm0, %v5452_v12, 0.0  ;;  %v5491_v13 = vsel %vm491_vm0, %v5451_v33, 0.0 }
 0x685   : > { %5280 = vmax.xlane.f32.xlu1 %v5279_v11  ;;  %5277 = vmax.xlane.f32.xlu0 %v5276_v8  ;;  %v5454_v11 = vmul.f32 %v5438_v9, %v11022_v22  ;;  %v5453_v8 = vmul.f32 %v5437_v45, %v11022_v22 }
 0x689   : > { %5286 = vmax.xlane.f32.xlu1 %v5285_v15  ;;  %5283 = vmax.xlane.f32.xlu0 %v5282_v29  ;;  %v5500_v15 = vsel %vm491_vm0, %v5454_v11, 0.0  ;;  %v5497_v29 = vsel %vm491_vm0, %v5453_v8, 0.0 }
 0x68d   : > { %5292 = vmax.xlane.f32.xlu1 %v5291_v17  ;;  %5289 = vmax.xlane.f32.xlu0 %v5288_v30  ;;  %v5619_v17 = vsel %vm491_vm0, %v11097_v5, -inf  ;;  %v5616_v30 = vsel %vm491_vm0, %v11100_v14, -inf  ;;  %v5661_v5 = vsel %vm491_vm0, %v5454_v11, -inf  ;;  %v5658_v14 = vsel %vm491_vm0, %v5453_v8, -inf }
 0x691   : > { %5298 = vmax.xlane.f32.xlu1 %v5297_v46  ;;  %5295 = vmax.xlane.f32.xlu0 %v5294_v54  ;;  %v5625_v46 = vsel %vm491_vm0, %v5442_v32, -inf  ;;  %v5622_v54 = vsel %vm491_vm0, %v5441_v18, -inf }
 0x695   : > { %5304 = vmax.xlane.f32.xlu1 %v5303_v25  ;;  %5301 = vmax.xlane.f32.xlu0 %v5300_v48  ;;  %v5631_v25 = vsel %vm491_vm0, %v5444_v62, -inf  ;;  %v5628_v48 = vsel %vm491_vm0, %v5443_v7, -inf  ;;  %v5184_v62 = vadd.s32 4294967293, %v5183_v44  ;;  %v11154_v7 = vsub.s32 %v5189_v50, %v11016_v55 }
 0x699   : > { %5310 = vmax.xlane.f32.xlu1 %v5309_v0  ;;  %5307 = vmax.xlane.f32.xlu0 %v5306_v58  ;;  %v5637_v0 = vsel %vm491_vm0, %v5446_v31, -inf  ;;  %v5634_v58 = vsel %vm491_vm0, %v5445_v34, -inf  ;;  %v11157_v31 = vsub.s32 %v5184_v62, %v11016_v55 }
 0x69d   : > { %5316 = vmax.xlane.f32.xlu1 %v5315_v35  ;;  %5313 = vmax.xlane.f32.xlu0 %v5312_v4  ;;  %v5643_v35 = vsel %vm491_vm0, %v5448_v51, -inf  ;;  %v5640_v4 = vsel %vm491_vm0, %v5447_v57, -inf }
 0x6a1   : > { %5322 = vmax.xlane.f32.xlu1 %v5321_v40  ;;  %5319 = vmax.xlane.f32.xlu0 %v5318_v36  ;;  %v5655_v40 = vsel %vm491_vm0, %v5452_v12, -inf  ;;  %v5652_v36 = vsel %vm491_vm0, %v5451_v33, -inf }
 0x6a5   : > { %5459 = vadd.xlane.f32.xlu1 %v5458_v28  ;;  %5456 = vadd.xlane.f32.xlu0 %v5455_v38 }
 0x6a9   : > { %5465 = vadd.xlane.f32.xlu1 %v5464_v41  ;;  %5462 = vadd.xlane.f32.xlu0 %v5461_v24 }
 0x6ad   : > { %5471 = vadd.xlane.f32.xlu1 %v5470_v52  ;;  %5468 = vadd.xlane.f32.xlu0 %v5467_v23 }
 0x6b1   : > { %5477 = vadd.xlane.f32.xlu1 %v5476_v42  ;;  %5474 = vadd.xlane.f32.xlu0 %v5473_v49 }
 0x6b5   : > { %5483 = vadd.xlane.f32.xlu1 %v5482_v6  ;;  %5480 = vadd.xlane.f32.xlu0 %v5479_v56 }
 0x6b9   : > { %5489 = vadd.xlane.f32.xlu1 %v5488_v3  ;;  %5486 = vadd.xlane.f32.xlu0 %v5485_v60 }
 0x6bd   : > { %5495 = vadd.xlane.f32.xlu1 %v5494_v53  ;;  %5492 = vadd.xlane.f32.xlu0 %v5491_v13 }
 0x6c1   : > { %5501 = vadd.xlane.f32.xlu1 %v5500_v15  ;;  %5498 = vadd.xlane.f32.xlu0 %v5497_v29 }
 0x6c5   : > { %5620 = vmax.xlane.f32.xlu1 %v5619_v17  ;;  %5617 = vmax.xlane.f32.xlu0 %v5616_v30 }
 0x6c9   : > { %5626 = vmax.xlane.f32.xlu1 %v5625_v46  ;;  %5623 = vmax.xlane.f32.xlu0 %v5622_v54 }
 0x6cd   : > { %5632 = vmax.xlane.f32.xlu1 %v5631_v25  ;;  %5629 = vmax.xlane.f32.xlu0 %v5628_v48 }
 0x6d1   : > { %5638 = vmax.xlane.f32.xlu1 %v5637_v0  ;;  %5635 = vmax.xlane.f32.xlu0 %v5634_v58 }
 0x6d5   : > { %5644 = vmax.xlane.f32.xlu1 %v5643_v35  ;;  %5641 = vmax.xlane.f32.xlu0 %v5640_v4 }
 0x6d9   : > { %5650 = vmax.xlane.f32.xlu1 %v5649_v37  ;;  %5647 = vmax.xlane.f32.xlu0 %v5646_v2 }
 0x6dd   : > { %5656 = vmax.xlane.f32.xlu1 %v5655_v40  ;;  %5653 = vmax.xlane.f32.xlu0 %v5652_v36 }
 0x6e1   : > { %5662 = vmax.xlane.f32.xlu1 %v5661_v5  ;;  %5659 = vmax.xlane.f32.xlu0 %v5658_v14 }
 0x6f2   : > { %v5109_v20 = vpop.xlane.xlu1 %5108  ;;  %v5103_v47 = vpop.xlane.xlu0 %5102 }
 0x6f3   : > { %v5152_v34 = vmul.f32 0.0625, %v5109_v20  ;;  %v5150_v16 = vmul.f32 0.0625, %v5103_v47 }
 0x6f5   : > { %v5199_v19 = vrot.slane %v5152_v34, %v11157_v31  ;;  %v5188_v43 = vrot.slane %v5150_v16, %v11157_v31 }
 0x6f6   : > { %v5112_v28 = vpop.xlane.xlu1 %5111  ;;  %v5106_v38 = vpop.xlane.xlu0 %5105 }
 0x6f7   : > { %v5153_v21 = vmul.f32 0.0625, %v5112_v28  ;;  %v5151_v39 = vmul.f32 0.0625, %v5106_v38 }
 0x6f9   : > { %v5203_v51 = vrot.slane %v5153_v21, %v11154_v7  ;;  %v5193_v57 = vrot.slane %v5151_v39, %v11154_v7 }
 0x6fa   : > { %v5118_v32 = vpop.xlane.xlu1 %5117  ;;  %v5115_v18 = vpop.xlane.xlu0 %5114 }
 0x6fb   : > { %v5155_v26 = vmul.f32 0.0625, %v5118_v32  ;;  %v5154_v42 = vmul.f32 0.0625, %v5115_v18  ;;  %v5204_v9 = vsel %vm5194_vm11, %v5203_v51, %v5199_v19  ;;  %v5195_v45 = vsel %vm5194_vm11, %v5193_v57, %v5188_v43 }
 0x6fc   : > { %v5260_v0 = vsel %vm5259_vm12, %v5204_v9, %v5195_v45 }
 0x6fd   : > { %v5212_v3 = vrot.slane %v5155_v26, %v11154_v7  ;;  %v5208_v60 = vrot.slane %v5154_v42, %v11157_v31 }
 0x6fe   : > { %v5124_v41 = vpop.xlane.xlu1 %5123  ;;  %v5121_v24 = vpop.xlane.xlu0 %5120 }
 0x6ff   : > { %v5157_v49 = vmul.f32 0.0625, %v5124_v41  ;;  %v5156_v63 = vmul.f32 0.0625, %v5121_v24  ;;  %v5213_v46 = vsel %vm5194_vm11, %v5212_v3, %v5208_v60 }
 0x700   : > { %v5262_v37 = vsel %vm5261_vm13, %v5213_v46, %v5260_v0 }
 0x701   : > { %v5221_v12 = vrot.slane %v5157_v49, %v11154_v7  ;;  %v5217_v33 = vrot.slane %v5156_v63, %v11157_v31 }
 0x702   : > { %v5130_v52 = vpop.xlane.xlu1 %5129  ;;  %v5127_v23 = vpop.xlane.xlu0 %5126 }
 0x703   : > { %v5159_v10 = vmul.f32 0.0625, %v5130_v52  ;;  %v5158_v61 = vmul.f32 0.0625, %v5127_v23  ;;  %v5222_v54 = vsel %vm5194_vm11, %v5221_v12, %v5217_v33 }
 0x704   : > { %v5264_v5 = vsel %vm5263_vm14, %v5222_v54, %v5262_v37 }
 0x705   : > { %v5230_v53 = vrot.slane %v5159_v10, %v11154_v7  ;;  %v5226_v13 = vrot.slane %v5158_v61, %v11157_v31 }
 0x706   : > { %v5136_v6 = vpop.xlane.xlu1 %5135  ;;  %v5133_v56 = vpop.xlane.xlu0 %5132 }
 0x707   : > { %v5161_v1 = vmul.f32 0.0625, %v5136_v6  ;;  %v5160_v59 = vmul.f32 0.0625, %v5133_v56  ;;  %v5231_v58 = vsel %vm5194_vm11, %v5230_v53, %v5226_v13 }
 0x708   : > { %v5266_v20 = vsel %vm5265_vm15, %v5231_v58, %v5264_v5 }
 0x709   : > { %v5239_v15 = vrot.slane %v5161_v1, %v11154_v7  ;;  %v5235_v29 = vrot.slane %v5160_v59, %v11157_v31 }
 0x70a   : > { %v5142_v11 = vpop.xlane.xlu1 %5141  ;;  %v5139_v8 = vpop.xlane.xlu0 %5138 }
 0x70b   : > { %v5163_v17 = vmul.f32 0.0625, %v5142_v11  ;;  %v5162_v30 = vmul.f32 0.0625, %v5139_v8  ;;  %v5240_v2 = vsel %vm5194_vm11, %v5239_v15, %v5235_v29 }
 0x70c   : > { %v5268_v38 = vsel %vm5267_vm1, %v5240_v2, %v5266_v20 }
 0x70d   : > { %v5248_v25 = vrot.slane %v5163_v17, %v11154_v7  ;;  %v5244_v48 = vrot.slane %v5162_v30, %v11157_v31 }
 0x70e   : > { %v5148_v35 = vpop.xlane.xlu1 %5147  ;;  %v5145_v4 = vpop.xlane.xlu0 %5144 }
 0x70f   : > { %v5165_v40 = vmul.f32 0.0625, %v5148_v35  ;;  %v5164_v36 = vmul.f32 0.0625, %v5145_v4  ;;  %v5249_v14 = vsel %vm5194_vm11, %v5248_v25, %v5244_v48 }
 0x710   : > { %v5270_v44 = vsel %vm5269_vm2, %v5249_v14, %v5268_v38  ;;  %v6414_v14 = vstv %s11219_s9  ;;  %s11492_s9 = sld [smem:[#allocation10 + $0x5]] }
 0x711   : > { %v5257_v47 = vrot.slane %v5165_v40, %v11154_v7  ;;  %v5253_v28 = vrot.slane %v5164_v36, %v11157_v31 }
 0x712   : > { %v5281_v32 = vpop.xlane.xlu1 %5280  ;;  %v5278_v18 = vpop.xlane.xlu0 %5277 }
 0x713   : > { %v5258_v50 = vsel %vm5194_vm11, %v5257_v47, %v5253_v28  ;;  %v5347_v10 = vrot.slane %v5281_v32, %v11154_v7  ;;  %v5343_v61 = vrot.slane %v5278_v18, %v11157_v31  ;;  %v6428_v32 = vstv %s11225_s19  ;;  %s11504_s19 = sld [smem:[#allocation10 + $0x54]] }
 0x714   : > { %v5272_v41 = vsel %vm5271_vm3, %v5258_v50, %v5270_v44 }
 0x715   : > { %5275 = vst.msk [vmem:[#allocation4 + $0x3] sm:$0xff] %vm5274_vm4, %v5272_v41  ;;  %v5348_v9 = vsel %vm5194_vm11, %v5347_v10, %v5343_v61  ;;  %v6442_v41 = vstv %s11228_s27  ;;  %s11524_s27 = sld [smem:[#allocation10 + $0x8]] }
 0x716   : > { %v5287_v24 = vpop.xlane.xlu1 %5286  ;;  %v5284_v62 = vpop.xlane.xlu0 %5283 }
 0x717   : > { %v5356_v26 = vrot.slane %v5287_v24, %v11154_v7  ;;  %v5352_v42 = vrot.slane %v5284_v62, %v11157_v31 }
 0x719   : > { %v5357_v19 = vsel %vm5194_vm11, %v5356_v26, %v5352_v42  ;;  %12976 = sst [smem:[#allocation49_spill]] %s11504_s19 }
 0x71a   : > { %v5293_v21 = vpop.xlane.xlu1 %5292  ;;  %v5290_v39 = vpop.xlane.xlu0 %5289  ;;  %v5412_v11 = vsel %vm5259_vm12, %v5357_v19, %v5348_v9 }
 0x71b   : > { %v5365_v49 = vrot.slane %v5293_v21, %v11154_v7  ;;  %v5361_v63 = vrot.slane %v5290_v39, %v11157_v31 }
 0x71d   : > { %v5366_v60 = vsel %vm5194_vm11, %v5365_v49, %v5361_v63 }
 0x71e   : > { %v5299_v52 = vpop.xlane.xlu1 %5298  ;;  %v5296_v23 = vpop.xlane.xlu0 %5295  ;;  %v5413_v15 = vsel %vm5261_vm13, %v5366_v60, %v5412_v11 }
 0x71f   : > { %v5374_v6 = vrot.slane %v5299_v52, %v11154_v7  ;;  %v5370_v56 = vrot.slane %v5296_v23, %v11157_v31 }
 0x721   : > { %v5375_v45 = vsel %vm5194_vm11, %v5374_v6, %v5370_v56 }
 0x722   : > { %v5305_v34 = vpop.xlane.xlu1 %5304  ;;  %v5302_v16 = vpop.xlane.xlu0 %5301  ;;  %v5414_v17 = vsel %vm5263_vm14, %v5375_v45, %v5413_v15 }
 0x723   : > { %v5383_v1 = vrot.slane %v5305_v34, %v11154_v7  ;;  %v5379_v59 = vrot.slane %v5302_v16, %v11157_v31  ;;  %v6456_v16 = vstv %s11236_s18  ;;  %s11537_s18 = sld [smem:[#allocation10 + $0x9]] }
 0x725   : > { %v5384_v8 = vsel %vm5194_vm11, %v5383_v1, %v5379_v59 }
 0x726   : > { %v5311_v51 = vpop.xlane.xlu1 %5310  ;;  %v5308_v57 = vpop.xlane.xlu0 %5307  ;;  %v5415_v25 = vsel %vm5265_vm15, %v5384_v8, %v5414_v17 }
 0x727   : > { %v5392_v43 = vrot.slane %v5311_v51, %v11154_v7  ;;  %v5388_v3 = vrot.slane %v5308_v57, %v11157_v31 }
 0x729   : > { %v5393_v29 = vsel %vm5194_vm11, %v5392_v43, %v5388_v3  ;;  %v6470_v43 = vstv %s11242_s21  ;;  %s11561_s21 = sld [smem:[#allocation10 + $0xa]] }
 0x72a   : > { %v5317_v12 = vpop.xlane.xlu1 %5316  ;;  %v5314_v33 = vpop.xlane.xlu0 %5313  ;;  %v5416_v58 = vsel %vm5267_vm1, %v5393_v29, %v5415_v25 }
 0x72b   : > { %v5401_v53 = vrot.slane %v5317_v12, %v11154_v7  ;;  %v5397_v13 = vrot.slane %v5314_v33, %v11157_v31  ;;  %v6484_v12 = vstv %s11245_s23  ;;  %s11571_s23 = sld [smem:[#allocation10 + $0xb]] }
 0x72d   : > { %v5402_v30 = vsel %vm5194_vm11, %v5401_v53, %v5397_v13 }
 0x72e   : > { %v5323_v46 = vpop.xlane.xlu1 %5322  ;;  %v5320_v54 = vpop.xlane.xlu0 %5319  ;;  %v5417_v35 = vsel %vm5269_vm2, %v5402_v30, %v5416_v58 }
 0x72f   : > { %v5410_v48 = vrot.slane %v5323_v46, %v11154_v7  ;;  %v5406_v0 = vrot.slane %v5320_v54, %v11157_v31 }
 0x731   : > { %v5411_v4 = vsel %vm5194_vm11, %v5410_v48, %v5406_v0 }
 0x732   : > { %v5418_v37 = vsel %vm5271_vm3, %v5411_v4, %v5417_v35  ;;  %v5460_v2 = vpop.xlane.xlu1 %5459  ;;  %v5457_v40 = vpop.xlane.xlu0 %5456 }
 0x733   : > { %5421 = vst.msk [vmem:[#allocation4 + $0x1b] sm:$0xff] %vm5274_vm4, %v5418_v37  ;;  %v5504_v26 = vmul.f32 0.0625, %v5460_v2  ;;  %v5503_v42 = vmul.f32 0.0625, %v5457_v40 }
 0x735   : > { %v5542_v33 = vrot.slane %v5504_v26, %v11154_v7  ;;  %v5538_v9 = vrot.slane %v5503_v42, %v11157_v31 }
 0x736   : > { %v5466_v36 = vpop.xlane.xlu1 %5465  ;;  %v5463_v5 = vpop.xlane.xlu0 %5462 }
 0x737   : > { %v5506_v24 = vmul.f32 0.0625, %v5466_v36  ;;  %v5505_v62 = vmul.f32 0.0625, %v5463_v5  ;;  %v5543_v0 = vsel %vm5194_vm11, %v5542_v33, %v5538_v9 }
 0x739   : > { %v5551_v51 = vrot.slane %v5506_v24, %v11154_v7  ;;  %v5547_v57 = vrot.slane %v5505_v62, %v11157_v31  ;;  %v6506_v62 = vstv %s11262_s11  ;;  %s11591_s11 = sld [smem:[#allocation10 + $0xd]] }
 0x73a   : > { %v5472_v20 = vpop.xlane.xlu1 %5471  ;;  %v5469_v47 = vpop.xlane.xlu0 %5468  ;;  %v11230_v28 = vld [vmem:[#allocation4 + $0x18] sm:$0xff] }
 0x73b   : > { %v6415_v38 = vmul.f32 %v6414_v14, %v11230_v28  ;;  %v6429_v50 = vmul.f32 %v6428_v32, %v11230_v28  ;;  %v6443_v52 = vmul.f32 %v6442_v41, %v11230_v28  ;;  %v5508_v23 = vmul.f32 0.0625, %v5472_v20  ;;  %v6498_v24 = vld [vmem:[#allocation4 + $0x19] sm:$0xff] }
 0x73c   : > { %v5507_v34 = vmul.f32 0.0625, %v5469_v47  ;;  %v6457_v19 = vmul.f32 %v6456_v16, %v11230_v28  ;;  %v5552_v13 = vsel %vm5194_vm11, %v5551_v51, %v5547_v57  ;;  %v6471_v17 = vmul.f32 %v6470_v43, %v11230_v28 }
 0x73d   : > { %6419 = vrot.lane.b32.xlu0 %v6415_v38, %s12814_s24  ;;  %v5560_v3 = vrot.slane %v5508_v23, %v11154_v7  ;;  %v5607_v37 = vsel %vm5259_vm12, %v5552_v13, %v5543_v0  ;;  %v6485_v5 = vmul.f32 %v6484_v12, %v11230_v28  ;;  %v6520_v51 = vstv %s11278_s28  ;;  %s11318_s24 = sld [smem:[#allocation10 + $0x3c]]  ;;  %s11601_s28 = sld [smem:[#allocation10 + $0xf]] }
 0x73e   : > { %v5478_v18 = vpop.xlane.xlu1 %5477  ;;  %v5475_v44 = vpop.xlane.xlu0 %5474  ;;  %v5556_v60 = vrot.slane %v5507_v34, %v11157_v31 }
 0x73f   : > { %v5510_v49 = vmul.f32 0.0625, %v5478_v18  ;;  %v5509_v63 = vmul.f32 0.0625, %v5475_v44 }
 0x740   : > { %v5561_v48 = vsel %vm5194_vm11, %v5560_v3, %v5556_v60 }
 0x741   : > { %6433 = vrot.lane.b32.xlu0 %v6429_v50, %s12810_s29  ;;  %v5569_v45 = vrot.slane %v5510_v49, %v11154_v7  ;;  %v5565_v53 = vrot.slane %v5509_v63, %v11157_v31  ;;  %v5608_v20 = vsel %vm5261_vm13, %v5561_v48, %v5607_v37  ;;  %s11308_s29 = sld [smem:[#allocation10 + $0x7]]  ;;  %v6507_v49 = vmul.f32 %v6506_v62, %v6498_v24 }
 0x742   : > { %v5484_v21 = vpop.xlane.xlu1 %5483  ;;  %v5481_v39 = vpop.xlane.xlu0 %5480  ;;  %v6576_v48 = vstv %s11330_s3  ;;  %s11634_s3 = sld [smem:[#allocation10 + $0x12]] }
 0x743   : > { %v5512_v10 = vmul.f32 0.0625, %v5484_v21  ;;  %v5511_v61 = vmul.f32 0.0625, %v5481_v39  ;;  %v5570_v58 = vsel %vm5194_vm11, %v5569_v45, %v5565_v53  ;;  %v6548_v53 = vstv %s11318_s24  ;;  %s7954_s24 = sld [smem:[#allocation10 + $0x2]] }
 0x744   : > { %v5609_v44 = vsel %vm5263_vm14, %v5570_v58, %v5608_v20 }
 0x745   : > { %6447 = vrot.lane.b32.xlu0 %v6443_v52, %s12808_s30  ;;  %v5578_v11 = vrot.slane %v5512_v10, %v11154_v7  ;;  %v5574_v8 = vrot.slane %v5511_v61, %v11157_v31  ;;  %s11306_s30 = sld [smem:[#allocation10]]  ;;  %v6521_v61 = vmul.f32 %v6520_v51, %v6498_v24 }
 0x746   : > { %v5490_v6 = vpop.xlane.xlu1 %5489  ;;  %v5487_v56 = vpop.xlane.xlu0 %5486 }
 0x747   : > { %v5514_v1 = vmul.f32 0.0625, %v5490_v6  ;;  %v5513_v59 = vmul.f32 0.0625, %v5487_v56  ;;  %v5579_v2 = vsel %vm5194_vm11, %v5578_v11, %v5574_v8  ;;  %12964 = sst [smem:[#allocation44_spill]] %s11308_s29  ;;  %v12842_v3 = vstv %s11308_s29  ;;  %s11514_s29 = sld [smem:[#allocation10 + $0x6]] }
 0x748   : > { %v5610_v21 = vsel %vm5265_vm15, %v5579_v2, %v5609_v44 }
 0x749   : > { %6461 = vrot.lane.b32.xlu0 %v6457_v19, %s12806_s15  ;;  %v5587_v30 = vrot.slane %v5514_v1, %v11154_v7  ;;  %v5583_v46 = vrot.slane %v5513_v59, %v11157_v31  ;;  %s12812_s15 = smov 122  }
 0x74a   : > { %v5496_v15 = vpop.xlane.xlu1 %5495  ;;  %v5493_v29 = vpop.xlane.xlu0 %5492 }
 0x74b   : > { %v5516_v54 = vmul.f32 0.0625, %v5496_v15  ;;  %v5515_v25 = vmul.f32 0.0625, %v5493_v29  ;;  %v5588_v47 = vsel %vm5194_vm11, %v5587_v30, %v5583_v46  ;;  %v12843_v19 = vstv %s11306_s30 }
 0x74c   : > { %v5611_v52 = vsel %vm5267_vm1, %v5588_v47, %v5610_v21  ;;  %v6562_v30 = vstv %s11325_s1  ;;  %s11623_s1 = sld [smem:[#allocation10 + $0x11]] }
 0x74d   : > { %v5596_v35 = vrot.slane %v5516_v54, %v11154_v7  ;;  %v5592_v4 = vrot.slane %v5515_v25, %v11157_v31  ;;  %6475 = vrot.lane.b32.xlu0 %v6471_v17, %s12804_s20  ;;  %s11295_s20 = sld [smem:[#allocation10 + $0x3b]]  ;;  %v6549_v17 = vmul.f32 %v6548_v53, %v6498_v24  ;;  %v6563_v25 = vmul.f32 %v6562_v30, %v6498_v24 }
 0x74e   : > { %v5502_v40 = vpop.xlane.xlu1 %5501  ;;  %v5499_v36 = vpop.xlane.xlu0 %5498 }
 0x74f   : > { %v5518_v38 = vmul.f32 0.0625, %v5502_v40  ;;  %v5517_v18 = vmul.f32 0.0625, %v5499_v36  ;;  %v5597_v50 = vsel %vm5194_vm11, %v5596_v35, %v5592_v4  ;;  %v6577_v40 = vmul.f32 %v6576_v48, %v6498_v24 }
 0x750   : > { %v5612_v26 = vsel %vm5269_vm2, %v5597_v50, %v5611_v52  ;;  %v6598_v36 = vstv %s11358_s5  ;;  %s11647_s5 = sld [smem:[#allocation10 + $0x13]] }
 0x751   : > { %v5605_v28 = vrot.slane %v5518_v38, %v11154_v7  ;;  %v5601_v39 = vrot.slane %v5517_v18, %v11157_v31  ;;  %6489 = vrot.lane.b32.xlu0 %v6485_v5, %s12812_s15  ;;  %s11314_s15 = sld [smem:[#allocation10 + $0xe]]  ;;  %v11385_v18 = vld [vmem:[#allocation4 + $0x1a] sm:$0xff] }
 0x752   : > { %v11302_v23 = vpop.xlane.xlu1 %5620  ;;  %v11304_v34 = vpop.xlane.xlu0 %5617 }
 0x753   : > { %v5606_v42 = vsel %vm5194_vm11, %v5605_v28, %v5601_v39  ;;  %v6534_v6 = vstv %s11295_s20  ;;  %v5687_v5 = vrot.slane %v11302_v23, %v11154_v7  ;;  %v5683_v20 = vrot.slane %v11304_v34, %v11157_v31  ;;  %s11611_s20 = sld [smem:[#allocation10 + $0x10]] }
 0x754   : > { %v5613_v63 = vsel %vm5271_vm3, %v5606_v42, %v5612_v26  ;;  %v6535_v59 = vmul.f32 %v6534_v6, %v6498_v24  ;;  %v6599_v34 = vmul.f32 %v6598_v36, %v11385_v18 }
 0x755   : > { %5615 = vst.msk [vmem:[#allocation4 + $0xb] sm:$0xff] %vm5274_vm4, %v5613_v63  ;;  %6511 = vrot.lane.b32.xlu0 %v6507_v49, %s12966_s0  ;;  %v5688_v26 = vsel %vm5194_vm11, %v5687_v5, %v5683_v20 }
 0x756   : > { %v5627_v57 = vpop.xlane.xlu1 %5626  ;;  %v5624_v10 = vpop.xlane.xlu0 %5623 }
 0x757   : > { %12965 = sst [smem:[#allocation45_spill]] %s11314_s15  ;;  %v12841_v60 = vstv %s11314_s15  ;;  %v5696_v0 = vrot.slane %v5627_v57, %v11154_v7  ;;  %v5692_v58 = vrot.slane %v5624_v10, %v11157_v31  ;;  %s11506_s15 = sld [smem:[#allocation10 + $0x5b]] }
 0x759   : > { %6525 = vrot.lane.b32.xlu0 %v6521_v61, %s12967_s2  ;;  %v5697_v24 = vsel %vm5194_vm11, %v5696_v0, %v5692_v58  ;;  %v6612_v61 = vstv %s11367_s7  ;;  %s11660_s7 = sld [smem:[#allocation10 + $0x14]] }
 0x75a   : > { %v5633_v56 = vpop.xlane.xlu1 %5632  ;;  %v5630_v1 = vpop.xlane.xlu0 %5629  ;;  %v5752_v57 = vsel %vm5259_vm12, %v5697_v24, %v5688_v26  ;;  %v6613_v58 = vmul.f32 %v6612_v61, %v11385_v18  ;;  %v11477_v26 = vld [vmem:[#allocation4] sm:$0xff] }
 0x75b   : > { %v5705_v35 = vrot.slane %v5633_v56, %v11154_v7  ;;  %v5701_v4 = vrot.slane %v5630_v1, %v11157_v31 }
 0x75c   : > { %v11335_v33 = vld [vmem:[#allocation4 + $0x8] sm:$0xff] }
 0x75d   : > { %v11337_v9 = vld [vmem:[#allocation4 + $0x9] sm:$0xff]  ;;  %v11345_v13 = vmul.f32 %v12843_v19, %v11335_v33  ;;  %6539 = vrot.lane.b32.xlu0 %v6535_v59, %s12968_s4  ;;  %v5706_v39 = vsel %vm5194_vm11, %v5705_v35, %v5701_v4  ;;  %12977 = sst [smem:[#allocation50_spill]] %s11506_s15 }
 0x75e   : > { %v11339_v45 = vld [vmem:[#allocation4 + $0xa] sm:$0xff]  ;;  %v11350_v11 = vmul.f32 %v12842_v3, %v11337_v9  ;;  %v5639_v15 = vpop.xlane.xlu1 %5638  ;;  %v5636_v29 = vpop.xlane.xlu0 %5635  ;;  %v5753_v56 = vsel %vm5261_vm13, %v5706_v39, %v5752_v57  ;;  %v6654_v39 = vstv %s11425_s17  ;;  %s11701_s17 = sld [smem:[#allocation10 + $0x18]] }
 0x75f   : > { %v11355_v8 = vmul.f32 %v12841_v60, %v11339_v45  ;;  %v5714_v47 = vrot.slane %v5639_v15, %v11154_v7  ;;  %v5710_v38 = vrot.slane %v5636_v29, %v11157_v31  ;;  %v11427_v4 = vld [vmem:[#allocation4 + $0xc] sm:$0xff] }
 0x761   : > { %6553 = vrot.lane.b32.xlu0 %v6549_v17, %s12969_s6  ;;  %v5715_v42 = vsel %vm5194_vm11, %v5714_v47, %v5710_v38 }
 0x762   : > { %v5645_v46 = vpop.xlane.xlu1 %5644  ;;  %v5642_v54 = vpop.xlane.xlu0 %5641  ;;  %v5754_v59 = vsel %vm5263_vm14, %v5715_v42, %v5753_v56  ;;  %v5770_v42 = vstv %s11460_s22  ;;  %s11712_s22 = sld [smem:[#allocation10 + $0x19]] }
 0x763   : > { %v5723_v44 = vrot.slane %v5645_v46, %v11154_v7  ;;  %v5719_v50 = vrot.slane %v5642_v54, %v11157_v31  ;;  %v6626_v46 = vstv %s11377_s14  ;;  %s11673_s14 = sld [smem:[#allocation10 + $0x16]] }
 0x764   : > { %v6627_v38 = vmul.f32 %v6626_v46, %v11385_v18 }
 0x765   : > { %6567 = vrot.lane.b32.xlu0 %v6563_v25, %s12970_s8  ;;  %v5724_v10 = vsel %vm5194_vm11, %v5723_v44, %v5719_v50 }
 0x766   : > { %v5651_v37 = vpop.xlane.xlu1 %5650  ;;  %v5648_v2 = vpop.xlane.xlu0 %5647  ;;  %v5755_v54 = vsel %vm5265_vm15, %v5724_v10, %v5754_v59 }
 0x767   : > { %v5732_v21 = vrot.slane %v5651_v37, %v11154_v7  ;;  %v5728_v28 = vrot.slane %v5648_v2, %v11157_v31  ;;  %v11429_v37 = vld [vmem:[#allocation4 + $0xd] sm:$0xff]  ;;  %v12840_v2 = vstv %s11387_s16  ;;  %s11497_s16 = sld [smem:[#allocation10 + $0x4d]] }
 0x768   : > { %v11447_v44 = vmul.f32 %v12840_v2, %v11427_v4  ;;  %v11774_v2 = vld [vmem:[#allocation4 + $0x4] sm:$0xff]  ;;  %v12994_v27 = vstv %s11712_s22 }
 0x769   : > { %6581 = vrot.lane.b32.xlu0 %v6577_v40, %s12974_s10  ;;  %v5733_v1 = vsel %vm5194_vm11, %v5732_v21, %v5728_v28  ;;  %v12838_v40 = vstv %s11393_s13  ;;  %v6640_v21 = vstv %s11410_s25  ;;  %s11470_s13 = sld [smem:[#allocation10 + $0x45]]  ;;  %s11686_s25 = sld [smem:[#allocation10 + $0x17]] }
 0x76a   : > { %v5657_v52 = vpop.xlane.xlu1 %5656  ;;  %v5654_v23 = vpop.xlane.xlu0 %5653  ;;  %v5756_v35 = vsel %vm5267_vm1, %v5733_v1, %v5755_v54  ;;  %v6641_v28 = vmul.f32 %v6640_v21, %v11385_v18 }
 0x76b   : > { %v5741_v49 = vrot.slane %v5657_v52, %v11154_v7  ;;  %v5737_v63 = vrot.slane %v5654_v23, %v11157_v31  ;;  %v6655_v23 = vmul.f32 %v6654_v39, %v11385_v18 }
 0x76d   : > { %6603 = vrot.lane.b32.xlu0 %v6599_v34, %s12966_s0  ;;  %v5742_v15 = vsel %vm5194_vm11, %v5741_v49, %v5737_v63  ;;  %v5771_v49 = vmul.f32 %v5770_v42, %v11477_v26  ;;  %v12836_v54 = vstv %s11497_s16 }
 0x76e   : > { %v5663_v29 = vpop.xlane.xlu1 %5662  ;;  %v5660_v17 = vpop.xlane.xlu0 %5659  ;;  %v5757_v5 = vsel %vm5269_vm2, %v5742_v15, %v5756_v35  ;;  %v12834_v35 = vstv %s11506_s15  ;;  %s11581_s15 = sld [smem:[#allocation10 + $0xc]] }
 0x76f   : > { %v5750_v25 = vrot.slane %v5663_v29, %v11154_v7  ;;  %v5746_v0 = vrot.slane %v5660_v17, %v11157_v31  ;;  %v11432_v7 = vld [vmem:[#allocation4 + $0xe] sm:$0xff]  ;;  %v12839_v31 = vstv %s11391_s26  ;;  %s11480_s26 = sld [smem:[#allocation10 + $0x4]]  ;;  %v12850_v10 = vstv %s11470_s13 }
 0x770   : > { %v11452_v50 = vmul.f32 %v12839_v31, %v11429_v37  ;;  %v11457_v24 = vmul.f32 %v12838_v40, %v11432_v7  ;;  %v5826_v17 = vstv %s11492_s9  ;;  %s11777_s9 = sld [smem:[#allocation10 + $0x1f]]  ;;  %v12990_v22 = vstv %s11686_s25 }
 0x771   : > { %v5751_v20 = vsel %vm5194_vm11, %v5750_v25, %v5746_v0  ;;  %6617 = vrot.lane.b32.xlu0 %v6613_v58, %s12967_s2  ;;  %v12835_v58 = vstv %s11504_s19  ;;  %s11736_s19 = sld [smem:[#allocation10 + $0x1b]] }
 0x772   : > { %v5758_v47 = vsel %vm5271_vm3, %v5751_v20, %v5757_v5  ;;  %12975 = vst [vmem:[#allocation29_spill] sm:$0xff] %v11457_v24  ;;  %v5840_v20 = vstv %s11514_s29  ;;  %s11790_s29 = sld [smem:[#allocation10 + $0x20]] }
 0x773   : > { %5760 = vst.msk [vmem:[#allocation4 + $0x23] sm:$0xff] %vm5274_vm4, %v5758_v47 }
 0x775   : > { %6631 = vrot.lane.b32.xlu0 %v6627_v38, %s12968_s4  ;;  %v5812_v59 = vstv %s11480_s26  ;;  %s11762_s26 = sld [smem:[#allocation10 + $0x1e]] }
 0x776   : > { %v5813_v15 = vmul.f32 %v5812_v59, %v11477_v26  ;;  %v12844_v3 = vstv %s11777_s9 }
 0x777   : > { %v12854_v31 = vstv %s11736_s19 }
 0x778   : > { %v12845_v19 = vstv %s11790_s29 }
 0x779   : > { %6645 = vrot.lane.b32.xlu0 %v6641_v28, %s12969_s6 }
 0x77a   : > { %v6407_v52 = vld [vmem:[#allocation4 + $0x20] sm:$0xff] }
 0x77b   : > { %v6416_v34 = vmul.f32 %v6414_v14, %v6407_v52  ;;  %v6430_v63 = vmul.f32 %v6428_v32, %v6407_v52  ;;  %v11489_v57 = vld [vmem:[#allocation4 + $0x22] sm:$0xff]  ;;  %v5798_v14 = vstv %s11467_s12  ;;  %v6444_v1 = vmul.f32 %v6442_v41, %v6407_v52  ;;  %s11749_s12 = sld [smem:[#allocation10 + $0x1d]] }
 0x77c   : > { %v11502_v56 = vmul.f32 %v12850_v10, %v11489_v57  ;;  %v5799_v32 = vmul.f32 %v5798_v14, %v11477_v26  ;;  %v6458_v29 = vmul.f32 %v6456_v16, %v6407_v52  ;;  %v6775_v41 = vld [vmem:[#allocation4 + $0x24] sm:$0xff]  ;;  %v5827_v16 = vmul.f32 %v5826_v17, %v11477_v26 }
 0x77d   : > { %6659 = vrot.lane.b32.xlu0 %v6655_v23, %s12970_s8  ;;  %6421 = vrot.lane.b32.xlu1 %v6416_v34, %s12966_s0  ;;  %v6867_v25 = vld [vmem:[#allocation4 + $0x25] sm:$0xff]  ;;  %v6472_v5 = vmul.f32 %v6470_v43, %v6407_v52  ;;  %v11541_v47 = vmul.f32 %v12836_v54, %v6775_v41  ;;  %v5841_v43 = vmul.f32 %v5840_v20, %v11477_v26  ;;  %v12858_v54 = vstv %s11712_s22  ;;  %s12040_s22 = sld [smem:[#allocation10 + $0x48]] }
 0x77e   : > { %v6959_v0 = vld [vmem:[#allocation4 + $0x26] sm:$0xff]  ;;  %v11547_v38 = vmul.f32 %v12835_v58, %v6867_v25  ;;  %v6486_v23 = vmul.f32 %v6484_v12, %v6407_v52  ;;  %v5904_v25 = vstv %s11571_s23  ;;  %v5800_v58 = vmul.f32 %v5798_v14, %v11335_v33  ;;  %s11842_s23 = sld [smem:[#allocation10 + $0x25]] }
 0x77f   : > { %12978 = vst [vmem:[#allocation30_spill] sm:$0xff] %v11541_v47  ;;  %v11551_v28 = vmul.f32 %v12834_v35, %v6959_v0  ;;  %v11558_v34 = vld [vmem:[#allocation4 + $0x1] sm:$0xff]  ;;  %v12859_v35 = vstv %s11701_s17 }
 0x780   : > { %12979 = vst [vmem:[#allocation31_spill] sm:$0xff] %v11547_v38  ;;  %v12992_v38 = vstv %s11701_s17  ;;  %s12026_s17 = sld [smem:[#allocation10 + $0x47]] }
 0x781   : > { %5775 = vrot.lane.b32.xlu0 %v5771_v49, %s12966_s0  ;;  %6435 = vrot.lane.b32.xlu1 %v6430_v63, %s12967_s2  ;;  %12980 = vst [vmem:[#allocation32_spill] sm:$0xff] %v11551_v28  ;;  %v5862_v49 = vstv %s11524_s27  ;;  %v6499_v63 = vld [vmem:[#allocation4 + $0x21] sm:$0xff]  ;;  %s11803_s27 = sld [smem:[#allocation10 + $0x21]] }
 0x782   : > { %v6522_v52 = vmul.f32 %v6520_v51, %v6499_v63  ;;  %v6536_v41 = vmul.f32 %v6534_v6, %v6499_v63  ;;  %v5905_v51 = vmul.f32 %v5904_v25, %v11558_v34  ;;  %v6550_v0 = vmul.f32 %v6548_v53, %v6499_v63 }
 0x785   : > { %5803 = vrot.lane.b32.xlu0 %v5799_v32, %s12968_s4  ;;  %6449 = vrot.lane.b32.xlu1 %v6444_v1, %s12968_s4  ;;  %v5863_v32 = vmul.f32 %v5862_v49, %v11558_v34  ;;  %v6508_v1 = vmul.f32 %v6506_v62, %v6499_v63 }
 0x789   : > { %5817 = vrot.lane.b32.xlu0 %v5813_v15, %s12969_s6  ;;  %6463 = vrot.lane.b32.xlu1 %v6458_v29, %s12969_s6  ;;  %v5876_v15 = vstv %s11537_s18  ;;  %v5890_v29 = vstv %s11561_s21  ;;  %s11816_s18 = sld [smem:[#allocation10 + $0x22]]  ;;  %s11829_s21 = sld [smem:[#allocation10 + $0x24]] }
 0x78a   : > { %v5877_v12 = vmul.f32 %v5876_v15, %v11558_v34  ;;  %v5891_v62 = vmul.f32 %v5890_v29, %v11558_v34  ;;  %v5878_v60 = vmul.f32 %v5876_v15, %v11337_v9 }
 0x78d   : > { %5831 = vrot.lane.b32.xlu0 %v5827_v16, %s12970_s8  ;;  %6477 = vrot.lane.b32.xlu1 %v6472_v5, %s12970_s8  ;;  %v5918_v16 = vstv %s11581_s15  ;;  %v6564_v5 = vmul.f32 %v6562_v30, %v6499_v63  ;;  %s11859_s15 = sld [smem:[#allocation10 + $0x26]] }
 0x78e   : > { %v5919_v6 = vmul.f32 %v5918_v16, %v11558_v34 }
 0x791   : > { %5845 = vrot.lane.b32.xlu0 %v5841_v43, %s12974_s10  ;;  %6491 = vrot.lane.b32.xlu1 %v6486_v23, %s12974_s10  ;;  %v5932_v43 = vstv %s11591_s11  ;;  %v6578_v23 = vmul.f32 %v6576_v48, %v6499_v63  ;;  %s11874_s11 = sld [smem:[#allocation10 + $0x27]] }
 0x792   : > { %v5933_v53 = vmul.f32 %v5932_v43, %v11558_v34 }
 0x793   : > { %v12853_v10 = vstv %s11859_s15 }
 0x795   : > { %5867 = vrot.lane.b32.xlu0 %v5863_v32, %s12966_s0  ;;  %6513 = vrot.lane.b32.xlu1 %v6508_v1, %s12966_s0  ;;  %v11620_v32 = vld [vmem:[#allocation4 + $0x2] sm:$0xff]  ;;  %v5954_v1 = vstv %s11601_s28  ;;  %s11889_s28 = sld [smem:[#allocation10 + $0x28]] }
 0x796   : > { %v5955_v30 = vmul.f32 %v5954_v1, %v11620_v32 }
 0x799   : > { %5881 = vrot.lane.b32.xlu0 %v5877_v12, %s12967_s2  ;;  %6527 = vrot.lane.b32.xlu1 %v6522_v52, %s12967_s2  ;;  %v6600_v12 = vmul.f32 %v6598_v36, %v11489_v57  ;;  %v5968_v52 = vstv %s11611_s20  ;;  %s11904_s20 = sld [smem:[#allocation10 + $0x29]] }
 0x79a   : > { %v5969_v63 = vmul.f32 %v5968_v52, %v11620_v32 }
 0x79d   : > { %5895 = vrot.lane.b32.xlu0 %v5891_v62, %s12968_s4  ;;  %6541 = vrot.lane.b32.xlu1 %v6536_v41, %s12968_s4  ;;  %v6614_v62 = vmul.f32 %v6612_v61, %v11489_v57  ;;  %v5982_v41 = vstv %s11623_s1  ;;  %s11919_s1 = sld [smem:[#allocation10 + $0x2b]] }
 0x7a1   : > { %5909 = vrot.lane.b32.xlu0 %v5905_v51, %s12969_s6  ;;  %6555 = vrot.lane.b32.xlu1 %v6550_v0, %s12969_s6  ;;  %v5983_v51 = vmul.f32 %v5982_v41, %v11620_v32  ;;  %v6628_v0 = vmul.f32 %v6626_v46, %v11489_v57 }
 0x7a5   : > { %5923 = vrot.lane.b32.xlu0 %v5919_v6, %s12970_s8  ;;  %6569 = vrot.lane.b32.xlu1 %v6564_v5, %s12970_s8  ;;  %v5996_v6 = vstv %s11634_s3  ;;  %s11934_s3 = sld [smem:[#allocation10 + $0x2c]] }
 0x7a6   : > { %v5997_v5 = vmul.f32 %v5996_v6, %v11620_v32 }
 0x7a9   : > { %5937 = vrot.lane.b32.xlu0 %v5933_v53, %s12974_s10  ;;  %6583 = vrot.lane.b32.xlu1 %v6578_v23, %s12974_s10  ;;  %v6642_v53 = vmul.f32 %v6640_v21, %v11489_v57  ;;  %v6010_v23 = vstv %s11647_s5  ;;  %s11953_s5 = sld [smem:[#allocation10 + $0x2d]] }
 0x7ad   : > { %5959 = vrot.lane.b32.xlu0 %v5955_v30, %s12966_s0  ;;  %6605 = vrot.lane.b32.xlu1 %v6600_v12, %s12966_s0  ;;  %v6011_v30 = vmul.f32 %v6010_v23, %v11620_v32  ;;  %v6656_v12 = vmul.f32 %v6654_v39, %v11489_v57  ;;  %v6046_v39 = vstv %s11673_s14  ;;  %v5784_v57 = vstv %s7954_s24  ;;  %s11723_s24 = sld [smem:[#allocation10 + $0x1a]]  ;;  %s11983_s14 = sld [smem:[#allocation10 + $0x2f]] }
 0x7af   : > { %v11638_v48 = vpop.permute.xlu0 %6419  ;;  %v12870_v28 = vstv %s11953_s5 }
 0x7b1   : > { %5973 = vrot.lane.b32.xlu0 %v5969_v63, %s12967_s2  ;;  %6619 = vrot.lane.b32.xlu1 %v6614_v62, %s12967_s2  ;;  %v6024_v63 = vstv %s11660_s7  ;;  %s11968_s7 = sld [smem:[#allocation10 + $0x2e]] }
 0x7b2   : > { %v6025_v62 = vmul.f32 %v6024_v63, %v11620_v32 }
 0x7b3   : > { %v11651_v36 = vpop.permute.xlu0 %6433  ;;  %v12855_v40 = vstv %s11723_s24  ;;  %v12872_v47 = vstv %s11983_s14 }
 0x7b5   : > { %5987 = vrot.lane.b32.xlu0 %v5983_v51, %s12968_s4  ;;  %6633 = vrot.lane.b32.xlu1 %v6628_v0, %s12968_s4  ;;  %v5772_v51 = vmul.f32 %v5770_v42, %v11335_v33  ;;  %v11698_v0 = vld [vmem:[#allocation4 + $0x3] sm:$0xff]  ;;  %v5785_v42 = vmul.f32 %v5784_v57, %v11477_v26 }
 0x7b7   : > { %v11664_v61 = vpop.permute.xlu0 %6447  ;;  %v12871_v55 = vstv %s11968_s7 }
 0x7b9   : > { %6001 = vrot.lane.b32.xlu0 %v5997_v5, %s12969_s6  ;;  %6647 = vrot.lane.b32.xlu1 %v6642_v53, %s12969_s6  ;;  %v6047_v53 = vmul.f32 %v6046_v39, %v11698_v0 }
 0x7bb   : > { %v11677_v46 = vpop.permute.xlu0 %6461 }
 0x7bd   : > { %6015 = vrot.lane.b32.xlu0 %v6011_v30, %s12970_s8  ;;  %6661 = vrot.lane.b32.xlu1 %v6656_v12, %s12970_s8  ;;  %v12861_v30 = vstv %s11686_s25  ;;  %s11998_s25 = sld [smem:[#allocation10 + $0x30]] }
 0x7bf   : > { %v11690_v21 = vpop.permute.xlu0 %6475 }
 0x7c1   : > { %6029 = vrot.lane.b32.xlu0 %v6025_v62, %s12974_s10  ;;  %5777 = vrot.lane.b32.xlu1 %v5772_v51, %s12966_s0  ;;  %v6061_v62 = vmul.f32 %v12861_v30, %v11698_v0  ;;  %v5786_v51 = vmul.f32 %v5784_v57, %v11335_v33  ;;  %v12865_v30 = vstv %s11934_s3 }
 0x7c3   : > { %v11705_v5 = vpop.permute.xlu0 %6489 }
 0x7c5   : > { %6051 = vrot.lane.b32.xlu0 %v6047_v53, %s12966_s0  ;;  %5789 = vrot.lane.b32.xlu1 %v5785_v42, %s12967_s2  ;;  %v6075_v42 = vmul.f32 %v12859_v35, %v11698_v0  ;;  %v11950_v35 = vld [vmem:[#allocation4 + $0x6] sm:$0xff] }
 0x7c7   : > { %v11716_v12 = vpop.permute.xlu0 %6511 }
 0x7c9   : > { %6065 = vrot.lane.b32.xlu0 %v6061_v62, %s12967_s2  ;;  %5791 = vrot.lane.b32.xlu1 %v5786_v51, %s12967_s2  ;;  %v6089_v62 = vmul.f32 %v12858_v54, %v11698_v0  ;;  %v5814_v51 = vmul.f32 %v5812_v59, %v11335_v33  ;;  %v11948_v54 = vld [vmem:[#allocation4 + $0xb] sm:$0xff] }
 0x7cb   : > { %v11727_v53 = vpop.permute.xlu0 %6525 }
 0x7cd   : > { %6079 = vrot.lane.b32.xlu0 %v6075_v42, %s12968_s4  ;;  %5805 = vrot.lane.b32.xlu1 %v5800_v58, %s12968_s4  ;;  %v6103_v58 = vmul.f32 %v12855_v40, %v11698_v0  ;;  %v5828_v42 = vmul.f32 %v5826_v17, %v11335_v33  ;;  %v12852_v17 = vstv %s11749_s12 }
 0x7cf   : > { %v11740_v57 = vpop.permute.xlu0 %6539 }
 0x7d1   : > { %6093 = vrot.lane.b32.xlu0 %v6089_v62, %s12969_s6  ;;  %5819 = vrot.lane.b32.xlu1 %v5814_v51, %s12969_s6  ;;  %v6117_v62 = vmul.f32 %v12854_v31, %v11698_v0  ;;  %v5842_v51 = vmul.f32 %v5840_v20, %v11335_v33  ;;  %v5864_v33 = vmul.f32 %v5862_v49, %v11337_v9  ;;  %v12847_v20 = vstv %s11762_s26 }
 0x7d2   : > { %v12857_v31 = vstv %s11889_s28 }
 0x7d3   : > { %v11753_v14 = vpop.permute.xlu0 %6553 }
 0x7d5   : > { %6107 = vrot.lane.b32.xlu0 %v6103_v58, %s12970_s8  ;;  %5833 = vrot.lane.b32.xlu1 %v5828_v42, %s12970_s8  ;;  %v6139_v42 = vmul.f32 %v12852_v17, %v11774_v2  ;;  %v12856_v17 = vstv %s11874_s11 }
 0x7d7   : > { %v11766_v59 = vpop.permute.xlu0 %6567 }
 0x7d9   : > { %6121 = vrot.lane.b32.xlu0 %v6117_v62, %s12974_s10  ;;  %5847 = vrot.lane.b32.xlu1 %v5842_v51, %s12974_s10  ;;  %v6153_v51 = vmul.f32 %v12847_v20, %v11774_v2  ;;  %v12849_v20 = vstv %s11829_s21 }
 0x7db   : > { %v11781_v58 = vpop.permute.xlu0 %6581 }
 0x7dd   : > { %6143 = vrot.lane.b32.xlu0 %v6139_v42, %s12966_s0  ;;  %5869 = vrot.lane.b32.xlu1 %v5864_v33, %s12966_s0  ;;  %v6167_v42 = vmul.f32 %v12844_v3, %v11774_v2  ;;  %v5892_v33 = vmul.f32 %v5890_v29, %v11337_v9  ;;  %v12846_v3 = vstv %s11803_s27 }
 0x7df   : > { %v11794_v62 = vpop.permute.xlu0 %6603 }
 0x7e1   : > { %6157 = vrot.lane.b32.xlu0 %v6153_v51, %s12967_s2  ;;  %5883 = vrot.lane.b32.xlu1 %v5878_v60, %s12967_s2  ;;  %v6181_v60 = vmul.f32 %v12845_v19, %v11774_v2  ;;  %v5906_v51 = vmul.f32 %v5904_v25, %v11337_v9  ;;  %v12848_v19 = vstv %s11816_s18 }
 0x7e3   : > { %v11807_v49 = vpop.permute.xlu0 %6617 }
 0x7e5   : > { %6171 = vrot.lane.b32.xlu0 %v6167_v42, %s12968_s4  ;;  %5897 = vrot.lane.b32.xlu1 %v5892_v33, %s12968_s4  ;;  %v6195_v42 = vmul.f32 %v12846_v3, %v11774_v2  ;;  %v5920_v33 = vmul.f32 %v5918_v16, %v11337_v9  ;;  %v5934_v16 = vmul.f32 %v5932_v43, %v11337_v9  ;;  %v11856_v3 = vld [vmem:[#allocation4 + $0x5] sm:$0xff]  ;;  %v12851_v43 = vstv %s11842_s23 }
 0x7e6   : > { %v5956_v9 = vmul.f32 %v5954_v1, %v11339_v45  ;;  %v5970_v1 = vmul.f32 %v5968_v52, %v11339_v45  ;;  %v6259_v52 = vmul.f32 %v12853_v10, %v11856_v3  ;;  %v6273_v10 = vmul.f32 %v12856_v17, %v11856_v3 }
 0x7e7   : > { %v11820_v15 = vpop.permute.xlu0 %6631  ;;  %v6287_v40 = vmul.f32 %v12857_v31, %v11856_v3  ;;  %v12860_v17 = vstv %s11904_s20 }
 0x7e8   : > { %v6301_v31 = vmul.f32 %v12860_v17, %v11856_v3 }
 0x7e9   : > { %6185 = vrot.lane.b32.xlu0 %v6181_v60, %s12969_s6  ;;  %5911 = vrot.lane.b32.xlu1 %v5906_v51, %s12969_s6  ;;  %v6209_v51 = vmul.f32 %v12848_v19, %v11774_v2  ;;  %v6231_v19 = vmul.f32 %v12849_v20, %v11856_v3  ;;  %v6245_v20 = vmul.f32 %v12851_v43, %v11856_v3 }
 0x7ea   : > { %v5984_v43 = vmul.f32 %v5982_v41, %v11339_v45  ;;  %v5998_v41 = vmul.f32 %v5996_v6, %v11339_v45  ;;  %v6012_v6 = vmul.f32 %v6010_v23, %v11339_v45  ;;  %v6026_v23 = vmul.f32 %v6024_v63, %v11339_v45 }
 0x7eb   : > { %v11833_v29 = vpop.permute.xlu0 %6645  ;;  %v6048_v63 = vmul.f32 %v6046_v39, %v11948_v54  ;;  %v6062_v39 = vmul.f32 %v12990_v22, %v11948_v54  ;;  %v6076_v22 = vmul.f32 %v12992_v38, %v11948_v54  ;;  %v6090_v38 = vmul.f32 %v12994_v27, %v11948_v54 }
 0x7ec   : > { %v6379_v27 = vmul.f32 %v12872_v47, %v11950_v35  ;;  %v13000_v47 = vstv %s11749_s12  ;;  %s12102_s12 = sld [smem:[#allocation10 + $0x4c]] }
 0x7ed   : > { %6199 = vrot.lane.b32.xlu0 %v6195_v42, %s12970_s8  ;;  %5925 = vrot.lane.b32.xlu1 %v5920_v33, %s12970_s8 }
 0x7ef   : > { %v11846_v25 = vpop.permute.xlu1 %6421  ;;  %v11848_v60 = vpop.permute.xlu0 %6659 }
 0x7f0   : > { %12981 = vst [vmem:[#allocation33_spill] sm:$0xff] %v11846_v25 }
 0x7f1   : > { %6213 = vrot.lane.b32.xlu0 %v6209_v51, %s12974_s10  ;;  %5939 = vrot.lane.b32.xlu1 %v5934_v16, %s12974_s10 }
 0x7f2   : > { %v12878_v24 = vstv %s12102_s12 }
 0x7f3   : > { %v11863_v42 = vpop.permute.xlu1 %6435  ;;  %v11865_v33 = vpop.permute.xlu0 %5775 }
 0x7f4   : > { %12982 = vst [vmem:[#allocation34_spill] sm:$0xff] %v11863_v42 }
 0x7f5   : > { %6235 = vrot.lane.b32.xlu0 %v6231_v19, %s12966_s0  ;;  %5961 = vrot.lane.b32.xlu1 %v5956_v9, %s12966_s0 }
 0x7f7   : > { %v11878_v51 = vpop.permute.xlu1 %6449  ;;  %v11880_v16 = vpop.permute.xlu0 %5803 }
 0x7f8   : > { %12983 = vst [vmem:[#allocation35_spill] sm:$0xff] %v11878_v51 }
 0x7f9   : > { %6249 = vrot.lane.b32.xlu0 %v6245_v20, %s12967_s2  ;;  %5975 = vrot.lane.b32.xlu1 %v5970_v1, %s12967_s2 }
 0x7fb   : > { %v11893_v19 = vpop.permute.xlu1 %6463  ;;  %v11895_v9 = vpop.permute.xlu0 %5817 }
 0x7fc   : > { %12984 = vst [vmem:[#allocation36_spill] sm:$0xff] %v11893_v19 }
 0x7fd   : > { %5989 = vrot.lane.b32.xlu1 %v5984_v43, %s12968_s4  ;;  %6263 = vrot.lane.b32.xlu0 %v6259_v52, %s12968_s4 }
 0x7ff   : > { %v11908_v20 = vpop.permute.xlu1 %6477  ;;  %v11910_v1 = vpop.permute.xlu0 %5831 }
 0x800   : > { %12985 = vst [vmem:[#allocation37_spill] sm:$0xff] %v11908_v20 }
 0x801   : > { %6003 = vrot.lane.b32.xlu1 %v5998_v41, %s12969_s6  ;;  %6277 = vrot.lane.b32.xlu0 %v6273_v10, %s12969_s6 }
 0x803   : > { %v11923_v43 = vpop.permute.xlu1 %6491  ;;  %v11925_v52 = vpop.permute.xlu0 %5845 }
 0x804   : > { %12986 = vst [vmem:[#allocation38_spill] sm:$0xff] %v11923_v43 }
 0x805   : > { %6017 = vrot.lane.b32.xlu1 %v6012_v6, %s12970_s8  ;;  %6291 = vrot.lane.b32.xlu0 %v6287_v40, %s12970_s8  ;;  %v12864_v6 = vstv %s11919_s1 }
 0x806   : > { %v6323_v17 = vmul.f32 %v12864_v6, %v11950_v35  ;;  %v6337_v6 = vmul.f32 %v12865_v30, %v11950_v35  ;;  %v6351_v30 = vmul.f32 %v12870_v28, %v11950_v35  ;;  %v6365_v28 = vmul.f32 %v12871_v55, %v11950_v35 }
 0x807   : > { %v11938_v10 = vpop.permute.xlu1 %6513  ;;  %v11940_v41 = vpop.permute.xlu0 %5867  ;;  %v12998_v55 = vstv %s11736_s19  ;;  %s12057_s19 = sld [smem:[#allocation10 + $0x49]] }
 0x808   : > { %12987 = vst [vmem:[#allocation39_spill] sm:$0xff] %v11938_v10  ;;  %v12874_v10 = vstv %s12026_s17 }
 0x809   : > { %6031 = vrot.lane.b32.xlu1 %v6026_v23, %s12974_s10  ;;  %6305 = vrot.lane.b32.xlu0 %v6301_v31, %s12974_s10 }
 0x80b   : > { %v11957_v40 = vpop.permute.xlu1 %6527  ;;  %v11959_v45 = vpop.permute.xlu0 %5881 }
 0x80c   : > { %12988 = vst [vmem:[#allocation40_spill] sm:$0xff] %v11957_v40 }
 0x80d   : > { %6053 = vrot.lane.b32.xlu1 %v6048_v63, %s12966_s0  ;;  %6327 = vrot.lane.b32.xlu0 %v6323_v17, %s12966_s0  ;;  %v12876_v43 = vstv %s12057_s19 }
 0x80f   : > { %v11972_v31 = vpop.permute.xlu1 %6541  ;;  %v11974_v23 = vpop.permute.xlu0 %5895 }
 0x810   : > { %12989 = vst [vmem:[#allocation41_spill] sm:$0xff] %v11972_v31  ;;  %v12873_v31 = vstv %s11998_s25 }
 0x811   : > { %6067 = vrot.lane.b32.xlu1 %v6062_v39, %s12967_s2  ;;  %6341 = vrot.lane.b32.xlu0 %v6337_v6, %s12967_s2 }
 0x813   : > { %v11987_v17 = vpop.permute.xlu1 %6555  ;;  %v11989_v63 = vpop.permute.xlu0 %5909 }
 0x814   : > { %12991 = vst [vmem:[#allocation42_spill] sm:$0xff] %v11987_v17 }
 0x815   : > { %6081 = vrot.lane.b32.xlu1 %v6076_v22, %s12968_s4  ;;  %6355 = vrot.lane.b32.xlu0 %v6351_v30, %s12968_s4 }
 0x817   : > { %v12002_v6 = vpop.permute.xlu1 %6569  ;;  %v12004_v39 = vpop.permute.xlu0 %5923 }
 0x818   : > { %12993 = vst [vmem:[#allocation43_spill] sm:$0xff] %v12002_v6  ;;  %v12996_v6 = vstv %s11723_s24  ;;  %s12087_s24 = sld [smem:[#allocation10 + $0x4b]] }
 0x819   : > { %6095 = vrot.lane.b32.xlu1 %v6090_v38, %s12969_s6  ;;  %6369 = vrot.lane.b32.xlu0 %v6365_v28, %s12969_s6  ;;  %v6104_v17 = vmul.f32 %v12996_v6, %v11948_v54  ;;  %v6393_v6 = vmul.f32 %v12873_v31, %v11950_v35  ;;  %v12054_v31 = vld [vmem:[#allocation4 + $0x1b] sm:$0xff] }
 0x81a   : > { %13002 = vst [vmem:[#allocation54_spill] sm:$0xff] %v12054_v31 }
 0x81b   : > { %v12015_v22 = vpop.permute.xlu1 %6583  ;;  %v12017_v30 = vpop.permute.xlu0 %5937 }
 0x81c   : > { %12995 = vst [vmem:[#allocation51_spill] sm:$0xff] %v12015_v22  ;;  %v6118_v22 = vmul.f32 %v12998_v55, %v11948_v54  ;;  %v13001_v55 = vstv %s11470_s13  ;;  %s12072_s13 = sld [smem:[#allocation10 + $0x4a]] }
 0x81d   : > { %6109 = vrot.lane.b32.xlu1 %v6104_v17, %s12970_s8  ;;  %6383 = vrot.lane.b32.xlu0 %v6379_v27, %s12970_s8  ;;  %v6669_v40 = vmul.f32 %v13001_v55, %v11385_v18  ;;  %v6691_v18 = vmul.f32 %v12874_v10, %v12054_v31  ;;  %v12875_v55 = vstv %s12040_s22 }
 0x81e   : > { %v6705_v10 = vmul.f32 %v12875_v55, %v12054_v31  ;;  %v6719_v55 = vmul.f32 %v12876_v43, %v12054_v31  ;;  %v13010_v43 = vstv %s11306_s30  ;;  %v12879_v42 = vstv %s12087_s24  ;;  %s12132_s30 = sld [smem:[#allocation10 + $0x4f]] }
 0x81f   : > { %v12030_v28 = vpop.permute.xlu1 %6605  ;;  %v12032_v38 = vpop.permute.xlu0 %5959  ;;  %v5765_v51 = vmul.f32 %v13010_v43, %v11477_v26  ;;  %v6747_v26 = vmul.f32 %v12879_v42, %v12054_v31 }
 0x820   : > { %12997 = vst [vmem:[#allocation52_spill] sm:$0xff] %v12030_v28  ;;  %v6140_v28 = vmul.f32 %v13000_v47, %v11427_v4  ;;  %v13004_v47 = vstv %s11762_s26  ;;  %s12118_s26 = sld [smem:[#allocation10 + $0x4e]] }
 0x821   : > { %6123 = vrot.lane.b32.xlu1 %v6118_v22, %s12974_s10  ;;  %6397 = vrot.lane.b32.xlu0 %v6393_v6, %s12974_s10 }
 0x822   : > { %v12877_v20 = vstv %s12072_s13 }
 0x823   : > { %v12044_v17 = vpop.permute.xlu1 %6619  ;;  %v12046_v27 = vpop.permute.xlu0 %5973 }
 0x824   : > { %12999 = vst [vmem:[#allocation53_spill] sm:$0xff] %v12044_v17  ;;  %v6154_v17 = vmul.f32 %v13004_v47, %v11427_v4 }
 0x825   : > { %6145 = vrot.lane.b32.xlu1 %v6140_v28, %s12966_s0  ;;  %6673 = vrot.lane.b32.xlu0 %v6669_v40, %s12974_s10 }
 0x827   : > { %v12061_v22 = vpop.permute.xlu1 %6633  ;;  %v12063_v6 = vpop.permute.xlu0 %5987 }
 0x828   : > { %13003 = vst [vmem:[#allocation55_spill] sm:$0xff] %v12061_v22  ;;  %v13006_v22 = vstv %s11777_s9  ;;  %s13012_s9 = sld [smem:[#allocation44_spill]] }
 0x829   : > { %6159 = vrot.lane.b32.xlu1 %v6154_v17, %s12967_s2  ;;  %6695 = vrot.lane.b32.xlu0 %v6691_v18, %s12966_s0  ;;  %v6168_v47 = vmul.f32 %v13006_v22, %v11427_v4  ;;  %v13008_v22 = vstv %s11790_s29  ;;  %s12149_s29 = sld [smem:[#allocation10 + $0x50]] }
 0x82b   : > { %v12076_v40 = vpop.permute.xlu1 %6647  ;;  %v12078_v28 = vpop.permute.xlu0 %6001 }
 0x82c   : > { %13005 = vst [vmem:[#allocation56_spill] sm:$0xff] %v12076_v40  ;;  %v6182_v40 = vmul.f32 %v13008_v22, %v11427_v4  ;;  %v6733_v22 = vmul.f32 %v12877_v20, %v12054_v31  ;;  %v13011_v20 = vstv %s11816_s18  ;;  %s12182_s18 = sld [smem:[#allocation10 + $0x52]] }
 0x82d   : > { %6173 = vrot.lane.b32.xlu1 %v6168_v47, %s12968_s4  ;;  %6709 = vrot.lane.b32.xlu0 %v6705_v10, %s12967_s2  ;;  %v6210_v25 = vmul.f32 %v13011_v20, %v11427_v4 }
 0x82f   : > { %v12091_v17 = vpop.permute.xlu1 %6661  ;;  %v12093_v18 = vpop.permute.xlu0 %6015 }
 0x830   : > { %13007 = vst [vmem:[#allocation57_spill] sm:$0xff] %v12091_v17  ;;  %v13009_v17 = vstv %s11803_s27  ;;  %s12167_s27 = sld [smem:[#allocation10 + $0x51]] }
 0x831   : > { %6187 = vrot.lane.b32.xlu1 %v6182_v40, %s12969_s6  ;;  %6723 = vrot.lane.b32.xlu0 %v6719_v55, %s12968_s4  ;;  %v6196_v19 = vmul.f32 %v13009_v17, %v11427_v4  ;;  %v5781_v55 = vadd.f32 %v11865_v33, %v5765_v51  ;;  %v13013_v4 = vstv %s11829_s21  ;;  %s13018_s21 = sld [smem:[#allocation45_spill]] }
 0x832   : > { %v6232_v20 = vmul.f32 %v13013_v4, %v11429_v37  ;;  %v13014_v4 = vstv %s11842_s23  ;;  %s12197_s23 = sld [smem:[#allocation10 + $0x53]] }
 0x833   : > { %v5778_v10 = vpop.permute.xlu1 %5777  ;;  %v12106_v47 = vpop.permute.xlu0 %6029 }
 0x835   : > { %6201 = vrot.lane.b32.xlu1 %v6196_v19, %s12970_s8  ;;  %6737 = vrot.lane.b32.xlu0 %v6733_v22, %s12969_s6  ;;  %v6761_v22 = vmul.f32 %v12878_v24, %v12054_v31  ;;  %v6246_v24 = vmul.f32 %v13014_v4, %v11429_v37 }
 0x837   : > { %v5790_v40 = vpop.permute.xlu1 %5789  ;;  %v12123_v17 = vpop.permute.xlu0 %6051 }
 0x838   : > { %v5795_v43 = vadd.f32 %v5790_v40, %v5781_v55  ;;  %v12881_v40 = vstv %s12118_s26 }
 0x839   : > { %6215 = vrot.lane.b32.xlu1 %v6210_v25, %s12974_s10  ;;  %6751 = vrot.lane.b32.xlu0 %v6747_v26, %s12970_s8  ;;  %v12146_v25 = vld [vmem:[#allocation4 + $0x1c] sm:$0xff] }
 0x83a   : > { %v5809_v33 = vadd.f32 %v11880_v16, %v5795_v43 }
 0x83b   : > { %v5792_v51 = vpop.permute.xlu1 %5791  ;;  %v12137_v19 = vpop.permute.xlu0 %6065 }
 0x83c   : > { %v5823_v55 = vadd.f32 %v11895_v9, %v5809_v33  ;;  %v6783_v9 = vmul.f32 %v12881_v40, %v12146_v25  ;;  %v13015_v33 = vstv %s13012_s9  ;;  %v13016_v40 = vstv %s11859_s15  ;;  %s12212_s15 = sld [smem:[#allocation10 + $0x55]]  ;;  %s12309_s9 = sld [smem:[#allocation10 + $0x5c]] }
 0x83d   : > { %6237 = vrot.lane.b32.xlu1 %v6232_v20, %s12966_s0  ;;  %6765 = vrot.lane.b32.xlu0 %v6761_v22, %s12974_s10  ;;  %v5857_v42 = vmul.f32 %v13015_v33, %v11558_v34  ;;  %v6796_v22 = vstv %s12132_s30  ;;  %v6260_v34 = vmul.f32 %v13016_v40, %v11429_v37  ;;  %v6810_v33 = vstv %s12149_s29  ;;  %s13075_s30 = sld [smem:[#allocation22_spill]] }
 0x83e   : > { %v5837_v16 = vadd.f32 %v11910_v1, %v5823_v55  ;;  %v5782_v1 = vadd.f32 %v5778_v10, %v11345_v13 }
 0x83f   : > { %v5806_v26 = vpop.permute.xlu1 %5805  ;;  %v12154_v43 = vpop.permute.xlu0 %6079 }
 0x840   : > { %v5851_v20 = vadd.f32 %v11925_v52, %v5837_v16  ;;  %v6797_v52 = vmul.f32 %v6796_v22, %v12146_v25 }
 0x841   : > { %6251 = vrot.lane.b32.xlu1 %v6246_v24, %s12967_s2  ;;  %6787 = vrot.lane.b32.xlu0 %v6783_v9, %s12966_s0  ;;  %v5796_v24 = vadd.f32 %v5792_v51, %v5782_v1  ;;  %v13017_v9 = vstv %s11874_s11  ;;  %s12230_s11 = sld [smem:[#allocation10 + $0x56]] }
 0x842   : > { %v5859_v55 = vadd.f32 %v5857_v42, %v5851_v20  ;;  %v6274_v20 = vmul.f32 %v13017_v9, %v11429_v37 }
 0x843   : > { %v5820_v4 = vpop.permute.xlu1 %5819  ;;  %v12172_v31 = vpop.permute.xlu0 %6093  ;;  %v5810_v42 = vadd.f32 %v5806_v26, %v5796_v24  ;;  %p13078_p12 = scmp.ne.s32.totalorder %s13075_s30, 0 }
 0x844   : > { %v5873_v16 = vadd.f32 %v11940_v41, %v5859_v55  ;;  %v6811_v41 = vmul.f32 %v6810_v33, %v12146_v25  ;;  %v6824_v55 = vstv %s12167_s27 }
 0x845   : > { %6265 = vrot.lane.b32.xlu1 %v6260_v34, %s12968_s4  ;;  %6801 = vrot.lane.b32.xlu0 %v6797_v52, %s12967_s2  ;;  %v5824_v1 = vadd.f32 %v5820_v4, %v5810_v42  ;;  %v6825_v4 = vmul.f32 %v6824_v55, %v12146_v25  ;;  %v6838_v42 = vstv %s12182_s18 }
 0x846   : > { %v5887_v13 = vadd.f32 %v11959_v45, %v5873_v16  ;;  %v13019_v16 = vstv %s11889_s28  ;;  %s12232_s28 = sld [smem:[#allocation10 + $0x15]] }
 0x847   : > { %v5834_v10 = vpop.permute.xlu1 %5833  ;;  %v12187_v40 = vpop.permute.xlu0 %6107 }
 0x848   : > { %v5901_v51 = vadd.f32 %v11974_v23, %v5887_v13  ;;  %v5838_v26 = vadd.f32 %v5834_v10, %v5824_v1  ;;  %v6288_v23 = vmul.f32 %v13019_v16, %v11429_v37 }
 0x849   : > { %6279 = vrot.lane.b32.xlu1 %v6274_v20, %s12969_s6  ;;  %6815 = vrot.lane.b32.xlu0 %v6811_v41, %s12968_s4 }
 0x84a   : > { %v5915_v45 = vadd.f32 %v11989_v63, %v5901_v51  ;;  %v13020_v63 = vstv %s13018_s21  ;;  %s12352_s21 = sld [smem:[#allocation10 + $0x5f]] }
 0x84b   : > { %v5848_v34 = vpop.permute.xlu1 %5847  ;;  %v12202_v52 = vpop.permute.xlu0 %6121  ;;  %v5949_v10 = vmul.f32 %v13020_v63, %v11620_v32 }
 0x84c   : > { %v5929_v24 = vadd.f32 %v12004_v39, %v5915_v45  ;;  %v5852_v13 = vadd.f32 %v5848_v34, %v5838_v26  ;;  %v13021_v39 = vstv %s11904_s20  ;;  %v6839_v45 = vmul.f32 %v6838_v42, %v12146_v25  ;;  %s12249_s20 = sld [smem:[#allocation10 + $0x57]] }
 0x84d   : > { %6293 = vrot.lane.b32.xlu1 %v6288_v23, %s12970_s8  ;;  %6829 = vrot.lane.b32.xlu0 %v6825_v4, %s12969_s6  ;;  %v6302_v1 = vmul.f32 %v13021_v39, %v11429_v37  ;;  %v6852_v34 = vstv %s12197_s23 }
 0x84e   : > { %v5943_v9 = vadd.f32 %v12017_v30, %v5929_v24  ;;  %v5860_v20 = vadd.f32 %v11350_v11, %v5852_v13  ;;  %v13022_v30 = vstv %s11919_s1  ;;  %v6853_v23 = vmul.f32 %v6852_v34, %v12146_v25  ;;  %v12246_v24 = vld [vmem:[#allocation4 + $0x1d] sm:$0xff]  ;;  %s12264_s1 = sld [smem:[#allocation10 + $0x58]] }
 0x84f   : > { %v5870_v41 = vpop.permute.xlu1 %5869  ;;  %v12221_v51 = vpop.permute.xlu0 %6143  ;;  %v6324_v16 = vmul.f32 %v13022_v30, %v11432_v7  ;;  %v6874_v13 = vstv %s12212_s15  ;;  %s13076_s15 = sld [smem:[#allocation68_spill]] }
 0x850   : > { %v5951_v26 = vadd.f32 %v5949_v10, %v5943_v9  ;;  %v13023_v9 = vstv %s11934_s3  ;;  %v6875_v39 = vmul.f32 %v6874_v13, %v12246_v24  ;;  %s12283_s3 = sld [smem:[#allocation10 + $0x59]] }
 0x851   : > { %6307 = vrot.lane.b32.xlu1 %v6302_v1, %s12974_s10  ;;  %6843 = vrot.lane.b32.xlu0 %v6839_v45, %s12970_s8  ;;  %v6888_v45 = vstv %s12230_s11 }
 0x852   : > { %v5965_v11 = vadd.f32 %v12032_v38, %v5951_v26  ;;  %v6040_v26 = vstv %s12232_s28 }
 0x853   : > { %v5884_v32 = vpop.permute.xlu1 %5883  ;;  %v12237_v37 = vpop.permute.xlu0 %6157 }
 0x854   : > { %v5979_v4 = vadd.f32 %v12046_v27, %v5965_v11  ;;  %v6338_v27 = vmul.f32 %v13023_v9, %v11432_v7  ;;  %v5874_v11 = vadd.f32 %v5870_v41, %v5860_v20 }
 0x855   : > { %6329 = vrot.lane.b32.xlu1 %v6324_v16, %s12966_s0  ;;  %6857 = vrot.lane.b32.xlu0 %v6853_v23, %s12974_s10  ;;  %v13024_v23 = vstv %s11953_s5  ;;  %s12297_s5 = sld [smem:[#allocation10 + $0x5a]]  ;;  %s13077_s11 = smov %s13076_s15 }
 0x856   : > { %v5993_v38 = vadd.f32 %v12063_v6, %v5979_v4  ;;  %v6352_v4 = vmul.f32 %v13024_v23, %v11432_v7  ;;  %v13025_v23 = vstv %s11968_s7  ;;  %s13027_s7 = sld [smem:[#allocation46_spill]] }
 0x857   : > { %v5898_v63 = vpop.permute.xlu1 %5897  ;;  %v12254_v10 = vpop.permute.xlu0 %6171 }
 0x858   : > { %v6007_v1 = vadd.f32 %v12078_v28, %v5993_v38  ;;  %v6889_v28 = vmul.f32 %v6888_v45, %v12246_v24  ;;  %v6041_v38 = vmul.f32 %v6040_v26, %v11698_v0  ;;  %v6366_v0 = vmul.f32 %v13025_v23, %v11432_v7 }
 0x859   : > { %6343 = vrot.lane.b32.xlu1 %v6338_v27, %s12967_s2  ;;  %6879 = vrot.lane.b32.xlu0 %v6875_v39, %s12966_s0  ;;  %v5888_v27 = vadd.f32 %v5884_v32, %v5874_v11  ;;  %v6916_v11 = vstv %s12264_s1 }
 0x85a   : > { %v6021_v6 = vadd.f32 %v12093_v18, %v6007_v1  ;;  %v6902_v18 = vstv %s12249_s20 }
 0x85b   : > { %v5912_v30 = vpop.permute.xlu1 %5911  ;;  %v12270_v16 = vpop.permute.xlu0 %6185  ;;  %v5902_v41 = vadd.f32 %v5898_v63, %v5888_v27 }
 0x85c   : > { %v6035_v9 = vadd.f32 %v12106_v47, %v6021_v6  ;;  %v6903_v47 = vmul.f32 %v6902_v18, %v12246_v24 }
 0x85d   : > { %6357 = vrot.lane.b32.xlu1 %v6352_v4, %s12968_s4  ;;  %6893 = vrot.lane.b32.xlu0 %v6889_v28, %s12967_s2  ;;  %v5916_v6 = vadd.f32 %v5912_v30, %v5902_v41  ;;  %v6930_v41 = vstv %s12283_s3  ;;  %s9509_s3 = smov [#allocation11]  }
 0x85e   : > { %v6043_v20 = vadd.f32 %v6041_v38, %v6035_v9  ;;  %v9369_v38 = vld [vmem:[#allocation4 + $0xe] sm:$0xff]  ;;  %v13026_v9 = vstv %s11983_s14  ;;  %s12322_s14 = sld [smem:[#allocation10 + $0x5d]] }
 0x85f   : > { %v5926_v39 = vpop.permute.xlu1 %5925  ;;  %v12287_v1 = vpop.permute.xlu0 %6199  ;;  %v6380_v27 = vmul.f32 %v9369_v38, %v13026_v9 }
 0x860   : > { %v6057_v32 = vadd.f32 %v12123_v17, %v6043_v20  ;;  %v5930_v4 = vadd.f32 %v5926_v39, %v5916_v6  ;;  %v6917_v17 = vmul.f32 %v6916_v11, %v12246_v24 }
 0x861   : > { %6371 = vrot.lane.b32.xlu1 %v6366_v0, %s12969_s6  ;;  %6907 = vrot.lane.b32.xlu0 %v6903_v47, %s12968_s4  ;;  %v13028_v47 = vstv %s11998_s25  ;;  %s12338_s25 = sld [smem:[#allocation10 + $0x5e]] }
 0x862   : > { %v6071_v63 = vadd.f32 %v12137_v19, %v6057_v32  ;;  %v6394_v32 = vmul.f32 %v9369_v38, %v13028_v47 }
 0x863   : > { %v5940_v28 = vpop.permute.xlu1 %5939  ;;  %v6214_v7 = vpop.permute.xlu0 %6213 }
 0x864   : > { %v6085_v30 = vadd.f32 %v12154_v43, %v6071_v63  ;;  %v5944_v20 = vadd.f32 %v5940_v28, %v5930_v4  ;;  %v6931_v43 = vmul.f32 %v6930_v41, %v12246_v24  ;;  %v6944_v63 = vstv %s12297_s5  ;;  %s9428_s5 = sshll.u32 %s9509_s3, 4  ;;  %s9429_s5 = int_to_ptr.vmem [resolvable:$false] %s9428_s5 }
 0x865   : > { %6385 = vrot.lane.b32.xlu1 %v6380_v27, %s12970_s8  ;;  %6921 = vrot.lane.b32.xlu0 %v6917_v17, %s12969_s6  ;;  %v12333_v27 = vld [vmem:[#allocation4 + $0x23] sm:$0xff] }
 0x866   : > { %v6099_v19 = vadd.f32 %v12172_v31, %v6085_v30  ;;  %v5952_v39 = vadd.f32 %v11355_v8, %v5944_v20  ;;  %v13029_v31 = vstv %s13027_s7  ;;  %v12335_v17 = vld [vmem:[#allocation4 + $0x1e] sm:$0xff]  ;;  %v6966_v30 = vstv %s12309_s9  ;;  %s12365_s7 = sld [smem:[#allocation10 + $0x60]]  ;;  %s9430_s9 = scalar_lea.vmem %s9429_s5, 8192 }
 0x867   : > { %v5962_v23 = vpop.permute.xlu1 %5961  ;;  %v6236_v0 = vpop.permute.xlu0 %6235  ;;  %v6133_v8 = vmul.f32 %v13029_v31, %v11774_v2 }
 0x868   : > { %v6113_v6 = vadd.f32 %v12187_v40, %v6099_v19  ;;  %v6945_v40 = vmul.f32 %v6944_v63, %v12246_v24  ;;  %v13030_v19 = vstv %s12026_s17  ;;  %s13031_s17 = sld [smem:[#allocation47_spill]] }
 0x869   : > { %6399 = vrot.lane.b32.xlu1 %v6394_v32, %s12974_s10  ;;  %6935 = vrot.lane.b32.xlu0 %v6931_v43, %s12970_s8  ;;  %v6692_v47 = vmul.f32 %v13030_v19, %v12333_v27  ;;  %v6967_v32 = vmul.f32 %v6966_v30, %v12335_v17  ;;  %v6994_v19 = vstv %s12338_s25 }
 0x86a   : > { %v6127_v4 = vadd.f32 %v12202_v52, %v6113_v6  ;;  %v6980_v6 = vstv %s12322_s14 }
 0x86b   : > { %v5976_v28 = vpop.permute.xlu1 %5975  ;;  %v6250_v38 = vpop.permute.xlu0 %6249 }
 0x86c   : > { %v6135_v9 = vadd.f32 %v6133_v8, %v6127_v4  ;;  %v13032_v4 = vstv %s12040_s22  ;;  %s12380_s22 = sld [smem:[#allocation10 + $0x61]] }
 0x86d   : > { %6675 = vrot.lane.b32.xlu1 %v11502_v56, %s12974_s10  ;;  %6949 = vrot.lane.b32.xlu0 %v6945_v40, %s12974_s10  ;;  %v6706_v40 = vmul.f32 %v13032_v4, %v12333_v27 }
 0x86e   : > { %v6149_v2 = vadd.f32 %v12221_v51, %v6135_v9  ;;  %v5966_v51 = vadd.f32 %v5962_v23, %v5952_v39 }
 0x86f   : > { %v5990_v52 = vpop.permute.xlu1 %5989  ;;  %v6264_v20 = vpop.permute.xlu0 %6263 }
 0x870   : > { %v6163_v43 = vadd.f32 %v12237_v37, %v6149_v2  ;;  %v6981_v37 = vmul.f32 %v6980_v6, %v12335_v17  ;;  %v5980_v2 = vadd.f32 %v5976_v28, %v5966_v51  ;;  %v13034_v28 = vstv %s13031_s17 }
 0x871   : > { %6697 = vrot.lane.b32.xlu1 %v6692_v47, %s12966_s0  ;;  %6971 = vrot.lane.b32.xlu0 %v6967_v32, %s12966_s0  ;;  %v13033_v32 = vstv %s12057_s19  ;;  %s13036_s19 = sld [smem:[#allocation48_spill]] }
 0x872   : > { %v6177_v56 = vadd.f32 %v12254_v10, %v6163_v43  ;;  %v5994_v39 = vadd.f32 %v5990_v52, %v5980_v2  ;;  %v6720_v43 = vmul.f32 %v13033_v32, %v12333_v27  ;;  %v13035_v2 = vstv %s12072_s13  ;;  %s12419_s13 = sld [smem:[#allocation10 + $0x31]] }
 0x873   : > { %v6004_v31 = vpop.permute.xlu1 %6003  ;;  %v6278_v8 = vpop.permute.xlu0 %6277  ;;  %v7022_v32 = vstv %s12365_s7 }
 0x874   : > { %v6191_v9 = vadd.f32 %v12270_v16, %v6177_v56  ;;  %v6995_v16 = vmul.f32 %v6994_v19, %v12335_v17  ;;  %v6225_v56 = vmul.f32 %v13034_v28, %v11856_v3  ;;  %v6008_v4 = vadd.f32 %v6004_v31, %v5994_v39 }
 0x875   : > { %6711 = vrot.lane.b32.xlu1 %v6706_v40, %s12967_s2  ;;  %6985 = vrot.lane.b32.xlu0 %v6981_v37, %s12967_s2  ;;  %v7008_v40 = vstv %s12352_s21  ;;  %v6734_v3 = vmul.f32 %v13035_v2, %v12333_v27 }
 0x876   : > { %v6205_v10 = vadd.f32 %v12287_v1, %v6191_v9 }
 0x877   : > { %v6018_v23 = vpop.permute.xlu1 %6017  ;;  %v6292_v47 = vpop.permute.xlu0 %6291 }
 0x878   : > { %v6219_v51 = vadd.f32 %v6214_v7, %v6205_v10  ;;  %v6022_v52 = vadd.f32 %v6018_v23, %v6008_v4  ;;  %v7009_v7 = vmul.f32 %v7008_v40, %v12335_v17  ;;  %v6042_v10 = vmul.f32 %v6040_v26, %v11948_v54 }
 0x879   : > { %6725 = vrot.lane.b32.xlu1 %v6720_v43, %s12968_s4  ;;  %6999 = vrot.lane.b32.xlu0 %v6995_v16, %s12968_s4  ;;  %v7036_v26 = vstv %s12380_s22 }
 0x87a   : > { %v6227_v1 = vadd.f32 %v6225_v56, %v6219_v51  ;;  %v13037_v56 = vstv %s12087_s24  ;;  %v7037_v2 = vmul.f32 %v7036_v26, %v12335_v17  ;;  %s12434_s24 = sld [smem:[#allocation10 + $0x38]] }
 0x87b   : > { %v6032_v37 = vpop.permute.xlu1 %6031  ;;  %v6306_v9 = vpop.permute.xlu0 %6305  ;;  %v6748_v51 = vmul.f32 %v13037_v56, %v12333_v27 }
 0x87c   : > { %v6241_v31 = vadd.f32 %v6236_v0, %v6227_v1  ;;  %v6036_v39 = vadd.f32 %v6032_v37, %v6022_v52  ;;  %v7023_v0 = vmul.f32 %v7022_v32, %v12335_v17  ;;  %v13038_v52 = vstv %s12102_s12  ;;  %s12464_s12 = sld [smem:[#allocation10 + $0x3f]] }
 0x87d   : > { %6739 = vrot.lane.b32.xlu1 %v6734_v3, %s12969_s6  ;;  %7013 = vrot.lane.b32.xlu0 %v7009_v7, %s12969_s6  ;;  %v6762_v37 = vmul.f32 %v13038_v52, %v12333_v27 }
 0x87e   : > { %v6255_v23 = vadd.f32 %v6250_v38, %v6241_v31  ;;  %v6044_v43 = vadd.f32 %v6042_v10, %v6036_v39  ;;  %v9370_v39 = vld [vmem:[#allocation4 + $0x24] sm:$0xff] }
 0x87f   : > { %v6054_v16 = vpop.permute.xlu1 %6053  ;;  %v6328_v28 = vpop.permute.xlu0 %6327  ;;  %v6798_v52 = vmul.f32 %v9370_v39, %v6796_v22 }
 0x880   : > { %v6269_v54 = vadd.f32 %v6264_v20, %v6255_v23  ;;  %v13039_v20 = vstv %s13036_s19  ;;  %v13040_v23 = vstv %s12118_s26  ;;  %s12488_s26 = sld [smem:[#allocation10 + $0x46]] }
 0x881   : > { %6753 = vrot.lane.b32.xlu1 %v6748_v51, %s12970_s8  ;;  %7027 = vrot.lane.b32.xlu0 %v7023_v0, %s12970_s8  ;;  %v6317_v7 = vmul.f32 %v13039_v20, %v11950_v35  ;;  %v6784_v56 = vmul.f32 %v9370_v39, %v13040_v23 }
 0x882   : > { %v6283_v4 = vadd.f32 %v6278_v8, %v6269_v54 }
 0x883   : > { %v6068_v1 = vpop.permute.xlu1 %6067  ;;  %v6342_v38 = vpop.permute.xlu0 %6341 }
 0x884   : > { %v6297_v3 = vadd.f32 %v6292_v47, %v6283_v4  ;;  %v6058_v47 = vadd.f32 %v6054_v16, %v6044_v43  ;;  %v6408_v16 = vstv %s12419_s13 }
 0x885   : > { %6767 = vrot.lane.b32.xlu1 %v6762_v37, %s12974_s10  ;;  %7041 = vrot.lane.b32.xlu0 %v7037_v2, %s12974_s10 }
 0x886   : > { %v6311_v31 = vadd.f32 %v6306_v9, %v6297_v3  ;;  %v6072_v35 = vadd.f32 %v6068_v1, %v6058_v47 }
 0x887   : > { %v6082_v10 = vpop.permute.xlu1 %6081  ;;  %v6356_v8 = vpop.permute.xlu0 %6355 }
 0x888   : > { %v6319_v51 = vadd.f32 %v6317_v7, %v6311_v31  ;;  %v6086_v37 = vadd.f32 %v6082_v10, %v6072_v35  ;;  %v6812_v7 = vmul.f32 %v9370_v39, %v6810_v33  ;;  %v9371_v10 = vld [vmem:[#allocation4 + $0x18] sm:$0xff] }
 0x889   : > { %6789 = vrot.lane.b32.xlu1 %v6784_v56, %s12966_s0 }
 0x88a   : > { %v6333_v0 = vadd.f32 %v6328_v28, %v6319_v51 }
 0x88b   : > { %v6096_v54 = vpop.permute.xlu1 %6095  ;;  %v6370_v4 = vpop.permute.xlu0 %6369 }
 0x88c   : > { %v6347_v9 = vadd.f32 %v6342_v38, %v6333_v0  ;;  %v6100_v31 = vadd.f32 %v6096_v54, %v6086_v37  ;;  %v6826_v38 = vmul.f32 %v9370_v39, %v6824_v55  ;;  %v6840_v55 = vmul.f32 %v9370_v39, %v6838_v42 }
 0x88d   : > { %6803 = vrot.lane.b32.xlu1 %v6798_v52, %s12967_s2  ;;  %v6500_v42 = vstv %s12434_s24 }
 0x88e   : > { %v6361_v2 = vadd.f32 %v6356_v8, %v6347_v9  ;;  %v6409_v8 = vmul.f32 %v9371_v10, %v6408_v16 }
 0x88f   : > { %v6110_v3 = vpop.permute.xlu1 %6109  ;;  %v6384_v20 = vpop.permute.xlu0 %6383 }
 0x890   : > { %v6375_v43 = vadd.f32 %v6370_v4, %v6361_v2  ;;  %v6114_v28 = vadd.f32 %v6110_v3, %v6100_v31 }
 0x891   : > { %6817 = vrot.lane.b32.xlu1 %v6812_v7, %s12968_s4 }
 0x892   : > { %v6389_v22 = vadd.f32 %v6384_v20, %v6375_v43  ;;  %v9372_v20 = vld [vmem:[#allocation4 + $0x25] sm:$0xff] }
 0x893   : > { %v6124_v1 = vpop.permute.xlu1 %6123  ;;  %v6398_v23 = vpop.permute.xlu0 %6397  ;;  %v6876_v7 = vmul.f32 %v9372_v20, %v6874_v13 }
 0x894   : > { %v6128_v56 = vadd.f32 %v6124_v1, %v6114_v28  ;;  %v6403_v51 = vadd.f32 %v6398_v23, %v6389_v22  ;;  %v6890_v28 = vmul.f32 %v9372_v20, %v6888_v45 }
 0x895   : > { %6831 = vrot.lane.b32.xlu1 %v6826_v38, %s12969_s6 }
 0x896   : > { %v6136_v33 = vadd.f32 %v11447_v44, %v6128_v56  ;;  %v6411_v47 = vadd.f32 %v6409_v8, %v6403_v51  ;;  %v6854_v44 = vmul.f32 %v9370_v39, %v6852_v34  ;;  %v9373_v34 = vld [vmem:[#allocation4 + $0x19] sm:$0xff] }
 0x897   : > { %v6146_v0 = vpop.permute.xlu1 %6145  ;;  %v12436_v54 = vpop.permute.xlu0 %6673 }
 0x898   : > { %v6425_v4 = vadd.f32 %v11638_v48, %v6411_v47  ;;  %v6150_v31 = vadd.f32 %v6146_v0, %v6136_v33 }
 0x899   : > { %6845 = vrot.lane.b32.xlu1 %v6840_v55, %s12970_s8  ;;  %v6592_v55 = vstv %s12464_s12 }
 0x89a   : > { %v6439_v52 = vadd.f32 %v11651_v36, %v6425_v4 }
 0x89b   : > { %v6160_v35 = vpop.permute.xlu1 %6159  ;;  %v12443_v9 = vpop.permute.xlu0 %6695 }
 0x89c   : > { %v6453_v37 = vadd.f32 %v11664_v61, %v6439_v52  ;;  %v6501_v61 = vmul.f32 %v9373_v34, %v6500_v42  ;;  %v6164_v1 = vadd.f32 %v6160_v35, %v6150_v31 }
 0x89d   : > { %6859 = vrot.lane.b32.xlu1 %v6854_v44, %s12974_s10  ;;  %v9374_v44 = vld [vmem:[#allocation4 + $0x1a] sm:$0xff] }
 0x89e   : > { %v6467_v2 = vadd.f32 %v11677_v46, %v6453_v37 }
 0x89f   : > { %v6174_v3 = vpop.permute.xlu1 %6173  ;;  %v12451_v48 = vpop.permute.xlu0 %6709 }
 0x8a0   : > { %v6481_v36 = vadd.f32 %v11690_v21, %v6467_v2  ;;  %v6178_v13 = vadd.f32 %v6174_v3, %v6164_v1 }
 0x8a1   : > { %6881 = vrot.lane.b32.xlu1 %v6876_v7, %s12966_s0  ;;  %v9375_v7 = vld [vmem:[#allocation4 + $0x26] sm:$0xff] }
 0x8a2   : > { %v6495_v39 = vadd.f32 %v11705_v5, %v6481_v36  ;;  %v6904_v5 = vmul.f32 %v9372_v20, %v6902_v18  ;;  %v6968_v36 = vmul.f32 %v9375_v7, %v6966_v30  ;;  %v6982_v31 = vmul.f32 %v9375_v7, %v6980_v6 }
 0x8a3   : > { %v6188_v43 = vpop.permute.xlu1 %6187  ;;  %v12460_v46 = vpop.permute.xlu0 %6723 }
 0x8a4   : > { %v6503_v22 = vadd.f32 %v6501_v61, %v6495_v39  ;;  %v6192_v45 = vadd.f32 %v6188_v43, %v6178_v13 }
 0x8a5   : > { %6895 = vrot.lane.b32.xlu1 %v6890_v28, %s12967_s2 }
 0x8a6   : > { %v6517_v21 = vadd.f32 %v11716_v12, %v6503_v22  ;;  %v6918_v12 = vmul.f32 %v9372_v20, %v6916_v11  ;;  %v6593_v11 = vmul.f32 %v9374_v44, %v6592_v55 }
 0x8a7   : > { %v6202_v23 = vpop.permute.xlu1 %6201  ;;  %v12468_v38 = vpop.permute.xlu0 %6737 }
 0x8a8   : > { %v6531_v56 = vadd.f32 %v11727_v53, %v6517_v21  ;;  %v6206_v8 = vadd.f32 %v6202_v23, %v6192_v45  ;;  %v6996_v21 = vmul.f32 %v9375_v7, %v6994_v19 }
 0x8a9   : > { %6909 = vrot.lane.b32.xlu1 %v6904_v5, %s12968_s4 }
 0x8aa   : > { %v6545_v10 = vadd.f32 %v11740_v57, %v6531_v56  ;;  %v6932_v57 = vmul.f32 %v9372_v20, %v6930_v41 }
 0x8ab   : > { %v6216_v51 = vpop.permute.xlu1 %6215  ;;  %v6752_v33 = vpop.permute.xlu0 %6751 }
 0x8ac   : > { %v6559_v47 = vadd.f32 %v11753_v14, %v6545_v10  ;;  %v6220_v0 = vadd.f32 %v6216_v51, %v6206_v8  ;;  %v13042_v8 = vld [vmem:[#allocation29_spill] sm:$0xff] }
 0x8ad   : > { %6923 = vrot.lane.b32.xlu1 %v6918_v12, %s12969_s6 }
 0x8ae   : > { %v6573_v53 = vadd.f32 %v11766_v59, %v6559_v47  ;;  %v6228_v18 = vadd.f32 %v11452_v50, %v6220_v0  ;;  %v6946_v50 = vmul.f32 %v9372_v20, %v6944_v63  ;;  %v6684_v20 = vstv %s12488_s26 }
 0x8af   : > { %v6238_v4 = vpop.permute.xlu1 %6237  ;;  %v6766_v52 = vpop.permute.xlu0 %6765 }
 0x8b0   : > { %v6587_v35 = vadd.f32 %v11781_v58, %v6573_v53  ;;  %v6242_v63 = vadd.f32 %v6238_v4, %v6228_v18 }
 0x8b1   : > { %6937 = vrot.lane.b32.xlu1 %v6932_v57, %s12970_s8  ;;  %v13043_v57 = vstv %s11497_s16  ;;  %s13074_s16 = sld [smem:[#allocation19_spill]] }
 0x8b2   : > { %v6595_v14 = vadd.f32 %v6593_v11, %v6587_v35  ;;  %v6777_v35 = vmul.f32 %v13043_v57, %v12146_v25 }
 0x8b3   : > { %v6252_v37 = vpop.permute.xlu1 %6251  ;;  %v6788_v59 = vpop.permute.xlu0 %6787 }
 0x8b4   : > { %v6609_v2 = vadd.f32 %v11794_v62, %v6595_v14  ;;  %v6256_v43 = vadd.f32 %v6252_v37, %v6242_v63 }
 0x8b5   : > { %6951 = vrot.lane.b32.xlu1 %v6946_v50, %s12974_s10 }
 0x8b6   : > { %v6623_v58 = vadd.f32 %v11807_v49, %v6609_v2 }
 0x8b7   : > { %v6266_v41 = vpop.permute.xlu1 %6265  ;;  %v6802_v3 = vpop.permute.xlu0 %6801  ;;  %s8088_s29 = sshll.u32 %s13074_s16, 12 }
 0x8b8   : > { %v6637_v34 = vadd.f32 %v11820_v15, %v6623_v58  ;;  %v13041_v15 = vld [vmem:[#allocation54_spill] sm:$0xff]  ;;  %v6270_v22 = vadd.f32 %v6266_v41, %v6256_v43  ;;  %s12716_s28 = scalar_lea.hbm %s13076_s15, %s8088_s29 }
 0x8b9   : > { %6973 = vrot.lane.b32.xlu1 %v6968_v36, %s12966_s0  ;;  %v6685_v28 = vmul.f32 %v6684_v20, %v13041_v15  ;;  %s13044_s0 = sld [smem:[#allocation49_spill]] }
 0x8ba   : > { %v6651_v61 = vadd.f32 %v11833_v29, %v6637_v34 }
 0x8bb   : > { %v6280_v62 = vpop.permute.xlu1 %6279  ;;  %v6816_v39 = vpop.permute.xlu0 %6815 }
 0x8bc   : > { %v6665_v49 = vadd.f32 %v11848_v60, %v6651_v61  ;;  %v6284_v23 = vadd.f32 %v6280_v62, %v6270_v22 }
 0x8bd   : > { %6987 = vrot.lane.b32.xlu1 %v6982_v31, %s12967_s2  ;;  %s13046_s2 = sld [smem:[#allocation50_spill]] }
 0x8be   : > { %v6679_v30 = vadd.f32 %v12436_v54, %v6665_v49  ;;  %v7010_v54 = vmul.f32 %v9375_v7, %v7008_v40  ;;  %v9376_v49 = vld [vmem:[#allocation4 + $0x20] sm:$0xff] }
 0x8bf   : > { %v6294_v1 = vpop.permute.xlu1 %6293  ;;  %v6830_v29 = vpop.permute.xlu0 %6829  ;;  %v13045_v34 = vstv %s13044_s0 }
 0x8c0   : > { %v6687_v13 = vadd.f32 %v6685_v28, %v6679_v30  ;;  %v6298_v6 = vadd.f32 %v6294_v1, %v6284_v23  ;;  %v6869_v61 = vmul.f32 %v13045_v34, %v12246_v24  ;;  %v13047_v1 = vld [vmem:[#allocation33_spill] sm:$0xff] }
 0x8c1   : > { %7001 = vrot.lane.b32.xlu1 %v6996_v21, %s12968_s4  ;;  %s13070_s4 = sld [smem:[#allocation25_spill]] }
 0x8c2   : > { %v6701_v60 = vadd.f32 %v12443_v9, %v6687_v13  ;;  %v7024_v9 = vmul.f32 %v9375_v7, %v7022_v32  ;;  %v13048_v13 = vld [vmem:[#allocation34_spill] sm:$0xff] }
 0x8c3   : > { %v6308_v5 = vpop.permute.xlu1 %6307  ;;  %v6844_v56 = vpop.permute.xlu0 %6843 }
 0x8c4   : > { %v6715_v45 = vadd.f32 %v12451_v48, %v6701_v60  ;;  %v6312_v10 = vadd.f32 %v6308_v5, %v6298_v6  ;;  %v7038_v48 = vmul.f32 %v9375_v7, %v7036_v26  ;;  %v13049_v5 = vld [vmem:[#allocation35_spill] sm:$0xff] }
 0x8c5   : > { %7015 = vrot.lane.b32.xlu1 %v7010_v54, %s12969_s6  ;;  %v13050_v54 = vld [vmem:[#allocation36_spill] sm:$0xff]  ;;  %s13072_s6 = sld [smem:[#allocation24_spill]] }
 0x8c6   : > { %v6729_v19 = vadd.f32 %v12460_v46, %v6715_v45  ;;  %v6320_v51 = vadd.f32 %v13042_v8, %v6312_v10  ;;  %v13051_v8 = vld [vmem:[#allocation37_spill] sm:$0xff] }
 0x8c7   : > { %v6330_v12 = vpop.permute.xlu1 %6329  ;;  %v6858_v47 = vpop.permute.xlu0 %6857 }
 0x8c8   : > { %v6743_v0 = vadd.f32 %v12468_v38, %v6729_v19  ;;  %v6334_v38 = vadd.f32 %v6330_v12, %v6320_v51 }
 0x8c9   : > { %7029 = vrot.lane.b32.xlu1 %v7024_v9, %s12970_s8 }
 0x8ca   : > { %v6757_v53 = vadd.f32 %v6752_v33, %v6743_v0  ;;  %v9377_v0 = vld [vmem:[#allocation4 + $0x21] sm:$0xff] }
 0x8cb   : > { %v6344_v40 = vpop.permute.xlu1 %6343  ;;  %v6880_v18 = vpop.permute.xlu0 %6879  ;;  %s13073_s8 = sshll.u32 %s13072_s6, 8  ;;  %s7468_s20 = scalar_lea.sflag [#allocation8], %s13072_s6 }
 0x8cc   : > { %v6771_v4 = vadd.f32 %v6766_v52, %v6757_v53  ;;  %v6348_v2 = vadd.f32 %v6344_v40, %v6334_v38  ;;  %v6502_v53 = vmul.f32 %v9377_v0, %v6500_v42  ;;  %v13053_v40 = vld [vmem:[#allocation38_spill] sm:$0xff] }
 0x8cd   : > { %7043 = vrot.lane.b32.xlu1 %v7038_v48, %s12974_s10  ;;  %s12593_s10 = scalar_lea.vmem [#allocation11], %s13073_s8 }
 0x8ce   : > { %v6779_v46 = vadd.f32 %v6777_v35, %v6771_v4  ;;  %s7481_s27 = sshll.u32 %s12593_s10, 4  ;;  %s12718_s27 = int_to_ptr.vmem [resolvable:$true] %s7481_s27 }
 0x8cf   : > { %v6358_v44 = vpop.permute.xlu1 %6357  ;;  %v6894_v11 = vpop.permute.xlu0 %6893  ;;  %s9424_s1 = scalar_lea.vmem %s12718_s27, 4096  ;;  %p9431_p10 = scmp.lt.s32.totalorder %s12718_s27, %s9429_s5 }
 0x8d0   : > { %v6793_v32 = vadd.f32 %v6788_v59, %v6779_v46  ;;  %v6362_v26 = vadd.f32 %v6358_v44, %v6348_v2  ;;  %v13054_v44 = vld [vmem:[#allocation39_spill] sm:$0xff]  ;;  %p9425_p5 = scmp.ne.s32.totalorder %s12718_s27, %s9424_s1  ;;  %p9432_p1 = scmp.lt.s32.totalorder %s9430_s9, %s9424_s1 }
 0x8d2   : > { %v6807_v14 = vadd.f32 %v6802_v3, %v6793_v32  ;;  %p9426_p8 = pnand %p9425_p5, %p13078_p12  ;;  %p9433_p4 = por %p9432_p1, %p9431_p10 }
 0x8d3   : > { %v6372_v37 = vpop.permute.xlu1 %6371  ;;  %v6908_v50 = vpop.permute.xlu0 %6907 }
 0x8d4   : > { %v6821_v33 = vadd.f32 %v6816_v39, %v6807_v14  ;;  %v6376_v25 = vadd.f32 %v6372_v37, %v6362_v26  ;;  %v6410_v39 = vmul.f32 %v9376_v49, %v6408_v16  ;;  %v13055_v37 = vld [vmem:[#allocation40_spill] sm:$0xff]  ;;  %p9427_p9 = pneg %p9426_p8 }
 0x8d6   : > { %v6835_v58 = vadd.f32 %v6830_v29, %v6821_v33  ;;  %p9434_p11 = pnand %p9433_p4, %p9427_p9 }
 0x8d7   : > { %v6386_v52 = vpop.permute.xlu1 %6385  ;;  %v6922_v41 = vpop.permute.xlu0 %6921 }
 0x8d8   : > { %v6849_v7 = vadd.f32 %v6844_v56, %v6835_v58  ;;  %v6390_v63 = vadd.f32 %v6386_v52, %v6376_v25  ;;  %v13057_v52 = vld [vmem:[#allocation42_spill] sm:$0xff] }
 0x8da   : > { %v6863_v36 = vadd.f32 %v6858_v47, %v6849_v7  ;;  %v13052_v47 = vstv %s13046_s2  ;;  %v13058_v7 = vld [vmem:[#allocation43_spill] sm:$0xff] }
 0x8db   : > { %v6400_v62 = vpop.permute.xlu1 %6399  ;;  %v6936_v59 = vpop.permute.xlu0 %6935  ;;  %v6961_v9 = vmul.f32 %v13052_v47, %v12335_v17  ;;  %v13056_v17 = vld [vmem:[#allocation41_spill] sm:$0xff] }
 0x8dc   : > { %v6871_v3 = vadd.f32 %v6869_v61, %v6863_v36  ;;  %v6404_v31 = vadd.f32 %v6400_v62, %v6390_v63  ;;  %v9378_v63 = vld [vmem:[#allocation4 + $0x22] sm:$0xff] }
 0x8dd   : > { %v6594_v62 = vmul.f32 %v9378_v63, %v6592_v55  ;;  %v13064_v55 = vld [vmem:[#allocation57_spill] sm:$0xff] }
 0x8de   : > { %v6885_v43 = vadd.f32 %v6880_v18, %v6871_v3  ;;  %v6412_v30 = vadd.f32 %v6410_v39, %v6404_v31 }
 0x8df   : > { %v6676_v15 = vpop.permute.xlu1 %6675  ;;  %v6950_v28 = vpop.permute.xlu0 %6949 }
 0x8e0   : > { %v6899_v22 = vadd.f32 %v6894_v11, %v6885_v43  ;;  %v6426_v29 = vadd.f32 %v13047_v1, %v6412_v30  ;;  %v13060_v30 = vld [vmem:[#allocation52_spill] sm:$0xff]  ;;  %v13061_v1 = vld [vmem:[#allocation53_spill] sm:$0xff] }
 0x8e2   : > { %v6913_v21 = vadd.f32 %v6908_v50, %v6899_v22  ;;  %v6440_v24 = vadd.f32 %v13048_v13, %v6426_v29  ;;  %v13062_v13 = vld [vmem:[#allocation55_spill] sm:$0xff] }
 0x8e3   : > { %v6698_v23 = vpop.permute.xlu1 %6697  ;;  %v6972_v60 = vpop.permute.xlu0 %6971 }
 0x8e4   : > { %v6927_v6 = vadd.f32 %v6922_v41, %v6913_v21  ;;  %v6454_v56 = vadd.f32 %v13049_v5, %v6440_v24 }
 0x8e6   : > { %v6468_v45 = vadd.f32 %v13050_v54, %v6454_v56  ;;  %v6941_v16 = vadd.f32 %v6936_v59, %v6927_v6  ;;  %v13059_v59 = vld [vmem:[#allocation51_spill] sm:$0xff] }
 0x8e7   : > { %v6712_v10 = vpop.permute.xlu1 %6711  ;;  %v6986_v19 = vpop.permute.xlu0 %6985 }
 0x8e8   : > { %v6482_v51 = vadd.f32 %v13051_v8, %v6468_v45  ;;  %v6955_v12 = vadd.f32 %v6950_v28, %v6941_v16  ;;  %v6686_v45 = vmul.f32 %v6684_v20, %v12333_v27 }
 0x8ea   : > { %v6496_v18 = vadd.f32 %v13053_v40, %v6482_v51  ;;  %v6963_v48 = vadd.f32 %v6961_v9, %v6955_v12 }
 0x8eb   : > { %v6726_v4 = vpop.permute.xlu1 %6725  ;;  %v7000_v57 = vpop.permute.xlu0 %6999 }
 0x8ec   : > { %v6504_v35 = vadd.f32 %v6502_v53, %v6496_v18  ;;  %v6977_v46 = vadd.f32 %v6972_v60, %v6963_v48  ;;  %v13063_v60 = vld [vmem:[#allocation56_spill] sm:$0xff] }
 0x8ee   : > { %v6518_v11 = vadd.f32 %v13054_v44, %v6504_v35  ;;  %v6991_v32 = vadd.f32 %v6986_v19, %v6977_v46 }
 0x8ef   : > { %v6740_v14 = vpop.permute.xlu1 %6739  ;;  %v7014_v38 = vpop.permute.xlu0 %7013 }
 0x8f0   : > { %v6532_v50 = vadd.f32 %v13055_v37, %v6518_v11  ;;  %v7005_v33 = vadd.f32 %v7000_v57, %v6991_v32  ;;  %v13066_v37 = vld [vmem:[#allocation27_spill] sm:$0xff] }
 0x8f2   : > { %v6546_v2 = vadd.f32 %v13056_v17, %v6532_v50  ;;  %v7019_v58 = vadd.f32 %v7014_v38, %v7005_v33 }
 0x8f3   : > { %v6754_v42 = vpop.permute.xlu1 %6753  ;;  %v7028_v26 = vpop.permute.xlu0 %7027 }
 0x8f4   : > { %v6560_v41 = vadd.f32 %v13057_v52, %v6546_v2  ;;  %v7033_v36 = vadd.f32 %v7028_v26, %v7019_v58  ;;  %v13068_v26 = vld [vmem:[#allocation31_spill] sm:$0xff] }
 0x8f6   : > { %v6574_v25 = vadd.f32 %v13058_v7, %v6560_v41 }
 0x8f7   : > { %v6768_v34 = vpop.permute.xlu1 %6767  ;;  %v7042_v61 = vpop.permute.xlu0 %7041 }
 0x8f8   : > { %v6588_v3 = vadd.f32 %v13059_v59, %v6574_v25  ;;  %v7047_v31 = vadd.f32 %v7042_v61, %v7033_v36 }
 0x8fa   : > { %v6596_v49 = vadd.f32 %v6594_v62, %v6588_v3  ;;  %v7049_v39 = vsub.f32 0.0, %v7047_v31 }
 0x8fb   : > { %v6790_v43 = vpop.permute.xlu1 %6789 }
 0x8fc   : > { %v6610_v28 = vadd.f32 %v13060_v30, %v6596_v49  ;;  %v7051_v22 = vmul.f32 1.442695, %v7049_v39 }
 0x8fe   : > { %v6624_v29 = vadd.f32 %v13061_v1, %v6610_v28  ;;  %9361 = vpow2.f32 %v7051_v22  ;;  %v13069_v28 = vld [vmem:[#allocation32_spill] sm:$0xff] }
 0x8ff   : > { %v6804_v21 = vpop.permute.xlu1 %6803 }
 0x900   : > { %v6638_v24 = vadd.f32 %v13062_v13, %v6624_v29 }
 0x902   : > { %v6652_v6 = vadd.f32 %v13063_v60, %v6638_v24 }
 0x903   : > { %v6818_v5 = vpop.permute.xlu1 %6817 }
 0x904   : > { %v6666_v56 = vadd.f32 %v13064_v55, %v6652_v6 }
 0x906   : > { %v6680_v54 = vadd.f32 %v6676_v15, %v6666_v56  ;;  %v13065_v15 = vld [vmem:[#allocation30_spill] sm:$0xff] }
 0x907   : > { %v6832_v16 = vpop.permute.xlu1 %6831 }
 0x908   : > { %v9362_v19 = vpop.eup %9361  ;;  %v6688_v8 = vadd.f32 %v6686_v45, %v6680_v54 }
 0x909   : > { %v7055_v51 = vadd.f32 1.0, %v9362_v19 }
 0x90a   : > { %v6702_v12 = vadd.f32 %v6698_v23, %v6688_v8 }
 0x90b   : > { %9363 = vrcp.f32 %v7055_v51  ;;  %v6846_v47 = vpop.permute.xlu1 %6845 }
 0x90c   : > { %v6716_v9 = vadd.f32 %v6712_v10, %v6702_v12 }
 0x90e   : > { %v6730_v0 = vadd.f32 %v6726_v4, %v6716_v9  ;;  %v13067_v4 = vld [vmem:[#allocation26_spill] sm:$0xff] }
 0x90f   : > { %v6860_v53 = vpop.permute.xlu1 %6859  ;;  %v7125_v50 = vsub.s32 1, %v13067_v4  ;;  %v7136_v58 = vsub.s32 2, %v13067_v4  ;;  %v7147_v25 = vsub.s32 3, %v13067_v4  ;;  %v7158_v62 = vsub.s32 4, %v13067_v4 }
 0x910   : > { %v6744_v40 = vadd.f32 %v6740_v14, %v6730_v0  ;;  %v7169_v39 = vsub.s32 5, %v13067_v4  ;;  %v7180_v29 = vsub.s32 6, %v13067_v4  ;;  %v7191_v6 = vsub.s32 7, %v13067_v4 }
 0x912   : > { %v6758_v18 = vadd.f32 %v6754_v42, %v6744_v40 }
 0x913   : > { %v6882_v48 = vpop.permute.xlu1 %6881 }
 0x914   : > { %v6772_v57 = vadd.f32 %v6768_v34, %v6758_v18 }
 0x915   : > { %v9364_v35 = vpop.eup %9363 }
 0x916   : > { %7061 = vst.msk [vmem:[#allocation5] sm:$0xff] %vm491_vm0, %v9364_v35  ;;  %v6780_v46 = vadd.f32 %v13065_v15, %v6772_v57 }
 0x917   : > { %v6896_v27 = vpop.permute.xlu1 %6895 }
 0x918   : > { %v6794_v20 = vadd.f32 %v6790_v43, %v6780_v46 }
 0x91a   : > { %v6808_v44 = vadd.f32 %v6804_v21, %v6794_v20  ;;  %v7064_v20 = vld [vmem:[#allocation3 + $0x8] sm:$0xff] }
 0x91b   : > { %v6910_v11 = vpop.permute.xlu1 %6909 }
 0x91c   : > { %v6822_v32 = vadd.f32 %v6818_v5, %v6808_v44  ;;  %v7063_v44 = vld [vmem:[#allocation3] sm:$0xff] }
 0x91d   : > { %v7095_v23 = vld [vmem:[#allocation5] sm:$0xff] }
 0x91e   : > { %v6836_v38 = vadd.f32 %v6832_v16, %v6822_v32  ;;  %v7115_v10 = vrot.slane %v7095_v23, %v13066_v37  ;;  %v7126_v2 = vrot.slane %v7095_v23, %v7125_v50  ;;  %v7137_v7 = vrot.slane %v7095_v23, %v7136_v58 }
 0x91f   : > { %v6924_v14 = vpop.permute.xlu1 %6923  ;;  %v7148_v63 = vrot.slane %v7095_v23, %v7147_v25  ;;  %v7159_v49 = vrot.slane %v7095_v23, %v7158_v62  ;;  %v7170_v1 = vrot.slane %v7095_v23, %v7169_v39  ;;  %v7181_v60 = vrot.slane %v7095_v23, %v7180_v29 }
 0x920   : > { %v6850_v33 = vadd.f32 %v6846_v47, %v6836_v38  ;;  %7121 = vbcast.lane.b32.xlu1 %v7115_v10, 264  ;;  %7117 = vbcast.lane.b32.xlu0 %v7115_v10, 256  ;;  %v7192_v54 = vrot.slane %v7095_v23, %v7191_v6  ;;  %v7097_v38 = vld [vmem:[%s13070_s4 + $0x8] sm:$0xff]  ;;  %v7096_v10 = vld [vmem:[%s13070_s4] sm:$0xff] }
 0x922   : > { %v6864_v17 = vadd.f32 %v6860_v53, %v6850_v33  ;;  %v7066_v33 = vld [vmem:[#allocation3 + $0x18] sm:$0xff] }
 0x923   : > { %v6938_v42 = vpop.permute.xlu1 %6937 }
 0x924   : > { %v6872_v52 = vadd.f32 %v13068_v26, %v6864_v17  ;;  %7132 = vbcast.lane.b32.xlu1 %v7126_v2, 264  ;;  %7128 = vbcast.lane.b32.xlu0 %v7126_v2, 256  ;;  %v7065_v17 = vld [vmem:[#allocation3 + $0x10] sm:$0xff] }
 0x926   : > { %v6886_v41 = vadd.f32 %v6882_v48, %v6872_v52  ;;  %v7099_v52 = vld [vmem:[%s13070_s4 + $0x18] sm:$0xff] }
 0x927   : > { %v6952_v36 = vpop.permute.xlu1 %6951 }
 0x928   : > { %v6900_v34 = vadd.f32 %v6896_v27, %v6886_v41  ;;  %7143 = vbcast.lane.b32.xlu1 %v7137_v7, 264  ;;  %7139 = vbcast.lane.b32.xlu0 %v7137_v7, 256  ;;  %v7098_v7 = vld [vmem:[%s13070_s4 + $0x10] sm:$0xff] }
 0x92a   : > { %v6914_v61 = vadd.f32 %v6910_v11, %v6900_v34  ;;  %v13071_v11 = vld [vmem:[#allocation28_spill] sm:$0xff] }
 0x92b   : > { %v6974_v59 = vpop.permute.xlu1 %6973  ;;  %v7080_v32 = vmul.f32 %v7064_v20, %v13071_v11  ;;  %v7079_v23 = vmul.f32 %v7063_v44, %v13071_v11  ;;  %v7081_v26 = vmul.f32 %v7065_v17, %v13071_v11  ;;  %v7106_v17 = vld [vmem:[%s13070_s4 + $0x50] sm:$0xff] }
 0x92c   : > { %v6928_v3 = vadd.f32 %v6924_v14, %v6914_v61  ;;  %7154 = vbcast.lane.b32.xlu1 %v7148_v63, 264  ;;  %7150 = vbcast.lane.b32.xlu0 %v7148_v63, 256 }
 0x92e   : > { %v6942_v31 = vadd.f32 %v6938_v42, %v6928_v3  ;;  %v7082_v42 = vmul.f32 %v7066_v33, %v13071_v11 }
 0x92f   : > { %v6988_v43 = vpop.permute.xlu1 %6987 }
 0x930   : > { %v6956_v30 = vadd.f32 %v6952_v36, %v6942_v31  ;;  %7165 = vbcast.lane.b32.xlu1 %v7159_v49, 264  ;;  %7161 = vbcast.lane.b32.xlu0 %v7159_v49, 256 }
 0x932   : > { %v6964_v22 = vadd.f32 %v13069_v28, %v6956_v30  ;;  %v7100_v28 = vld [vmem:[%s13070_s4 + $0x20] sm:$0xff] }
 0x933   : > { %v7002_v21 = vpop.permute.xlu1 %7001 }
 0x934   : > { %v6978_v13 = vadd.f32 %v6974_v59, %v6964_v22  ;;  %7176 = vbcast.lane.b32.xlu1 %v7170_v1, 264  ;;  %7172 = vbcast.lane.b32.xlu0 %v7170_v1, 256  ;;  %v7067_v59 = vld [vmem:[#allocation3 + $0x20] sm:$0xff] }
 0x936   : > { %v6992_v24 = vadd.f32 %v6988_v43, %v6978_v13  ;;  %v7101_v43 = vld [vmem:[%s13070_s4 + $0x28] sm:$0xff] }
 0x937   : > { %v7016_v5 = vpop.permute.xlu1 %7015 }
 0x938   : > { %v7006_v55 = vadd.f32 %v7002_v21, %v6992_v24  ;;  %7187 = vbcast.lane.b32.xlu1 %v7181_v60, 264  ;;  %7183 = vbcast.lane.b32.xlu0 %v7181_v60, 256  ;;  %v7070_v24 = vld [vmem:[#allocation3 + $0x38] sm:$0xff]  ;;  %v7069_v60 = vld [vmem:[#allocation3 + $0x30] sm:$0xff] }
 0x93a   : > { %v7020_v56 = vadd.f32 %v7016_v5, %v7006_v55  ;;  %v7086_v55 = vmul.f32 %v7070_v24, %v13071_v11 }
 0x93b   : > { %v7030_v45 = vpop.permute.xlu1 %7029 }
 0x93c   : > { %7198 = vbcast.lane.b32.xlu1 %v7192_v54, 264  ;;  %7194 = vbcast.lane.b32.xlu0 %v7192_v54, 256  ;;  %v7034_v16 = vadd.f32 %v7030_v45, %v7020_v56  ;;  %v7085_v56 = vmul.f32 %v7069_v60, %v13071_v11  ;;  %v7103_v54 = vld [vmem:[%s13070_s4 + $0x38] sm:$0xff]  ;;  %v7110_v60 = vld [vmem:[%s13070_s4 + $0x70] sm:$0xff] }
 0x93f   : > { %v7044_v19 = vpop.permute.xlu1 %7043 }
 0x940   : > { %v7048_v8 = vadd.f32 %v7044_v19, %v7034_v16  ;;  %v7102_v16 = vld [vmem:[%s13070_s4 + $0x30] sm:$0xff] }
 0x942   : > { %v7050_v51 = vsub.f32 0.0, %v7048_v8 }
 0x944   : > { %v7053_v12 = vmul.f32 1.442695, %v7050_v51 }
 0x946   : > { %9365 = vpow2.f32 %v7053_v12 }
 0x950   : > { %v9366_v47 = vpop.eup %9365 }
 0x951   : > { %v7056_v9 = vadd.f32 1.0, %v9366_v47 }
 0x953   : > { %9367 = vrcp.f32 %v7056_v9  ;;  %v7072_v9 = vld [vmem:[#allocation3 + $0x48] sm:$0xff] }
 0x95d   : > { %v9368_v0 = vpop.eup %9367 }
 0x95e   : > { %7062 = vst.msk [vmem:[#allocation5 + $0x8] sm:$0xff] %vm491_vm0, %v9368_v0  ;;  %v7071_v0 = vld [vmem:[#allocation3 + $0x40] sm:$0xff] }
 0x965   : > { %v7296_v53 = vld [vmem:[#allocation5 + $0x8] sm:$0xff] }
 0x966   : > { %v7317_v40 = vrot.slane %v7296_v53, %v13066_v37  ;;  %v7328_v18 = vrot.slane %v7296_v53, %v7125_v50  ;;  %v7339_v48 = vrot.slane %v7296_v53, %v7136_v58  ;;  %v7350_v57 = vrot.slane %v7296_v53, %v7147_v25 }
 0x967   : > { %v7361_v35 = vrot.slane %v7296_v53, %v7158_v62  ;;  %v7372_v15 = vrot.slane %v7296_v53, %v7169_v39  ;;  %v7383_v46 = vrot.slane %v7296_v53, %v7180_v29  ;;  %v7394_v27 = vrot.slane %v7296_v53, %v7191_v6  ;;  %v7068_v62 = vld [vmem:[#allocation3 + $0x28] sm:$0xff] }
 0x968   : > { %7323 = vbcast.lane.b32.xlu1 %v7317_v40, 264  ;;  %7319 = vbcast.lane.b32.xlu0 %v7317_v40, 256  ;;  %v7084_v49 = vmul.f32 %v7068_v62, %v13071_v11  ;;  %v7083_v39 = vmul.f32 %v7067_v59, %v13071_v11  ;;  %v7108_v59 = vld [vmem:[%s13070_s4 + $0x60] sm:$0xff] }
 0x96c   : > { %7334 = vbcast.lane.b32.xlu1 %v7328_v18, 264  ;;  %7330 = vbcast.lane.b32.xlu0 %v7328_v18, 256  ;;  %v7088_v18 = vmul.f32 %v7072_v9, %v13071_v11 }
 0x970   : > { %7345 = vbcast.lane.b32.xlu1 %v7339_v48, 264  ;;  %7341 = vbcast.lane.b32.xlu0 %v7339_v48, 256  ;;  %v7087_v48 = vmul.f32 %v7071_v0, %v13071_v11  ;;  %v8051_v0 = vld [vmem:[%s13070_s4 + $0x88] sm:$0xff] }
 0x974   : > { %7356 = vbcast.lane.b32.xlu1 %v7350_v57, 264  ;;  %7352 = vbcast.lane.b32.xlu0 %v7350_v57, 256  ;;  %v7105_v57 = vld [vmem:[%s13070_s4 + $0x48] sm:$0xff] }
 0x978   : > { %7367 = vbcast.lane.b32.xlu1 %v7361_v35, 264  ;;  %7363 = vbcast.lane.b32.xlu0 %v7361_v35, 256 }
 0x97c   : > { %7378 = vbcast.lane.b32.xlu1 %v7372_v15, 264  ;;  %7374 = vbcast.lane.b32.xlu0 %v7372_v15, 256  ;;  %v7104_v15 = vld [vmem:[%s13070_s4 + $0x40] sm:$0xff] }
 0x980   : > { %7389 = vbcast.lane.b32.xlu1 %v7383_v46, 264  ;;  %7385 = vbcast.lane.b32.xlu0 %v7383_v46, 256 }
 0x984   : > { %7400 = vbcast.lane.b32.xlu1 %v7394_v27, 264  ;;  %7396 = vbcast.lane.b32.xlu0 %v7394_v27, 256 }
 0x992   : > { %v7122_v37 = vpop.permute.xlu1 %7121  ;;  %v7118_v4 = vpop.permute.xlu0 %7117 }
 0x993   : > { %v7201_v50 = vmul.f32 %v7122_v37, %v7080_v32  ;;  %v7200_v14 = vmul.f32 %v7118_v4, %v7079_v23  ;;  %v7074_v23 = vld [vmem:[#allocation3 + $0x58] sm:$0xff] }
 0x994   : > { %v7090_v4 = vmul.f32 %v7074_v23, %v13071_v11 }
 0x995   : > { %v7217_v2 = vadd.f32 %v7201_v50, %v7097_v38  ;;  %v7216_v58 = vadd.f32 %v7200_v14, %v7096_v10  ;;  %v7073_v38 = vld [vmem:[#allocation3 + $0x50] sm:$0xff]  ;;  %v7107_v14 = vld [vmem:[%s13070_s4 + $0x58] sm:$0xff] }
 0x996   : > { %v7133_v41 = vpop.permute.xlu1 %7132  ;;  %v7129_v25 = vpop.permute.xlu0 %7128  ;;  %v7089_v50 = vmul.f32 %v7073_v38, %v13071_v11  ;;  %v8052_v38 = vld [vmem:[%s13070_s4 + $0x90] sm:$0xff] }
 0x997   : > { %v7233_v36 = vmax.f32 %v7217_v2, 0.0  ;;  %v7232_v34 = vmax.f32 %v7216_v58, 0.0  ;;  %v7203_v61 = vmul.f32 %v7133_v41, %v7082_v42  ;;  %v7202_v63 = vmul.f32 %v7129_v25, %v7081_v26  ;;  %v7076_v41 = vld [vmem:[#allocation3 + $0x68] sm:$0xff] }
 0x999   : > { %7249 = vst.msk [vmem:[%s12593_s10 + $0x8] sm:$0xff] %vm491_vm0, %v7233_v36  ;;  %7248 = vst.msk [vmem:[%s12593_s10] sm:$0xff] %vm491_vm0, %v7232_v34  ;;  %v7219_v3 = vadd.f32 %v7203_v61, %v7099_v52  ;;  %v7218_v31 = vadd.f32 %v7202_v63, %v7098_v7  ;;  %v7075_v7 = vld [vmem:[#allocation3 + $0x60] sm:$0xff]  ;;  %v7092_v34 = vmul.f32 %v7076_v41, %v13071_v11  ;;  %v7109_v63 = vld [vmem:[%s13070_s4 + $0x68] sm:$0xff] }
 0x99a   : > { %v7144_v30 = vpop.permute.xlu1 %7143  ;;  %v7140_v22 = vpop.permute.xlu0 %7139  ;;  %v7091_v61 = vmul.f32 %v7075_v7, %v13071_v11  ;;  %v8054_v7 = vld [vmem:[%s13070_s4 + $0xa0] sm:$0xff] }
 0x99b   : > { %v7235_v1 = vmax.f32 %v7219_v3, 0.0  ;;  %v7234_v29 = vmax.f32 %v7218_v31, 0.0  ;;  %v7205_v21 = vmul.f32 %v7144_v30, %v7084_v49  ;;  %v7204_v13 = vmul.f32 %v7140_v22, %v7083_v39  ;;  %v7078_v30 = vld [vmem:[#allocation3 + $0x78] sm:$0xff] }
 0x99d   : > { %7251 = vst.msk [vmem:[%s12593_s10 + $0x18] sm:$0xff] %vm491_vm0, %v7235_v1  ;;  %7250 = vst.msk [vmem:[%s12593_s10 + $0x10] sm:$0xff] %vm491_vm0, %v7234_v29  ;;  %v7221_v6 = vadd.f32 %v7205_v21, %v7101_v43  ;;  %v7220_v5 = vadd.f32 %v7204_v13, %v7100_v28  ;;  %v7077_v28 = vld [vmem:[#allocation3 + $0x70] sm:$0xff]  ;;  %v7094_v29 = vmul.f32 %v7078_v30, %v13071_v11  ;;  %v7111_v13 = vld [vmem:[%s13070_s4 + $0x78] sm:$0xff] }
 0x99e   : > { %v7155_v45 = vpop.permute.xlu1 %7154  ;;  %v7151_v19 = vpop.permute.xlu0 %7150  ;;  %v7093_v21 = vmul.f32 %v7077_v28, %v13071_v11  ;;  %v8056_v28 = vld [vmem:[%s13070_s4 + $0xb0] sm:$0xff] }
 0x99f   : > { %v7237_v8 = vmax.f32 %v7221_v6, 0.0  ;;  %v7236_v51 = vmax.f32 %v7220_v5, 0.0  ;;  %v7207_v12 = vmul.f32 %v7155_v45, %v7086_v55  ;;  %v7206_v47 = vmul.f32 %v7151_v19, %v7085_v56 }
 0x9a1   : > { %7253 = vst.msk [vmem:[%s12593_s10 + $0x28] sm:$0xff] %vm491_vm0, %v7237_v8  ;;  %7252 = vst.msk [vmem:[%s12593_s10 + $0x20] sm:$0xff] %vm491_vm0, %v7236_v51  ;;  %v7223_v53 = vadd.f32 %v7207_v12, %v7103_v54  ;;  %v7222_v40 = vadd.f32 %v7206_v47, %v7102_v16  ;;  %v7265_v51 = vld [vmem:[#allocation3 + $0x88] sm:$0xff]  ;;  %v7264_v12 = vld [vmem:[#allocation3 + $0x80] sm:$0xff] }
 0x9a2   : > { %v7166_v35 = vpop.permute.xlu1 %7165  ;;  %v7162_v46 = vpop.permute.xlu0 %7161  ;;  %v7281_v47 = vmul.f32 %v7265_v51, %v13071_v11  ;;  %v7280_v9 = vmul.f32 %v7264_v12, %v13071_v11 }
 0x9a3   : > { %v7239_v27 = vmax.f32 %v7223_v53, 0.0  ;;  %v7238_v20 = vmax.f32 %v7222_v40, 0.0  ;;  %v7209_v44 = vmul.f32 %v7166_v35, %v7088_v18  ;;  %v7208_v32 = vmul.f32 %v7162_v46, %v7087_v48  ;;  %v8050_v40 = vld [vmem:[%s13070_s4 + $0x80] sm:$0xff]  ;;  %v7267_v35 = vld [vmem:[#allocation3 + $0x98] sm:$0xff] }
 0x9a5   : > { %7255 = vst.msk [vmem:[%s12593_s10 + $0x38] sm:$0xff] %vm491_vm0, %v7239_v27  ;;  %7254 = vst.msk [vmem:[%s12593_s10 + $0x30] sm:$0xff] %vm491_vm0, %v7238_v20  ;;  %v7225_v37 = vadd.f32 %v7209_v44, %v7105_v57  ;;  %v7224_v10 = vadd.f32 %v7208_v32, %v7104_v15  ;;  %v7266_v15 = vld [vmem:[#allocation3 + $0x90] sm:$0xff]  ;;  %v7283_v20 = vmul.f32 %v7267_v35, %v13071_v11  ;;  %v8053_v32 = vld [vmem:[%s13070_s4 + $0x98] sm:$0xff] }
 0x9a6   : > { %v7177_v33 = vpop.permute.xlu1 %7176  ;;  %v7173_v2 = vpop.permute.xlu0 %7172  ;;  %v7282_v44 = vmul.f32 %v7266_v15, %v13071_v11  ;;  %v8060_v15 = vld [vmem:[%s13070_s4 + $0xd0] sm:$0xff] }
 0x9a7   : > { %v7241_v58 = vmax.f32 %v7225_v37, 0.0  ;;  %v7240_v42 = vmax.f32 %v7224_v10, 0.0  ;;  %v7211_v26 = vmul.f32 %v7177_v33, %v7090_v4  ;;  %v7210_v52 = vmul.f32 %v7173_v2, %v7089_v50  ;;  %v7269_v33 = vld [vmem:[#allocation3 + $0xa8] sm:$0xff] }
 0x9a9   : > { %7257 = vst.msk [vmem:[%s12593_s10 + $0x48] sm:$0xff] %vm491_vm0, %v7241_v58  ;;  %7256 = vst.msk [vmem:[%s12593_s10 + $0x40] sm:$0xff] %vm491_vm0, %v7240_v42  ;;  %v7227_v25 = vadd.f32 %v7211_v26, %v7107_v14  ;;  %v7226_v36 = vadd.f32 %v7210_v52, %v7106_v17  ;;  %v7268_v17 = vld [vmem:[#allocation3 + $0xa0] sm:$0xff]  ;;  %v7285_v42 = vmul.f32 %v7269_v33, %v13071_v11  ;;  %v8055_v52 = vld [vmem:[%s13070_s4 + $0xa8] sm:$0xff] }
 0x9aa   : > { %v7188_v62 = vpop.permute.xlu1 %7187  ;;  %v7184_v3 = vpop.permute.xlu0 %7183  ;;  %v7284_v26 = vmul.f32 %v7268_v17, %v13071_v11  ;;  %v8062_v17 = vld [vmem:[%s13070_s4 + $0xe0] sm:$0xff] }
 0x9ab   : > { %v7243_v31 = vmax.f32 %v7227_v25, 0.0  ;;  %v7242_v49 = vmax.f32 %v7226_v36, 0.0  ;;  %v7213_v39 = vmul.f32 %v7188_v62, %v7092_v34  ;;  %v7212_v43 = vmul.f32 %v7184_v3, %v7091_v61  ;;  %v7271_v62 = vld [vmem:[#allocation3 + $0xb8] sm:$0xff] }
 0x9ad   : > { %7259 = vst.msk [vmem:[%s12593_s10 + $0x58] sm:$0xff] %vm491_vm0, %v7243_v31  ;;  %7258 = vst.msk [vmem:[%s12593_s10 + $0x50] sm:$0xff] %vm491_vm0, %v7242_v49  ;;  %v7229_v22 = vadd.f32 %v7213_v39, %v7109_v63  ;;  %v7228_v1 = vadd.f32 %v7212_v43, %v7108_v59  ;;  %v7270_v59 = vld [vmem:[#allocation3 + $0xb0] sm:$0xff]  ;;  %v7287_v49 = vmul.f32 %v7271_v62, %v13071_v11  ;;  %v8057_v43 = vld [vmem:[%s13070_s4 + $0xb8] sm:$0xff] }
 0x9ae   : > { %v7199_v24 = vpop.permute.xlu1 %7198  ;;  %v7195_v6 = vpop.permute.xlu0 %7194  ;;  %v7286_v39 = vmul.f32 %v7270_v59, %v13071_v11  ;;  %v8064_v59 = vld [vmem:[%s13070_s4 + $0xf0] sm:$0xff] }
 0x9af   : > { %v7245_v5 = vmax.f32 %v7229_v22, 0.0  ;;  %v7244_v55 = vmax.f32 %v7228_v1, 0.0  ;;  %v7215_v56 = vmul.f32 %v7199_v24, %v7094_v29  ;;  %v7214_v54 = vmul.f32 %v7195_v6, %v7093_v21  ;;  %v7273_v24 = vld [vmem:[#allocation3 + $0xc8] sm:$0xff] }
 0x9b1   : > { %7261 = vst.msk [vmem:[%s12593_s10 + $0x68] sm:$0xff] %vm491_vm0, %v7245_v5  ;;  %7260 = vst.msk [vmem:[%s12593_s10 + $0x60] sm:$0xff] %vm491_vm0, %v7244_v55  ;;  %v7231_v45 = vadd.f32 %v7215_v56, %v7111_v13  ;;  %v7230_v16 = vadd.f32 %v7214_v54, %v7110_v60  ;;  %v7272_v60 = vld [vmem:[#allocation3 + $0xc0] sm:$0xff]  ;;  %v7289_v55 = vmul.f32 %v7273_v24, %v13071_v11  ;;  %v8059_v54 = vld [vmem:[%s13070_s4 + $0xc8] sm:$0xff] }
 0x9b2   : > { %v7288_v56 = vmul.f32 %v7272_v60, %v13071_v11 }
 0x9b3   : > { %v7247_v19 = vmax.f32 %v7231_v45, 0.0  ;;  %v7246_v8 = vmax.f32 %v7230_v16, 0.0  ;;  %v8058_v16 = vld [vmem:[%s13070_s4 + $0xc0] sm:$0xff] }
 0x9b5   : > { %7263 = vst.msk [vmem:[%s12593_s10 + $0x78] sm:$0xff] %vm491_vm0, %v7247_v19  ;;  %7262 = vst.msk [vmem:[%s12593_s10 + $0x70] sm:$0xff] %vm491_vm0, %v7246_v8 }
 0x9da   : > { %v7324_v53 = vpop.permute.xlu1 %7323  ;;  %v7320_v18 = vpop.permute.xlu0 %7319 }
 0x9db   : > { %v7403_v48 = vmul.f32 %v7324_v53, %v7281_v47  ;;  %v7402_v57 = vmul.f32 %v7320_v18, %v7280_v9  ;;  %v7275_v9 = vld [vmem:[#allocation3 + $0xd8] sm:$0xff] }
 0x9dc   : > { %v7291_v18 = vmul.f32 %v7275_v9, %v13071_v11 }
 0x9dd   : > { %v7419_v46 = vadd.f32 %v8051_v0, %v7403_v48  ;;  %v7418_v27 = vadd.f32 %v8050_v40, %v7402_v57  ;;  %v7274_v0 = vld [vmem:[#allocation3 + $0xd0] sm:$0xff]  ;;  %v8061_v57 = vld [vmem:[%s13070_s4 + $0xd8] sm:$0xff] }
 0x9de   : > { %v7335_v23 = vpop.permute.xlu1 %7334  ;;  %v7331_v37 = vpop.permute.xlu0 %7330  ;;  %v7290_v48 = vmul.f32 %v7274_v0, %v13071_v11 }
 0x9df   : > { %v7435_v10 = vmax.f32 %v7419_v46, 0.0  ;;  %v7434_v4 = vmax.f32 %v7418_v27, 0.0  ;;  %v7405_v50 = vmul.f32 %v7335_v23, %v7283_v20  ;;  %v7404_v14 = vmul.f32 %v7331_v37, %v7282_v44  ;;  %v7277_v23 = vld [vmem:[#allocation3 + $0xe8] sm:$0xff] }
 0x9e1   : > { %8067 = vst.msk [vmem:[%s12593_s10 + $0x88] sm:$0xff] %vm491_vm0, %v7435_v10  ;;  %8066 = vst.msk [vmem:[%s12593_s10 + $0x80] sm:$0xff] %vm491_vm0, %v7434_v4  ;;  %v7421_v2 = vadd.f32 %v8053_v32, %v7405_v50  ;;  %v7420_v58 = vadd.f32 %v8052_v38, %v7404_v14  ;;  %v7276_v38 = vld [vmem:[#allocation3 + $0xe0] sm:$0xff]  ;;  %v7293_v4 = vmul.f32 %v7277_v23, %v13071_v11  ;;  %v8063_v14 = vld [vmem:[%s13070_s4 + $0xe8] sm:$0xff] }
 0x9e2   : > { %v7346_v41 = vpop.permute.xlu1 %7345  ;;  %v7342_v25 = vpop.permute.xlu0 %7341  ;;  %v7292_v50 = vmul.f32 %v7276_v38, %v13071_v11 }
 0x9e3   : > { %v7437_v36 = vmax.f32 %v7421_v2, 0.0  ;;  %v7436_v34 = vmax.f32 %v7420_v58, 0.0  ;;  %v7407_v61 = vmul.f32 %v7346_v41, %v7285_v42  ;;  %v7406_v63 = vmul.f32 %v7342_v25, %v7284_v26  ;;  %v7279_v41 = vld [vmem:[#allocation3 + $0xf8] sm:$0xff] }
 0x9e5   : > { %8069 = vst.msk [vmem:[%s12593_s10 + $0x98] sm:$0xff] %vm491_vm0, %v7437_v36  ;;  %8068 = vst.msk [vmem:[%s12593_s10 + $0x90] sm:$0xff] %vm491_vm0, %v7436_v34  ;;  %v7423_v3 = vadd.f32 %v8055_v52, %v7407_v61  ;;  %v7422_v31 = vadd.f32 %v8054_v7, %v7406_v63  ;;  %v7278_v7 = vld [vmem:[#allocation3 + $0xf0] sm:$0xff]  ;;  %v7295_v34 = vmul.f32 %v7279_v41, %v13071_v11  ;;  %v8065_v63 = vld [vmem:[%s13070_s4 + $0xf8] sm:$0xff] }
 0x9e6   : > { %v7357_v30 = vpop.permute.xlu1 %7356  ;;  %v7353_v22 = vpop.permute.xlu0 %7352  ;;  %v7294_v61 = vmul.f32 %v7278_v7, %v13071_v11 }
 0x9e7   : > { %v7439_v1 = vmax.f32 %v7423_v3, 0.0  ;;  %v7438_v29 = vmax.f32 %v7422_v31, 0.0  ;;  %v7409_v21 = vmul.f32 %v7357_v30, %v7287_v49  ;;  %v7408_v13 = vmul.f32 %v7353_v22, %v7286_v39 }
 0x9e9   : > { %8071 = vst.msk [vmem:[%s12593_s10 + $0xa8] sm:$0xff] %vm491_vm0, %v7439_v1  ;;  %8070 = vst.msk [vmem:[%s12593_s10 + $0xa0] sm:$0xff] %vm491_vm0, %v7438_v29  ;;  %v7425_v6 = vadd.f32 %v8057_v43, %v7409_v21  ;;  %v7424_v5 = vadd.f32 %v8056_v28, %v7408_v13 }
 0x9ea   : > { %v7368_v45 = vpop.permute.xlu1 %7367  ;;  %v7364_v19 = vpop.permute.xlu0 %7363 }
 0x9eb   : > { %v7441_v8 = vmax.f32 %v7425_v6, 0.0  ;;  %v7440_v51 = vmax.f32 %v7424_v5, 0.0  ;;  %v7411_v12 = vmul.f32 %v7368_v45, %v7289_v55  ;;  %v7410_v47 = vmul.f32 %v7364_v19, %v7288_v56 }
 0x9ed   : > { %8073 = vst.msk [vmem:[%s12593_s10 + $0xb8] sm:$0xff] %vm491_vm0, %v7441_v8  ;;  %8072 = vst.msk [vmem:[%s12593_s10 + $0xb0] sm:$0xff] %vm491_vm0, %v7440_v51  ;;  %v7427_v53 = vadd.f32 %v8059_v54, %v7411_v12  ;;  %v7426_v40 = vadd.f32 %v8058_v16, %v7410_v47 }
 0x9ee   : > { %v7379_v35 = vpop.permute.xlu1 %7378  ;;  %v7375_v46 = vpop.permute.xlu0 %7374 }
 0x9ef   : > { %v7443_v27 = vmax.f32 %v7427_v53, 0.0  ;;  %v7442_v20 = vmax.f32 %v7426_v40, 0.0  ;;  %v7413_v44 = vmul.f32 %v7379_v35, %v7291_v18  ;;  %v7412_v32 = vmul.f32 %v7375_v46, %v7290_v48 }
 0x9f1   : > { %8075 = vst.msk [vmem:[%s12593_s10 + $0xc8] sm:$0xff] %vm491_vm0, %v7443_v27  ;;  %8074 = vst.msk [vmem:[%s12593_s10 + $0xc0] sm:$0xff] %vm491_vm0, %v7442_v20  ;;  %v7429_v37 = vadd.f32 %v8061_v57, %v7413_v44  ;;  %v7428_v10 = vadd.f32 %v8060_v15, %v7412_v32 }
 0x9f2   : > { %v7390_v33 = vpop.permute.xlu1 %7389  ;;  %v7386_v2 = vpop.permute.xlu0 %7385 }
 0x9f3   : > { %v7445_v58 = vmax.f32 %v7429_v37, 0.0  ;;  %v7444_v42 = vmax.f32 %v7428_v10, 0.0  ;;  %v7415_v26 = vmul.f32 %v7390_v33, %v7293_v4  ;;  %v7414_v52 = vmul.f32 %v7386_v2, %v7292_v50 }
 0x9f5   : > { %8077 = vst.msk [vmem:[%s12593_s10 + $0xd8] sm:$0xff] %vm491_vm0, %v7445_v58  ;;  %8076 = vst.msk [vmem:[%s12593_s10 + $0xd0] sm:$0xff] %vm491_vm0, %v7444_v42  ;;  %v7431_v25 = vadd.f32 %v8063_v14, %v7415_v26  ;;  %v7430_v36 = vadd.f32 %v8062_v17, %v7414_v52 }
 0x9f6   : > { %v7401_v62 = vpop.permute.xlu1 %7400  ;;  %v7397_v3 = vpop.permute.xlu0 %7396 }
 0x9f7   : > { %v7447_v31 = vmax.f32 %v7431_v25, 0.0  ;;  %v7446_v49 = vmax.f32 %v7430_v36, 0.0  ;;  %v7417_v39 = vmul.f32 %v7401_v62, %v7295_v34  ;;  %v7416_v43 = vmul.f32 %v7397_v3, %v7294_v61 }
 0x9f9   : > { %8079 = vst.msk [vmem:[%s12593_s10 + $0xe8] sm:$0xff] %vm491_vm0, %v7447_v31  ;;  %8078 = vst.msk [vmem:[%s12593_s10 + $0xe0] sm:$0xff] %vm491_vm0, %v7446_v49  ;;  %v7433_v30 = vadd.f32 %v8065_v63, %v7417_v39  ;;  %v7432_v11 = vadd.f32 %v8064_v59, %v7416_v43 }
 0x9fb   : > { %v7449_v28 = vmax.f32 %v7433_v30, 0.0  ;;  %v7448_v22 = vmax.f32 %v7432_v11, 0.0 }
 0x9fd   : > { %8081 = vst.msk [vmem:[%s12593_s10 + $0xf8] sm:$0xff] %vm491_vm0, %v7449_v28  ;;  %8080 = vst.msk [vmem:[%s12593_s10 + $0xf0] sm:$0xff] %vm491_vm0, %v7448_v22 }
 0x9fe   : > { %9437 = shalt.err (!%p9434_p11)
}
 0x9ff   : > { %s9438_s14 = scalar_lea.hbm %s12716_s28, 4096  ;;  %s9442_s17 = scalar_lea.hbm %s13077_s11, 8192 }
 0xa00   : > { %p9439_p0 = scmp.ne.s32.totalorder %s12716_s28, %s9438_s14  ;;  %p9443_p6 = scmp.lt.u32.totalorder %s12716_s28, %s13077_s11 }
 0xa01   : > { %p9444_p3 = scmp.lt.u32.totalorder %s9442_s17, %s9438_s14  ;;  %p9446_p5 = scmp.lt.u32.totalorder %s9438_s14, %s12716_s28 }
 0xa02   : > { %p9440_p2 = pnand %p9439_p0, %p13078_p12 }
 0xa03   : > { %p9445_p13 = por %p9444_p3, %p9443_p6 }
 0xa04   : > { %p9441_p7 = pneg %p9440_p2 }
 0xa05   : > { %p9447_p8 = por %p9446_p5, %p9445_p13 }
 0xa07   : > { %p9448_p9 = pnand %p9447_p8, %p9441_p7 }
 0xa09   : > { %9451 = shalt.err (!%p9448_p9)
}
 0xa0a   : > { %s9510_s19 = smov 128   ;;  %s9511_s13 = smov 8  }
 0xa0b   : > { %9293 = dma.vmem_to_hbm [thread:$0]  (%p13078_p12), %s12718_s27, 4096, %s12716_s28, %s7468_s20, %s9510_s19, %s9510_s19, %s9511_s13  }
 0xa0c PF: > { %s13079_s24 = sld [smem:[#allocation15_spill]]  ;;  %s13080_s12 = sld [smem:[#allocation23_spill]] }
 0xa0d   : > { %s13081_s26 = sld [smem:[#allocation18_spill]] }
 0xa12   : > { %s7496_s0 = sand.u32 1, %s13079_s24   ;;  %p13082_p10 = scmp.ne.s32.totalorder %s13080_s12, 0 }
 0xa13   : > { %p13083_p1 = scmp.ge.s32.totalorder %s13081_s26, 2  ;;  %s7497_s2 = scalar_lea.sflag [#allocation8], %s7496_s0 }
 0xa15   : > { %p9304_p4 = pnand %p13083_p1, %p13082_p10 }
 0xa17   : > { %9477 = dma.done.wait (!%p9304_p4), %s7497_s2, 4096  }
 0xa18   : > { %9479 = vsyncadd (!%p9304_p4), %s7497_s2, 4294963200  ;;  %s13084_s16 = sld [smem:[#allocation20_spill]]  ;;  %s13085_s13 = sld [smem:[#allocation16_spill]] }
 0xa19   : > { %s13086_s14 = sld [smem:[#allocation17_spill]]  ;;  %s13087_s15 = sld [smem:[#allocation21_spill]] }
 0xa1e   : > { %p24_p11 = scmp.ge.s32.totalorder %s13084_s16, 4  }
 0xa20   :  { %26 = sbr.rel (!%p24_p11) target bundleno = 18 (0x12), region = 125 }
 0xa27   :  { %7502 = vsyncpa [#allocation7], 1 }
 0xa28   :  { %7504 = vsyncpa [#allocation7 + $0x1], 1 }
 0xa29   :  { %7505 = vsyncpa [#allocation8], 1 }
 0xa2a   :  { %7507 = vsyncpa [#allocation8 + $0x1], 1 }
 0xa2b   :  { %7508 = vsyncpa [#allocation9], 1 }
 0xa2c   :  { %7510 = vsyncpa [#allocation9 + $0x1], 1 }

</bundles_post_ra>
